<compile_context>
chip_gen: v6e
topology: v6e:2x2x1
jax: 0.10.0
libtpu: 0.0.40
codegen_flags: <defaults>
</compile_context>

<pallas_src>
import math

import jax
import jax.numpy as jnp
import numpy as np
from jax.experimental import pallas as pl
from jax.experimental.pallas import tpu as pltpu

_LN_EPS = 1e-5                      # PyTorch nn.LayerNorm default
_INV_SQRT2 = 1.0 / math.sqrt(2.0)


def _layernorm(y, gamma, beta):
    mu = jnp.mean(y, axis=-1, keepdims=True)
    var = jnp.mean((y - mu) ** 2, axis=-1, keepdims=True)
    return (y - mu) * jax.lax.rsqrt(var + _LN_EPS) * gamma + beta


def residual_block_kernel(
    x_ref,                     # (TL, C)   f32
    dprime_ref,                # (1, 2C)   f32   == (emb @ Wd + bd) @ Win + b_in
    win_ref,                   # (C, 2C)   bf16  input_projection weight
    ln_ref,                    # (4, 2C)   f32   rows: g1, b1, g2, b2
    wres_ref,                  # (C, C)    bf16  output_projection residual half
    wskip_ref,                 # (C, C)    bf16  output_projection skip half
    bout_ref,                  # (2, C)    f32   rows: bres, bskip
    res_ref, skip_ref,         # (TL, C)   outputs
):
    x = x_ref[...]                                                   # (TL, C) f32
    C = x.shape[-1]

    # input_projection fused with diffusion projection (linearity):
    # (x + d) @ Win + b_in == x @ Win + d'
    y = jnp.dot(x.astype(win_ref.dtype), win_ref[...],
                preferred_element_type=jnp.float32) + dprime_ref[...]  # (TL, 2C)

    g1 = ln_ref[0:1, :]
    b1 = ln_ref[1:2, :]
    g2 = ln_ref[2:3, :]
    b2 = ln_ref[3:4, :]

    # TODO(synk): S4_1 state-space layer not defined in the snippet; identity.
    y = _layernorm(y, g1, b1)
    # TODO(synk): S4_2 state-space layer not defined in the snippet; identity.
    y = _layernorm(y, g2, b2)

    # gated activation: torch.chunk(y, 2, dim=channel)  (C is 128-aligned)
    gate = y[:, :C]
    filt = y[:, C:]
    g = (jax.nn.sigmoid(gate) * jnp.tanh(filt)).astype(wres_ref.dtype)  # (TL, C)

    # output_projection split into residual / skip halves -> lane-dense writes.
    residual = jnp.dot(g, wres_ref[...],
                       preferred_element_type=jnp.float32) + bout_ref[0:1, :]
    skip = jnp.dot(g, wskip_ref[...],
                   preferred_element_type=jnp.float32) + bout_ref[1:2, :]

    res_ref[...] = ((x + residual) * _INV_SQRT2).astype(res_ref.dtype)
    skip_ref[...] = skip.astype(skip_ref.dtype)


def _pick_tile_l(L, target=512):
    """Largest divisor of L that is <= target and a multiple of 8 (fallback L)."""
    if L <= target:
        return L
    for tl in range(target, 7, -1):
        if L % tl == 0 and tl % 8 == 0:
            return tl
    return L


def residual_block(x, diffusion_emb, params, *, tile_l=None,
                   matmul_dtype=jnp.bfloat16):
    """x: (B, L, C) float32 (channels-last); diffusion_emb: (B, E) float32."""
    B, L, C = x.shape
    wd, bd, win, bin_, g1, be1, g2, be2, wout, bo = params

    # Hoist the M=1 diffusion projection out of the kernel and fold the
    # input-projection bias:  d' = (emb @ Wd + bd) @ Win + b_in   (tiny XLA op).
    d = diffusion_emb @ wd + bd                      # (B, C)
    dprime = (d @ win + bin_)[:, None, :]            # (B, 1, 2C)

    # Split output projection into lane-aligned residual / skip halves.
    wres, wskip = wout[:, :C], wout[:, C:]
    bout = jnp.concatenate([bo[:, :C], bo[:, C:]], axis=0)   # (2, C)

    # Stack the LayerNorm affine params into one resident block.
    ln_params = jnp.concatenate([g1, be1, g2, be2], axis=0)  # (4, 2C)

    # Feed the MXU bf16 operands (f32 accumulation inside the kernel).
    win_m = win.astype(matmul_dtype)
    wres_m = wres.astype(matmul_dtype)
    wskip_m = wskip.astype(matmul_dtype)

    TL = tile_l if tile_l is not None else _pick_tile_l(L)
    assert L % TL == 0, f"sequence length {L} must be divisible by tile {TL}"
    grid = (B, L // TL)

    in_specs = [
        pl.BlockSpec((None, TL, C), lambda b, l: (b, l, 0)),      # x tile
        pl.BlockSpec((None, 1, 2 * C), lambda b, l: (b, 0, 0)),   # d' (per batch)
        pl.BlockSpec((C, 2 * C), lambda b, l: (0, 0)),            # Win (resident)
        pl.BlockSpec((4, 2 * C), lambda b, l: (0, 0)),            # ln params (resident)
        pl.BlockSpec((C, C), lambda b, l: (0, 0)),                # Wout residual half
        pl.BlockSpec((C, C), lambda b, l: (0, 0)),                # Wout skip half
        pl.BlockSpec((2, C), lambda b, l: (0, 0)),                # output biases
    ]
    out_specs = [
        pl.BlockSpec((None, TL, C), lambda b, l: (b, l, 0)),      # (x+residual)/sqrt(2)
        pl.BlockSpec((None, TL, C), lambda b, l: (b, l, 0)),      # skip
    ]

    grid_spec = pltpu.PrefetchScalarGridSpec(
        num_scalar_prefetch=0,
        grid=grid,
        in_specs=in_specs,
        out_specs=out_specs,
    )

    res, skip = pl.pallas_call(
        residual_block_kernel,
        out_shape=(
            jax.ShapeDtypeStruct((B, L, C), x.dtype),
            jax.ShapeDtypeStruct((B, L, C), x.dtype),
        ),
        grid_spec=grid_spec,
        compiler_params=pltpu.CompilerParams(
            dimension_semantics=("parallel", "parallel"),
            vmem_limit_bytes=32 * 1024 * 1024,
        ),
    )(x, dprime, win_m, ln_params, wres_m, wskip_m, bout)
    return res, skip


def reference_matched(x, diffusion_emb, params, matmul_dtype=jnp.bfloat16):
    """Pure-JAX reference with the SAME compute recipe as the kernel
    (bf16 MXU operands, f32 accumulation, folded diffusion projection)."""
    wd, bd, win, bin_, g1, be1, g2, be2, wout, bo = params
    C = x.shape[-1]
    d = diffusion_emb @ wd + bd
    dprime = d @ win + bin_
    y = jnp.einsum('blc,cd->bld', x.astype(matmul_dtype), win.astype(matmul_dtype),
                   preferred_element_type=jnp.float32) + dprime[:, None, :]
    y = _layernorm(y, g1, be1)
    y = _layernorm(y, g2, be2)
    gate, filt = y[..., :C], y[..., C:]
    g = (jax.nn.sigmoid(gate) * jnp.tanh(filt)).astype(matmul_dtype)
    z = jnp.einsum('blc,cd->bld', g, wout.astype(matmul_dtype),
                   preferred_element_type=jnp.float32) + bo
    residual, skip = z[..., :C], z[..., C:]
    return (x + residual) * _INV_SQRT2, skip


def reference_f32(x, diffusion_emb, params):
    """Pure-f32 reference matching the PyTorch module arithmetic exactly."""
    wd, bd, win, bin_, g1, be1, g2, be2, wout, bo = params
    C = x.shape[-1]
    d = diffusion_emb @ wd + bd
    y = x + d[:, None, :]
    y = jnp.einsum('blc,cd->bld', y, win) + bin_
    y = _layernorm(y, g1, be1)
    y = _layernorm(y, g2, be2)
    gate, filt = y[..., :C], y[..., C:]
    g = jax.nn.sigmoid(gate) * jnp.tanh(filt)
    z = jnp.einsum('blc,cd->bld', g, wout) + bo
    residual, skip = z[..., :C], z[..., C:]
    return (x + residual) * _INV_SQRT2, skip


if __name__ == "__main__":
    # num_tokens C=128 (lane-dense), embedding_dim E=32, batch B=2, L=1024
    # -> grid (B, L/TL) = (2, 2) with the default TL=512.
    B, L, C, E = 2, 1024, 128, 32
    key = jax.random.PRNGKey(0)
    ks = jax.random.split(key, 8)

    x = jax.random.normal(ks[0], (B, L, C), jnp.float32)
    diffusion_emb = jax.random.normal(ks[1], (B, E), jnp.float32)

    params = (
        0.1 * jax.random.normal(ks[2], (E, C), jnp.float32),      # diffusion Linear weight (transposed)
        0.1 * jax.random.normal(ks[3], (1, C), jnp.float32),      # diffusion Linear bias
        0.1 * jax.random.normal(ks[4], (C, 2 * C), jnp.float32),  # input_projection weight (transposed, k=1)
        0.1 * jax.random.normal(ks[5], (1, 2 * C), jnp.float32),  # input_projection bias
        jnp.ones((1, 2 * C), jnp.float32),                        # ln1 gamma
        jnp.zeros((1, 2 * C), jnp.float32),                       # ln1 beta
        jnp.ones((1, 2 * C), jnp.float32),                        # ln2 gamma
        jnp.zeros((1, 2 * C), jnp.float32),                       # ln2 beta
        0.1 * jax.random.normal(ks[6], (C, 2 * C), jnp.float32),  # output_projection weight (transposed, k=1)
        0.1 * jax.random.normal(ks[7], (1, 2 * C), jnp.float32),  # output_projection bias
    )

    res, skip = residual_block(x, diffusion_emb, params)
    jax.block_until_ready((res, skip))

    # Tight check vs a reference using the identical bf16-MXU / f32-accum recipe.
    res_m, skip_m = reference_matched(x, diffusion_emb, params)
    np.testing.assert_allclose(np.asarray(res), np.asarray(res_m), rtol=2e-3, atol=2e-3)
    np.testing.assert_allclose(np.asarray(skip), np.asarray(skip_m), rtol=2e-3, atol=2e-3)

    # Loose sanity check vs the full-f32 PyTorch-equivalent arithmetic
    # (bf16 matmul operands introduce a small, LayerNorm-damped error).
    res_f, skip_f = reference_f32(x, diffusion_emb, params)
    np.testing.assert_allclose(np.asarray(res), np.asarray(res_f), rtol=5e-2, atol=5e-2)
    np.testing.assert_allclose(np.asarray(skip), np.asarray(skip_f), rtol=5e-2, atol=5e-2)

    print("KERNEL_OK")
</pallas_src>

<mosaic_0001>
module attributes {stable_mosaic.version = 11 : i64} {
  func.func @residual_block_kernel(%arg0: i32, %arg1: i32, %arg2: memref<1x512x128xf32, #tpu.memory_space<vmem>>, %arg3: memref<1x1x256xf32, #tpu.memory_space<vmem>>, %arg4: memref<128x256xbf16, #tpu.memory_space<vmem>>, %arg5: memref<4x256xf32, #tpu.memory_space<vmem>>, %arg6: memref<128x128xbf16, #tpu.memory_space<vmem>>, %arg7: memref<128x128xbf16, #tpu.memory_space<vmem>>, %arg8: memref<2x128xf32, #tpu.memory_space<vmem>>, %arg9: memref<1x512x128xf32, #tpu.memory_space<vmem>>, %arg10: memref<1x512x128xf32, #tpu.memory_space<vmem>>) attributes {dimension_semantics = [#tpu.dimension_semantics<parallel>, #tpu.dimension_semantics<parallel>], iteration_bounds = array<i64: 2, 2>, scalar_prefetch = 0 : i64, scratch_operands = 0 : i64, tpu.core_type = #tpu.core_type<tc>, window_params = [{transform_indices = @transform_0, window_bounds = array<i64: 1, 512, 128>}, {transform_indices = @transform_1, window_bounds = array<i64: 1, 1, 256>}, {pipeline_mode = #tpu.pipeline_mode<synchronous>, transform_indices = @transform_2, window_bounds = array<i64: 128, 256>}, {pipeline_mode = #tpu.pipeline_mode<synchronous>, transform_indices = @transform_3, window_bounds = array<i64: 4, 256>}, {pipeline_mode = #tpu.pipeline_mode<synchronous>, transform_indices = @transform_4, window_bounds = array<i64: 128, 128>}, {pipeline_mode = #tpu.pipeline_mode<synchronous>, transform_indices = @transform_5, window_bounds = array<i64: 128, 128>}, {pipeline_mode = #tpu.pipeline_mode<synchronous>, transform_indices = @transform_6, window_bounds = array<i64: 2, 128>}, {transform_indices = @transform_7, window_bounds = array<i64: 1, 512, 128>}, {transform_indices = @transform_8, window_bounds = array<i64: 1, 512, 128>}]} {
    %c0 = arith.constant 0 : index
    %c0_0 = arith.constant 0 : index
    %c0_1 = arith.constant 0 : index
    %0 = vector.load %arg2[%c0, %c0_0, %c0_1] : memref<1x512x128xf32, #tpu.memory_space<vmem>>, vector<1x512x128xf32>
    %1 = vector.shape_cast %0 : vector<1x512x128xf32> to vector<512x128xf32>
    %2 = arith.truncf %1 : vector<512x128xf32> to vector<512x128xbf16>
    %c0_2 = arith.constant 0 : index
    %c0_3 = arith.constant 0 : index
    %3 = vector.load %arg4[%c0_2, %c0_3] : memref<128x256xbf16, #tpu.memory_space<vmem>>, vector<128x256xbf16>
    %cst = arith.constant dense<0.000000e+00> : vector<512x256xf32>
    %4 = tpu.matmul %2, %3, %cst {dimension_numbers = #tpu.dot_dimension_numbers<[1], [0], [0], [1], [0, 0, 1, 1], [], []>} : vector<512x128xbf16>, vector<128x256xbf16>, vector<512x256xf32> -> vector<512x256xf32>
    %c0_4 = arith.constant 0 : index
    %c0_5 = arith.constant 0 : index
    %c0_6 = arith.constant 0 : index
    %5 = vector.load %arg3[%c0_4, %c0_5, %c0_6] : memref<1x1x256xf32, #tpu.memory_space<vmem>>, vector<1x1x256xf32>
    %6 = vector.shape_cast %5 : vector<1x1x256xf32> to vector<1x256xf32>
    %7 = vector.broadcast %6 : vector<1x256xf32> to vector<512x256xf32>
    %8 = arith.addf %4, %7 : vector<512x256xf32>
    %c0_7 = arith.constant 0 : index
    %c0_8 = arith.constant 0 : index
    %9 = vector.load %arg5[%c0_7, %c0_8] : memref<4x256xf32, #tpu.memory_space<vmem>>, vector<1x256xf32>
    %c1 = arith.constant 1 : index
    %c0_9 = arith.constant 0 : index
    %10 = vector.load %arg5[%c1, %c0_9] : memref<4x256xf32, #tpu.memory_space<vmem>>, vector<1x256xf32>
    %c2 = arith.constant 2 : index
    %c0_10 = arith.constant 0 : index
    %11 = vector.load %arg5[%c2, %c0_10] : memref<4x256xf32, #tpu.memory_space<vmem>>, vector<1x256xf32>
    %c3 = arith.constant 3 : index
    %c0_11 = arith.constant 0 : index
    %12 = vector.load %arg5[%c3, %c0_11] : memref<4x256xf32, #tpu.memory_space<vmem>>, vector<1x256xf32>
    %cst_12 = arith.constant dense<0.000000e+00> : vector<512xf32>
    %13 = vector.multi_reduction <add>, %8, %cst_12 [1] : vector<512x256xf32> to vector<512xf32>
    %14 = vector.shape_cast %13 : vector<512xf32> to vector<512x1xf32>
    %cst_13 = arith.constant 2.560000e+02 : f32
    %15 = vector.broadcast %cst_13 : f32 to vector<512x1xf32>
    %16 = arith.divf %14, %15 : vector<512x1xf32>
    %17 = vector.broadcast %16 : vector<512x1xf32> to vector<512x256xf32>
    %18 = arith.subf %8, %17 : vector<512x256xf32>
    %19 = arith.mulf %18, %18 : vector<512x256xf32>
    %cst_14 = arith.constant dense<0.000000e+00> : vector<512xf32>
    %20 = vector.multi_reduction <add>, %19, %cst_14 [1] : vector<512x256xf32> to vector<512xf32>
    %21 = vector.shape_cast %20 : vector<512xf32> to vector<512x1xf32>
    %cst_15 = arith.constant 2.560000e+02 : f32
    %22 = vector.broadcast %cst_15 : f32 to vector<512x1xf32>
    %23 = arith.divf %21, %22 : vector<512x1xf32>
    %24 = vector.broadcast %16 : vector<512x1xf32> to vector<512x256xf32>
    %25 = arith.subf %8, %24 : vector<512x256xf32>
    %cst_16 = arith.constant 9.99999974E-6 : f32
    %26 = vector.broadcast %cst_16 : f32 to vector<512x1xf32>
    %27 = arith.addf %23, %26 : vector<512x1xf32>
    %28 = math.rsqrt %27 : vector<512x1xf32>
    %29 = vector.broadcast %28 : vector<512x1xf32> to vector<512x256xf32>
    %30 = arith.mulf %25, %29 : vector<512x256xf32>
    %31 = vector.broadcast %9 : vector<1x256xf32> to vector<512x256xf32>
    %32 = arith.mulf %30, %31 : vector<512x256xf32>
    %33 = vector.broadcast %10 : vector<1x256xf32> to vector<512x256xf32>
    %34 = arith.addf %32, %33 : vector<512x256xf32>
    %cst_17 = arith.constant dense<0.000000e+00> : vector<512xf32>
    %35 = vector.multi_reduction <add>, %34, %cst_17 [1] : vector<512x256xf32> to vector<512xf32>
    %36 = vector.shape_cast %35 : vector<512xf32> to vector<512x1xf32>
    %cst_18 = arith.constant 2.560000e+02 : f32
    %37 = vector.broadcast %cst_18 : f32 to vector<512x1xf32>
    %38 = arith.divf %36, %37 : vector<512x1xf32>
    %39 = vector.broadcast %38 : vector<512x1xf32> to vector<512x256xf32>
    %40 = arith.subf %34, %39 : vector<512x256xf32>
    %41 = arith.mulf %40, %40 : vector<512x256xf32>
    %cst_19 = arith.constant dense<0.000000e+00> : vector<512xf32>
    %42 = vector.multi_reduction <add>, %41, %cst_19 [1] : vector<512x256xf32> to vector<512xf32>
    %43 = vector.shape_cast %42 : vector<512xf32> to vector<512x1xf32>
    %cst_20 = arith.constant 2.560000e+02 : f32
    %44 = vector.broadcast %cst_20 : f32 to vector<512x1xf32>
    %45 = arith.divf %43, %44 : vector<512x1xf32>
    %46 = vector.broadcast %38 : vector<512x1xf32> to vector<512x256xf32>
    %47 = arith.subf %34, %46 : vector<512x256xf32>
    %cst_21 = arith.constant 9.99999974E-6 : f32
    %48 = vector.broadcast %cst_21 : f32 to vector<512x1xf32>
    %49 = arith.addf %45, %48 : vector<512x1xf32>
    %50 = math.rsqrt %49 : vector<512x1xf32>
    %51 = vector.broadcast %50 : vector<512x1xf32> to vector<512x256xf32>
    %52 = arith.mulf %47, %51 : vector<512x256xf32>
    %53 = vector.broadcast %11 : vector<1x256xf32> to vector<512x256xf32>
    %54 = arith.mulf %52, %53 : vector<512x256xf32>
    %55 = vector.broadcast %12 : vector<1x256xf32> to vector<512x256xf32>
    %56 = arith.addf %54, %55 : vector<512x256xf32>
    %57 = vector.extract_strided_slice %56 {offsets = [0, 0], sizes = [512, 128], strides = [1, 1]} : vector<512x256xf32> to vector<512x128xf32>
    %58 = vector.extract_strided_slice %56 {offsets = [0, 128], sizes = [512, 128], strides = [1, 1]} : vector<512x256xf32> to vector<512x128xf32>
    %59 = arith.negf %57 : vector<512x128xf32>
    %60 = math.exp %59 : vector<512x128xf32>
    %cst_22 = arith.constant 1.000000e+00 : f32
    %61 = vector.broadcast %cst_22 : f32 to vector<512x128xf32>
    %62 = arith.addf %61, %60 : vector<512x128xf32>
    %63 = arith.divf %61, %62 : vector<512x128xf32>
    %64 = math.tanh %58 : vector<512x128xf32>
    %65 = arith.mulf %63, %64 : vector<512x128xf32>
    %66 = arith.truncf %65 : vector<512x128xf32> to vector<512x128xbf16>
    %c0_23 = arith.constant 0 : index
    %c0_24 = arith.constant 0 : index
    %67 = vector.load %arg6[%c0_23, %c0_24] : memref<128x128xbf16, #tpu.memory_space<vmem>>, vector<128x128xbf16>
    %cst_25 = arith.constant dense<0.000000e+00> : vector<512x128xf32>
    %68 = tpu.matmul %66, %67, %cst_25 {dimension_numbers = #tpu.dot_dimension_numbers<[1], [0], [0], [1], [0, 0, 1, 1], [], []>} : vector<512x128xbf16>, vector<128x128xbf16>, vector<512x128xf32> -> vector<512x128xf32>
    %c0_26 = arith.constant 0 : index
    %c0_27 = arith.constant 0 : index
    %69 = vector.load %arg8[%c0_26, %c0_27] : memref<2x128xf32, #tpu.memory_space<vmem>>, vector<1x128xf32>
    %70 = vector.broadcast %69 : vector<1x128xf32> to vector<512x128xf32>
    %71 = arith.addf %68, %70 : vector<512x128xf32>
    %c0_28 = arith.constant 0 : index
    %c0_29 = arith.constant 0 : index
    %72 = vector.load %arg7[%c0_28, %c0_29] : memref<128x128xbf16, #tpu.memory_space<vmem>>, vector<128x128xbf16>
    %cst_30 = arith.constant dense<0.000000e+00> : vector<512x128xf32>
    %73 = tpu.matmul %66, %72, %cst_30 {dimension_numbers = #tpu.dot_dimension_numbers<[1], [0], [0], [1], [0, 0, 1, 1], [], []>} : vector<512x128xbf16>, vector<128x128xbf16>, vector<512x128xf32> -> vector<512x128xf32>
    %c1_31 = arith.constant 1 : index
    %c0_32 = arith.constant 0 : index
    %74 = vector.load %arg8[%c1_31, %c0_32] : memref<2x128xf32, #tpu.memory_space<vmem>>, vector<1x128xf32>
    %75 = vector.broadcast %74 : vector<1x128xf32> to vector<512x128xf32>
    %76 = arith.addf %73, %75 : vector<512x128xf32>
    %77 = arith.addf %1, %71 : vector<512x128xf32>
    %cst_33 = arith.constant 0.707106769 : f32
    %78 = vector.broadcast %cst_33 : f32 to vector<512x128xf32>
    %79 = arith.mulf %77, %78 : vector<512x128xf32>
    %c0_34 = arith.constant 0 : index
    %c0_35 = arith.constant 0 : index
    %c0_36 = arith.constant 0 : index
    %80 = vector.load %arg9[%c0_34, %c0_35, %c0_36] : memref<1x512x128xf32, #tpu.memory_space<vmem>>, vector<1x512x128xf32>
    %81 = vector.shape_cast %80 : vector<1x512x128xf32> to vector<512x128xf32>
    %82 = vector.shape_cast %79 : vector<512x128xf32> to vector<1x512x128xf32>
    tpu.vector_store %arg9[%c0_34, %c0_35, %c0_36], %82 {strides = array<i32>} : memref<1x512x128xf32, #tpu.memory_space<vmem>>, vector<1x512x128xf32>,
    %c0_37 = arith.constant 0 : index
    %c0_38 = arith.constant 0 : index
    %c0_39 = arith.constant 0 : index
    %83 = vector.load %arg10[%c0_37, %c0_38, %c0_39] : memref<1x512x128xf32, #tpu.memory_space<vmem>>, vector<1x512x128xf32>
    %84 = vector.shape_cast %83 : vector<1x512x128xf32> to vector<512x128xf32>
    %85 = vector.shape_cast %76 : vector<512x128xf32> to vector<1x512x128xf32>
    tpu.vector_store %arg10[%c0_37, %c0_38, %c0_39], %85 {strides = array<i32>} : memref<1x512x128xf32, #tpu.memory_space<vmem>>, vector<1x512x128xf32>,
    return
  }
  func.func @transform_0(%arg0: i32, %arg1: i32) -> (i32, i32, i32) {
    %c0_i32 = arith.constant 0 : i32
    %c0_i32_0 = arith.constant 0 : i32
    return %arg0, %arg1, %c0_i32 : i32, i32, i32
  }
  func.func @transform_1(%arg0: i32, %arg1: i32) -> (i32, i32, i32) {
    %c0_i32 = arith.constant 0 : i32
    %c0_i32_0 = arith.constant 0 : i32
    %c0_i32_1 = arith.constant 0 : i32
    return %arg0, %c0_i32, %c0_i32_0 : i32, i32, i32
  }
  func.func @transform_2(%arg0: i32, %arg1: i32) -> (i32, i32) {
    %c0_i32 = arith.constant 0 : i32
    %c0_i32_0 = arith.constant 0 : i32
    %c0_i32_1 = arith.constant 0 : i32
    return %c0_i32, %c0_i32_0 : i32, i32
  }
  func.func @transform_3(%arg0: i32, %arg1: i32) -> (i32, i32) {
    %c0_i32 = arith.constant 0 : i32
    %c0_i32_0 = arith.constant 0 : i32
    %c0_i32_1 = arith.constant 0 : i32
    return %c0_i32, %c0_i32_0 : i32, i32
  }
  func.func @transform_4(%arg0: i32, %arg1: i32) -> (i32, i32) {
    %c0_i32 = arith.constant 0 : i32
    %c0_i32_0 = arith.constant 0 : i32
    %c0_i32_1 = arith.constant 0 : i32
    return %c0_i32, %c0_i32_0 : i32, i32
  }
  func.func @transform_5(%arg0: i32, %arg1: i32) -> (i32, i32) {
    %c0_i32 = arith.constant 0 : i32
    %c0_i32_0 = arith.constant 0 : i32
    %c0_i32_1 = arith.constant 0 : i32
    return %c0_i32, %c0_i32_0 : i32, i32
  }
  func.func @transform_6(%arg0: i32, %arg1: i32) -> (i32, i32) {
    %c0_i32 = arith.constant 0 : i32
    %c0_i32_0 = arith.constant 0 : i32
    %c0_i32_1 = arith.constant 0 : i32
    return %c0_i32, %c0_i32_0 : i32, i32
  }
  func.func @transform_7(%arg0: i32, %arg1: i32) -> (i32, i32, i32) {
    %c0_i32 = arith.constant 0 : i32
    %c0_i32_0 = arith.constant 0 : i32
    return %arg0, %arg1, %c0_i32 : i32, i32, i32
  }
  func.func @transform_8(%arg0: i32, %arg1: i32) -> (i32, i32, i32) {
    %c0_i32 = arith.constant 0 : i32
    %c0_i32_0 = arith.constant 0 : i32
    return %arg0, %arg1, %c0_i32 : i32, i32, i32
  }
}

</mosaic_0001>

<bundles_post_ra>
// kernel: tpu_custom_call.1
= control target key start
LH: loop header
LB: loop body
LE: loop exit
PB: predicated region body
PF: predicated region fallthrough
CT: control target
= control target key end

     0   :  { %s11372_s0 = inlined_call_operand.hbm [shape: f32[2,1024,128], index: 0, kind: input, shape index: {}]   ;;  %s11373_s1 = inlined_call_operand.hbm [shape: f32[2,1,256], index: 1, kind: input, shape index: {}]   ;;  %s11374_s2 = inlined_call_operand.hbm [shape: bf16[128,256], index: 2, kind: input, shape index: {}]   ;;  %s11375_s3 = inlined_call_operand.hbm [shape: f32[4,256], index: 3, kind: input, shape index: {}]   ;;  %s11376_s4 = inlined_call_operand.hbm [shape: bf16[128,128], index: 4, kind: input, shape index: {}]   ;;  %s11377_s5 = inlined_call_operand.hbm [shape: bf16[128,128], index: 5, kind: input, shape index: {}]   ;;  %s11378_s6 = inlined_call_operand.vmem [shape: f32[2,128], index: 6, kind: input, shape index: {}]   ;;  %s11379_s7 = inlined_call_operand.hbm [shape: f32[2,1024,128], index: 7, kind: output, shape index: {0}]   ;;  %s11380_s8 = inlined_call_operand.hbm [shape: f32[2,1024,128], index: 8, kind: output, shape index: {1}]  }
   0x1   :  { %11736 = sst [smem:[#allocation135_spill]] %s11374_s2 }
   0x2   :  { %11737 = sst [smem:[#allocation136_spill]] %s11375_s3 }
   0x3   :  { %11738 = sst [smem:[#allocation137_spill]] %s11376_s4 }
   0x4   :  { %11739 = sst [smem:[#allocation138_spill]] %s11377_s5 }
   0x5   :  { %11740 = sst [smem:[#allocation139_spill]] %s11379_s7 }
   0x6   :  { %11741 = sst [smem:[#allocation140_spill]] %s11380_s8 }
   0x7   :  { %14 = vsyncpa [#allocation3], 0 }
   0x8   :  { %16 = vsyncpa [#allocation3 + $0x1], 0 }
   0x9   :  { %17 = vsyncpa [#allocation6], 0 }
   0xa   :  { %19 = vsyncpa [#allocation6 + $0x1], 0 }
   0xb   :  { %20 = vsyncpa [#allocation9], 0 }
   0xc   :  { %21 = vsyncpa [#allocation12], 0 }
   0xd   :  { %22 = vsyncpa [#allocation4], 0 }
   0xe   :  { %24 = vsyncpa [#allocation4 + $0x1], 0 }
   0xf   :  { %25 = vsyncpa [#allocation15], 0 }
  0x10   :  { %27 = vsyncpa [#allocation15 + $0x1], 0  ;;  %s7029_s27 = smov 0   ;;  %s7031_s28 = smov 0  }
  0x11   :  { %s7033_s29 = smov 0   ;;  %s7035_s30 = smov 0  }
  0x12   :  { %s7037_s9 = smov 0   ;;  %s7039_s10 = smov 0  }
  0x13   :  { %s7041_s11 = smov 0   ;;  %s7043_s12 = smov 0  }
  0x14   :  { %s7045_s13 = smov 0   ;;  %s7047_s14 = smov 0  }
  0x15   :  { %s7049_s15 = smov 0  }
  0x16 LB: > { %11742 = sst [smem:[#allocation23_spill]] %s6939_s30  ;;  %s7085_s16 = sadd.s32 4294967295, %s6967_s15   ;;  %s6967_s15 = sphi %s7049_s15, %s33_s15   ;;  %s6963_s14 = sphi %s7047_s14, %s12467_s14   ;;  %s6959_s13 = sphi %s7045_s13, %s12458_s13   ;;  %s6955_s12 = sphi %s7043_s12, %s12466_s12   ;;  %s6951_s11 = sphi %s7041_s11, %s12457_s11   ;;  %s6947_s10 = sphi %s7039_s10, %s12465_s10   ;;  %s6943_s9 = sphi %s7037_s9, %s12464_s9   ;;  %s6939_s30 = sphi %s7035_s30, %s12463_s30   ;;  %s6935_s29 = sphi %s7033_s29, %s12462_s29   ;;  %s6931_s28 = sphi %s7031_s28, %s12461_s28   ;;  %s6927_s27 = sphi %s7029_s27, %s12460_s27  }
  0x17   : > { %11743 = sst [smem:[#allocation24_spill]] %s6955_s12  ;;  %p5365_p0 = scmp.ge.s32.totalorder %s6967_s15, 1 }
  0x18   : > { %11744 = sst [smem:[#allocation25_spill]] %s6959_s13  ;;  %p11393_p1 = scmp.eq.s32.totalorder %s7085_s16, 0 }
  0x19   : > { %p224_p2 = scmp.eq.s32.totalorder %s7085_s16, 3  ;;  %p265_p3 = scmp.lt.s32.totalorder %s6967_s15, 5 }
  0x1a   : > { %s6969_s18 = smov [#allocation7]   ;;  %s6970_s21 = smov [#allocation8]  }
  0x1b   : > { %p7091_p4 = pnand %p5365_p0, %p265_p3  ;;  %s277_s19 = sshll.u32 %s6969_s18, 4  ;;  %s278_s19 = int_to_ptr.vmem [resolvable:$true] %s277_s19 }
  0x1c   : > { %s291_s22 = sshll.u32 %s6970_s21, 4  ;;  %s6971_s23 = smov [#allocation10]   ;;  %s292_s22 = int_to_ptr.vmem [resolvable:$true] %s291_s22 }
  0x1d   : > { %p5760_p5 = pneg %p7091_p4  ;;  %s301_s24 = sshll.u32 %s6971_s23, 4  ;;  %s7103_s24 = int_to_ptr.vmem [resolvable:$true] %s301_s24 }
  0x1e   : > { %s6652_s25 = scalar_lea.vmem %s278_s19, 2048  ;;  %p6660_p11 = scmp.lt.s32.totalorder %s278_s19, %s278_s19 }
  0x1f   : > { %p7099_p6 = pnand %p5760_p5, %p11393_p1  ;;  %p6653_p8 = scmp.ne.s32.totalorder %s278_s19, %s6652_s25 }
  0x20   : > { %p6661_p12 = scmp.lt.s32.totalorder %s6652_s25, %s6652_s25 }
  0x21   : > { %p6643_p7 = pneg %p7099_p6 }
  0x22   : > { %p6662_p13 = por %p6661_p12, %p6660_p11 }
  0x23   : > { %p6655_p9 = pnand %p6653_p8, %p6643_p7 }
  0x25   : > { %p6656_p10 = pneg %p6655_p9 }
  0x27   : > { %p6663_p0 = pnand %p6662_p13, %p6656_p10 }
  0x29   : > { %6666 = shalt.err (!%p6663_p0)
}
  0x2a   : > { %s11383_s26 = smov 128   ;;  %s11384_s18 = smov 8  }
  0x2b   : > { %s11747_s2 = sld [smem:[#allocation135_spill]]  ;;  %s6678_s8 = scalar_lea.vmem %s292_s22, 128 }
  0x2c   : > { %p6679_p3 = scmp.ne.s32.totalorder %s292_s22, %s6678_s8  ;;  %p6686_p9 = scmp.lt.s32.totalorder %s292_s22, %s292_s22 }
  0x2d   : > { %p6687_p10 = scmp.lt.s32.totalorder %s6678_s8, %s6678_s8 }
  0x2e   : > { %p6681_p5 = pnand %p6679_p3, %p6643_p7 }
  0x2f   : > { %p6688_p11 = por %p6687_p10, %p6686_p9 }
  0x30   : > { %p6682_p8 = pneg %p6681_p5 }
  0x31   : > { %5763 = dma.hbm_to_vmem [thread:$0]  (!%p7099_p6), %s11747_s2, 2048, %s278_s19, [#allocation6], %s11383_s26, %s11383_s26, %s11384_s18  }
  0x32   : > { %p6689_p12 = pnand %p6688_p11, %p6682_p8 }
  0x34   : > { %6692 = shalt.err (!%p6689_p12)
}
  0x35   : > { %s11748_s3 = sld [smem:[#allocation136_spill]]  ;;  %s6704_s19 = scalar_lea.vmem %s7103_s24, 1024 }
  0x36   : > { %p6705_p13 = scmp.ne.s32.totalorder %s7103_s24, %s6704_s19  ;;  %p6712_p5 = scmp.lt.s32.totalorder %s7103_s24, %s7103_s24 }
  0x37   : > { %p6713_p8 = scmp.lt.s32.totalorder %s6704_s19, %s6704_s19 }
  0x38   : > { %p6707_p0 = pnand %p6705_p13, %p6643_p7 }
  0x39   : > { %p6714_p9 = por %p6713_p8, %p6712_p5 }
  0x3a   : > { %p6708_p3 = pneg %p6707_p0 }
  0x3b   : > { %5766 = dma.hbm_to_vmem [thread:$0]  (!%p7099_p6), %s11748_s3, 128, %s292_s22, [#allocation9]  }
  0x3c   : > { %p6715_p10 = pnand %p6714_p9, %p6708_p3 }
  0x3e   : > { %6718 = shalt.err (!%p6715_p10)
}
  0x3f   : > { %s6974_s8 = smov 64   ;;  %s6975_s7 = smov 4  }
  0x40   : > { %s11749_s4 = sld [smem:[#allocation137_spill]]  ;;  %s6976_s23 = smov [#allocation11]  }
  0x41   : > { %s314_s25 = sshll.u32 %s6976_s23, 4  ;;  %s315_s25 = int_to_ptr.vmem [resolvable:$true] %s314_s25 }
  0x42   : > { %s6730_s26 = scalar_lea.vmem %s315_s25, 1024  ;;  %p6738_p0 = scmp.lt.s32.totalorder %s315_s25, %s315_s25 }
  0x43   : > { %p6731_p11 = scmp.ne.s32.totalorder %s315_s25, %s6730_s26  ;;  %p6739_p3 = scmp.lt.s32.totalorder %s6730_s26, %s6730_s26 }
  0x45   : > { %p6733_p12 = pnand %p6731_p11, %p6643_p7  ;;  %p6740_p5 = por %p6739_p3, %p6738_p0 }
  0x46   : > { %5769 = dma.hbm_to_vmem [thread:$0]  (!%p7099_p6), %s11749_s4, 1024, %s7103_s24, [#allocation9], %s6974_s8, %s6974_s8, %s6975_s7  }
  0x47   : > { %p6734_p13 = pneg %p6733_p12 }
  0x49   : > { %p6741_p8 = pnand %p6740_p5, %p6734_p13 }
  0x4b   : > { %6744 = shalt.err (!%p6741_p8)
}
  0x4c   : > { %s11750_s5 = sld [smem:[#allocation138_spill]]  ;;  %s5364_s24 = sadd.s32 4294967294, %s6967_s15  }
  0x4d   : > { %s42_s20 = sadd.s32 1, %s6959_s13  ;;  %s45_s26 = sadd.s32 1, %s6963_s14 }
  0x4e   : > { %p43_p7 = scmp.ge.s32.totalorder %s42_s20, 2  ;;  %s54_s18 = sadd.s32 1, %s6947_s10 }
  0x4f   : > { %p61_p9 = scmp.ne.s32.totalorder %s6947_s10, %s6943_s9  ;;  %p11394_p10 = scmp.eq.s32.totalorder %s6967_s15, 0 }
  0x50   : > { %s12469_s20 = smov (%p43_p7, %s42_s20), 0  ;;  %s12471_s26 = smov (!%p43_p7, %s45_s26), %s6963_s14 }
  0x51   : > { %11751 = sst [smem:[#allocation26_spill]] %s12469_s20  ;;  %s50_s21 = ssub.s32 %s6959_s13, %s12469_s20 }
  0x52   : > { %5772 = dma.hbm_to_vmem [thread:$0]  (!%p7099_p6), %s11750_s5, 1024, %s315_s25, [#allocation12], %s6974_s8, %s6974_s8, %s6975_s7  }
  0x53   : > { %p7161_p11 = por %p11394_p10, %p61_p9  ;;  %p47_p6 = scmp.ge.s32.totalorder %s12471_s26, 2 }
  0x54   : > { %p67_p12 = scmp.ne.s32.totalorder %s6943_s9, %s6939_s30  ;;  %p7169_p13 = por %p224_p2, %p61_p9 }
  0x55   : > { %p230_p0 = scmp.eq.s32.totalorder %s5364_s24, 3  ;;  %s12473_s26 = smov (%p47_p6, %s12471_s26), 0 }
  0x56   : > { %s11753_s7 = scalar_select %p7169_p13, 1, 0 }
  0x57   : > { %11755 = sst [smem:[#allocation28_spill]] %s12473_s26  ;;  %p7177_p3 = por %p11393_p1, %p67_p12 }
  0x58   : > { %11754 = sst [smem:[#allocation27_spill]] %s11753_s7  ;;  %p7181_p5 = por %p230_p0, %p67_p12 }
  0x59   : > { %s7187_s25 = ssub.s32 %s6963_s14, %s12473_s26  ;;  %p11392_p2 = scmp.lt.s32.totalorder %s6967_s15, 4 }
  0x5a   : > { %s11757_s23 = scalar_select %p7181_p5, 1, 0 }
  0x5b   : > { %s51_s19 = sor.u32 %s50_s21, %s7187_s25  ;;  %p78_p8 = scmp.eq.s32.totalorder %s7187_s25, 0 }
  0x5c   : > { %11758 = sst [smem:[#allocation29_spill]] %s11757_s23  ;;  %p52_p7 = scmp.eq.s32.totalorder %s51_s19, 0 }
  0x5d   : > { %s331_s24 = sand.u32 1, %s6947_s10   ;;  %s5372_s4 = sshll.u32 %s6959_s13, 6 }
  0x5e   : > { %s5371_s2 = sshll.u32 %s331_s24, 9  ;;  %s5373_s5 = sshll.u32 %s6963_s14, 7 }
  0x5f   : > { %s7194_s3 = scalar_select %p52_p7, %s6947_s10, %s54_s18  }
  0x60   : > { %s335_s20 = scalar_lea.vmem [#allocation2], %s5371_s2  ;;  %s341_s7 = sadd.s32 %s5373_s5, %s5372_s4 }
  0x61   : > { %s344_s30 = sshll.u32 %s335_s20, 4  ;;  %s5374_s23 = sshll.u32 %s341_s7, 7  ;;  %s345_s30 = int_to_ptr.vmem [resolvable:$true] %s344_s30 }
  0x62   : > { %p7202_p9 = pnand %p11392_p2, %p7161_p11  ;;  %s343_s19 = scalar_lea.hbm %s11372_s0, %s5374_s23 }
  0x63   : > { %s332_s18 = scalar_lea.sflag [#allocation3], %s331_s24  ;;  %s6758_s13 = scalar_lea.vmem %s345_s30, 8192 }
  0x64   : > { %p6747_p6 = pneg %p7202_p9  ;;  %p6759_p12 = scmp.ne.s32.totalorder %s345_s30, %s6758_s13 }
  0x65   : > { %s6977_s2 = smov [#allocation2]  }
  0x66   : > { %p6761_p0 = pnand %p6759_p12, %p6747_p6  ;;  %s6763_s4 = sshll.u32 %s6977_s2, 4  ;;  %s6764_s4 = int_to_ptr.vmem [resolvable:$false] %s6763_s4 }
  0x67   : > { %s6765_s5 = scalar_lea.vmem %s6764_s4, 16384  ;;  %p6766_p11 = scmp.lt.s32.totalorder %s345_s30, %s6764_s4 }
  0x68   : > { %p6762_p7 = pneg %p6761_p0  ;;  %p6767_p2 = scmp.lt.s32.totalorder %s6765_s5, %s6758_s13 }
  0x6a   : > { %p6768_p1 = por %p6767_p2, %p6766_p11 }
  0x6c   : > { %p6769_p10 = pnand %p6768_p1, %p6762_p7 }
  0x6e   : > { %6772 = shalt.err (!%p6769_p10)
}
  0x6f   : > { %s11760_s12 = smov 8   ;;  %s11761_s20 = smov 128  }
  0x70   : > { %5776 = dma.hbm_to_vmem [thread:$0]  (!%p7202_p9), %s343_s19, 8192, %s345_s30, %s332_s18, %s11761_s20, %s11761_s20, %s11760_s12  }
  0x71   : > { %s80_s13 = sadd.s32 1, %s6935_s29  ;;  %p87_p1 = scmp.ne.s32.totalorder %s6935_s29, %s6931_s28 }
  0x72   : > { %s7222_s26 = scalar_select %p78_p8, %s6935_s29, %s80_s13  }
  0x73   : > { %p11762_p10 = scmp.eq.s32.totalorder %s6967_s15, 0  ;;  %p93_p6 = scmp.ne.s32.totalorder %s6931_s28, %s6927_s27 }
  0x74   : > { %s354_s8 = sand.u32 1, %s6967_s15   ;;  %s356_s7 = sand.u32 1, %s6935_s29  }
  0x75   : > { %p89_p2 = por %p87_p1, %p11762_p10  ;;  %p11763_p12 = scmp.eq.s32.totalorder %s7085_s16, 0 }
  0x76   : > { %s5375_s24 = sshll.u32 %s356_s7, 1  ;;  %s5495_s21 = sshll.u32 %s6963_s14, 5 }
  0x77   : > { %p7232_p0 = por %p93_p6, %p11763_p12  ;;  %s364_s30 = scalar_lea.hbm %s11373_s1, %s5495_s21 }
  0x78   : > { %s358_s19 = scalar_lea.vmem [#allocation5], %s5375_s24  ;;  %p11765_p8 = scmp.lt.s32.totalorder %s6967_s15, 4 }
  0x79   : > { %s366_s25 = sshll.u32 %s358_s19, 4  ;;  %s355_s27 = scalar_lea.sflag [#allocation6], %s354_s8  ;;  %s367_s25 = int_to_ptr.vmem [resolvable:$true] %s366_s25 }
  0x7a   : > { %p7242_p9 = pnand %p11765_p8, %p89_p2  ;;  %s6786_s5 = scalar_lea.vmem %s367_s25, 32 }
  0x7b   : > { %p6787_p11 = scmp.ne.s32.totalorder %s367_s25, %s6786_s5  ;;  %s6978_s12 = smov [#allocation5]  }
  0x7c   : > { %p6775_p7 = pneg %p7242_p9  ;;  %s6791_s20 = sshll.u32 %s6978_s12, 4  ;;  %s6792_s20 = int_to_ptr.vmem [resolvable:$false] %s6791_s20 }
  0x7d   : > { %s6793_s13 = scalar_lea.vmem %s6792_s20, 64  ;;  %p6794_p6 = scmp.lt.s32.totalorder %s367_s25, %s6792_s20 }
  0x7e   : > { %p6789_p1 = pnand %p6787_p11, %p6775_p7  ;;  %p6795_p12 = scmp.lt.s32.totalorder %s6793_s13, %s6786_s5 }
  0x80   : > { %p6790_p10 = pneg %p6789_p1  ;;  %p6796_p5 = por %p6795_p12, %p6794_p6 }
  0x82   : > { %p6797_p2 = pnand %p6796_p5, %p6790_p10 }
  0x84   : > { %6800 = shalt.err (!%p6797_p2)
}
  0x85   : > { %5779 = dma.hbm_to_vmem [thread:$0]  (!%p7242_p9), %s364_s30, 32, %s367_s25, %s355_s27  }
  0x86   : > { %375 = sbr.rel (%p7091_p4) target bundleno = 1686 (0x696), region = 48 }
  0x8b   : > { %s7253_s8 = sand.u32 1, %s6943_s9  }
  0x8c   : > { %s7256_s7 = sshll.u32 %s7253_s8, 9  ;;  %s378_s24 = scalar_lea.sflag [#allocation3], %s7253_s8 }
  0x8d   : > { %s7260_s21 = scalar_lea.vmem [#allocation2], %s7256_s7 }
  0x8e   : > { %6898 = dma.done.wait (%p7177_p3), %s378_s24, 8192  }
  0x8f   : > { %6900 = vsyncadd (%p7177_p3), %s378_s24, 4294959104  ;;  %s386_s17 = sand.u32 1, %s7085_s16   ;;  %s388_s2 = sand.u32 1, %s6931_s28  }
  0x90   : > { %s7268_s4 = sshll.u32 %s388_s2, 1  ;;  %s387_s30 = scalar_lea.sflag [#allocation6], %s386_s17 }
  0x91   : > { %s390_s19 = scalar_lea.vmem [#allocation5], %s7268_s4 }
  0x92   : > { %6902 = dma.done.wait (%p7232_p0), %s387_s30, 32  }
  0x93   : > { %6904 = vsyncadd (%p7232_p0), %s387_s30, 4294967264  ;;  %p11767_p4 = scmp.eq.s32.totalorder %s7085_s16, 0 }
  0x95   : > { %6906 = dma.done.wait (%p11767_p4), [#allocation6], 2048   ;;  %p11768_p3 = pmov %p11767_p4 }
  0x97   : > { %6908 = vsyncadd (%p11768_p3), [#allocation6], 4294965248  ;;  %p11769_p5 = pmov %p11768_p3 }
  0x98   : > { %p11770_p8 = pmov %p11768_p3 }
  0x99   : > { %6910 = dma.done.wait (%p11769_p5), [#allocation9], 1152  }
  0x9a   : > { %6912 = vsyncadd (%p11770_p8), [#allocation9], 4294966144  ;;  %p11771_p9 = pmov %p11768_p3 }
  0x9b   : > { %p11772_p7 = pmov %p11768_p3 }
  0x9c   : > { %6914 = dma.done.wait (%p11771_p9), [#allocation12], 1024  }
  0x9d   : > { %6916 = vsyncadd (%p11772_p7), [#allocation12], 4294966272  ;;  %v6979_v0 = vmov 0   ;;  %v5896_v1 = vld [vmem:[#allocation7 + $0x74] ss:$8 sps:$4 sm:$0xff]   ;;  %v454_v18 = vld [vmem:[%s7260_s21 + $0x8] sm:$0xff] }
  0x9e   : > { %689 = vmatprep.mubr.bf16.mxu0 %v6979_v0  ;;  %v5898_v2 = vld [vmem:[#allocation7 + $0x70] ss:$8 sps:$4 sm:$0xff]   ;;  %657 = vmatprep.subr.bf16.mxu0 %v5896_v1  ;;  %v5899_v3 = vld [vmem:[#allocation7 + $0x64] ss:$8 sps:$4 sm:$0xff]   ;;  %v5901_v4 = vld [vmem:[#allocation7 + $0x60] ss:$8 sps:$4 sm:$0xff]  }
  0x9f   : > { %658 = vmatpush1.bf16.msra.mxu0 %v5898_v2  ;;  %v5902_v5 = vld [vmem:[#allocation7 + $0x54] ss:$8 sps:$4 sm:$0xff]   ;;  %v5904_v6 = vld [vmem:[#allocation7 + $0x50] ss:$8 sps:$4 sm:$0xff]   ;;  %v5905_v7 = vld [vmem:[#allocation7 + $0x44] ss:$8 sps:$4 sm:$0xff]  }
  0xa0   : > { %659 = vmatprep.subr.bf16.mxu0 %v5899_v3  ;;  %v5907_v8 = vld [vmem:[#allocation7 + $0x40] ss:$8 sps:$4 sm:$0xff]   ;;  %v5908_v9 = vld [vmem:[#allocation7 + $0x34] ss:$8 sps:$4 sm:$0xff]   ;;  %v5910_v10 = vld [vmem:[#allocation7 + $0x30] ss:$8 sps:$4 sm:$0xff]  }
  0xa1   : > { %v5911_v11 = vld [vmem:[#allocation7 + $0x24] ss:$8 sps:$4 sm:$0xff]   ;;  %v5913_v12 = vld [vmem:[#allocation7 + $0x20] ss:$8 sps:$4 sm:$0xff]   ;;  %v5914_v13 = vld [vmem:[#allocation7 + $0x14] ss:$8 sps:$4 sm:$0xff]  }
  0xa2   : > { %v5916_v14 = vld [vmem:[#allocation7 + $0x10] ss:$8 sps:$4 sm:$0xff]   ;;  %v5917_v15 = vld [vmem:[#allocation7 + $0x4] ss:$8 sps:$4 sm:$0xff]   ;;  %v5919_v16 = vld [vmem:[#allocation7] ss:$8 sps:$4 sm:$0xff]  }
  0xa3   : > { %660 = vmatpush1.bf16.msra.mxu0 %v5901_v4  ;;  %v453_v17 = vld [vmem:[%s7260_s21] sm:$0xff]  ;;  %v455_v20 = vld [vmem:[%s7260_s21 + $0x10] sm:$0xff]  ;;  %v456_v21 = vld [vmem:[%s7260_s21 + $0x18] sm:$0xff]  ;;  %s10830_s23 = scalar_lea.vmem [#allocation13], %s7256_s7  ;;  %s12449_s27 = sld [smem:[#allocation24_spill]] }
  0xa4   : > { %661 = vmatprep.subr.bf16.mxu0 %v5902_v5  ;;  %v517_v19 = vpack.c.bf16 %v454_v18, %v453_v17  ;;  %v518_v22 = vpack.c.bf16 %v456_v21, %v455_v20  ;;  %v457_v23 = vld [vmem:[%s7260_s21 + $0x20] sm:$0xff]  ;;  %v458_v24 = vld [vmem:[%s7260_s21 + $0x28] sm:$0xff]  ;;  %v459_v26 = vld [vmem:[%s7260_s21 + $0x30] sm:$0xff]  ;;  %s5487_s20 = sshll.u32 %s6951_s11, 6  ;;  %s5159_s24 = sshll.u32 %s10830_s23, 4  ;;  %s11139_s24 = int_to_ptr.vmem [resolvable:$true] %s5159_s24 }
  0xa5   : > { %v519_v25 = vpack.c.bf16 %v458_v24, %v457_v23  ;;  %v460_v27 = vld [vmem:[%s7260_s21 + $0x38] sm:$0xff]  ;;  %v461_v29 = vld [vmem:[%s7260_s21 + $0x40] sm:$0xff]  ;;  %v462_v30 = vld [vmem:[%s7260_s21 + $0x48] sm:$0xff]  ;;  %s11133_s2 = scalar_lea.vmem [#allocation14], %s7256_s7  ;;  %s12451_s30 = sld [smem:[#allocation139_spill]] }
  0xa6   : > { %v520_v28 = vpack.c.bf16 %v460_v27, %v459_v26  ;;  %v521_v31 = vpack.c.bf16 %v462_v30, %v461_v29  ;;  %v463_v32 = vld [vmem:[%s7260_s21 + $0x50] sm:$0xff]  ;;  %v464_v33 = vld [vmem:[%s7260_s21 + $0x58] sm:$0xff]  ;;  %v465_v35 = vld [vmem:[%s7260_s21 + $0x60] sm:$0xff]  ;;  %s5139_s22 = scalar_lea.sflag [#allocation4], %s7253_s8  ;;  %s6801_s25 = scalar_lea.vmem %s11139_s24, 8192 }
  0xa7   : > { %662 = vmatpush1.bf16.msra.mxu0 %v5904_v6  ;;  %v522_v34 = vpack.c.bf16 %v464_v33, %v463_v32  ;;  %v466_v36 = vld [vmem:[%s7260_s21 + $0x68] sm:$0xff]  ;;  %v467_v38 = vld [vmem:[%s7260_s21 + $0x70] sm:$0xff]  ;;  %v468_v39 = vld [vmem:[%s7260_s21 + $0x78] sm:$0xff]  ;;  %p6802_p0 = scmp.ne.s32.totalorder %s11139_s24, %s6801_s25  ;;  %s6980_s18 = smov [#allocation13]  }
  0xa8   : > { %663 = vmatprep.subr.bf16.mxu0 %v5905_v7  ;;  %v523_v37 = vpack.c.bf16 %v466_v36, %v465_v35  ;;  %v524_v40 = vpack.c.bf16 %v468_v39, %v467_v38  ;;  %v469_v41 = vld [vmem:[%s7260_s21 + $0x80] sm:$0xff]  ;;  %v470_v42 = vld [vmem:[%s7260_s21 + $0x88] sm:$0xff]  ;;  %v471_v44 = vld [vmem:[%s7260_s21 + $0x90] sm:$0xff] }
  0xa9   : > { %v525_v43 = vpack.c.bf16 %v470_v42, %v469_v41  ;;  %v472_v45 = vld [vmem:[%s7260_s21 + $0x98] sm:$0xff]  ;;  %v473_v47 = vld [vmem:[%s7260_s21 + $0xa0] sm:$0xff]  ;;  %v474_v48 = vld [vmem:[%s7260_s21 + $0xa8] sm:$0xff]  ;;  %s5488_s13 = sshll.u32 %s12449_s27, 7  ;;  %p6803_p11 = pnand %p6802_p0, %p7169_p13 }
  0xaa   : > { %v526_v46 = vpack.c.bf16 %v472_v45, %v471_v44  ;;  %v527_v49 = vpack.c.bf16 %v474_v48, %v473_v47  ;;  %v475_v50 = vld [vmem:[%s7260_s21 + $0xb0] sm:$0xff]  ;;  %v476_v51 = vld [vmem:[%s7260_s21 + $0xb8] sm:$0xff]  ;;  %v477_v53 = vld [vmem:[%s7260_s21 + $0xc0] sm:$0xff]  ;;  %s6805_s27 = sshll.u32 %s6980_s18, 4  ;;  %s6806_s27 = int_to_ptr.vmem [resolvable:$false] %s6805_s27 }
  0xab   : > { %664 = vmatpush1.bf16.msra.mxu0 %v5907_v8  ;;  %v528_v52 = vpack.c.bf16 %v476_v51, %v475_v50  ;;  %v478_v54 = vld [vmem:[%s7260_s21 + $0xc8] sm:$0xff]  ;;  %v479_v56 = vld [vmem:[%s7260_s21 + $0xd0] sm:$0xff]  ;;  %v480_v57 = vld [vmem:[%s7260_s21 + $0xd8] sm:$0xff]  ;;  %p6804_p1 = pneg %p6803_p11  ;;  %p6808_p10 = scmp.lt.s32.totalorder %s11139_s24, %s6806_s27 }
  0xac   : > { %665 = vmatprep.subr.bf16.mxu0 %v5908_v9  ;;  %v529_v55 = vpack.c.bf16 %v478_v54, %v477_v53  ;;  %v530_v58 = vpack.c.bf16 %v480_v57, %v479_v56  ;;  %v481_v59 = vld [vmem:[%s7260_s21 + $0xe0] sm:$0xff]  ;;  %v482_v60 = vld [vmem:[%s7260_s21 + $0xe8] sm:$0xff]  ;;  %v483_v62 = vld [vmem:[%s7260_s21 + $0xf0] sm:$0xff] }
  0xad   : > { %v531_v61 = vpack.c.bf16 %v482_v60, %v481_v59  ;;  %v484_v63 = vld [vmem:[%s7260_s21 + $0xf8] sm:$0xff]  ;;  %v485_v2 = vld [vmem:[%s7260_s21 + $0x100] sm:$0xff]  ;;  %v486_v3 = vld [vmem:[%s7260_s21 + $0x108] sm:$0xff] }
  0xae   : > { %v532_v1 = vpack.c.bf16 %v484_v63, %v483_v62  ;;  %v533_v4 = vpack.c.bf16 %v486_v3, %v485_v2  ;;  %v487_v5 = vld [vmem:[%s7260_s21 + $0x110] sm:$0xff]  ;;  %v488_v6 = vld [vmem:[%s7260_s21 + $0x118] sm:$0xff]  ;;  %v489_v8 = vld [vmem:[%s7260_s21 + $0x120] sm:$0xff] }
  0xaf   : > { %666 = vmatpush1.bf16.msra.mxu0 %v5910_v10  ;;  %v534_v7 = vpack.c.bf16 %v488_v6, %v487_v5  ;;  %v490_v9 = vld [vmem:[%s7260_s21 + $0x128] sm:$0xff]  ;;  %v495_v17 = vld [vmem:[%s7260_s21 + $0x150] sm:$0xff]  ;;  %v496_v18 = vld [vmem:[%s7260_s21 + $0x158] sm:$0xff] }
  0xb0   : > { %667 = vmatprep.subr.bf16.mxu0 %v5911_v11  ;;  %v535_v10 = vpack.c.bf16 %v490_v9, %v489_v8  ;;  %v491_v11 = vld [vmem:[%s7260_s21 + $0x130] sm:$0xff]  ;;  %v497_v20 = vld [vmem:[%s7260_s21 + $0x160] sm:$0xff]  ;;  %v498_v21 = vld [vmem:[%s7260_s21 + $0x168] sm:$0xff] }
  0xb1   : > { %v499_v23 = vld [vmem:[%s7260_s21 + $0x170] sm:$0xff]  ;;  %v500_v24 = vld [vmem:[%s7260_s21 + $0x178] sm:$0xff]  ;;  %v502_v29 = vld [vmem:[%s7260_s21 + $0x188] sm:$0xff] }
  0xb2   : > { %v540_v26 = vpack.c.bf16 %v500_v24, %v499_v23  ;;  %v565_v32 = vld [vmem:[%s390_s19] sm:$0x3]  ;;  %v504_v38 = vld [vmem:[%s7260_s21 + $0x198] sm:$0xff]  ;;  %v506_v51 = vld [vmem:[%s7260_s21 + $0x1a8] sm:$0xff]  ;;  %s12452_s19 = smov %s12451_s30 }
  0xb3   : > { %668 = vmatpush1.bf16.msra.mxu0 %v5913_v12  ;;  %v492_v12 = vld [vmem:[%s7260_s21 + $0x138] sm:$0xff]  ;;  %v505_v50 = vld [vmem:[%s7260_s21 + $0x1a0] sm:$0xff]  ;;  %v507_v63 = vld [vmem:[%s7260_s21 + $0x1b0] sm:$0xff] }
  0xb4   : > { %669 = vmatprep.subr.bf16.mxu0 %v5914_v13  ;;  %v536_v13 = vpack.c.bf16 %v492_v12, %v491_v11  ;;  %v543_v56 = vpack.c.bf16 %v506_v51, %v505_v50 }
  0xb7   : > { %670 = vmatpush1.bf16.msra.mxu0 %v5916_v14  ;;  %v493_v14 = vld [vmem:[%s7260_s21 + $0x140] sm:$0xff] }
  0xb8   : > { %671 = vmatprep.subr.bf16.mxu0 %v5917_v15  ;;  %v494_v15 = vld [vmem:[%s7260_s21 + $0x148] sm:$0xff] }
  0xbb   : > { %672 = vmatpush1.bf16.msra.mxu0 %v5919_v16  ;;  %v537_v16 = vpack.c.bf16 %v494_v15, %v493_v14  ;;  %v510_v14 = vld [vmem:[%s7260_s21 + $0x1c8] sm:$0xff] }
  0xbe   : > { %690 = vmatmul.mubr.bf16.vlgmr.msra.gmra.mxu0 %v517_v19  ;;  %v538_v19 = vpack.c.bf16 %v496_v18, %v495_v17 }
  0xbf   : > { %699 = vmatprep.mubr.bf16.mxu0 %v6979_v0 }
  0xc6   : > { %700 = vmatmul.mubr.bf16.gmra.mxu0 %v518_v22  ;;  %v539_v22 = vpack.c.bf16 %v498_v21, %v497_v20 }
  0xc7   : > { %709 = vmatprep.mubr.bf16.mxu0 %v6979_v0 }
  0xce   : > { %710 = vmatmul.mubr.bf16.gmra.mxu0 %v519_v25  ;;  %v567_v25 = vlaneseq }
  0xcf   : > { %719 = vmatprep.mubr.bf16.mxu0 %v6979_v0 }
  0xd0   : > { %v568_v27 = vshrl.u32 %v567_v25, 7 }
  0xd2   : > { %v7362_v30 = vsub.s32 0, %v568_v27 }
  0xd4   : > { %11773 = vst [vmem:[#allocation30_spill] sm:$0xff] %v7362_v30 }
  0xd6   : > { %720 = vmatmul.mubr.bf16.gmra.mxu0 %v520_v28  ;;  %v501_v28 = vld [vmem:[%s7260_s21 + $0x180] sm:$0xff] }
  0xd7   : > { %729 = vmatprep.mubr.bf16.mxu0 %v6979_v0  ;;  %v541_v33 = vpack.c.bf16 %v502_v29, %v501_v28 }
  0xde   : > { %730 = vmatmul.mubr.bf16.gmra.mxu0 %v521_v31  ;;  %v7364_v31 = vsub.s32 1, %v568_v27  ;;  %v512_v27 = vld [vmem:[%s7260_s21 + $0x1d8] sm:$0xff] }
  0xdf   : > { %739 = vmatprep.mubr.bf16.mxu0 %v6979_v0 }
  0xe0   : > { %11774 = vst [vmem:[#allocation31_spill] sm:$0xff] %v7364_v31  ;;  %v7372_v35 = vrot.slane %v565_v32, %v7364_v31 }
  0xe6   : > { %740 = vmatmul.mubr.bf16.gmra.mxu0 %v522_v34  ;;  %v7369_v34 = vrot.slane %v565_v32, %v7362_v30 }
  0xe7   : > { %749 = vmatprep.mubr.bf16.mxu0 %v6979_v0 }
  0xee   : > { %750 = vmatmul.mubr.bf16.gmra.mxu0 %v523_v37  ;;  %v503_v37 = vld [vmem:[%s7260_s21 + $0x190] sm:$0xff] }
  0xef   : > { %759 = vmatprep.mubr.bf16.mxu0 %v6979_v0 }
  0xf6   : > { %760 = vmatmul.mubr.bf16.gmra.mxu0 %v524_v40 }
  0xf7   : > { %769 = vmatprep.mubr.bf16.mxu0 %v6979_v0 }
  0xfe   : > { %770 = vmatmul.mubr.bf16.gmra.mxu0 %v525_v43  ;;  %v542_v43 = vpack.c.bf16 %v504_v38, %v503_v37 }
  0xff   : > { %779 = vmatprep.mubr.bf16.mxu0 %v6979_v0 }
 0x106   : > { %780 = vmatmul.mubr.bf16.gmra.mxu0 %v526_v46 }
 0x107   : > { %789 = vmatprep.mubr.bf16.mxu0 %v6979_v0 }
 0x10e   : > { %790 = vmatmul.mubr.bf16.gmra.mxu0 %v527_v49 }
 0x10f   : > { %799 = vmatprep.mubr.bf16.mxu0 %v6979_v0 }
 0x116   : > { %800 = vmatmul.mubr.bf16.gmra.mxu0 %v528_v52 }
 0x117   : > { %809 = vmatprep.mubr.bf16.mxu0 %v6979_v0 }
 0x11e   : > { %810 = vmatmul.mubr.bf16.gmra.mxu0 %v529_v55 }
 0x11f   : > { %819 = vmatprep.mubr.bf16.mxu0 %v6979_v0 }
 0x126   : > { %820 = vmatmul.mubr.bf16.gmra.mxu0 %v530_v58 }
 0x127   : > { %829 = vmatprep.mubr.bf16.mxu0 %v6979_v0 }
 0x12e   : > { %830 = vmatmul.mubr.bf16.gmra.mxu0 %v531_v61 }
 0x12f   : > { %839 = vmatprep.mubr.bf16.mxu0 %v6979_v0 }
 0x136   : > { %840 = vmatmul.mubr.bf16.gmra.mxu0 %v532_v1  ;;  %v508_v1 = vld [vmem:[%s7260_s21 + $0x1b8] sm:$0xff] }
 0x137   : > { %849 = vmatprep.mubr.bf16.mxu0 %v6979_v0  ;;  %v544_v6 = vpack.c.bf16 %v508_v1, %v507_v63  ;;  %v515_v1 = vld [vmem:[%s7260_s21 + $0x1f0] sm:$0xff] }
 0x13e   : > { %850 = vmatmul.mubr.bf16.gmra.mxu0 %v533_v4 }
 0x13f   : > { %859 = vmatprep.mubr.bf16.mxu0 %v6979_v0 }
 0x146   : > { %860 = vmatmul.mubr.bf16.gmra.mxu0 %v534_v7 }
 0x147   : > { %869 = vmatprep.mubr.bf16.mxu0 %v6979_v0 }
 0x14e   : > { %870 = vmatmul.mubr.bf16.gmra.mxu0 %v535_v10 }
 0x14f   : > { %879 = vmatprep.mubr.bf16.mxu0 %v6979_v0 }
 0x156   : > { %880 = vmatmul.mubr.bf16.gmra.mxu0 %v536_v13  ;;  %v509_v13 = vld [vmem:[%s7260_s21 + $0x1c0] sm:$0xff] }
 0x157   : > { %889 = vmatprep.mubr.bf16.mxu0 %v6979_v0 }
 0x15e   : > { %890 = vmatmul.mubr.bf16.gmra.mxu0 %v537_v16 }
 0x15f   : > { %899 = vmatprep.mubr.bf16.mxu0 %v6979_v0 }
 0x166   : > { %900 = vmatmul.mubr.bf16.gmra.mxu0 %v538_v19  ;;  %v545_v19 = vpack.c.bf16 %v510_v14, %v509_v13 }
 0x167   : > { %909 = vmatprep.mubr.bf16.mxu0 %v6979_v0 }
 0x16e   : > { %910 = vmatmul.mubr.bf16.gmra.mxu0 %v539_v22 }
 0x16f   : > { %919 = vmatprep.mubr.bf16.mxu0 %v6979_v0 }
 0x176   : > { %920 = vmatmul.mubr.bf16.gmra.mxu0 %v540_v26  ;;  %v511_v26 = vld [vmem:[%s7260_s21 + $0x1d0] sm:$0xff] }
 0x177   : > { %929 = vmatprep.mubr.bf16.mxu0 %v6979_v0 }
 0x17e   : > { %v691_v36 = vpop.f32.mrf.mxu0  ;;  %930 = vmatmul.mubr.bf16.gmra.mxu0 %v541_v33 }
 0x17f   : > { %939 = vmatprep.mubr.bf16.mxu0 %v6979_v0  ;;  %v7378_v40 = vadd.f32 %v691_v36, %v7369_v34  ;;  %v546_v36 = vpack.c.bf16 %v512_v27, %v511_v26 }
 0x180   : > { %v693_v39 = vpop.f32.mrf.mxu0 }
 0x181   : > { %v7381_v41 = vadd.f32 %v693_v39, %v7372_v35 }
 0x182   : > { %v695_v42 = vpop.f32.mrf.mxu0 }
 0x183   : > { %v1017_v44 = vadd.f32 %v7381_v41, %v7378_v40  ;;  %v7386_v46 = vadd.f32 %v695_v42, %v7369_v34 }
 0x184   : > { %v697_v45 = vpop.f32.mrf.mxu0 }
 0x185   : > { %v7389_v47 = vadd.f32 %v697_v45, %v7372_v35  ;;  %1018 = vadd.xlane.f32.xlu0 %v1017_v44  ;;  %v513_v45 = vld [vmem:[%s7260_s21 + $0x1e0] sm:$0xff] }
 0x186   : > { %v701_v48 = vpop.f32.mrf.mxu0  ;;  %940 = vmatmul.mubr.bf16.gmra.mxu0 %v542_v43 }
 0x187   : > { %v1020_v49 = vadd.f32 %v7389_v47, %v7386_v46  ;;  %949 = vmatprep.mubr.bf16.mxu0 %v6979_v0  ;;  %v7397_v53 = vadd.f32 %v701_v48, %v7369_v34  ;;  %v514_v48 = vld [vmem:[%s7260_s21 + $0x1e8] sm:$0xff] }
 0x188   : > { %v703_v52 = vpop.f32.mrf.mxu0 }
 0x189   : > { %v7400_v54 = vadd.f32 %v703_v52, %v7372_v35  ;;  %1021 = vadd.xlane.f32.xlu0 %v1020_v49 }
 0x18a   : > { %v705_v55 = vpop.f32.mrf.mxu0 }
 0x18b   : > { %v1023_v57 = vadd.f32 %v7400_v54, %v7397_v53  ;;  %v7405_v59 = vadd.f32 %v705_v55, %v7369_v34  ;;  %v547_v55 = vpack.c.bf16 %v514_v48, %v513_v45 }
 0x18c   : > { %v707_v58 = vpop.f32.mrf.mxu0 }
 0x18d   : > { %v7408_v60 = vadd.f32 %v707_v58, %v7372_v35  ;;  %1024 = vadd.xlane.f32.xlu1 %v1023_v57 }
 0x18e   : > { %v711_v61 = vpop.f32.mrf.mxu0  ;;  %950 = vmatmul.mubr.bf16.gmra.mxu0 %v543_v56 }
 0x18f   : > { %v1026_v62 = vadd.f32 %v7408_v60, %v7405_v59  ;;  %959 = vmatprep.mubr.bf16.mxu0 %v6979_v0  ;;  %v7416_v3 = vadd.f32 %v711_v61, %v7369_v34 }
 0x190   : > { %v713_v2 = vpop.f32.mrf.mxu0 }
 0x191   : > { %v7419_v4 = vadd.f32 %v713_v2, %v7372_v35  ;;  %1027 = vadd.xlane.f32.xlu1 %v1026_v62  ;;  %v516_v2 = vld [vmem:[%s7260_s21 + $0x1f8] sm:$0xff] }
 0x192   : > { %v715_v5 = vpop.f32.mrf.mxu0 }
 0x193   : > { %v1029_v7 = vadd.f32 %v7419_v4, %v7416_v3  ;;  %v7424_v9 = vadd.f32 %v715_v5, %v7369_v34 }
 0x194   : > { %v717_v8 = vpop.f32.mrf.mxu0 }
 0x195   : > { %v7427_v10 = vadd.f32 %v717_v8, %v7372_v35  ;;  %1030 = vadd.xlane.f32.xlu0 %v1029_v7 }
 0x196   : > { %v721_v11 = vpop.f32.mrf.mxu0  ;;  %960 = vmatmul.mubr.bf16.gmra.mxu0 %v544_v6 }
 0x197   : > { %v1032_v12 = vadd.f32 %v7427_v10, %v7424_v9  ;;  %969 = vmatprep.mubr.bf16.mxu0 %v6979_v0  ;;  %v7435_v16 = vadd.f32 %v721_v11, %v7369_v34  ;;  %v548_v11 = vpack.c.bf16 %v516_v2, %v515_v1 }
 0x198   : > { %v723_v15 = vpop.f32.mrf.mxu0 }
 0x199   : > { %v7438_v17 = vadd.f32 %v723_v15, %v7372_v35  ;;  %1033 = vadd.xlane.f32.xlu1 %v1032_v12 }
 0x19a   : > { %v725_v18 = vpop.f32.mrf.mxu0 }
 0x19b   : > { %v1035_v20 = vadd.f32 %v7438_v17, %v7435_v16  ;;  %v7443_v22 = vadd.f32 %v725_v18, %v7369_v34 }
 0x19c   : > { %v727_v21 = vpop.f32.mrf.mxu0 }
 0x19d   : > { %v7446_v23 = vadd.f32 %v727_v21, %v7372_v35  ;;  %1036 = vadd.xlane.f32.xlu0 %v1035_v20 }
 0x19e   : > { %v731_v24 = vpop.f32.mrf.mxu0  ;;  %970 = vmatmul.mubr.bf16.gmra.mxu0 %v545_v19 }
 0x19f   : > { %v1038_v25 = vadd.f32 %v7446_v23, %v7443_v22  ;;  %979 = vmatprep.mubr.bf16.mxu0 %v6979_v0  ;;  %v7454_v29 = vadd.f32 %v731_v24, %v7369_v34 }
 0x1a0   : > { %v733_v28 = vpop.f32.mrf.mxu0 }
 0x1a1   : > { %v7457_v32 = vadd.f32 %v733_v28, %v7372_v35  ;;  %1039 = vadd.xlane.f32.xlu1 %v1038_v25 }
 0x1a2   : > { %v735_v33 = vpop.f32.mrf.mxu0 }
 0x1a3   : > { %v1041_v37 = vadd.f32 %v7457_v32, %v7454_v29  ;;  %v7462_v39 = vadd.f32 %v735_v33, %v7369_v34 }
 0x1a4   : > { %v737_v38 = vpop.f32.mrf.mxu0 }
 0x1a5   : > { %v7465_v42 = vadd.f32 %v737_v38, %v7372_v35  ;;  %1042 = vadd.xlane.f32.xlu0 %v1041_v37 }
 0x1a6   : > { %v741_v43 = vpop.f32.mrf.mxu0  ;;  %980 = vmatmul.mubr.bf16.gmra.mxu0 %v546_v36 }
 0x1a7   : > { %v1044_v44 = vadd.f32 %v7465_v42, %v7462_v39  ;;  %989 = vmatprep.mubr.bf16.mxu0 %v6979_v0  ;;  %v7473_v50 = vadd.f32 %v741_v43, %v7369_v34 }
 0x1a8   : > { %v743_v49 = vpop.f32.mrf.mxu0 }
 0x1a9   : > { %v7476_v51 = vadd.f32 %v743_v49, %v7372_v35  ;;  %1045 = vadd.xlane.f32.xlu1 %v1044_v44 }
 0x1aa   : > { %v745_v52 = vpop.f32.mrf.mxu0 }
 0x1ab   : > { %v1047_v56 = vadd.f32 %v7476_v51, %v7473_v50  ;;  %v7481_v58 = vadd.f32 %v745_v52, %v7369_v34 }
 0x1ac   : > { %v747_v57 = vpop.f32.mrf.mxu0 }
 0x1ad   : > { %v7484_v61 = vadd.f32 %v747_v57, %v7372_v35  ;;  %1048 = vadd.xlane.f32.xlu0 %v1047_v56 }
 0x1ae   : > { %v751_v62 = vpop.f32.mrf.mxu0  ;;  %990 = vmatmul.mubr.bf16.gmra.mxu0 %v547_v55 }
 0x1af   : > { %v1050_v63 = vadd.f32 %v7484_v61, %v7481_v58  ;;  %999 = vmatprep.mubr.bf16.mxu0 %v6979_v0  ;;  %v7492_v6 = vadd.f32 %v751_v62, %v7369_v34 }
 0x1b0   : > { %v753_v5 = vpop.f32.mrf.mxu0 }
 0x1b1   : > { %v7495_v7 = vadd.f32 %v753_v5, %v7372_v35  ;;  %1051 = vadd.xlane.f32.xlu1 %v1050_v63 }
 0x1b2   : > { %v755_v8 = vpop.f32.mrf.mxu0 }
 0x1b3   : > { %v1053_v12 = vadd.f32 %v7495_v7, %v7492_v6  ;;  %v7500_v14 = vadd.f32 %v755_v8, %v7369_v34 }
 0x1b4   : > { %v757_v13 = vpop.f32.mrf.mxu0 }
 0x1b5   : > { %v7503_v0 = vadd.f32 %v757_v13, %v7372_v35  ;;  %1054 = vadd.xlane.f32.xlu0 %v1053_v12 }
 0x1b6   : > { %v761_v15 = vpop.f32.mrf.mxu0  ;;  %1000 = vmatmul.mubr.bf16.gmra.mxu0 %v548_v11 }
 0x1b7   : > { %v1056_v18 = vadd.f32 %v7503_v0, %v7500_v14  ;;  %v7508_v20 = vadd.f32 %v761_v15, %v7369_v34 }
 0x1b8   : > { %v763_v19 = vpop.f32.mrf.mxu0 }
 0x1b9   : > { %v7511_v21 = vadd.f32 %v763_v19, %v7372_v35  ;;  %1057 = vadd.xlane.f32.xlu1 %v1056_v18 }
 0x1ba   : > { %v765_v24 = vpop.f32.mrf.mxu0 }
 0x1bb   : > { %v1059_v25 = vadd.f32 %v7511_v21, %v7508_v20  ;;  %v7516_v27 = vadd.f32 %v765_v24, %v7369_v34 }
 0x1bc   : > { %v767_v26 = vpop.f32.mrf.mxu0 }
 0x1bd   : > { %v7519_v28 = vadd.f32 %v767_v26, %v7372_v35  ;;  %1060 = vadd.xlane.f32.xlu0 %v1059_v25 }
 0x1be   : > { %v771_v33 = vpop.f32.mrf.mxu0 }
 0x1bf   : > { %v1062_v36 = vadd.f32 %v7519_v28, %v7516_v27  ;;  %v7524_v38 = vadd.f32 %v771_v33, %v7369_v34 }
 0x1c0   : > { %v773_v37 = vpop.f32.mrf.mxu0 }
 0x1c1   : > { %v7527_v43 = vadd.f32 %v773_v37, %v7372_v35  ;;  %1063 = vadd.xlane.f32.xlu1 %v1062_v36 }
 0x1c2   : > { %v775_v44 = vpop.f32.mrf.mxu0 }
 0x1c3   : > { %v1065_v45 = vadd.f32 %v7527_v43, %v7524_v38  ;;  %v7532_v49 = vadd.f32 %v775_v44, %v7369_v34 }
 0x1c4   : > { %v777_v48 = vpop.f32.mrf.mxu0 }
 0x1c5   : > { %v7535_v52 = vadd.f32 %v777_v48, %v7372_v35  ;;  %1066 = vadd.xlane.f32.xlu0 %v1065_v45 }
 0x1c6   : > { %v781_v55 = vpop.f32.mrf.mxu0 }
 0x1c7   : > { %v1068_v56 = vadd.f32 %v7535_v52, %v7532_v49  ;;  %v7540_v62 = vadd.f32 %v781_v55, %v7369_v34 }
 0x1c8   : > { %v783_v57 = vpop.f32.mrf.mxu0 }
 0x1c9   : > { %v7543_v63 = vadd.f32 %v783_v57, %v7372_v35  ;;  %1069 = vadd.xlane.f32.xlu1 %v1068_v56 }
 0x1ca   : > { %v785_v1 = vpop.f32.mrf.mxu0 }
 0x1cb   : > { %v1071_v2 = vadd.f32 %v7543_v63, %v7540_v62  ;;  %v7548_v8 = vadd.f32 %v785_v1, %v7369_v34 }
 0x1cc   : > { %v787_v5 = vpop.f32.mrf.mxu0 }
 0x1cd   : > { %v7551_v11 = vadd.f32 %v787_v5, %v7372_v35  ;;  %1072 = vadd.xlane.f32.xlu0 %v1071_v2 }
 0x1ce   : > { %v791_v12 = vpop.f32.mrf.mxu0 }
 0x1cf   : > { %v1074_v13 = vadd.f32 %v7551_v11, %v7548_v8  ;;  %v7556_v18 = vadd.f32 %v791_v12, %v7369_v34 }
 0x1d0   : > { %v793_v15 = vpop.f32.mrf.mxu0 }
 0x1d1   : > { %v7559_v19 = vadd.f32 %v793_v15, %v7372_v35  ;;  %1075 = vadd.xlane.f32.xlu1 %v1074_v13 }
 0x1d2   : > { %v795_v24 = vpop.f32.mrf.mxu0 }
 0x1d3   : > { %v1077_v25 = vadd.f32 %v7559_v19, %v7556_v18  ;;  %v7564_v33 = vadd.f32 %v795_v24, %v7369_v34 }
 0x1d4   : > { %v797_v26 = vpop.f32.mrf.mxu0 }
 0x1d5   : > { %v7567_v36 = vadd.f32 %v797_v26, %v7372_v35  ;;  %1078 = vadd.xlane.f32.xlu0 %v1077_v25 }
 0x1d6   : > { %v801_v37 = vpop.f32.mrf.mxu0 }
 0x1d7   : > { %v1080_v44 = vadd.f32 %v7567_v36, %v7564_v33  ;;  %v7572_v48 = vadd.f32 %v801_v37, %v7369_v34 }
 0x1d8   : > { %v803_v45 = vpop.f32.mrf.mxu0 }
 0x1d9   : > { %v7575_v55 = vadd.f32 %v803_v45, %v7372_v35  ;;  %1081 = vadd.xlane.f32.xlu1 %v1080_v44 }
 0x1da   : > { %v805_v56 = vpop.f32.mrf.mxu0 }
 0x1db   : > { %v1083_v57 = vadd.f32 %v7575_v55, %v7572_v48  ;;  %v7580_v2 = vadd.f32 %v805_v56, %v7369_v34 }
 0x1dc   : > { %v807_v1 = vpop.f32.mrf.mxu0 }
 0x1dd   : > { %v7583_v5 = vadd.f32 %v807_v1, %v7372_v35  ;;  %1084 = vadd.xlane.f32.xlu0 %v1083_v57 }
 0x1de   : > { %v811_v12 = vpop.f32.mrf.mxu0 }
 0x1df   : > { %v1086_v13 = vadd.f32 %v7583_v5, %v7580_v2  ;;  %v7588_v24 = vadd.f32 %v811_v12, %v7369_v34 }
 0x1e0   : > { %v813_v15 = vpop.f32.mrf.mxu0 }
 0x1e1   : > { %11775 = vst [vmem:[#allocation32_spill] sm:$0xff] %v7588_v24  ;;  %v7591_v25 = vadd.f32 %v813_v15, %v7372_v35  ;;  %1087 = vadd.xlane.f32.xlu1 %v1086_v13 }
 0x1e2   : > { %v815_v26 = vpop.f32.mrf.mxu0 }
 0x1e3   : > { %11776 = vst [vmem:[#allocation33_spill] sm:$0xff] %v7591_v25  ;;  %v1089_v37 = vadd.f32 %v7591_v25, %v7588_v24  ;;  %v7596_v45 = vadd.f32 %v815_v26, %v7369_v34 }
 0x1e4   : > { %v817_v44 = vpop.f32.mrf.mxu0 }
 0x1e5   : > { %11777 = vst [vmem:[#allocation34_spill] sm:$0xff] %v7596_v45  ;;  %v7599_v56 = vadd.f32 %v817_v44, %v7372_v35  ;;  %1090 = vadd.xlane.f32.xlu0 %v1089_v37 }
 0x1e6   : > { %v821_v57 = vpop.f32.mrf.mxu0 }
 0x1e7   : > { %11778 = vst [vmem:[#allocation35_spill] sm:$0xff] %v7599_v56  ;;  %v1092_v1 = vadd.f32 %v7599_v56, %v7596_v45  ;;  %v7604_v15 = vadd.f32 %v821_v57, %v7369_v34 }
 0x1e8   : > { %v823_v12 = vpop.f32.mrf.mxu0 }
 0x1e9   : > { %11779 = vst [vmem:[#allocation36_spill] sm:$0xff] %v7604_v15  ;;  %v7607_v13 = vadd.f32 %v823_v12, %v7372_v35  ;;  %1093 = vadd.xlane.f32.xlu1 %v1092_v1 }
 0x1ea   : > { %v825_v31 = vpop.f32.mrf.mxu0 }
 0x1eb   : > { %11780 = vst [vmem:[#allocation37_spill] sm:$0xff] %v7607_v13  ;;  %v1095_v26 = vadd.f32 %v7607_v13, %v7604_v15  ;;  %v7612_v44 = vadd.f32 %v825_v31, %v7369_v34 }
 0x1ec   : > { %v827_v30 = vpop.f32.mrf.mxu0 }
 0x1ed   : > { %11781 = vst [vmem:[#allocation38_spill] sm:$0xff] %v7612_v44  ;;  %v7615_v37 = vadd.f32 %v827_v30, %v7372_v35  ;;  %1096 = vadd.xlane.f32.xlu0 %v1095_v26 }
 0x1ee   : > { %v831_v56 = vpop.f32.mrf.mxu0 }
 0x1ef   : > { %11782 = vst [vmem:[#allocation39_spill] sm:$0xff] %v7615_v37  ;;  %v1098_v57 = vadd.f32 %v7615_v37, %v7612_v44  ;;  %v7620_v12 = vadd.f32 %v831_v56, %v7369_v34 }
 0x1f0   : > { %v833_v45 = vpop.f32.mrf.mxu0 }
 0x1f1   : > { %11783 = vst [vmem:[#allocation40_spill] sm:$0xff] %v7620_v12  ;;  %v7623_v1 = vadd.f32 %v833_v45, %v7372_v35  ;;  %1099 = vadd.xlane.f32.xlu1 %v1098_v57 }
 0x1f2   : > { %v835_v13 = vpop.f32.mrf.mxu0 }
 0x1f3   : > { %11784 = vst [vmem:[#allocation41_spill] sm:$0xff] %v7623_v1  ;;  %v1101_v31 = vadd.f32 %v7623_v1, %v7620_v12  ;;  %v7628_v30 = vadd.f32 %v835_v13, %v7369_v34 }
 0x1f4   : > { %v837_v15 = vpop.f32.mrf.mxu0 }
 0x1f5   : > { %11785 = vst [vmem:[#allocation42_spill] sm:$0xff] %v7628_v30  ;;  %v7631_v26 = vadd.f32 %v837_v15, %v7372_v35  ;;  %1102 = vadd.xlane.f32.xlu0 %v1101_v31 }
 0x1f6   : > { %v841_v37 = vpop.f32.mrf.mxu0 }
 0x1f7   : > { %11786 = vst [vmem:[#allocation43_spill] sm:$0xff] %v7631_v26  ;;  %v1104_v56 = vadd.f32 %v7631_v26, %v7628_v30  ;;  %v7636_v45 = vadd.f32 %v841_v37, %v7369_v34 }
 0x1f8   : > { %v843_v44 = vpop.f32.mrf.mxu0 }
 0x1f9   : > { %11787 = vst [vmem:[#allocation44_spill] sm:$0xff] %v7636_v45  ;;  %v7639_v57 = vadd.f32 %v843_v44, %v7372_v35  ;;  %1105 = vadd.xlane.f32.xlu1 %v1104_v56 }
 0x1fa   : > { %v845_v1 = vpop.f32.mrf.mxu0 }
 0x1fb   : > { %11788 = vst [vmem:[#allocation45_spill] sm:$0xff] %v7639_v57  ;;  %v1107_v13 = vadd.f32 %v7639_v57, %v7636_v45  ;;  %v7644_v15 = vadd.f32 %v845_v1, %v7369_v34 }
 0x1fc   : > { %v847_v12 = vpop.f32.mrf.mxu0 }
 0x1fd   : > { %11789 = vst [vmem:[#allocation46_spill] sm:$0xff] %v7644_v15  ;;  %v7647_v31 = vadd.f32 %v847_v12, %v7372_v35  ;;  %1108 = vadd.xlane.f32.xlu0 %v1107_v13 }
 0x1fe   : > { %v851_v26 = vpop.f32.mrf.mxu0 }
 0x1ff   : > { %11790 = vst [vmem:[#allocation47_spill] sm:$0xff] %v7647_v31  ;;  %v1110_v37 = vadd.f32 %v7647_v31, %v7644_v15  ;;  %v7652_v44 = vadd.f32 %v851_v26, %v7369_v34 }
 0x200   : > { %v853_v30 = vpop.f32.mrf.mxu0 }
 0x201   : > { %11791 = vst [vmem:[#allocation48_spill] sm:$0xff] %v7652_v44  ;;  %v7655_v56 = vadd.f32 %v853_v30, %v7372_v35  ;;  %1111 = vadd.xlane.f32.xlu1 %v1110_v37 }
 0x202   : > { %v855_v57 = vpop.f32.mrf.mxu0 }
 0x203   : > { %11792 = vst [vmem:[#allocation49_spill] sm:$0xff] %v7655_v56  ;;  %v1113_v1 = vadd.f32 %v7655_v56, %v7652_v44  ;;  %v7660_v12 = vadd.f32 %v855_v57, %v7369_v34 }
 0x204   : > { %v857_v45 = vpop.f32.mrf.mxu0 }
 0x205   : > { %11793 = vst [vmem:[#allocation50_spill] sm:$0xff] %v7660_v12  ;;  %v7663_v13 = vadd.f32 %v857_v45, %v7372_v35  ;;  %1114 = vadd.xlane.f32.xlu0 %v1113_v1 }
 0x206   : > { %v861_v31 = vpop.f32.mrf.mxu0 }
 0x207   : > { %11794 = vst [vmem:[#allocation51_spill] sm:$0xff] %v7663_v13  ;;  %v1116_v26 = vadd.f32 %v7663_v13, %v7660_v12  ;;  %v7668_v30 = vadd.f32 %v861_v31, %v7369_v34 }
 0x208   : > { %v863_v15 = vpop.f32.mrf.mxu0 }
 0x209   : > { %11795 = vst [vmem:[#allocation52_spill] sm:$0xff] %v7668_v30  ;;  %v7671_v37 = vadd.f32 %v863_v15, %v7372_v35  ;;  %1117 = vadd.xlane.f32.xlu1 %v1116_v26 }
 0x20a   : > { %v865_v56 = vpop.f32.mrf.mxu0 }
 0x20b   : > { %11796 = vst [vmem:[#allocation53_spill] sm:$0xff] %v7671_v37  ;;  %v1119_v57 = vadd.f32 %v7671_v37, %v7668_v30  ;;  %v7676_v45 = vadd.f32 %v865_v56, %v7369_v34 }
 0x20c   : > { %v867_v44 = vpop.f32.mrf.mxu0 }
 0x20d   : > { %11797 = vst [vmem:[#allocation54_spill] sm:$0xff] %v7676_v45  ;;  %v7679_v1 = vadd.f32 %v867_v44, %v7372_v35  ;;  %1120 = vadd.xlane.f32.xlu0 %v1119_v57 }
 0x20e   : > { %v871_v13 = vpop.f32.mrf.mxu0  ;;  %v1019_v12 = vpop.xlane.xlu0 %1018 }
 0x20f   : > { %11798 = vst [vmem:[#allocation55_spill] sm:$0xff] %v7679_v1  ;;  %v1210_v31 = vmul.f32 0.00390625, %v1019_v12  ;;  %v1122_v15 = vadd.f32 %v7679_v1, %v7676_v45  ;;  %v7684_v26 = vadd.f32 %v871_v13, %v7369_v34 }
 0x210   : > { %v873_v25 = vpop.f32.mrf.mxu0 }
 0x211   : > { %11799 = vst [vmem:[#allocation56_spill] sm:$0xff] %v7684_v26  ;;  %v7687_v37 = vsub.f32 %v7378_v40, %v1210_v31  ;;  %v7690_v56 = vsub.f32 %v7381_v41, %v1210_v31  ;;  %v7693_v44 = vadd.f32 %v873_v25, %v7372_v35  ;;  %1123 = vadd.xlane.f32.xlu1 %v1122_v15 }
 0x212   : > { %v875_v57 = vpop.f32.mrf.mxu0  ;;  %v1022_v30 = vpop.xlane.xlu0 %1021 }
 0x213   : > { %11800 = vst [vmem:[#allocation57_spill] sm:$0xff] %v7687_v37  ;;  %11801 = vst [vmem:[#allocation58_spill] sm:$0xff] %v7690_v56  ;;  %v1211_v12 = vmul.f32 0.00390625, %v1022_v30  ;;  %v1125_v1 = vadd.f32 %v7693_v44, %v7684_v26  ;;  %v1402_v13 = vmul.f32 %v7687_v37, %v7687_v37  ;;  %v1403_v40 = vmul.f32 %v7690_v56, %v7690_v56 }
 0x214   : > { %11802 = vst [vmem:[#allocation59_spill] sm:$0xff] %v7693_v44  ;;  %v877_v45 = vpop.f32.mrf.mxu0  ;;  %v7702_v41 = vadd.f32 %v875_v57, %v7369_v34 }
 0x215   : > { %v7705_v25 = vsub.f32 %v7386_v46, %v1211_v12  ;;  %v7708_v31 = vsub.f32 %v7389_v47, %v1211_v12  ;;  %v7711_v30 = vadd.f32 %v877_v45, %v7372_v35  ;;  %1126 = vadd.xlane.f32.xlu0 %v1125_v1  ;;  %v1530_v56 = vadd.f32 %v1403_v40, %v1402_v13 }
 0x216   : > { %v881_v15 = vpop.f32.mrf.mxu0  ;;  %v1025_v44 = vpop.xlane.xlu1 %1024 }
 0x217   : > { %11803 = vst [vmem:[#allocation60_spill] sm:$0xff] %v7705_v25  ;;  %11804 = vst [vmem:[#allocation61_spill] sm:$0xff] %v7708_v31  ;;  %v1212_v37 = vmul.f32 0.00390625, %v1025_v44  ;;  %v1128_v26 = vadd.f32 %v7711_v30, %v7702_v41  ;;  %v1404_v57 = vmul.f32 %v7705_v25, %v7705_v25  ;;  %v7718_v46 = vadd.f32 %v881_v15, %v7369_v34 }
 0x218   : > { %v883_v24 = vpop.f32.mrf.mxu0  ;;  %v1405_v47 = vmul.f32 %v7708_v31, %v7708_v31 }
 0x219   : > { %v7723_v45 = vsub.f32 %v7397_v53, %v1212_v37  ;;  %v7726_v1 = vsub.f32 %v7400_v54, %v1212_v37  ;;  %v7729_v44 = vadd.f32 %v883_v24, %v7372_v35  ;;  %1129 = vadd.xlane.f32.xlu1 %v1128_v26  ;;  %1531 = vadd.xlane.f32.xlu0 %v1530_v56 }
 0x21a   : > { %v885_v12 = vpop.f32.mrf.mxu0  ;;  %v1028_v13 = vpop.xlane.xlu1 %1027  ;;  %v1533_v25 = vadd.f32 %v1405_v47, %v1404_v57 }
 0x21b   : > { %11805 = vst [vmem:[#allocation62_spill] sm:$0xff] %v7723_v45  ;;  %11806 = vst [vmem:[#allocation63_spill] sm:$0xff] %v7726_v1  ;;  %v1213_v40 = vmul.f32 0.00390625, %v1028_v13  ;;  %v1131_v15 = vadd.f32 %v7729_v44, %v7718_v46  ;;  %v1406_v31 = vmul.f32 %v7723_v45, %v7723_v45  ;;  %v7736_v53 = vadd.f32 %v885_v12, %v7369_v34 }
 0x21c   : > { %v887_v54 = vpop.f32.mrf.mxu0  ;;  %v1407_v24 = vmul.f32 %v7726_v1, %v7726_v1 }
 0x21d   : > { %v7741_v37 = vsub.f32 %v7405_v59, %v1213_v40  ;;  %v7744_v26 = vsub.f32 %v7408_v60, %v1213_v40  ;;  %v7747_v56 = vadd.f32 %v887_v54, %v7372_v35  ;;  %1132 = vadd.xlane.f32.xlu0 %v1131_v15  ;;  %1534 = vadd.xlane.f32.xlu1 %v1533_v25 }
 0x21e   : > { %v891_v57 = vpop.f32.mrf.mxu0  ;;  %v1031_v47 = vpop.xlane.xlu0 %1030  ;;  %v1536_v12 = vadd.f32 %v1407_v24, %v1406_v31 }
 0x21f   : > { %11807 = vst [vmem:[#allocation64_spill] sm:$0xff] %v7741_v37  ;;  %11808 = vst [vmem:[#allocation65_spill] sm:$0xff] %v7744_v26  ;;  %v1214_v13 = vmul.f32 0.00390625, %v1031_v47  ;;  %v1134_v45 = vadd.f32 %v7747_v56, %v7736_v53  ;;  %v1408_v1 = vmul.f32 %v7741_v37, %v7741_v37  ;;  %v7754_v59 = vadd.f32 %v891_v57, %v7369_v34 }
 0x220   : > { %v893_v60 = vpop.f32.mrf.mxu0  ;;  %v1409_v40 = vmul.f32 %v7744_v26, %v7744_v26 }
 0x221   : > { %v7759_v15 = vsub.f32 %v7416_v3, %v1214_v13  ;;  %v7762_v25 = vsub.f32 %v7419_v4, %v1214_v13  ;;  %v7765_v31 = vadd.f32 %v893_v60, %v7372_v35  ;;  %1537 = vadd.xlane.f32.xlu0 %v1536_v12  ;;  %1135 = vadd.xlane.f32.xlu1 %v1134_v45 }
 0x222   : > { %v895_v54 = vpop.f32.mrf.mxu0  ;;  %v1034_v24 = vpop.xlane.xlu1 %1033  ;;  %v1539_v37 = vadd.f32 %v1409_v40, %v1408_v1 }
 0x223   : > { %11809 = vst [vmem:[#allocation66_spill] sm:$0xff] %v7759_v15  ;;  %11810 = vst [vmem:[#allocation67_spill] sm:$0xff] %v7762_v25  ;;  %v1215_v47 = vmul.f32 0.00390625, %v1034_v24  ;;  %v1137_v57 = vadd.f32 %v7765_v31, %v7754_v59  ;;  %v1410_v26 = vmul.f32 %v7759_v15, %v7759_v15  ;;  %v7772_v3 = vadd.f32 %v895_v54, %v7369_v34 }
 0x224   : > { %v897_v4 = vpop.f32.mrf.mxu0  ;;  %v1411_v13 = vmul.f32 %v7762_v25, %v7762_v25 }
 0x225   : > { %v7777_v12 = vsub.f32 %v7424_v9, %v1215_v47  ;;  %v7780_v45 = vsub.f32 %v7427_v10, %v1215_v47  ;;  %v7783_v60 = vadd.f32 %v897_v4, %v7372_v35  ;;  %1138 = vadd.xlane.f32.xlu0 %v1137_v57  ;;  %1540 = vadd.xlane.f32.xlu1 %v1539_v37 }
 0x226   : > { %v901_v1 = vpop.f32.mrf.mxu0  ;;  %v1037_v40 = vpop.xlane.xlu0 %1036  ;;  %v1542_v15 = vadd.f32 %v1411_v13, %v1410_v26 }
 0x227   : > { %11811 = vst [vmem:[#allocation68_spill] sm:$0xff] %v7777_v12  ;;  %11812 = vst [vmem:[#allocation69_spill] sm:$0xff] %v7780_v45  ;;  %v1216_v24 = vmul.f32 0.00390625, %v1037_v40  ;;  %v1140_v54 = vadd.f32 %v7783_v60, %v7772_v3  ;;  %v1412_v25 = vmul.f32 %v7777_v12, %v7777_v12  ;;  %v7790_v9 = vadd.f32 %v901_v1, %v7369_v34 }
 0x228   : > { %v903_v10 = vpop.f32.mrf.mxu0  ;;  %v1413_v47 = vmul.f32 %v7780_v45, %v7780_v45 }
 0x229   : > { %v7795_v57 = vsub.f32 %v7435_v16, %v1216_v24  ;;  %v7798_v37 = vsub.f32 %v7438_v17, %v1216_v24  ;;  %v7801_v4 = vadd.f32 %v903_v10, %v7372_v35  ;;  %1141 = vadd.xlane.f32.xlu1 %v1140_v54  ;;  %1543 = vadd.xlane.f32.xlu0 %v1542_v15 }
 0x22a   : > { %v905_v26 = vpop.f32.mrf.mxu0  ;;  %v1040_v13 = vpop.xlane.xlu1 %1039  ;;  %v1545_v1 = vadd.f32 %v1413_v47, %v1412_v25 }
 0x22b   : > { %11813 = vst [vmem:[#allocation70_spill] sm:$0xff] %v7795_v57  ;;  %11814 = vst [vmem:[#allocation71_spill] sm:$0xff] %v7798_v37  ;;  %v1217_v40 = vmul.f32 0.00390625, %v1040_v13  ;;  %v1143_v12 = vadd.f32 %v7801_v4, %v7790_v9  ;;  %v1414_v45 = vmul.f32 %v7795_v57, %v7795_v57  ;;  %v7808_v16 = vadd.f32 %v905_v26, %v7369_v34 }
 0x22c   : > { %v907_v17 = vpop.f32.mrf.mxu0  ;;  %v1415_v24 = vmul.f32 %v7798_v37, %v7798_v37 }
 0x22d   : > { %v7813_v54 = vsub.f32 %v7443_v22, %v1217_v40  ;;  %v7816_v15 = vsub.f32 %v7446_v23, %v1217_v40  ;;  %v7819_v25 = vadd.f32 %v907_v17, %v7372_v35  ;;  %1546 = vadd.xlane.f32.xlu1 %v1545_v1  ;;  %1144 = vadd.xlane.f32.xlu0 %v1143_v12 }
 0x22e   : > { %v911_v10 = vpop.f32.mrf.mxu0  ;;  %v1043_v47 = vpop.xlane.xlu0 %1042  ;;  %v1548_v57 = vadd.f32 %v1415_v24, %v1414_v45 }
 0x22f   : > { %11815 = vst [vmem:[#allocation72_spill] sm:$0xff] %v7813_v54  ;;  %11816 = vst [vmem:[#allocation73_spill] sm:$0xff] %v7816_v15  ;;  %v1218_v13 = vmul.f32 0.00390625, %v1043_v47  ;;  %v1146_v26 = vadd.f32 %v7819_v25, %v7808_v16  ;;  %v1416_v37 = vmul.f32 %v7813_v54, %v7813_v54  ;;  %v7826_v22 = vadd.f32 %v911_v10, %v7369_v34 }
 0x230   : > { %v913_v23 = vpop.f32.mrf.mxu0  ;;  %v1417_v40 = vmul.f32 %v7816_v15, %v7816_v15 }
 0x231   : > { %v7831_v1 = vsub.f32 %v7454_v29, %v1218_v13  ;;  %v7834_v12 = vsub.f32 %v7457_v32, %v1218_v13  ;;  %v7837_v17 = vadd.f32 %v913_v23, %v7372_v35  ;;  %1147 = vadd.xlane.f32.xlu1 %v1146_v26  ;;  %1549 = vadd.xlane.f32.xlu0 %v1548_v57 }
 0x232   : > { %v915_v45 = vpop.f32.mrf.mxu0  ;;  %v1046_v24 = vpop.xlane.xlu1 %1045  ;;  %v1551_v10 = vadd.f32 %v1417_v40, %v1416_v37 }
 0x233   : > { %11817 = vst [vmem:[#allocation74_spill] sm:$0xff] %v7831_v1  ;;  %11818 = vst [vmem:[#allocation75_spill] sm:$0xff] %v7834_v12  ;;  %v1219_v47 = vmul.f32 0.00390625, %v1046_v24  ;;  %v1149_v54 = vadd.f32 %v7837_v17, %v7826_v22  ;;  %v1418_v15 = vmul.f32 %v7831_v1, %v7831_v1  ;;  %v7844_v29 = vadd.f32 %v915_v45, %v7369_v34 }
 0x234   : > { %v917_v32 = vpop.f32.mrf.mxu0  ;;  %v1419_v13 = vmul.f32 %v7834_v12, %v7834_v12 }
 0x235   : > { %v7849_v26 = vsub.f32 %v7462_v39, %v1219_v47  ;;  %v7852_v57 = vsub.f32 %v7465_v42, %v1219_v47  ;;  %v7855_v37 = vadd.f32 %v917_v32, %v7372_v35  ;;  %1552 = vadd.xlane.f32.xlu1 %v1551_v10  ;;  %1150 = vadd.xlane.f32.xlu0 %v1149_v54 }
 0x236   : > { %v921_v23 = vpop.f32.mrf.mxu0  ;;  %v1049_v40 = vpop.xlane.xlu0 %1048  ;;  %v1554_v1 = vadd.f32 %v1419_v13, %v1418_v15 }
 0x237   : > { %11819 = vst [vmem:[#allocation76_spill] sm:$0xff] %v7849_v26  ;;  %11820 = vst [vmem:[#allocation77_spill] sm:$0xff] %v7852_v57  ;;  %v1220_v24 = vmul.f32 0.00390625, %v1049_v40  ;;  %v1152_v45 = vadd.f32 %v7855_v37, %v7844_v29  ;;  %v1420_v12 = vmul.f32 %v7849_v26, %v7849_v26  ;;  %v7862_v39 = vadd.f32 %v921_v23, %v7369_v34 }
 0x238   : > { %v923_v42 = vpop.f32.mrf.mxu0  ;;  %v1421_v47 = vmul.f32 %v7852_v57, %v7852_v57 }
 0x239   : > { %v7867_v10 = vsub.f32 %v7473_v50, %v1220_v24  ;;  %v7870_v54 = vsub.f32 %v7476_v51, %v1220_v24  ;;  %v7873_v32 = vadd.f32 %v923_v42, %v7372_v35  ;;  %1153 = vadd.xlane.f32.xlu1 %v1152_v45  ;;  %1555 = vadd.xlane.f32.xlu0 %v1554_v1 }
 0x23a   : > { %v925_v15 = vpop.f32.mrf.mxu0  ;;  %v1052_v13 = vpop.xlane.xlu1 %1051  ;;  %v1557_v23 = vadd.f32 %v1421_v47, %v1420_v12 }
 0x23b   : > { %11821 = vst [vmem:[#allocation78_spill] sm:$0xff] %v7867_v10  ;;  %11822 = vst [vmem:[#allocation79_spill] sm:$0xff] %v7870_v54  ;;  %v1221_v40 = vmul.f32 0.00390625, %v1052_v13  ;;  %v1155_v26 = vadd.f32 %v7873_v32, %v7862_v39  ;;  %v1422_v57 = vmul.f32 %v7867_v10, %v7867_v10  ;;  %v7880_v50 = vadd.f32 %v925_v15, %v7369_v34 }
 0x23c   : > { %v927_v51 = vpop.f32.mrf.mxu0  ;;  %v1423_v24 = vmul.f32 %v7870_v54, %v7870_v54 }
 0x23d   : > { %v7885_v45 = vsub.f32 %v7481_v58, %v1221_v40  ;;  %v7888_v1 = vsub.f32 %v7484_v61, %v1221_v40  ;;  %v7891_v12 = vadd.f32 %v927_v51, %v7372_v35  ;;  %1558 = vadd.xlane.f32.xlu1 %v1557_v23  ;;  %1156 = vadd.xlane.f32.xlu0 %v1155_v26 }
 0x23e   : > { %v931_v42 = vpop.f32.mrf.mxu0  ;;  %v1055_v47 = vpop.xlane.xlu0 %1054  ;;  %v1560_v10 = vadd.f32 %v1423_v24, %v1422_v57 }
 0x23f   : > { %11823 = vst [vmem:[#allocation80_spill] sm:$0xff] %v7885_v45  ;;  %11824 = vst [vmem:[#allocation81_spill] sm:$0xff] %v7888_v1  ;;  %v1222_v13 = vmul.f32 0.00390625, %v1055_v47  ;;  %v1158_v15 = vadd.f32 %v7891_v12, %v7880_v50  ;;  %v1424_v54 = vmul.f32 %v7885_v45, %v7885_v45  ;;  %v7898_v58 = vadd.f32 %v931_v42, %v7369_v34 }
 0x240   : > { %v933_v61 = vpop.f32.mrf.mxu0  ;;  %v1425_v40 = vmul.f32 %v7888_v1, %v7888_v1 }
 0x241   : > { %v7903_v23 = vsub.f32 %v7492_v6, %v1222_v13  ;;  %v7906_v26 = vsub.f32 %v7495_v7, %v1222_v13  ;;  %v7909_v51 = vadd.f32 %v933_v61, %v7372_v35  ;;  %1159 = vadd.xlane.f32.xlu1 %v1158_v15  ;;  %1561 = vadd.xlane.f32.xlu0 %v1560_v10 }
 0x242   : > { %v935_v57 = vpop.f32.mrf.mxu0  ;;  %v1058_v24 = vpop.xlane.xlu1 %1057  ;;  %v1563_v42 = vadd.f32 %v1425_v40, %v1424_v54 }
 0x243   : > { %11825 = vst [vmem:[#allocation82_spill] sm:$0xff] %v7903_v23  ;;  %11826 = vst [vmem:[#allocation83_spill] sm:$0xff] %v7906_v26  ;;  %v1223_v47 = vmul.f32 0.00390625, %v1058_v24  ;;  %v1161_v45 = vadd.f32 %v7909_v51, %v7898_v58  ;;  %v1426_v1 = vmul.f32 %v7903_v23, %v7903_v23  ;;  %v7916_v6 = vadd.f32 %v935_v57, %v7369_v34 }
 0x244   : > { %v937_v7 = vpop.f32.mrf.mxu0  ;;  %v1427_v13 = vmul.f32 %v7906_v26, %v7906_v26 }
 0x245   : > { %v7921_v15 = vsub.f32 %v7500_v14, %v1223_v47  ;;  %v7924_v10 = vsub.f32 %v7503_v0, %v1223_v47  ;;  %v7927_v54 = vadd.f32 %v937_v7, %v7372_v35  ;;  %1564 = vadd.xlane.f32.xlu1 %v1563_v42  ;;  %1162 = vadd.xlane.f32.xlu0 %v1161_v45 }
 0x246   : > { %v941_v61 = vpop.f32.mrf.mxu0  ;;  %v1061_v40 = vpop.xlane.xlu0 %1060  ;;  %v1566_v23 = vadd.f32 %v1427_v13, %v1426_v1 }
 0x247   : > { %11827 = vst [vmem:[#allocation84_spill] sm:$0xff] %v7921_v15  ;;  %11828 = vst [vmem:[#allocation85_spill] sm:$0xff] %v7924_v10  ;;  %v1224_v24 = vmul.f32 0.00390625, %v1061_v40  ;;  %v1164_v57 = vadd.f32 %v7927_v54, %v7916_v6  ;;  %v1428_v26 = vmul.f32 %v7921_v15, %v7921_v15  ;;  %v7934_v14 = vadd.f32 %v941_v61, %v7369_v34 }
 0x248   : > { %v943_v0 = vpop.f32.mrf.mxu0  ;;  %v1429_v47 = vmul.f32 %v7924_v10, %v7924_v10 }
 0x249   : > { %v7939_v42 = vsub.f32 %v7508_v20, %v1224_v24  ;;  %v7942_v45 = vsub.f32 %v7511_v21, %v1224_v24  ;;  %v7945_v7 = vadd.f32 %v943_v0, %v7372_v35  ;;  %1165 = vadd.xlane.f32.xlu1 %v1164_v57  ;;  %1567 = vadd.xlane.f32.xlu0 %v1566_v23 }
 0x24a   : > { %v945_v1 = vpop.f32.mrf.mxu0  ;;  %v1064_v13 = vpop.xlane.xlu1 %1063  ;;  %v1569_v61 = vadd.f32 %v1429_v47, %v1428_v26 }
 0x24b   : > { %11829 = vst [vmem:[#allocation86_spill] sm:$0xff] %v7939_v42  ;;  %11830 = vst [vmem:[#allocation87_spill] sm:$0xff] %v7942_v45  ;;  %v1225_v40 = vmul.f32 0.00390625, %v1064_v13  ;;  %v1167_v15 = vadd.f32 %v7945_v7, %v7934_v14  ;;  %v1430_v10 = vmul.f32 %v7939_v42, %v7939_v42  ;;  %v7952_v20 = vadd.f32 %v945_v1, %v7369_v34 }
 0x24c   : > { %v947_v21 = vpop.f32.mrf.mxu0  ;;  %v1431_v24 = vmul.f32 %v7942_v45, %v7942_v45 }
 0x24d   : > { %v7957_v57 = vsub.f32 %v7516_v27, %v1225_v40  ;;  %v7960_v23 = vsub.f32 %v7519_v28, %v1225_v40  ;;  %v7963_v26 = vadd.f32 %v947_v21, %v7372_v35  ;;  %1570 = vadd.xlane.f32.xlu1 %v1569_v61  ;;  %1168 = vadd.xlane.f32.xlu0 %v1167_v15 }
 0x24e   : > { %v951_v0 = vpop.f32.mrf.mxu0  ;;  %v1067_v47 = vpop.xlane.xlu0 %1066  ;;  %v1572_v42 = vadd.f32 %v1431_v24, %v1430_v10 }
 0x24f   : > { %11831 = vst [vmem:[#allocation88_spill] sm:$0xff] %v7957_v57  ;;  %11832 = vst [vmem:[#allocation89_spill] sm:$0xff] %v7960_v23  ;;  %v1226_v13 = vmul.f32 0.00390625, %v1067_v47  ;;  %v1170_v1 = vadd.f32 %v7963_v26, %v7952_v20  ;;  %v1432_v45 = vmul.f32 %v7957_v57, %v7957_v57  ;;  %v7970_v27 = vadd.f32 %v951_v0, %v7369_v34 }
 0x250   : > { %v953_v28 = vpop.f32.mrf.mxu0  ;;  %v1433_v40 = vmul.f32 %v7960_v23, %v7960_v23 }
 0x251   : > { %v7975_v61 = vsub.f32 %v7524_v38, %v1226_v13  ;;  %v7978_v15 = vsub.f32 %v7527_v43, %v1226_v13  ;;  %v7981_v21 = vadd.f32 %v953_v28, %v7372_v35  ;;  %1171 = vadd.xlane.f32.xlu1 %v1170_v1  ;;  %1573 = vadd.xlane.f32.xlu0 %v1572_v42 }
 0x252   : > { %v955_v10 = vpop.f32.mrf.mxu0  ;;  %v1070_v24 = vpop.xlane.xlu1 %1069  ;;  %v1575_v0 = vadd.f32 %v1433_v40, %v1432_v45 }
 0x253   : > { %11833 = vst [vmem:[#allocation90_spill] sm:$0xff] %v7975_v61  ;;  %11834 = vst [vmem:[#allocation91_spill] sm:$0xff] %v7978_v15  ;;  %v1227_v47 = vmul.f32 0.00390625, %v1070_v24  ;;  %v1173_v57 = vadd.f32 %v7981_v21, %v7970_v27  ;;  %v1434_v23 = vmul.f32 %v7975_v61, %v7975_v61  ;;  %v7988_v38 = vadd.f32 %v955_v10, %v7369_v34 }
 0x254   : > { %v957_v43 = vpop.f32.mrf.mxu0  ;;  %v1435_v13 = vmul.f32 %v7978_v15, %v7978_v15 }
 0x255   : > { %v7993_v1 = vsub.f32 %v7532_v49, %v1227_v47  ;;  %v7996_v42 = vsub.f32 %v7535_v52, %v1227_v47  ;;  %v7999_v45 = vadd.f32 %v957_v43, %v7372_v35  ;;  %1576 = vadd.xlane.f32.xlu1 %v1575_v0  ;;  %1174 = vadd.xlane.f32.xlu0 %v1173_v57 }
 0x256   : > { %v961_v28 = vpop.f32.mrf.mxu0  ;;  %v1073_v40 = vpop.xlane.xlu0 %1072  ;;  %v1578_v61 = vadd.f32 %v1435_v13, %v1434_v23 }
 0x257   : > { %11835 = vst [vmem:[#allocation92_spill] sm:$0xff] %v7993_v1  ;;  %11836 = vst [vmem:[#allocation93_spill] sm:$0xff] %v7996_v42  ;;  %v1228_v24 = vmul.f32 0.00390625, %v1073_v40  ;;  %v1176_v10 = vadd.f32 %v7999_v45, %v7988_v38  ;;  %v1436_v15 = vmul.f32 %v7993_v1, %v7993_v1  ;;  %v8006_v49 = vadd.f32 %v961_v28, %v7369_v34 }
 0x258   : > { %v963_v52 = vpop.f32.mrf.mxu0  ;;  %v1437_v47 = vmul.f32 %v7996_v42, %v7996_v42 }
 0x259   : > { %v8011_v0 = vsub.f32 %v7540_v62, %v1228_v24  ;;  %v8014_v57 = vsub.f32 %v7543_v63, %v1228_v24  ;;  %v8017_v43 = vadd.f32 %v963_v52, %v7372_v35  ;;  %1177 = vadd.xlane.f32.xlu1 %v1176_v10  ;;  %1579 = vadd.xlane.f32.xlu0 %v1578_v61 }
 0x25a   : > { %v965_v23 = vpop.f32.mrf.mxu0  ;;  %v1076_v13 = vpop.xlane.xlu1 %1075  ;;  %v1581_v28 = vadd.f32 %v1437_v47, %v1436_v15 }
 0x25b   : > { %11837 = vst [vmem:[#allocation94_spill] sm:$0xff] %v8011_v0  ;;  %11838 = vst [vmem:[#allocation95_spill] sm:$0xff] %v8014_v57  ;;  %v1229_v40 = vmul.f32 0.00390625, %v1076_v13  ;;  %v1179_v1 = vadd.f32 %v8017_v43, %v8006_v49  ;;  %v1438_v42 = vmul.f32 %v8011_v0, %v8011_v0  ;;  %v8024_v62 = vadd.f32 %v965_v23, %v7369_v34 }
 0x25c   : > { %v967_v63 = vpop.f32.mrf.mxu0  ;;  %v1439_v24 = vmul.f32 %v8014_v57, %v8014_v57 }
 0x25d   : > { %v8029_v10 = vsub.f32 %v7548_v8, %v1229_v40  ;;  %v8032_v61 = vsub.f32 %v7551_v11, %v1229_v40  ;;  %v8035_v15 = vadd.f32 %v967_v63, %v7372_v35  ;;  %1582 = vadd.xlane.f32.xlu1 %v1581_v28  ;;  %1180 = vadd.xlane.f32.xlu0 %v1179_v1 }
 0x25e   : > { %v971_v52 = vpop.f32.mrf.mxu0  ;;  %v1079_v47 = vpop.xlane.xlu0 %1078  ;;  %v1584_v0 = vadd.f32 %v1439_v24, %v1438_v42 }
 0x25f   : > { %11839 = vst [vmem:[#allocation96_spill] sm:$0xff] %v8029_v10  ;;  %11840 = vst [vmem:[#allocation97_spill] sm:$0xff] %v8032_v61  ;;  %v1230_v13 = vmul.f32 0.00390625, %v1079_v47  ;;  %v1182_v23 = vadd.f32 %v8035_v15, %v8024_v62  ;;  %v1440_v57 = vmul.f32 %v8029_v10, %v8029_v10  ;;  %v8042_v8 = vadd.f32 %v971_v52, %v7369_v34 }
 0x260   : > { %v973_v11 = vpop.f32.mrf.mxu0  ;;  %v1441_v40 = vmul.f32 %v8032_v61, %v8032_v61 }
 0x261   : > { %v8047_v28 = vsub.f32 %v7556_v18, %v1230_v13  ;;  %v8050_v1 = vsub.f32 %v7559_v19, %v1230_v13  ;;  %v8053_v63 = vadd.f32 %v973_v11, %v7372_v35  ;;  %1183 = vadd.xlane.f32.xlu1 %v1182_v23  ;;  %1585 = vadd.xlane.f32.xlu0 %v1584_v0 }
 0x262   : > { %v975_v42 = vpop.f32.mrf.mxu0  ;;  %v1082_v24 = vpop.xlane.xlu1 %1081  ;;  %v1587_v52 = vadd.f32 %v1441_v40, %v1440_v57 }
 0x263   : > { %11841 = vst [vmem:[#allocation98_spill] sm:$0xff] %v8047_v28  ;;  %11842 = vst [vmem:[#allocation99_spill] sm:$0xff] %v8050_v1  ;;  %v1231_v47 = vmul.f32 0.00390625, %v1082_v24  ;;  %v1185_v10 = vadd.f32 %v8053_v63, %v8042_v8  ;;  %v1442_v61 = vmul.f32 %v8047_v28, %v8047_v28  ;;  %v8060_v18 = vadd.f32 %v975_v42, %v7369_v34 }
 0x264   : > { %v977_v19 = vpop.f32.mrf.mxu0  ;;  %v1443_v13 = vmul.f32 %v8050_v1, %v8050_v1 }
 0x265   : > { %v8065_v23 = vsub.f32 %v7564_v33, %v1231_v47  ;;  %v8068_v0 = vsub.f32 %v7567_v36, %v1231_v47  ;;  %v8071_v57 = vadd.f32 %v977_v19, %v7372_v35  ;;  %1588 = vadd.xlane.f32.xlu1 %v1587_v52  ;;  %1186 = vadd.xlane.f32.xlu0 %v1185_v10 }
 0x266   : > { %v981_v11 = vpop.f32.mrf.mxu0  ;;  %v1085_v40 = vpop.xlane.xlu0 %1084  ;;  %v1590_v24 = vadd.f32 %v1443_v13, %v1442_v61 }
 0x267   : > { %11843 = vst [vmem:[#allocation100_spill] sm:$0xff] %v8065_v23  ;;  %11844 = vst [vmem:[#allocation101_spill] sm:$0xff] %v8068_v0  ;;  %v8074_v42 = vadd.f32 %v981_v11, %v7369_v34  ;;  %v1232_v28 = vmul.f32 0.00390625, %v1085_v40  ;;  %v1188_v1 = vadd.f32 %v8071_v57, %v8060_v18  ;;  %v1444_v33 = vmul.f32 %v8065_v23, %v8065_v23 }
 0x268   : > { %v983_v36 = vpop.f32.mrf.mxu0  ;;  %v1445_v47 = vmul.f32 %v8068_v0, %v8068_v0 }
 0x269   : > { %v8083_v52 = vsub.f32 %v7572_v48, %v1232_v28  ;;  %v8086_v10 = vsub.f32 %v7575_v55, %v1232_v28  ;;  %v8089_v61 = vadd.f32 %v983_v36, %v7372_v35  ;;  %1189 = vadd.xlane.f32.xlu1 %v1188_v1  ;;  %1591 = vadd.xlane.f32.xlu0 %v1590_v24 }
 0x26a   : > { %v985_v19 = vpop.f32.mrf.mxu0  ;;  %v1088_v13 = vpop.xlane.xlu1 %1087  ;;  %v1593_v40 = vadd.f32 %v1445_v47, %v1444_v33 }
 0x26b   : > { %11845 = vst [vmem:[#allocation102_spill] sm:$0xff] %v8083_v52  ;;  %11846 = vst [vmem:[#allocation103_spill] sm:$0xff] %v8086_v10  ;;  %v1233_v11 = vmul.f32 0.00390625, %v1088_v13  ;;  %v1191_v23 = vadd.f32 %v8089_v61, %v8074_v42  ;;  %v1446_v0 = vmul.f32 %v8083_v52, %v8083_v52  ;;  %v8096_v48 = vadd.f32 %v985_v19, %v7369_v34 }
 0x26c   : > { %11847 = vst [vmem:[#allocation104_spill] sm:$0xff] %v8089_v61  ;;  %v987_v55 = vpop.f32.mrf.mxu0  ;;  %v1447_v28 = vmul.f32 %v8086_v10, %v8086_v10 }
 0x26d   : > { %11848 = vst [vmem:[#allocation105_spill] sm:$0xff] %v8096_v48  ;;  %v8101_v1 = vsub.f32 %v7580_v2, %v1233_v11  ;;  %v8104_v24 = vsub.f32 %v7583_v5, %v1233_v11  ;;  %v8107_v33 = vadd.f32 %v987_v55, %v7372_v35  ;;  %1594 = vadd.xlane.f32.xlu1 %v1593_v40  ;;  %v11853_v55 = vld [vmem:[#allocation32_spill] sm:$0xff] }
 0x26e   : > { %1192 = vadd.xlane.f32.xlu0 %v1191_v23  ;;  %v991_v36 = vpop.f32.mrf.mxu0  ;;  %v1091_v47 = vpop.xlane.xlu0 %1090  ;;  %v1596_v13 = vadd.f32 %v1447_v28, %v1446_v0  ;;  %v11855_v23 = vld [vmem:[#allocation33_spill] sm:$0xff] }
 0x26f   : > { %11849 = vst [vmem:[#allocation106_spill] sm:$0xff] %v8101_v1  ;;  %11850 = vst [vmem:[#allocation107_spill] sm:$0xff] %v8104_v24  ;;  %v8110_v19 = vadd.f32 %v991_v36, %v7369_v34  ;;  %v1234_v52 = vmul.f32 0.00390625, %v1091_v47  ;;  %v1194_v10 = vadd.f32 %v8107_v33, %v8096_v48  ;;  %v1448_v2 = vmul.f32 %v8101_v1, %v8101_v1 }
 0x270   : > { %11851 = vst [vmem:[#allocation108_spill] sm:$0xff] %v8107_v33  ;;  %v993_v5 = vpop.f32.mrf.mxu0  ;;  %v1449_v11 = vmul.f32 %v8104_v24, %v8104_v24 }
 0x271   : > { %11852 = vst [vmem:[#allocation109_spill] sm:$0xff] %v8110_v19  ;;  %v8119_v40 = vsub.f32 %v11853_v55, %v1234_v52  ;;  %v8122_v61 = vsub.f32 %v11855_v23, %v1234_v52  ;;  %v8125_v0 = vadd.f32 %v993_v5, %v7372_v35  ;;  %1195 = vadd.xlane.f32.xlu1 %v1194_v10  ;;  %v11859_v23 = vld [vmem:[#allocation34_spill] sm:$0xff] }
 0x272   : > { %1597 = vadd.xlane.f32.xlu0 %v1596_v13  ;;  %v995_v28 = vpop.f32.mrf.mxu0  ;;  %v1094_v36 = vpop.xlane.xlu1 %1093  ;;  %v1599_v33 = vadd.f32 %v1449_v11, %v1448_v2  ;;  %v11861_v13 = vld [vmem:[#allocation35_spill] sm:$0xff] }
 0x273   : > { %11854 = vst [vmem:[#allocation32_spill] sm:$0xff] %v8119_v40  ;;  %11856 = vst [vmem:[#allocation33_spill] sm:$0xff] %v8122_v61  ;;  %v1235_v47 = vmul.f32 0.00390625, %v1094_v36  ;;  %v1197_v1 = vadd.f32 %v8125_v0, %v8110_v19  ;;  %v1450_v24 = vmul.f32 %v8119_v40, %v8119_v40  ;;  %v8132_v55 = vadd.f32 %v995_v28, %v7369_v34 }
 0x274   : > { %11857 = vst [vmem:[#allocation110_spill] sm:$0xff] %v8125_v0  ;;  %v997_v52 = vpop.f32.mrf.mxu0  ;;  %v1451_v5 = vmul.f32 %v8122_v61, %v8122_v61 }
 0x275   : > { %11858 = vst [vmem:[#allocation111_spill] sm:$0xff] %v8132_v55  ;;  %v8137_v10 = vsub.f32 %v11859_v23, %v1235_v47  ;;  %v8140_v48 = vsub.f32 %v11861_v13, %v1235_v47  ;;  %v8143_v2 = vadd.f32 %v997_v52, %v7372_v35  ;;  %1600 = vadd.xlane.f32.xlu1 %v1599_v33  ;;  %v11864_v13 = vld [vmem:[#allocation36_spill] sm:$0xff] }
 0x276   : > { %1198 = vadd.xlane.f32.xlu0 %v1197_v1  ;;  %v1001_v11 = vpop.f32.mrf.mxu0  ;;  %v1097_v36 = vpop.xlane.xlu0 %1096  ;;  %v1602_v40 = vadd.f32 %v1451_v5, %v1450_v24  ;;  %v11866_v1 = vld [vmem:[#allocation37_spill] sm:$0xff] }
 0x277   : > { %11860 = vst [vmem:[#allocation34_spill] sm:$0xff] %v8137_v10  ;;  %11862 = vst [vmem:[#allocation35_spill] sm:$0xff] %v8140_v48  ;;  %v8146_v28 = vadd.f32 %v1001_v11, %v7369_v34  ;;  %v1236_v0 = vmul.f32 0.00390625, %v1097_v36  ;;  %v1200_v61 = vadd.f32 %v8143_v2, %v8132_v55  ;;  %v1452_v23 = vmul.f32 %v8137_v10, %v8137_v10 }
 0x278   : > { %11863 = vst [vmem:[#allocation112_spill] sm:$0xff] %v8143_v2  ;;  %v1003_v47 = vpop.f32.mrf.mxu0  ;;  %v1453_v52 = vmul.f32 %v8140_v48, %v8140_v48 }
 0x279   : > { %v8155_v33 = vsub.f32 %v11864_v13, %v1236_v0  ;;  %v8158_v19 = vsub.f32 %v11866_v1, %v1236_v0  ;;  %v8161_v24 = vadd.f32 %v1003_v47, %v7372_v35  ;;  %1201 = vadd.xlane.f32.xlu1 %v1200_v61  ;;  %v11868_v1 = vld [vmem:[#allocation38_spill] sm:$0xff] }
 0x27a   : > { %1603 = vadd.xlane.f32.xlu0 %v1602_v40  ;;  %v1005_v5 = vpop.f32.mrf.mxu0  ;;  %v1100_v11 = vpop.xlane.xlu1 %1099  ;;  %v1605_v2 = vadd.f32 %v1453_v52, %v1452_v23  ;;  %v11870_v40 = vld [vmem:[#allocation39_spill] sm:$0xff] }
 0x27b   : > { %11865 = vst [vmem:[#allocation36_spill] sm:$0xff] %v8155_v33  ;;  %11867 = vst [vmem:[#allocation37_spill] sm:$0xff] %v8158_v19  ;;  %v1237_v36 = vmul.f32 0.00390625, %v1100_v11  ;;  %v1203_v10 = vadd.f32 %v8161_v24, %v8146_v28  ;;  %v1454_v48 = vmul.f32 %v8155_v33, %v8155_v33  ;;  %v8168_v13 = vadd.f32 %v1005_v5, %v7369_v34 }
 0x27c   : > { %v1007_v0 = vpop.f32.mrf.mxu0  ;;  %v1455_v47 = vmul.f32 %v8158_v19, %v8158_v19  ;;  %v11872_v19 = vld [vmem:[#allocation40_spill] sm:$0xff] }
 0x27d   : > { %v8173_v61 = vsub.f32 %v11868_v1, %v1237_v36  ;;  %v8176_v55 = vsub.f32 %v11870_v40, %v1237_v36  ;;  %v8179_v23 = vadd.f32 %v1007_v0, %v7372_v35  ;;  %1606 = vadd.xlane.f32.xlu1 %v1605_v2  ;;  %v11874_v40 = vld [vmem:[#allocation41_spill] sm:$0xff] }
 0x27e   : > { %1204 = vadd.xlane.f32.xlu0 %v1203_v10  ;;  %v1103_v52 = vpop.xlane.xlu0 %1102  ;;  %v1608_v11 = vadd.f32 %v1455_v47, %v1454_v48 }
 0x27f   : > { %11869 = vst [vmem:[#allocation38_spill] sm:$0xff] %v8173_v61  ;;  %11871 = vst [vmem:[#allocation39_spill] sm:$0xff] %v8176_v55  ;;  %v1238_v33 = vmul.f32 0.00390625, %v1103_v52  ;;  %v1206_v34 = vadd.f32 %v8179_v23, %v8168_v13  ;;  %v1456_v5 = vmul.f32 %v8173_v61, %v8173_v61  ;;  %v1457_v1 = vmul.f32 %v8176_v55, %v8176_v55  ;;  %v11876_v52 = vld [vmem:[#allocation42_spill] sm:$0xff]  ;;  %v11878_v55 = vld [vmem:[#allocation43_spill] sm:$0xff] }
 0x281   : > { %v8188_v36 = vsub.f32 %v11872_v19, %v1238_v33  ;;  %v8191_v35 = vsub.f32 %v11874_v40, %v1238_v33  ;;  %1207 = vadd.xlane.f32.xlu1 %v1206_v34  ;;  %v1611_v2 = vadd.f32 %v1457_v1, %v1456_v5  ;;  %v11880_v1 = vld [vmem:[#allocation44_spill] sm:$0xff] }
 0x282   : > { %1609 = vadd.xlane.f32.xlu0 %v1608_v11  ;;  %v1106_v10 = vpop.xlane.xlu1 %1105 }
 0x283   : > { %11873 = vst [vmem:[#allocation40_spill] sm:$0xff] %v8188_v36  ;;  %11875 = vst [vmem:[#allocation41_spill] sm:$0xff] %v8191_v35  ;;  %v1239_v48 = vmul.f32 0.00390625, %v1106_v10  ;;  %v1458_v0 = vmul.f32 %v8188_v36, %v8188_v36  ;;  %v1459_v47 = vmul.f32 %v8191_v35, %v8191_v35  ;;  %v11882_v35 = vld [vmem:[#allocation45_spill] sm:$0xff] }
 0x285   : > { %v8198_v61 = vsub.f32 %v11876_v52, %v1239_v48  ;;  %v8201_v19 = vsub.f32 %v11878_v55, %v1239_v48  ;;  %1612 = vadd.xlane.f32.xlu1 %v1611_v2  ;;  %v1614_v33 = vadd.f32 %v1459_v47, %v1458_v0  ;;  %v11884_v47 = vld [vmem:[#allocation46_spill] sm:$0xff] }
 0x286   : > { %v1109_v40 = vpop.xlane.xlu0 %1108 }
 0x287   : > { %11877 = vst [vmem:[#allocation42_spill] sm:$0xff] %v8198_v61  ;;  %11879 = vst [vmem:[#allocation43_spill] sm:$0xff] %v8201_v19  ;;  %v1240_v34 = vmul.f32 0.00390625, %v1109_v40  ;;  %1615 = vadd.xlane.f32.xlu0 %v1614_v33  ;;  %v1460_v11 = vmul.f32 %v8198_v61, %v8198_v61  ;;  %v1461_v5 = vmul.f32 %v8201_v19, %v8201_v19  ;;  %v11886_v40 = vld [vmem:[#allocation47_spill] sm:$0xff] }
 0x289   : > { %v8208_v10 = vsub.f32 %v11880_v1, %v1240_v34  ;;  %v8211_v52 = vsub.f32 %v11882_v35, %v1240_v34  ;;  %v1617_v36 = vadd.f32 %v1461_v5, %v1460_v11  ;;  %v11888_v11 = vld [vmem:[#allocation48_spill] sm:$0xff] }
 0x28a   : > { %v1112_v55 = vpop.xlane.xlu1 %1111 }
 0x28b   : > { %11881 = vst [vmem:[#allocation44_spill] sm:$0xff] %v8208_v10  ;;  %11883 = vst [vmem:[#allocation45_spill] sm:$0xff] %v8211_v52  ;;  %v1241_v48 = vmul.f32 0.00390625, %v1112_v55  ;;  %1618 = vadd.xlane.f32.xlu1 %v1617_v36  ;;  %v1462_v2 = vmul.f32 %v8208_v10, %v8208_v10  ;;  %v1463_v0 = vmul.f32 %v8211_v52, %v8211_v52  ;;  %v11890_v55 = vld [vmem:[#allocation49_spill] sm:$0xff] }
 0x28d   : > { %v8218_v33 = vsub.f32 %v11884_v47, %v1241_v48  ;;  %v8221_v19 = vsub.f32 %v11886_v40, %v1241_v48  ;;  %v1620_v1 = vadd.f32 %v1463_v0, %v1462_v2  ;;  %v11892_v0 = vld [vmem:[#allocation50_spill] sm:$0xff] }
 0x28e   : > { %v1115_v61 = vpop.xlane.xlu0 %1114 }
 0x28f   : > { %11885 = vst [vmem:[#allocation46_spill] sm:$0xff] %v8218_v33  ;;  %11887 = vst [vmem:[#allocation47_spill] sm:$0xff] %v8221_v19  ;;  %v1242_v35 = vmul.f32 0.00390625, %v1115_v61  ;;  %1621 = vadd.xlane.f32.xlu0 %v1620_v1  ;;  %v1464_v34 = vmul.f32 %v8218_v33, %v8218_v33  ;;  %v1465_v36 = vmul.f32 %v8221_v19, %v8221_v19  ;;  %v11894_v1 = vld [vmem:[#allocation51_spill] sm:$0xff] }
 0x291   : > { %v8228_v5 = vsub.f32 %v11888_v11, %v1242_v35  ;;  %v8231_v52 = vsub.f32 %v11890_v55, %v1242_v35  ;;  %v1623_v47 = vadd.f32 %v1465_v36, %v1464_v34  ;;  %v11896_v36 = vld [vmem:[#allocation52_spill] sm:$0xff] }
 0x292   : > { %v1118_v10 = vpop.xlane.xlu1 %1117 }
 0x293   : > { %11889 = vst [vmem:[#allocation48_spill] sm:$0xff] %v8228_v5  ;;  %11891 = vst [vmem:[#allocation49_spill] sm:$0xff] %v8231_v52  ;;  %v1243_v48 = vmul.f32 0.00390625, %v1118_v10  ;;  %1624 = vadd.xlane.f32.xlu1 %v1623_v47  ;;  %v1466_v61 = vmul.f32 %v8228_v5, %v8228_v5  ;;  %v1467_v2 = vmul.f32 %v8231_v52, %v8231_v52  ;;  %v11898_v47 = vld [vmem:[#allocation53_spill] sm:$0xff] }
 0x295   : > { %v8238_v40 = vsub.f32 %v11892_v0, %v1243_v48  ;;  %v8241_v19 = vsub.f32 %v11894_v1, %v1243_v48  ;;  %v1626_v11 = vadd.f32 %v1467_v2, %v1466_v61  ;;  %v11900_v2 = vld [vmem:[#allocation54_spill] sm:$0xff] }
 0x296   : > { %v1121_v33 = vpop.xlane.xlu0 %1120 }
 0x297   : > { %11893 = vst [vmem:[#allocation50_spill] sm:$0xff] %v8238_v40  ;;  %11895 = vst [vmem:[#allocation51_spill] sm:$0xff] %v8241_v19  ;;  %v1244_v35 = vmul.f32 0.00390625, %v1121_v33  ;;  %1627 = vadd.xlane.f32.xlu0 %v1626_v11  ;;  %v1468_v10 = vmul.f32 %v8238_v40, %v8238_v40  ;;  %v1469_v34 = vmul.f32 %v8241_v19, %v8241_v19  ;;  %v11902_v11 = vld [vmem:[#allocation55_spill] sm:$0xff] }
 0x299   : > { %v8248_v55 = vsub.f32 %v11896_v36, %v1244_v35  ;;  %v8251_v52 = vsub.f32 %v11898_v47, %v1244_v35  ;;  %v1629_v0 = vadd.f32 %v1469_v34, %v1468_v10  ;;  %v11903_v47 = vld [vmem:[#allocation56_spill] sm:$0xff] }
 0x29a   : > { %v1124_v5 = vpop.xlane.xlu1 %1123 }
 0x29b   : > { %11897 = vst [vmem:[#allocation52_spill] sm:$0xff] %v8248_v55  ;;  %11899 = vst [vmem:[#allocation53_spill] sm:$0xff] %v8251_v52  ;;  %v1470_v48 = vmul.f32 %v8248_v55, %v8248_v55  ;;  %v1471_v33 = vmul.f32 %v8251_v52, %v8251_v52  ;;  %v1245_v61 = vmul.f32 0.00390625, %v1124_v5  ;;  %1630 = vadd.xlane.f32.xlu1 %v1629_v0  ;;  %v11905_v5 = vld [vmem:[#allocation59_spill] sm:$0xff] }
 0x29d   : > { %v8258_v1 = vsub.f32 %v11900_v2, %v1245_v61  ;;  %v8261_v19 = vsub.f32 %v11902_v11, %v1245_v61  ;;  %v1632_v36 = vadd.f32 %v1471_v33, %v1470_v48 }
 0x29e   : > { %v1127_v40 = vpop.xlane.xlu0 %1126 }
 0x29f   : > { %11901 = vst [vmem:[#allocation54_spill] sm:$0xff] %v8258_v1  ;;  %v1472_v35 = vmul.f32 %v8258_v1, %v8258_v1  ;;  %v1473_v10 = vmul.f32 %v8261_v19, %v8261_v19  ;;  %v1246_v34 = vmul.f32 0.00390625, %v1127_v40  ;;  %1633 = vadd.xlane.f32.xlu0 %v1632_v36 }
 0x2a1   : > { %v8268_v52 = vsub.f32 %v11903_v47, %v1246_v34  ;;  %v8271_v0 = vsub.f32 %v11905_v5, %v1246_v34  ;;  %v1635_v2 = vadd.f32 %v1473_v10, %v1472_v35 }
 0x2a2   : > { %v1130_v55 = vpop.xlane.xlu1 %1129  ;;  %v1532_v61 = vpop.xlane.xlu0 %1531 }
 0x2a3   : > { %11904 = vst [vmem:[#allocation55_spill] sm:$0xff] %v8268_v52  ;;  %11906 = vst [vmem:[#allocation56_spill] sm:$0xff] %v8271_v0  ;;  %v1474_v48 = vmul.f32 %v8268_v52, %v8268_v52  ;;  %v1475_v33 = vmul.f32 %v8271_v0, %v8271_v0  ;;  %v1247_v11 = vmul.f32 0.00390625, %v1130_v55  ;;  %v1722_v1 = vmul.f32 0.00390625, %v1532_v61  ;;  %1636 = vadd.xlane.f32.xlu1 %v1635_v2 }
 0x2a5   : > { %v8278_v40 = vsub.f32 %v7702_v41, %v1247_v11  ;;  %v8281_v36 = vsub.f32 %v7711_v30, %v1247_v11  ;;  %v1786_v34 = vadd.f32 1e-05, %v1722_v1  ;;  %v1638_v47 = vadd.f32 %v1475_v33, %v1474_v48 }
 0x2a6   : > { %v1535_v35 = vpop.xlane.xlu1 %1534  ;;  %v1133_v10 = vpop.xlane.xlu0 %1132 }
 0x2a7   : > { %11907 = vst [vmem:[#allocation59_spill] sm:$0xff] %v8281_v36  ;;  %v1476_v5 = vmul.f32 %v8278_v40, %v8278_v40  ;;  %v1477_v52 = vmul.f32 %v8281_v36, %v8281_v36  ;;  %5936 = vrsqrt.f32 %v1786_v34  ;;  %v1723_v55 = vmul.f32 0.00390625, %v1535_v35  ;;  %1639 = vadd.xlane.f32.xlu0 %v1638_v47 }
 0x2a8   : > { %v1248_v2 = vmul.f32 0.00390625, %v1133_v10 }
 0x2a9   : > { %v1787_v61 = vadd.f32 1e-05, %v1723_v55  ;;  %v1641_v41 = vadd.f32 %v1477_v52, %v1476_v5 }
 0x2aa   : > { %v8288_v0 = vsub.f32 %v7718_v46, %v1248_v2  ;;  %v8291_v30 = vsub.f32 %v7729_v44, %v1248_v2  ;;  %v1136_v1 = vpop.xlane.xlu1 %1135  ;;  %v1538_v48 = vpop.xlane.xlu0 %1537 }
 0x2ab   : > { %5938 = vrsqrt.f32 %v1787_v61  ;;  %v1249_v33 = vmul.f32 0.00390625, %v1136_v1  ;;  %v1724_v11 = vmul.f32 0.00390625, %v1538_v48  ;;  %1642 = vadd.xlane.f32.xlu1 %v1641_v41  ;;  %v1010_v48 = vld [vmem:[#allocation8] ss:$4 sm:$0x3] }
 0x2ac   : > { %11908 = vst [vmem:[#allocation113_spill] sm:$0xff] %v8288_v0  ;;  %11909 = vst [vmem:[#allocation114_spill] sm:$0xff] %v8291_v30  ;;  %v1478_v34 = vmul.f32 %v8288_v0, %v8288_v0  ;;  %v1479_v47 = vmul.f32 %v8291_v30, %v8291_v30  ;;  %v11919_v30 = vld [vmem:[#allocation58_spill] sm:$0xff] }
 0x2ad   : > { %v8298_v52 = vsub.f32 %v7736_v53, %v1249_v33  ;;  %v8301_v46 = vsub.f32 %v7747_v56, %v1249_v33  ;;  %v1788_v44 = vadd.f32 1e-05, %v1724_v11 }
 0x2ae   : > { %v1541_v35 = vpop.xlane.xlu1 %1540  ;;  %v1139_v10 = vpop.xlane.xlu0 %1138  ;;  %v1644_v5 = vadd.f32 %v1479_v47, %v1478_v34 }
 0x2af   : > { %11910 = vst [vmem:[#allocation115_spill] sm:$0xff] %v8298_v52  ;;  %11911 = vst [vmem:[#allocation116_spill] sm:$0xff] %v8301_v46  ;;  %v1480_v55 = vmul.f32 %v8298_v52, %v8298_v52  ;;  %v1481_v2 = vmul.f32 %v8301_v46, %v8301_v46  ;;  %5940 = vrsqrt.f32 %v1788_v44  ;;  %v1725_v61 = vmul.f32 0.00390625, %v1541_v35  ;;  %v1012_v46 = vld [vmem:[#allocation8 + $0x1] ss:$4 sm:$0x3] }
 0x2b0   : > { %v1250_v41 = vmul.f32 0.00390625, %v1139_v10  ;;  %1645 = vadd.xlane.f32.xlu0 %v1644_v5  ;;  %v11914_v5 = vld [vmem:[#allocation30_spill] sm:$0xff] }
 0x2b1   : > { %v1789_v1 = vadd.f32 1e-05, %v1725_v61  ;;  %v1647_v53 = vadd.f32 %v1481_v2, %v1480_v55  ;;  %v11915_v55 = vld [vmem:[#allocation31_spill] sm:$0xff]  ;;  %v8332_v0 = vrot.slane %v1012_v46, %v11914_v5 }
 0x2b2   : > { %v8308_v56 = vsub.f32 %v7754_v59, %v1250_v41  ;;  %v8311_v33 = vsub.f32 %v7765_v31, %v1250_v41  ;;  %v1142_v11 = vpop.xlane.xlu1 %1141  ;;  %v1544_v34 = vpop.xlane.xlu0 %1543  ;;  %v8318_v59 = vrot.slane %v1010_v48, %v11914_v5  ;;  %v8321_v31 = vrot.slane %v1010_v48, %v11915_v55  ;;  %v11920_v5 = vld [vmem:[#allocation60_spill] sm:$0xff] }
 0x2b3   : > { %5942 = vrsqrt.f32 %v1789_v1  ;;  %v1251_v47 = vmul.f32 0.00390625, %v1142_v11  ;;  %v1726_v52 = vmul.f32 0.00390625, %v1544_v34  ;;  %1648 = vadd.xlane.f32.xlu1 %v1647_v53  ;;  %v11918_v1 = vld [vmem:[#allocation57_spill] sm:$0xff]  ;;  %v8335_v48 = vrot.slane %v1012_v46, %v11915_v55 }
 0x2b4   : > { %11912 = vst [vmem:[#allocation117_spill] sm:$0xff] %v8308_v56  ;;  %11913 = vst [vmem:[#allocation118_spill] sm:$0xff] %v8311_v33  ;;  %v5937_v44 = vpop.eup %5936  ;;  %v1482_v35 = vmul.f32 %v8308_v56, %v8308_v56  ;;  %v1483_v10 = vmul.f32 %v8311_v33, %v8311_v33  ;;  %v11921_v55 = vld [vmem:[#allocation61_spill] sm:$0xff] }
 0x2b5   : > { %v8324_v2 = vsub.f32 %v7772_v3, %v1251_v47  ;;  %v8327_v61 = vsub.f32 %v7783_v60, %v1251_v47  ;;  %v1790_v41 = vadd.f32 1e-05, %v1726_v52  ;;  %v1914_v53 = vmul.f32 %v5937_v44, %v11918_v1 }
 0x2b6   : > { %v1547_v11 = vpop.xlane.xlu1 %1546  ;;  %v1145_v34 = vpop.xlane.xlu0 %1144  ;;  %v1650_v56 = vadd.f32 %v1483_v10, %v1482_v35  ;;  %v1915_v33 = vmul.f32 %v5937_v44, %v11919_v30 }
 0x2b7   : > { %11916 = vst [vmem:[#allocation119_spill] sm:$0xff] %v8324_v2  ;;  %11917 = vst [vmem:[#allocation120_spill] sm:$0xff] %v8327_v61  ;;  %v1484_v3 = vmul.f32 %v8324_v2, %v8324_v2  ;;  %v1485_v60 = vmul.f32 %v8327_v61, %v8327_v61  ;;  %5944 = vrsqrt.f32 %v1790_v41  ;;  %v1727_v52 = vmul.f32 0.00390625, %v1547_v11 }
 0x2b8   : > { %v5939_v47 = vpop.eup %5938  ;;  %v1252_v1 = vmul.f32 0.00390625, %v1145_v34  ;;  %1651 = vadd.xlane.f32.xlu0 %v1650_v56  ;;  %v2053_v35 = vmul.f32 %v8318_v59, %v1914_v53  ;;  %v2054_v30 = vmul.f32 %v8321_v31, %v1915_v33 }
 0x2b9   : > { %v1791_v44 = vadd.f32 1e-05, %v1727_v52  ;;  %v1653_v10 = vadd.f32 %v1485_v60, %v1484_v3  ;;  %v1916_v46 = vmul.f32 %v5939_v47, %v11920_v5  ;;  %v1917_v36 = vmul.f32 %v5939_v47, %v11921_v55 }
 0x2ba   : > { %v8346_v2 = vsub.f32 %v7790_v9, %v1252_v1  ;;  %v8349_v61 = vsub.f32 %v7801_v4, %v1252_v1  ;;  %v1148_v41 = vpop.xlane.xlu1 %1147  ;;  %v1550_v11 = vpop.xlane.xlu0 %1549  ;;  %v8352_v56 = vadd.f32 %v8332_v0, %v2053_v35  ;;  %v8355_v53 = vadd.f32 %v8335_v48, %v2054_v30 }
 0x2bb   : > { %5946 = vrsqrt.f32 %v1791_v44  ;;  %v1253_v33 = vmul.f32 0.00390625, %v1148_v41  ;;  %v1728_v34 = vmul.f32 0.00390625, %v1550_v11  ;;  %1654 = vadd.xlane.f32.xlu1 %v1653_v10  ;;  %v2055_v5 = vmul.f32 %v8318_v59, %v1916_v46  ;;  %v11927_v41 = vld [vmem:[#allocation62_spill] sm:$0xff] }
 0x2bc   : > { %11922 = vst [vmem:[#allocation57_spill] sm:$0xff] %v8346_v2  ;;  %11923 = vst [vmem:[#allocation58_spill] sm:$0xff] %v8349_v61  ;;  %v5941_v55 = vpop.eup %5940  ;;  %v1486_v9 = vmul.f32 %v8346_v2, %v8346_v2  ;;  %v1487_v4 = vmul.f32 %v8349_v61, %v8349_v61  ;;  %v2320_v3 = vadd.f32 %v8355_v53, %v8352_v56  ;;  %v11930_v2 = vld [vmem:[#allocation65_spill] sm:$0xff] }
 0x2bd   : > { %11924 = vst [vmem:[#allocation60_spill] sm:$0xff] %v8355_v53  ;;  %v2056_v60 = vmul.f32 %v8321_v31, %v1917_v36  ;;  %v8366_v52 = vsub.f32 %v7808_v16, %v1253_v33  ;;  %v8369_v47 = vsub.f32 %v7819_v25, %v1253_v33  ;;  %v1792_v1 = vadd.f32 1e-05, %v1728_v34  ;;  %v11928_v36 = vld [vmem:[#allocation63_spill] sm:$0xff] }
 0x2be   : > { %v8372_v35 = vadd.f32 %v8332_v0, %v2055_v5  ;;  %2321 = vadd.xlane.f32.xlu0 %v2320_v3  ;;  %v1553_v30 = vpop.xlane.xlu1 %1552  ;;  %v1151_v44 = vpop.xlane.xlu0 %1150  ;;  %v1656_v46 = vadd.f32 %v1487_v4, %v1486_v9  ;;  %v1918_v11 = vmul.f32 %v5941_v55, %v11927_v41  ;;  %v1919_v61 = vmul.f32 %v5941_v55, %v11928_v36  ;;  %v11929_v55 = vld [vmem:[#allocation64_spill] sm:$0xff] }
 0x2bf   : > { %11925 = vst [vmem:[#allocation61_spill] sm:$0xff] %v8366_v52  ;;  %11926 = vst [vmem:[#allocation121_spill] sm:$0xff] %v8369_v47  ;;  %v8375_v10 = vadd.f32 %v8335_v48, %v2056_v60  ;;  %v1488_v16 = vmul.f32 %v8366_v52, %v8366_v52  ;;  %v1489_v25 = vmul.f32 %v8369_v47, %v8369_v47  ;;  %5948 = vrsqrt.f32 %v1792_v1 }
 0x2c0   : > { %v1729_v33 = vmul.f32 0.00390625, %v1553_v30  ;;  %v5943_v34 = vpop.eup %5942  ;;  %v1254_v5 = vmul.f32 0.00390625, %v1151_v44  ;;  %v2057_v60 = vmul.f32 %v8318_v59, %v1918_v11  ;;  %v2058_v9 = vmul.f32 %v8321_v31, %v1919_v61 }
 0x2c1   : > { %v2323_v3 = vadd.f32 %v8375_v10, %v8372_v35  ;;  %v1659_v41 = vadd.f32 %v1489_v25, %v1488_v16  ;;  %v1920_v36 = vmul.f32 %v5943_v34, %v11929_v55  ;;  %v1921_v52 = vmul.f32 %v5943_v34, %v11930_v2 }
 0x2c2   : > { %v1793_v4 = vadd.f32 1e-05, %v1729_v33  ;;  %v8390_v53 = vsub.f32 %v7826_v22, %v1254_v5  ;;  %v8393_v1 = vsub.f32 %v7837_v17, %v1254_v5  ;;  %1657 = vadd.xlane.f32.xlu0 %v1656_v46  ;;  %v1154_v30 = vpop.xlane.xlu1 %1153  ;;  %v1556_v44 = vpop.xlane.xlu0 %1555  ;;  %v8396_v11 = vadd.f32 %v8332_v0, %v2057_v60 }
 0x2c3   : > { %2324 = vadd.xlane.f32.xlu1 %v2323_v3  ;;  %v1255_v61 = vmul.f32 0.00390625, %v1154_v30  ;;  %v1730_v16 = vmul.f32 0.00390625, %v1556_v44  ;;  %v8399_v25 = vadd.f32 %v8335_v48, %v2058_v9  ;;  %v2059_v46 = vmul.f32 %v8318_v59, %v1920_v36  ;;  %v11936_v30 = vld [vmem:[#allocation66_spill] sm:$0xff] }
 0x2c4   : > { %11931 = vst [vmem:[#allocation62_spill] sm:$0xff] %v8390_v53  ;;  %11932 = vst [vmem:[#allocation63_spill] sm:$0xff] %v8393_v1  ;;  %5950 = vrsqrt.f32 %v1793_v4  ;;  %v5945_v2 = vpop.eup %5944  ;;  %v1490_v22 = vmul.f32 %v8390_v53, %v8390_v53  ;;  %v1491_v17 = vmul.f32 %v8393_v1, %v8393_v1  ;;  %v2060_v33 = vmul.f32 %v8321_v31, %v1921_v52  ;;  %v11937_v1 = vld [vmem:[#allocation67_spill] sm:$0xff]  ;;  %v11938_v53 = vld [vmem:[#allocation68_spill] sm:$0xff] }
 0x2c5   : > { %11933 = vst [vmem:[#allocation64_spill] sm:$0xff] %v8399_v25  ;;  %v8408_v34 = vsub.f32 %v7844_v29, %v1255_v61  ;;  %v8411_v5 = vsub.f32 %v7855_v37, %v1255_v61  ;;  %v1794_v3 = vadd.f32 1e-05, %v1730_v16  ;;  %v2326_v60 = vadd.f32 %v8399_v25, %v8396_v11 }
 0x2c6   : > { %v1559_v9 = vpop.xlane.xlu1 %1558  ;;  %v1157_v4 = vpop.xlane.xlu0 %1156  ;;  %v8416_v55 = vadd.f32 %v8332_v0, %v2059_v46  ;;  %v8419_v36 = vadd.f32 %v8335_v48, %v2060_v33  ;;  %v1662_v52 = vadd.f32 %v1491_v17, %v1490_v22  ;;  %v1922_v29 = vmul.f32 %v5945_v2, %v11936_v30 }
 0x2c7   : > { %11934 = vst [vmem:[#allocation65_spill] sm:$0xff] %v8408_v34  ;;  %11935 = vst [vmem:[#allocation122_spill] sm:$0xff] %v8411_v5  ;;  %1660 = vadd.xlane.f32.xlu1 %v1659_v41  ;;  %v1492_v37 = vmul.f32 %v8408_v34, %v8408_v34  ;;  %v1493_v44 = vmul.f32 %v8411_v5, %v8411_v5  ;;  %5952 = vrsqrt.f32 %v1794_v3  ;;  %2327 = vadd.xlane.f32.xlu0 %v2326_v60  ;;  %v11939_v34 = vld [vmem:[#allocation69_spill] sm:$0xff] }
 0x2c8   : > { %v1731_v41 = vmul.f32 0.00390625, %v1559_v9  ;;  %v5947_v61 = vpop.eup %5946  ;;  %v1256_v16 = vmul.f32 0.00390625, %v1157_v4  ;;  %v2329_v46 = vadd.f32 %v8419_v36, %v8416_v55  ;;  %v1923_v33 = vmul.f32 %v5945_v2, %v11937_v1 }
 0x2c9   : > { %v2061_v22 = vmul.f32 %v8318_v59, %v1922_v29  ;;  %v1665_v30 = vadd.f32 %v1493_v44, %v1492_v37  ;;  %v1924_v47 = vmul.f32 %v5947_v61, %v11938_v53  ;;  %v1925_v25 = vmul.f32 %v5947_v61, %v11939_v34 }
 0x2ca   : > { %v1795_v17 = vadd.f32 1e-05, %v1731_v41  ;;  %v8433_v5 = vsub.f32 %v7862_v39, %v1256_v16  ;;  %v8436_v3 = vsub.f32 %v7873_v32, %v1256_v16  ;;  %v1160_v60 = vpop.xlane.xlu1 %1159  ;;  %v1562_v9 = vpop.xlane.xlu0 %1561  ;;  %v2062_v4 = vmul.f32 %v8321_v31, %v1923_v33 }
 0x2cb   : > { %2330 = vadd.xlane.f32.xlu1 %v2329_v46  ;;  %v8440_v1 = vadd.f32 %v8332_v0, %v2061_v22  ;;  %1663 = vadd.xlane.f32.xlu0 %v1662_v52  ;;  %v1257_v2 = vmul.f32 0.00390625, %v1160_v60  ;;  %v1732_v53 = vmul.f32 0.00390625, %v1562_v9  ;;  %v2063_v34 = vmul.f32 %v8318_v59, %v1924_v47 }
 0x2cc   : > { %11940 = vst [vmem:[#allocation66_spill] sm:$0xff] %v8433_v5  ;;  %11941 = vst [vmem:[#allocation67_spill] sm:$0xff] %v8436_v3  ;;  %5954 = vrsqrt.f32 %v1795_v17  ;;  %v5949_v29 = vpop.eup %5948  ;;  %v1494_v39 = vmul.f32 %v8433_v5, %v8433_v5  ;;  %v1495_v32 = vmul.f32 %v8436_v3, %v8436_v3  ;;  %v8448_v37 = vadd.f32 %v8335_v48, %v2062_v4  ;;  %v11944_v17 = vld [vmem:[#allocation70_spill] sm:$0xff] }
 0x2cd   : > { %v2064_v44 = vmul.f32 %v8321_v31, %v1925_v25  ;;  %v8452_v41 = vsub.f32 %v7880_v50, %v1257_v2  ;;  %v8455_v52 = vsub.f32 %v7891_v12, %v1257_v2  ;;  %v1796_v61 = vadd.f32 1e-05, %v1732_v53  ;;  %v11945_v53 = vld [vmem:[#allocation71_spill] sm:$0xff] }
 0x2ce   : > { %v8458_v47 = vadd.f32 %v8332_v0, %v2063_v34  ;;  %v2332_v16 = vadd.f32 %v8448_v37, %v8440_v1  ;;  %v1565_v46 = vpop.xlane.xlu1 %1564  ;;  %v1163_v33 = vpop.xlane.xlu0 %1162  ;;  %v1668_v25 = vadd.f32 %v1495_v32, %v1494_v39  ;;  %v1926_v50 = vmul.f32 %v5949_v29, %v11944_v17  ;;  %v11946_v17 = vld [vmem:[#allocation72_spill] sm:$0xff] }
 0x2cf   : > { %11942 = vst [vmem:[#allocation68_spill] sm:$0xff] %v8452_v41  ;;  %11943 = vst [vmem:[#allocation69_spill] sm:$0xff] %v8455_v52  ;;  %1666 = vadd.xlane.f32.xlu1 %v1665_v30  ;;  %v8463_v22 = vadd.f32 %v8335_v48, %v2064_v44  ;;  %v1496_v12 = vmul.f32 %v8452_v41, %v8452_v41  ;;  %v1497_v60 = vmul.f32 %v8455_v52, %v8455_v52  ;;  %v11947_v41 = vld [vmem:[#allocation73_spill] sm:$0xff] }
 0x2d0   : > { %5956 = vrsqrt.f32 %v1796_v61  ;;  %v1733_v9 = vmul.f32 0.00390625, %v1565_v46  ;;  %2333 = vadd.xlane.f32.xlu0 %v2332_v16  ;;  %v1258_v4 = vmul.f32 0.00390625, %v1163_v33  ;;  %v1927_v34 = vmul.f32 %v5949_v29, %v11945_v53 }
 0x2d1   : > { %v5951_v30 = vpop.eup %5950  ;;  %v2335_v2 = vadd.f32 %v8463_v22, %v8458_v47  ;;  %v2065_v39 = vmul.f32 %v8318_v59, %v1926_v50  ;;  %v1671_v44 = vadd.f32 %v1497_v60, %v1496_v12 }
 0x2d2   : > { %v1797_v32 = vadd.f32 1e-05, %v1733_v9  ;;  %v1928_v3 = vmul.f32 %v5951_v30, %v11946_v17  ;;  %v1929_v5 = vmul.f32 %v5951_v30, %v11947_v41  ;;  %v8477_v52 = vsub.f32 %v7898_v58, %v1258_v4  ;;  %v1166_v16 = vpop.xlane.xlu1 %1165  ;;  %v1568_v46 = vpop.xlane.xlu0 %1567  ;;  %v11952_v17 = vld [vmem:[#allocation74_spill] sm:$0xff] }
 0x2d3   : > { %v8480_v61 = vsub.f32 %v7909_v51, %v1258_v4  ;;  %2336 = vadd.xlane.f32.xlu1 %v2335_v2  ;;  %v2066_v33 = vmul.f32 %v8321_v31, %v1927_v34  ;;  %v8484_v29 = vadd.f32 %v8332_v0, %v2065_v39  ;;  %v1259_v50 = vmul.f32 0.00390625, %v1166_v16 }
 0x2d4   : > { %11948 = vst [vmem:[#allocation70_spill] sm:$0xff] %v8477_v52  ;;  %5958 = vrsqrt.f32 %v1797_v32  ;;  %v1734_v12 = vmul.f32 0.00390625, %v1568_v46  ;;  %v2067_v60 = vmul.f32 %v8318_v59, %v1928_v3  ;;  %v5953_v41 = vpop.eup %5952  ;;  %v1498_v58 = vmul.f32 %v8477_v52, %v8477_v52  ;;  %1669 = vadd.xlane.f32.xlu0 %v1668_v25 }
 0x2d5   : > { %11949 = vst [vmem:[#allocation71_spill] sm:$0xff] %v8480_v61  ;;  %v1499_v51 = vmul.f32 %v8480_v61, %v8480_v61  ;;  %v8492_v9 = vadd.f32 %v8335_v48, %v2066_v33  ;;  %v2068_v30 = vmul.f32 %v8321_v31, %v1929_v5  ;;  %v8496_v4 = vsub.f32 %v7916_v6, %v1259_v50 }
 0x2d6   : > { %v8499_v2 = vsub.f32 %v7927_v54, %v1259_v50  ;;  %v1798_v3 = vadd.f32 1e-05, %v1734_v12  ;;  %v8502_v53 = vadd.f32 %v8332_v0, %v2067_v60  ;;  %v1571_v25 = vpop.xlane.xlu1 %1570  ;;  %v1169_v39 = vpop.xlane.xlu0 %1168  ;;  %v1930_v6 = vmul.f32 %v5953_v41, %v11952_v17  ;;  %v11953_v12 = vld [vmem:[#allocation75_spill] sm:$0xff]  ;;  %v11954_v17 = vld [vmem:[#allocation76_spill] sm:$0xff] }
 0x2d7   : > { %11950 = vst [vmem:[#allocation72_spill] sm:$0xff] %v8496_v4  ;;  %1672 = vadd.xlane.f32.xlu1 %v1671_v44  ;;  %v2338_v34 = vadd.f32 %v8492_v9, %v8484_v29  ;;  %v8507_v32 = vadd.f32 %v8335_v48, %v2068_v30  ;;  %v1674_v5 = vadd.f32 %v1499_v51, %v1498_v58  ;;  %v1735_v46 = vmul.f32 0.00390625, %v1571_v25 }
 0x2d8   : > { %11951 = vst [vmem:[#allocation73_spill] sm:$0xff] %v8499_v2  ;;  %v1500_v54 = vmul.f32 %v8496_v4, %v8496_v4  ;;  %v1501_v16 = vmul.f32 %v8499_v2, %v8499_v2  ;;  %5960 = vrsqrt.f32 %v1798_v3  ;;  %v1260_v33 = vmul.f32 0.00390625, %v1169_v39  ;;  %v11955_v4 = vld [vmem:[#allocation77_spill] sm:$0xff] }
 0x2d9   : > { %v5955_v44 = vpop.eup %5954  ;;  %2339 = vadd.xlane.f32.xlu0 %v2338_v34  ;;  %v2341_v50 = vadd.f32 %v8507_v32, %v8502_v53  ;;  %v1931_v60 = vmul.f32 %v5953_v41, %v11953_v12  ;;  %v2069_v58 = vmul.f32 %v8318_v59, %v1930_v6  ;;  %v1799_v51 = vadd.f32 1e-05, %v1735_v46 }
 0x2da   : > { %v1677_v30 = vadd.f32 %v1501_v16, %v1500_v54  ;;  %v1932_v61 = vmul.f32 %v5955_v44, %v11954_v17  ;;  %v1933_v52 = vmul.f32 %v5955_v44, %v11955_v4  ;;  %v8521_v2 = vsub.f32 %v7934_v14, %v1260_v33  ;;  %v1172_v34 = vpop.xlane.xlu1 %1171  ;;  %v1574_v25 = vpop.xlane.xlu0 %1573  ;;  %v11960_v17 = vld [vmem:[#allocation78_spill] sm:$0xff] }
 0x2db   : > { %v8524_v3 = vsub.f32 %v7945_v7, %v1260_v33  ;;  %2342 = vadd.xlane.f32.xlu1 %v2341_v50  ;;  %v2070_v39 = vmul.f32 %v8321_v31, %v1931_v60  ;;  %v8528_v41 = vadd.f32 %v8332_v0, %v2069_v58  ;;  %5962 = vrsqrt.f32 %v1799_v51 }
 0x2dc   : > { %11956 = vst [vmem:[#allocation74_spill] sm:$0xff] %v8521_v2  ;;  %v1261_v6 = vmul.f32 0.00390625, %v1172_v34  ;;  %v1736_v54 = vmul.f32 0.00390625, %v1574_v25  ;;  %v2071_v16 = vmul.f32 %v8318_v59, %v1932_v61  ;;  %v1502_v14 = vmul.f32 %v8521_v2, %v8521_v2 }
 0x2dd   : > { %11957 = vst [vmem:[#allocation75_spill] sm:$0xff] %v8524_v3  ;;  %v5957_v4 = vpop.eup %5956  ;;  %v1503_v7 = vmul.f32 %v8524_v3, %v8524_v3  ;;  %1675 = vadd.xlane.f32.xlu0 %v1674_v5  ;;  %v8536_v46 = vadd.f32 %v8335_v48, %v2070_v39  ;;  %v2072_v44 = vmul.f32 %v8321_v31, %v1933_v52 }
 0x2de   : > { %v8540_v33 = vsub.f32 %v7952_v20, %v1261_v6  ;;  %v8543_v50 = vsub.f32 %v7963_v26, %v1261_v6  ;;  %v1800_v61 = vadd.f32 1e-05, %v1736_v54  ;;  %v8546_v12 = vadd.f32 %v8332_v0, %v2071_v16  ;;  %v1577_v5 = vpop.xlane.xlu1 %1576  ;;  %v1175_v58 = vpop.xlane.xlu0 %1174  ;;  %v11961_v54 = vld [vmem:[#allocation79_spill] sm:$0xff] }
 0x2df   : > { %1678 = vadd.xlane.f32.xlu1 %v1677_v30  ;;  %v2344_v60 = vadd.f32 %v8536_v46, %v8528_v41  ;;  %v8551_v51 = vadd.f32 %v8335_v48, %v2072_v44  ;;  %v1680_v52 = vadd.f32 %v1503_v7, %v1502_v14  ;;  %v1934_v20 = vmul.f32 %v5957_v4, %v11960_v17  ;;  %v11962_v17 = vld [vmem:[#allocation80_spill] sm:$0xff] }
 0x2e0   : > { %11958 = vst [vmem:[#allocation76_spill] sm:$0xff] %v8540_v33  ;;  %11959 = vst [vmem:[#allocation77_spill] sm:$0xff] %v8543_v50  ;;  %v1504_v26 = vmul.f32 %v8540_v33, %v8540_v33  ;;  %v1505_v34 = vmul.f32 %v8543_v50, %v8543_v50  ;;  %5964 = vrsqrt.f32 %v1800_v61  ;;  %v1737_v25 = vmul.f32 0.00390625, %v1577_v5  ;;  %v11963_v33 = vld [vmem:[#allocation81_spill] sm:$0xff] }
 0x2e1   : > { %v5959_v30 = vpop.eup %5958  ;;  %2345 = vadd.xlane.f32.xlu0 %v2344_v60  ;;  %v1262_v39 = vmul.f32 0.00390625, %v1175_v58  ;;  %v2347_v6 = vadd.f32 %v8551_v51, %v8546_v12  ;;  %v1935_v16 = vmul.f32 %v5957_v4, %v11961_v54  ;;  %v2073_v14 = vmul.f32 %v8318_v59, %v1934_v20 }
 0x2e2   : > { %v1801_v7 = vadd.f32 1e-05, %v1737_v25  ;;  %v1683_v44 = vadd.f32 %v1505_v34, %v1504_v26  ;;  %v1936_v3 = vmul.f32 %v5959_v30, %v11962_v17  ;;  %v1937_v2 = vmul.f32 %v5959_v30, %v11963_v33  ;;  %v1178_v60 = vpop.xlane.xlu1 %1177  ;;  %v1580_v5 = vpop.xlane.xlu0 %1579  ;;  %v11968_v17 = vld [vmem:[#allocation82_spill] sm:$0xff] }
 0x2e3   : > { %v8565_v50 = vsub.f32 %v7970_v27, %v1262_v39  ;;  %v8568_v61 = vsub.f32 %v7981_v21, %v1262_v39  ;;  %2348 = vadd.xlane.f32.xlu1 %v2347_v6  ;;  %v2074_v58 = vmul.f32 %v8321_v31, %v1935_v16  ;;  %v8572_v4 = vadd.f32 %v8332_v0, %v2073_v14 }
 0x2e4   : > { %5966 = vrsqrt.f32 %v1801_v7  ;;  %v1263_v20 = vmul.f32 0.00390625, %v1178_v60  ;;  %v1738_v26 = vmul.f32 0.00390625, %v1580_v5  ;;  %v2075_v34 = vmul.f32 %v8318_v59, %v1936_v3 }
 0x2e5   : > { %11964 = vst [vmem:[#allocation78_spill] sm:$0xff] %v8565_v50  ;;  %11965 = vst [vmem:[#allocation79_spill] sm:$0xff] %v8568_v61  ;;  %v5961_v33 = vpop.eup %5960  ;;  %v1506_v27 = vmul.f32 %v8565_v50, %v8565_v50  ;;  %v1507_v21 = vmul.f32 %v8568_v61, %v8568_v61  ;;  %1681 = vadd.xlane.f32.xlu0 %v1680_v52  ;;  %v8580_v25 = vadd.f32 %v8335_v48, %v2074_v58 }
 0x2e6   : > { %v2076_v30 = vmul.f32 %v8321_v31, %v1937_v2  ;;  %v8584_v39 = vsub.f32 %v7988_v38, %v1263_v20  ;;  %v8587_v6 = vsub.f32 %v7999_v45, %v1263_v20  ;;  %v1802_v3 = vadd.f32 1e-05, %v1738_v26  ;;  %v1583_v52 = vpop.xlane.xlu1 %1582  ;;  %v1181_v14 = vpop.xlane.xlu0 %1180  ;;  %v11969_v26 = vld [vmem:[#allocation83_spill] sm:$0xff] }
 0x2e7   : > { %v8590_v54 = vadd.f32 %v8332_v0, %v2075_v34  ;;  %1684 = vadd.xlane.f32.xlu1 %v1683_v44  ;;  %v2350_v16 = vadd.f32 %v8580_v25, %v8572_v4  ;;  %v1686_v2 = vadd.f32 %v1507_v21, %v1506_v27  ;;  %v1938_v38 = vmul.f32 %v5961_v33, %v11968_v17  ;;  %v11970_v17 = vld [vmem:[#allocation84_spill] sm:$0xff] }
 0x2e8   : > { %11966 = vst [vmem:[#allocation80_spill] sm:$0xff] %v8584_v39  ;;  %11967 = vst [vmem:[#allocation81_spill] sm:$0xff] %v8587_v6  ;;  %v8595_v7 = vadd.f32 %v8335_v48, %v2076_v30  ;;  %v1508_v45 = vmul.f32 %v8584_v39, %v8584_v39  ;;  %v1509_v60 = vmul.f32 %v8587_v6, %v8587_v6  ;;  %5968 = vrsqrt.f32 %v1802_v3  ;;  %v5963_v44 = vpop.eup %5962  ;;  %v11971_v39 = vld [vmem:[#allocation85_spill] sm:$0xff] }
 0x2e9   : > { %v1739_v5 = vmul.f32 0.00390625, %v1583_v52  ;;  %2351 = vadd.xlane.f32.xlu0 %v2350_v16  ;;  %v1264_v58 = vmul.f32 0.00390625, %v1181_v14  ;;  %v1939_v34 = vmul.f32 %v5961_v33, %v11969_v26  ;;  %v2077_v27 = vmul.f32 %v8318_v59, %v1938_v38 }
 0x2ea   : > { %v2353_v20 = vadd.f32 %v8595_v7, %v8590_v54  ;;  %v1689_v30 = vadd.f32 %v1509_v60, %v1508_v45  ;;  %v1940_v61 = vmul.f32 %v5963_v44, %v11970_v17  ;;  %v1941_v50 = vmul.f32 %v5963_v44, %v11971_v39  ;;  %v1184_v16 = vpop.xlane.xlu1 %1183  ;;  %v1586_v52 = vpop.xlane.xlu0 %1585  ;;  %v11976_v17 = vld [vmem:[#allocation86_spill] sm:$0xff] }
 0x2eb   : > { %v1803_v21 = vadd.f32 1e-05, %v1739_v5  ;;  %v8609_v6 = vsub.f32 %v8006_v49, %v1264_v58  ;;  %v8612_v3 = vsub.f32 %v8017_v43, %v1264_v58  ;;  %v2078_v14 = vmul.f32 %v8321_v31, %v1939_v34 }
 0x2ec   : > { %2354 = vadd.xlane.f32.xlu1 %v2353_v20  ;;  %v8616_v33 = vadd.f32 %v8332_v0, %v2077_v27  ;;  %v1265_v38 = vmul.f32 0.00390625, %v1184_v16  ;;  %v1740_v45 = vmul.f32 0.00390625, %v1586_v52  ;;  %v2079_v60 = vmul.f32 %v8318_v59, %v1940_v61 }
 0x2ed   : > { %11972 = vst [vmem:[#allocation82_spill] sm:$0xff] %v8609_v6  ;;  %11973 = vst [vmem:[#allocation83_spill] sm:$0xff] %v8612_v3  ;;  %5970 = vrsqrt.f32 %v1803_v21  ;;  %v5965_v39 = vpop.eup %5964  ;;  %v1510_v49 = vmul.f32 %v8609_v6, %v8609_v6  ;;  %v1511_v43 = vmul.f32 %v8612_v3, %v8612_v3  ;;  %1687 = vadd.xlane.f32.xlu0 %v1686_v2 }
 0x2ee   : > { %v8624_v5 = vadd.f32 %v8335_v48, %v2078_v14  ;;  %v2080_v44 = vmul.f32 %v8321_v31, %v1941_v50  ;;  %v8628_v58 = vsub.f32 %v8024_v62, %v1265_v38  ;;  %v8631_v20 = vsub.f32 %v8035_v15, %v1265_v38  ;;  %v1589_v2 = vpop.xlane.xlu1 %1588  ;;  %v1187_v27 = vpop.xlane.xlu0 %1186 }
 0x2ef   : > { %v1804_v61 = vadd.f32 1e-05, %v1740_v45  ;;  %v8634_v26 = vadd.f32 %v8332_v0, %v2079_v60  ;;  %v1692_v50 = vadd.f32 %v1511_v43, %v1510_v49  ;;  %v1942_v62 = vmul.f32 %v5965_v39, %v11976_v17  ;;  %v11977_v45 = vld [vmem:[#allocation87_spill] sm:$0xff]  ;;  %v11978_v17 = vld [vmem:[#allocation88_spill] sm:$0xff] }
 0x2f0   : > { %11974 = vst [vmem:[#allocation84_spill] sm:$0xff] %v8628_v58  ;;  %11975 = vst [vmem:[#allocation85_spill] sm:$0xff] %v8631_v20  ;;  %1690 = vadd.xlane.f32.xlu1 %v1689_v30  ;;  %v2356_v34 = vadd.f32 %v8624_v5, %v8616_v33  ;;  %v8639_v21 = vadd.f32 %v8335_v48, %v2080_v44  ;;  %v1512_v15 = vmul.f32 %v8628_v58, %v8628_v58  ;;  %v11979_v58 = vld [vmem:[#allocation89_spill] sm:$0xff] }
 0x2f1   : > { %v1513_v16 = vmul.f32 %v8631_v20, %v8631_v20  ;;  %5972 = vrsqrt.f32 %v1804_v61  ;;  %v1741_v52 = vmul.f32 0.00390625, %v1589_v2  ;;  %v5967_v30 = vpop.eup %5966  ;;  %v1266_v14 = vmul.f32 0.00390625, %v1187_v27 }
 0x2f2   : > { %2357 = vadd.xlane.f32.xlu0 %v2356_v34  ;;  %v2359_v38 = vadd.f32 %v8639_v21, %v8634_v26  ;;  %v1943_v60 = vmul.f32 %v5965_v39, %v11977_v45  ;;  %v2081_v49 = vmul.f32 %v8318_v59, %v1942_v62  ;;  %v1944_v3 = vmul.f32 %v5967_v30, %v11978_v17  ;;  %v1190_v34 = vpop.xlane.xlu1 %1189  ;;  %v1592_v2 = vpop.xlane.xlu0 %1591  ;;  %v11986_v17 = vld [vmem:[#allocation90_spill] sm:$0xff] }
 0x2f3   : > { %v1805_v43 = vadd.f32 1e-05, %v1741_v52  ;;  %v1695_v44 = vadd.f32 %v1513_v16, %v1512_v15  ;;  %v1945_v6 = vmul.f32 %v5967_v30, %v11979_v58  ;;  %v8653_v20 = vsub.f32 %v8042_v8, %v1266_v14 }
 0x2f4   : > { %v8656_v61 = vsub.f32 %v8053_v63, %v1266_v14  ;;  %2360 = vadd.xlane.f32.xlu1 %v2359_v38  ;;  %v2082_v27 = vmul.f32 %v8321_v31, %v1943_v60  ;;  %v8660_v39 = vadd.f32 %v8332_v0, %v2081_v49  ;;  %v1267_v62 = vmul.f32 0.00390625, %v1190_v34 }
 0x2f5   : > { %11980 = vst [vmem:[#allocation86_spill] sm:$0xff] %v8653_v20  ;;  %5974 = vrsqrt.f32 %v1805_v43  ;;  %v1742_v15 = vmul.f32 0.00390625, %v1592_v2  ;;  %v2083_v16 = vmul.f32 %v8318_v59, %v1944_v3  ;;  %v5969_v58 = vpop.eup %5968  ;;  %v1514_v8 = vmul.f32 %v8653_v20, %v8653_v20 }
 0x2f6   : > { %11981 = vst [vmem:[#allocation87_spill] sm:$0xff] %v8656_v61  ;;  %v1515_v63 = vmul.f32 %v8656_v61, %v8656_v61  ;;  %1693 = vadd.xlane.f32.xlu0 %v1692_v50  ;;  %v8668_v52 = vadd.f32 %v8335_v48, %v2082_v27  ;;  %v2084_v30 = vmul.f32 %v8321_v31, %v1945_v6  ;;  %v1595_v50 = vpop.xlane.xlu1 %1594 }
 0x2f7   : > { %v8672_v14 = vsub.f32 %v8060_v18, %v1267_v62  ;;  %v8675_v38 = vsub.f32 %v8071_v57, %v1267_v62  ;;  %v1806_v3 = vadd.f32 1e-05, %v1742_v15  ;;  %v8678_v45 = vadd.f32 %v8332_v0, %v2083_v16  ;;  %v1193_v49 = vpop.xlane.xlu0 %1192  ;;  %v11987_v15 = vld [vmem:[#allocation91_spill] sm:$0xff] }
 0x2f8   : > { %1696 = vadd.xlane.f32.xlu1 %v1695_v44  ;;  %v2362_v60 = vadd.f32 %v8668_v52, %v8660_v39  ;;  %v8683_v43 = vadd.f32 %v8335_v48, %v2084_v30  ;;  %v1698_v6 = vadd.f32 %v1515_v63, %v1514_v8  ;;  %v1946_v18 = vmul.f32 %v5969_v58, %v11986_v17  ;;  %v11988_v17 = vld [vmem:[#allocation92_spill] sm:$0xff] }
 0x2f9   : > { %11982 = vst [vmem:[#allocation88_spill] sm:$0xff] %v8672_v14  ;;  %11983 = vst [vmem:[#allocation89_spill] sm:$0xff] %v8675_v38  ;;  %v1516_v57 = vmul.f32 %v8672_v14, %v8672_v14  ;;  %v1517_v34 = vmul.f32 %v8675_v38, %v8675_v38  ;;  %5976 = vrsqrt.f32 %v1806_v3  ;;  %v1743_v2 = vmul.f32 0.00390625, %v1595_v50  ;;  %v11989_v14 = vld [vmem:[#allocation93_spill] sm:$0xff]  ;;  %v11991_v3 = vld [vmem:[#allocation104_spill] sm:$0xff] }
 0x2fa   : > { %11984 = vst [vmem:[#allocation123_spill] sm:$0xff] %v8678_v45  ;;  %11985 = vst [vmem:[#allocation124_spill] sm:$0xff] %v8683_v43  ;;  %v5971_v44 = vpop.eup %5970  ;;  %2363 = vadd.xlane.f32.xlu0 %v2362_v60  ;;  %v1268_v27 = vmul.f32 0.00390625, %v1193_v49  ;;  %v2365_v62 = vadd.f32 %v8683_v43, %v8678_v45  ;;  %v1947_v16 = vmul.f32 %v5969_v58, %v11987_v15  ;;  %v1196_v60 = vpop.xlane.xlu1 %1195  ;;  %v12005_v45 = vld [vmem:[#allocation109_spill] sm:$0xff] }
 0x2fb   : > { %v2085_v8 = vmul.f32 %v8318_v59, %v1946_v18  ;;  %v1807_v63 = vadd.f32 1e-05, %v1743_v2  ;;  %v1701_v30 = vadd.f32 %v1517_v34, %v1516_v57  ;;  %v1948_v61 = vmul.f32 %v5971_v44, %v11988_v17  ;;  %v1598_v49 = vpop.xlane.xlu0 %1597 }
 0x2fc   : > { %v1949_v20 = vmul.f32 %v5971_v44, %v11989_v14  ;;  %v8697_v38 = vsub.f32 %v8074_v42, %v1268_v27  ;;  %v8700_v50 = vsub.f32 %v11991_v3, %v1268_v27  ;;  %2366 = vadd.xlane.f32.xlu1 %v2365_v62  ;;  %v2086_v43 = vmul.f32 %v8321_v31, %v1947_v16  ;;  %v11995_v62 = vld [vmem:[#allocation105_spill] sm:$0xff]  ;;  %v11997_v16 = vld [vmem:[#allocation108_spill] sm:$0xff] }
 0x2fd   : > { %v8704_v58 = vadd.f32 %v8332_v0, %v2085_v8  ;;  %5978 = vrsqrt.f32 %v1807_v63  ;;  %v1269_v18 = vmul.f32 0.00390625, %v1196_v60  ;;  %v1744_v57 = vmul.f32 0.00390625, %v1598_v49  ;;  %v12001_v60 = vld [vmem:[#allocation94_spill] sm:$0xff] }
 0x2fe   : > { %11990 = vst [vmem:[#allocation90_spill] sm:$0xff] %v8697_v38  ;;  %11992 = vst [vmem:[#allocation91_spill] sm:$0xff] %v8700_v50  ;;  %v2087_v34 = vmul.f32 %v8318_v59, %v1948_v61  ;;  %v5973_v14 = vpop.eup %5972  ;;  %v1518_v42 = vmul.f32 %v8697_v38, %v8697_v38  ;;  %v1519_v2 = vmul.f32 %v8700_v50, %v8700_v50  ;;  %1699 = vadd.xlane.f32.xlu0 %v1698_v6  ;;  %v1601_v6 = vpop.xlane.xlu1 %1600  ;;  %v12002_v50 = vld [vmem:[#allocation95_spill] sm:$0xff]  ;;  %v12003_v38 = vld [vmem:[#allocation96_spill] sm:$0xff] }
 0x2ff   : > { %11993 = vst [vmem:[#allocation92_spill] sm:$0xff] %v8704_v58  ;;  %v8712_v44 = vadd.f32 %v8335_v48, %v2086_v43  ;;  %v2088_v27 = vmul.f32 %v8321_v31, %v1949_v20  ;;  %v8716_v15 = vsub.f32 %v11995_v62, %v1269_v18  ;;  %v8719_v8 = vsub.f32 %v11997_v16, %v1269_v18  ;;  %v1199_v3 = vpop.xlane.xlu0 %1198 }
 0x300   : > { %v1808_v61 = vadd.f32 1e-05, %v1744_v57  ;;  %v8722_v63 = vadd.f32 %v8332_v0, %v2087_v34  ;;  %1702 = vadd.xlane.f32.xlu1 %v1701_v30  ;;  %v1704_v20 = vadd.f32 %v1519_v2, %v1518_v42  ;;  %v1950_v49 = vmul.f32 %v5973_v14, %v12001_v60 }
 0x301   : > { %11994 = vst [vmem:[#allocation93_spill] sm:$0xff] %v8712_v44  ;;  %11996 = vst [vmem:[#allocation104_spill] sm:$0xff] %v8716_v15  ;;  %v2368_v17 = vadd.f32 %v8712_v44, %v8704_v58  ;;  %v8727_v43 = vadd.f32 %v8335_v48, %v2088_v27  ;;  %v1520_v18 = vmul.f32 %v8716_v15, %v8716_v15  ;;  %v1745_v34 = vmul.f32 0.00390625, %v1601_v6  ;;  %v12004_v15 = vld [vmem:[#allocation97_spill] sm:$0xff] }
 0x302   : > { %11998 = vst [vmem:[#allocation105_spill] sm:$0xff] %v8719_v8  ;;  %11999 = vst [vmem:[#allocation108_spill] sm:$0xff] %v8722_v63  ;;  %v1521_v57 = vmul.f32 %v8719_v8, %v8719_v8  ;;  %5980 = vrsqrt.f32 %v1808_v61  ;;  %v5975_v30 = vpop.eup %5974  ;;  %v1270_v62 = vmul.f32 0.00390625, %v1199_v3  ;;  %v1951_v27 = vmul.f32 %v5973_v14, %v12002_v50  ;;  %v12007_v61 = vld [vmem:[#allocation110_spill] sm:$0xff] }
 0x303   : > { %12000 = vst [vmem:[#allocation125_spill] sm:$0xff] %v8727_v43  ;;  %2369 = vadd.xlane.f32.xlu0 %v2368_v17  ;;  %v2371_v16 = vadd.f32 %v8727_v43, %v8722_v63  ;;  %v2089_v42 = vmul.f32 %v8318_v59, %v1950_v49  ;;  %v1809_v2 = vadd.f32 1e-05, %v1745_v34  ;;  %v1952_v44 = vmul.f32 %v5975_v30, %v12003_v38  ;;  %v1202_v17 = vpop.xlane.xlu1 %1201  ;;  %v1604_v3 = vpop.xlane.xlu0 %1603 }
 0x304   : > { %v1707_v60 = vadd.f32 %v1521_v57, %v1520_v18  ;;  %v1953_v58 = vmul.f32 %v5975_v30, %v12004_v15  ;;  %v8741_v8 = vsub.f32 %v12005_v45, %v1270_v62  ;;  %v8744_v6 = vsub.f32 %v12007_v61, %v1270_v62  ;;  %v12011_v30 = vld [vmem:[#allocation111_spill] sm:$0xff] }
 0x305   : > { %2372 = vadd.xlane.f32.xlu1 %v2371_v16  ;;  %v2090_v43 = vmul.f32 %v8321_v31, %v1951_v27  ;;  %v8748_v50 = vadd.f32 %v8332_v0, %v2089_v42  ;;  %5982 = vrsqrt.f32 %v1809_v2  ;;  %v1271_v14 = vmul.f32 0.00390625, %v1202_v17  ;;  %v12013_v16 = vld [vmem:[#allocation112_spill] sm:$0xff] }
 0x306   : > { %12006 = vst [vmem:[#allocation94_spill] sm:$0xff] %v8741_v8  ;;  %12008 = vst [vmem:[#allocation95_spill] sm:$0xff] %v8744_v6  ;;  %v1746_v49 = vmul.f32 0.00390625, %v1604_v3  ;;  %v2091_v38 = vmul.f32 %v8318_v59, %v1952_v44  ;;  %v5977_v15 = vpop.eup %5976  ;;  %v1522_v45 = vmul.f32 %v8741_v8, %v8741_v8  ;;  %v1523_v18 = vmul.f32 %v8744_v6, %v8744_v6 }
 0x307   : > { %12009 = vst [vmem:[#allocation96_spill] sm:$0xff] %v8748_v50  ;;  %1705 = vadd.xlane.f32.xlu0 %v1704_v20  ;;  %v8756_v57 = vadd.f32 %v8335_v48, %v2090_v43  ;;  %v2092_v34 = vmul.f32 %v8321_v31, %v1953_v58  ;;  %v8760_v62 = vsub.f32 %v12011_v30, %v1271_v14  ;;  %v1607_v20 = vpop.xlane.xlu1 %1606  ;;  %v1205_v61 = vpop.xlane.xlu0 %1204  ;;  %v12015_v58 = vld [vmem:[#allocation98_spill] sm:$0xff] }
 0x308   : > { %v8763_v27 = vsub.f32 %v12013_v16, %v1271_v14  ;;  %v1810_v44 = vadd.f32 1e-05, %v1746_v49  ;;  %v8766_v42 = vadd.f32 %v8332_v0, %v2091_v38  ;;  %v1954_v17 = vmul.f32 %v5977_v15, %v12015_v58  ;;  %v12016_v16 = vld [vmem:[#allocation99_spill] sm:$0xff] }
 0x309   : > { %12010 = vst [vmem:[#allocation97_spill] sm:$0xff] %v8756_v57  ;;  %12012 = vst [vmem:[#allocation109_spill] sm:$0xff] %v8760_v62  ;;  %1708 = vadd.xlane.f32.xlu1 %v1707_v60  ;;  %v2374_v2 = vadd.f32 %v8756_v57, %v8748_v50  ;;  %v8771_v43 = vadd.f32 %v8335_v48, %v2092_v34  ;;  %v1524_v3 = vmul.f32 %v8760_v62, %v8760_v62  ;;  %v12017_v57 = vld [vmem:[#allocation100_spill] sm:$0xff]  ;;  %v12018_v62 = vld [vmem:[#allocation101_spill] sm:$0xff] }
 0x30a   : > { %12014 = vst [vmem:[#allocation110_spill] sm:$0xff] %v8763_v27  ;;  %v1525_v14 = vmul.f32 %v8763_v27, %v8763_v27  ;;  %5984 = vrsqrt.f32 %v1810_v44  ;;  %v1747_v49 = vmul.f32 0.00390625, %v1607_v20  ;;  %v5979_v38 = vpop.eup %5978  ;;  %v1272_v60 = vmul.f32 0.00390625, %v1205_v61 }
 0x30b   : > { %2375 = vadd.xlane.f32.xlu0 %v2374_v2  ;;  %v2377_v30 = vadd.f32 %v8771_v43, %v8766_v42  ;;  %v1955_v6 = vmul.f32 %v5977_v15, %v12016_v16  ;;  %v2093_v34 = vmul.f32 %v8318_v59, %v1954_v17  ;;  %v1710_v58 = vadd.f32 %v1523_v18, %v1522_v45  ;;  %v1208_v2 = vpop.xlane.xlu1 %1207  ;;  %v1610_v20 = vpop.xlane.xlu0 %1609 }
 0x30c   : > { %v1811_v8 = vadd.f32 1e-05, %v1747_v49  ;;  %v1956_v50 = vmul.f32 %v5979_v38, %v12017_v57  ;;  %v1957_v63 = vmul.f32 %v5979_v38, %v12018_v62  ;;  %v8785_v27 = vsub.f32 %v8146_v28, %v1272_v60 }
 0x30d   : > { %v8788_v44 = vsub.f32 %v8161_v24, %v1272_v60  ;;  %2378 = vadd.xlane.f32.xlu1 %v2377_v30  ;;  %v2094_v61 = vmul.f32 %v8321_v31, %v1955_v6  ;;  %v8792_v15 = vadd.f32 %v8332_v0, %v2093_v34  ;;  %v1273_v45 = vmul.f32 0.00390625, %v1208_v2 }
 0x30e   : > { %12019 = vst [vmem:[#allocation111_spill] sm:$0xff] %v8785_v27  ;;  %5986 = vrsqrt.f32 %v1811_v8  ;;  %v1748_v18 = vmul.f32 0.00390625, %v1610_v20  ;;  %v2095_v57 = vmul.f32 %v8318_v59, %v1956_v50  ;;  %v1526_v28 = vmul.f32 %v8785_v27, %v8785_v27 }
 0x30f   : > { %12020 = vst [vmem:[#allocation112_spill] sm:$0xff] %v8788_v44  ;;  %v5981_v62 = vpop.eup %5980  ;;  %1711 = vadd.xlane.f32.xlu0 %v1710_v58  ;;  %v1713_v24 = vadd.f32 %v1525_v14, %v1524_v3  ;;  %v8798_v17 = vadd.f32 %v8335_v48, %v2094_v61  ;;  %v2096_v49 = vmul.f32 %v8321_v31, %v1957_v63  ;;  %v1613_v14 = vpop.xlane.xlu1 %1612  ;;  %v12024_v61 = vld [vmem:[#allocation103_spill] sm:$0xff] }
 0x310   : > { %v8802_v6 = vsub.f32 %v8168_v13, %v1273_v45  ;;  %v8805_v8 = vsub.f32 %v8179_v23, %v1273_v45  ;;  %v1812_v38 = vadd.f32 1e-05, %v1748_v18  ;;  %v8808_v50 = vadd.f32 %v8332_v0, %v2095_v57  ;;  %v12023_v13 = vld [vmem:[#allocation102_spill] sm:$0xff]  ;;  %v1616_v2 = vpop.xlane.xlu0 %1615 }
 0x311   : > { %v1527_v60 = vmul.f32 %v8788_v44, %v8788_v44  ;;  %1714 = vadd.xlane.f32.xlu1 %v1713_v24  ;;  %v2380_v3 = vadd.f32 %v8798_v17, %v8792_v15  ;;  %v8815_v63 = vadd.f32 %v8335_v48, %v2096_v49  ;;  %v1958_v30 = vmul.f32 %v5981_v62, %v12023_v13  ;;  %v12025_v49 = vld [vmem:[#allocation106_spill] sm:$0xff] }
 0x312   : > { %12021 = vst [vmem:[#allocation98_spill] sm:$0xff] %v8802_v6  ;;  %12022 = vst [vmem:[#allocation99_spill] sm:$0xff] %v8805_v8  ;;  %v1528_v23 = vmul.f32 %v8802_v6, %v8802_v6  ;;  %5988 = vrsqrt.f32 %v1812_v38  ;;  %v1749_v16 = vmul.f32 0.00390625, %v1613_v14  ;;  %v5983_v34 = vpop.eup %5982  ;;  %v1529_v58 = vmul.f32 %v8805_v8, %v8805_v8 }
 0x313   : > { %2381 = vadd.xlane.f32.xlu0 %v2380_v3  ;;  %v2383_v20 = vadd.f32 %v8815_v63, %v8808_v50  ;;  %v1959_v45 = vmul.f32 %v5981_v62, %v12024_v61  ;;  %v2097_v18 = vmul.f32 %v8318_v59, %v1958_v30  ;;  %v1750_v24 = vmul.f32 0.00390625, %v1616_v2  ;;  %v12026_v3 = vld [vmem:[#allocation107_spill] sm:$0xff]  ;;  %v12027_v61 = vld [vmem:[#allocation32_spill] sm:$0xff] }
 0x314   : > { %v1813_v57 = vadd.f32 1e-05, %v1749_v16  ;;  %v1960_v13 = vmul.f32 %v5983_v34, %v12025_v49  ;;  %v1716_v38 = vadd.f32 %v1527_v60, %v1526_v28  ;;  %v1961_v8 = vmul.f32 %v5983_v34, %v12026_v3  ;;  %v1619_v30 = vpop.xlane.xlu1 %1618 }
 0x315   : > { %2384 = vadd.xlane.f32.xlu1 %v2383_v20  ;;  %v2098_v14 = vmul.f32 %v8321_v31, %v1959_v45  ;;  %v8829_v6 = vadd.f32 %v8332_v0, %v2097_v18  ;;  %v1814_v44 = vadd.f32 1e-05, %v1750_v24  ;;  %v1719_v16 = vadd.f32 %v1529_v58, %v1528_v23  ;;  %v12028_v23 = vld [vmem:[#allocation33_spill] sm:$0xff] }
 0x316   : > { %5990 = vrsqrt.f32 %v1813_v57  ;;  %v2099_v27 = vmul.f32 %v8318_v59, %v1960_v13  ;;  %v2100_v28 = vmul.f32 %v8321_v31, %v1961_v8  ;;  %v1751_v60 = vmul.f32 0.00390625, %v1619_v30  ;;  %v12031_v30 = vld [vmem:[#allocation35_spill] sm:$0xff] }
 0x317   : > { %v5985_v62 = vpop.eup %5984  ;;  %1717 = vadd.xlane.f32.xlu0 %v1716_v38  ;;  %v8834_v2 = vadd.f32 %v8335_v48, %v2098_v14  ;;  %5992 = vrsqrt.f32 %v1814_v44  ;;  %v12029_v14 = vld [vmem:[#allocation34_spill] sm:$0xff] }
 0x318   : > { %v8838_v20 = vadd.f32 %v8332_v0, %v2099_v27  ;;  %v1962_v34 = vmul.f32 %v5985_v62, %v12027_v61  ;;  %v8844_v18 = vadd.f32 %v8335_v48, %v2100_v28  ;;  %v1963_v58 = vmul.f32 %v5985_v62, %v12028_v23  ;;  %v1622_v44 = vpop.xlane.xlu0 %1621 }
 0x319   : > { %1720 = vadd.xlane.f32.xlu1 %v1719_v16  ;;  %v2386_v45 = vadd.f32 %v8834_v2, %v8829_v6  ;;  %v1815_v57 = vadd.f32 1e-05, %v1751_v60  ;;  %v1752_v13 = vmul.f32 0.00390625, %v1622_v44 }
 0x31a   : > { %v2101_v24 = vmul.f32 %v8318_v59, %v1962_v34  ;;  %v2389_v27 = vadd.f32 %v8844_v18, %v8838_v20  ;;  %v2102_v49 = vmul.f32 %v8321_v31, %v1963_v58 }
 0x31b   : > { %v5987_v8 = vpop.eup %5986  ;;  %2387 = vadd.xlane.f32.xlu0 %v2386_v45  ;;  %5994 = vrsqrt.f32 %v1815_v57  ;;  %v1816_v28 = vadd.f32 1e-05, %v1752_v13 }
 0x31c   : > { %v8852_v38 = vadd.f32 %v8332_v0, %v2101_v24  ;;  %v1964_v3 = vmul.f32 %v5987_v8, %v12029_v14  ;;  %v8856_v62 = vadd.f32 %v8335_v48, %v2102_v49  ;;  %v1965_v16 = vmul.f32 %v5987_v8, %v12031_v30  ;;  %v1625_v34 = vpop.xlane.xlu1 %1624  ;;  %v12033_v24 = vld [vmem:[#allocation36_spill] sm:$0xff] }
 0x31d   : > { %2390 = vadd.xlane.f32.xlu1 %v2389_v27  ;;  %5996 = vrsqrt.f32 %v1816_v28  ;;  %v1753_v58 = vmul.f32 0.00390625, %v1625_v34  ;;  %v12035_v27 = vld [vmem:[#allocation37_spill] sm:$0xff] }
 0x31e   : > { %12030 = vst [vmem:[#allocation100_spill] sm:$0xff] %v8856_v62  ;;  %v2103_v60 = vmul.f32 %v8318_v59, %v1964_v3  ;;  %v2392_v45 = vadd.f32 %v8856_v62, %v8852_v38  ;;  %v2104_v23 = vmul.f32 %v8321_v31, %v1965_v16 }
 0x31f   : > { %v5989_v61 = vpop.eup %5988  ;;  %v1817_v13 = vadd.f32 1e-05, %v1753_v58  ;;  %v12039_v58 = vld [vmem:[#allocation39_spill] sm:$0xff] }
 0x320   : > { %v8864_v57 = vadd.f32 %v8332_v0, %v2103_v60  ;;  %v1966_v44 = vmul.f32 %v5989_v61, %v12033_v24  ;;  %2393 = vadd.xlane.f32.xlu0 %v2392_v45  ;;  %v8868_v8 = vadd.f32 %v8335_v48, %v2104_v23  ;;  %v1967_v49 = vmul.f32 %v5989_v61, %v12035_v27  ;;  %v1628_v30 = vpop.xlane.xlu0 %1627  ;;  %v12037_v45 = vld [vmem:[#allocation38_spill] sm:$0xff] }
 0x321   : > { %5998 = vrsqrt.f32 %v1817_v13  ;;  %v1754_v60 = vmul.f32 0.00390625, %v1628_v30 }
 0x322   : > { %12032 = vst [vmem:[#allocation101_spill] sm:$0xff] %v8864_v57  ;;  %12034 = vst [vmem:[#allocation102_spill] sm:$0xff] %v8868_v8  ;;  %v2105_v14 = vmul.f32 %v8318_v59, %v1966_v44  ;;  %v2395_v16 = vadd.f32 %v8868_v8, %v8864_v57  ;;  %v2106_v28 = vmul.f32 %v8321_v31, %v1967_v49  ;;  %v12040_v8 = vld [vmem:[#allocation40_spill] sm:$0xff]  ;;  %v12041_v49 = vld [vmem:[#allocation41_spill] sm:$0xff] }
 0x323   : > { %v5991_v3 = vpop.eup %5990  ;;  %v1818_v27 = vadd.f32 1e-05, %v1754_v60 }
 0x324   : > { %v8876_v34 = vadd.f32 %v8332_v0, %v2105_v14  ;;  %v1968_v23 = vmul.f32 %v5991_v3, %v12037_v45  ;;  %v5993_v24 = vpop.eup %5992  ;;  %2396 = vadd.xlane.f32.xlu1 %v2395_v16  ;;  %v8880_v61 = vadd.f32 %v8335_v48, %v2106_v28  ;;  %v1969_v44 = vmul.f32 %v5991_v3, %v12039_v58  ;;  %v1631_v30 = vpop.xlane.xlu1 %1630 }
 0x325   : > { %v1970_v57 = vmul.f32 %v5993_v24, %v12040_v8  ;;  %v1971_v13 = vmul.f32 %v5993_v24, %v12041_v49  ;;  %6000 = vrsqrt.f32 %v1818_v27  ;;  %v1755_v16 = vmul.f32 0.00390625, %v1631_v30  ;;  %v12045_v49 = vld [vmem:[#allocation42_spill] sm:$0xff]  ;;  %v12046_v27 = vld [vmem:[#allocation43_spill] sm:$0xff] }
 0x326   : > { %12036 = vst [vmem:[#allocation103_spill] sm:$0xff] %v8876_v34  ;;  %12038 = vst [vmem:[#allocation106_spill] sm:$0xff] %v8880_v61  ;;  %v2107_v62 = vmul.f32 %v8318_v59, %v1968_v23  ;;  %v2398_v14 = vadd.f32 %v8880_v61, %v8876_v34  ;;  %v2108_v45 = vmul.f32 %v8321_v31, %v1969_v44 }
 0x327   : > { %v2109_v3 = vmul.f32 %v8318_v59, %v1970_v57  ;;  %v2110_v8 = vmul.f32 %v8321_v31, %v1971_v13  ;;  %v1819_v24 = vadd.f32 1e-05, %v1755_v16 }
 0x328   : > { %v8890_v28 = vadd.f32 %v8332_v0, %v2107_v62  ;;  %v5995_v60 = vpop.eup %5994  ;;  %2399 = vadd.xlane.f32.xlu0 %v2398_v14  ;;  %v8894_v23 = vadd.f32 %v8335_v48, %v2108_v45  ;;  %v1634_v61 = vpop.xlane.xlu0 %1633 }
 0x329   : > { %v8898_v58 = vadd.f32 %v8332_v0, %v2109_v3  ;;  %v1972_v44 = vmul.f32 %v5995_v60, %v12045_v49  ;;  %v1973_v30 = vmul.f32 %v5995_v60, %v12046_v27  ;;  %v8905_v57 = vadd.f32 %v8335_v48, %v2110_v8  ;;  %v12050_v8 = vld [vmem:[#allocation44_spill] sm:$0xff] }
 0x32a   : > { %12042 = vst [vmem:[#allocation107_spill] sm:$0xff] %v8890_v28  ;;  %12043 = vst [vmem:[#allocation32_spill] sm:$0xff] %v8894_v23  ;;  %v2401_v62 = vadd.f32 %v8894_v23, %v8890_v28  ;;  %6002 = vrsqrt.f32 %v1819_v24  ;;  %v1756_v14 = vmul.f32 0.00390625, %v1634_v61  ;;  %v5997_v16 = vpop.eup %5996  ;;  %v12051_v24 = vld [vmem:[#allocation45_spill] sm:$0xff]  ;;  %v12054_v28 = vld [vmem:[#allocation47_spill] sm:$0xff] }
 0x32b   : > { %12044 = vst [vmem:[#allocation33_spill] sm:$0xff] %v8898_v58  ;;  %12047 = vst [vmem:[#allocation34_spill] sm:$0xff] %v8905_v57  ;;  %v2111_v45 = vmul.f32 %v8318_v59, %v1972_v44  ;;  %v2112_v13 = vmul.f32 %v8321_v31, %v1973_v30  ;;  %v2404_v3 = vadd.f32 %v8905_v57, %v8898_v58 }
 0x32c   : > { %2402 = vadd.xlane.f32.xlu1 %v2401_v62  ;;  %v1820_v49 = vadd.f32 1e-05, %v1756_v14  ;;  %v1974_v23 = vmul.f32 %v5997_v16, %v12050_v8  ;;  %v1637_v61 = vpop.xlane.xlu1 %1636  ;;  %v1975_v44 = vmul.f32 %v5997_v16, %v12051_v24  ;;  %v12053_v8 = vld [vmem:[#allocation46_spill] sm:$0xff] }
 0x32d   : > { %v8912_v60 = vadd.f32 %v8332_v0, %v2111_v45  ;;  %v8915_v27 = vadd.f32 %v8335_v48, %v2112_v13  ;;  %2405 = vadd.xlane.f32.xlu0 %v2404_v3  ;;  %v1757_v30 = vmul.f32 0.00390625, %v1637_v61 }
 0x32e   : > { %6004 = vrsqrt.f32 %v1820_v49  ;;  %v2113_v57 = vmul.f32 %v8318_v59, %v1974_v23  ;;  %v5999_v14 = vpop.eup %5998  ;;  %v2114_v45 = vmul.f32 %v8321_v31, %v1975_v44 }
 0x32f   : > { %12048 = vst [vmem:[#allocation35_spill] sm:$0xff] %v8912_v60  ;;  %12049 = vst [vmem:[#allocation36_spill] sm:$0xff] %v8915_v27  ;;  %v2407_v62 = vadd.f32 %v8915_v27, %v8912_v60  ;;  %v1821_v58 = vadd.f32 1e-05, %v1757_v30  ;;  %v1976_v3 = vmul.f32 %v5999_v14, %v12053_v8  ;;  %v1977_v34 = vmul.f32 %v5999_v14, %v12054_v28  ;;  %v12057_v14 = vld [vmem:[#allocation48_spill] sm:$0xff]  ;;  %v12058_v8 = vld [vmem:[#allocation49_spill] sm:$0xff] }
 0x330   : > { %v8924_v13 = vadd.f32 %v8332_v0, %v2113_v57  ;;  %v1640_v16 = vpop.xlane.xlu0 %1639  ;;  %v8929_v49 = vadd.f32 %v8335_v48, %v2114_v45  ;;  %v12061_v27 = vld [vmem:[#allocation51_spill] sm:$0xff] }
 0x331   : > { %2408 = vadd.xlane.f32.xlu1 %v2407_v62  ;;  %6006 = vrsqrt.f32 %v1821_v58  ;;  %v1758_v61 = vmul.f32 0.00390625, %v1640_v16  ;;  %v2115_v23 = vmul.f32 %v8318_v59, %v1976_v3  ;;  %v2116_v24 = vmul.f32 %v8321_v31, %v1977_v34 }
 0x332   : > { %12052 = vst [vmem:[#allocation37_spill] sm:$0xff] %v8924_v13  ;;  %12055 = vst [vmem:[#allocation38_spill] sm:$0xff] %v8929_v49  ;;  %v6001_v44 = vpop.eup %6000  ;;  %v2410_v30 = vadd.f32 %v8929_v49, %v8924_v13 }
 0x333   : > { %v1822_v57 = vadd.f32 1e-05, %v1758_v61  ;;  %v8936_v62 = vadd.f32 %v8332_v0, %v2115_v23  ;;  %v8939_v28 = vadd.f32 %v8335_v48, %v2116_v24  ;;  %v1978_v45 = vmul.f32 %v6001_v44, %v12057_v14  ;;  %v12060_v14 = vld [vmem:[#allocation50_spill] sm:$0xff] }
 0x334   : > { %2411 = vadd.xlane.f32.xlu0 %v2410_v30  ;;  %v1643_v58 = vpop.xlane.xlu1 %1642  ;;  %v1979_v16 = vmul.f32 %v6001_v44, %v12058_v8 }
 0x335   : > { %12056 = vst [vmem:[#allocation39_spill] sm:$0xff] %v8939_v28  ;;  %6008 = vrsqrt.f32 %v1822_v57  ;;  %v1759_v3 = vmul.f32 0.00390625, %v1643_v58  ;;  %v2413_v34 = vadd.f32 %v8939_v28, %v8936_v62  ;;  %v2117_v49 = vmul.f32 %v8318_v59, %v1978_v45 }
 0x336   : > { %v2118_v23 = vmul.f32 %v8321_v31, %v1979_v16 }
 0x337   : > { %v6003_v61 = vpop.eup %6002  ;;  %v1823_v13 = vadd.f32 1e-05, %v1759_v3  ;;  %2414 = vadd.xlane.f32.xlu1 %v2413_v34  ;;  %v8948_v24 = vadd.f32 %v8332_v0, %v2117_v49 }
 0x338   : > { %v1980_v30 = vmul.f32 %v6003_v61, %v12060_v14  ;;  %v1981_v60 = vmul.f32 %v6003_v61, %v12061_v27  ;;  %v8953_v44 = vadd.f32 %v8335_v48, %v2118_v23  ;;  %v12065_v27 = vld [vmem:[#allocation52_spill] sm:$0xff]  ;;  %v12066_v23 = vld [vmem:[#allocation53_spill] sm:$0xff] }
 0x339   : > { %12059 = vst [vmem:[#allocation40_spill] sm:$0xff] %v8948_v24  ;;  %6010 = vrsqrt.f32 %v1823_v13  ;;  %v1646_v57 = vpop.xlane.xlu0 %1645 }
 0x33a   : > { %12062 = vst [vmem:[#allocation41_spill] sm:$0xff] %v8953_v44  ;;  %v2119_v58 = vmul.f32 %v8318_v59, %v1980_v30  ;;  %v2120_v45 = vmul.f32 %v8321_v31, %v1981_v60  ;;  %v1760_v16 = vmul.f32 0.00390625, %v1646_v57  ;;  %v2416_v3 = vadd.f32 %v8953_v44, %v8948_v24 }
 0x33b   : > { %v6005_v8 = vpop.eup %6004 }
 0x33c   : > { %v8960_v49 = vadd.f32 %v8332_v0, %v2119_v58  ;;  %v8963_v34 = vadd.f32 %v8335_v48, %v2120_v45  ;;  %v1982_v61 = vmul.f32 %v6005_v8, %v12065_v27  ;;  %v1983_v13 = vmul.f32 %v6005_v8, %v12066_v23  ;;  %2417 = vadd.xlane.f32.xlu0 %v2416_v3  ;;  %v1649_v30 = vpop.xlane.xlu1 %1648 }
 0x33d   : > { %v1824_v14 = vadd.f32 1e-05, %v1760_v16  ;;  %v1761_v28 = vmul.f32 0.00390625, %v1649_v30  ;;  %v12069_v16 = vld [vmem:[#allocation54_spill] sm:$0xff] }
 0x33e   : > { %12063 = vst [vmem:[#allocation42_spill] sm:$0xff] %v8960_v49  ;;  %12064 = vst [vmem:[#allocation43_spill] sm:$0xff] %v8963_v34  ;;  %v2419_v60 = vadd.f32 %v8963_v34, %v8960_v49  ;;  %v2121_v57 = vmul.f32 %v8318_v59, %v1982_v61  ;;  %v2122_v44 = vmul.f32 %v8321_v31, %v1983_v13  ;;  %v6007_v58 = vpop.eup %6006 }
 0x33f   : > { %6012 = vrsqrt.f32 %v1824_v14  ;;  %v1825_v24 = vadd.f32 1e-05, %v1761_v28  ;;  %v1984_v3 = vmul.f32 %v6007_v58, %v12069_v16  ;;  %v1985_v27 = vmul.f32 %v6007_v58, %v8261_v19  ;;  %v12072_v16 = vld [vmem:[#allocation56_spill] sm:$0xff] }
 0x340   : > { %2420 = vadd.xlane.f32.xlu1 %v2419_v60  ;;  %v8972_v45 = vadd.f32 %v8332_v0, %v2121_v57  ;;  %v8975_v8 = vadd.f32 %v8335_v48, %v2122_v44  ;;  %v12071_v44 = vld [vmem:[#allocation55_spill] sm:$0xff] }
 0x341   : > { %6014 = vrsqrt.f32 %v1825_v24  ;;  %v1652_v23 = vpop.xlane.xlu0 %1651  ;;  %v2123_v13 = vmul.f32 %v8318_v59, %v1984_v3  ;;  %v2124_v30 = vmul.f32 %v8321_v31, %v1985_v27 }
 0x342   : > { %12067 = vst [vmem:[#allocation44_spill] sm:$0xff] %v8972_v45  ;;  %12068 = vst [vmem:[#allocation45_spill] sm:$0xff] %v8975_v8  ;;  %v2422_v61 = vadd.f32 %v8975_v8, %v8972_v45  ;;  %v6009_v14 = vpop.eup %6008  ;;  %v1762_v28 = vmul.f32 0.00390625, %v1652_v23 }
 0x343   : > { %v8984_v60 = vadd.f32 %v8332_v0, %v2123_v13  ;;  %v1986_v57 = vmul.f32 %v6009_v14, %v12071_v44  ;;  %v1987_v34 = vmul.f32 %v6009_v14, %v12072_v16  ;;  %v8989_v58 = vadd.f32 %v8335_v48, %v2124_v30 }
 0x344   : > { %2423 = vadd.xlane.f32.xlu0 %v2422_v61  ;;  %v1826_v19 = vadd.f32 1e-05, %v1762_v28  ;;  %v1655_v24 = vpop.xlane.xlu1 %1654 }
 0x345   : > { %12070 = vst [vmem:[#allocation46_spill] sm:$0xff] %v8984_v60  ;;  %12073 = vst [vmem:[#allocation47_spill] sm:$0xff] %v8989_v58  ;;  %v1763_v8 = vmul.f32 0.00390625, %v1655_v24  ;;  %v2125_v3 = vmul.f32 %v8318_v59, %v1986_v57  ;;  %v2126_v23 = vmul.f32 %v8321_v31, %v1987_v34  ;;  %v2425_v27 = vadd.f32 %v8989_v58, %v8984_v60  ;;  %v12076_v57 = vld [vmem:[#allocation59_spill] sm:$0xff]  ;;  %v12078_v24 = vld [vmem:[#allocation60_spill] sm:$0xff] }
 0x346   : > { %v6011_v45 = vpop.eup %6010  ;;  %6016 = vrsqrt.f32 %v1826_v19 }
 0x347   : > { %v1827_v61 = vadd.f32 1e-05, %v1763_v8  ;;  %v2322_v13 = vpop.xlane.xlu0 %2321  ;;  %v8996_v44 = vadd.f32 %v8332_v0, %v2125_v3  ;;  %v8999_v14 = vadd.f32 %v8335_v48, %v2126_v23  ;;  %v1988_v28 = vmul.f32 %v6011_v45, %v8278_v40  ;;  %2426 = vadd.xlane.f32.xlu1 %v2425_v27 }
 0x348   : > { %v2512_v30 = vmul.f32 0.00390625, %v2322_v13  ;;  %v1989_v16 = vmul.f32 %v6011_v45, %v12076_v57  ;;  %v12081_v57 = vld [vmem:[#allocation113_spill] sm:$0xff] }
 0x349   : > { %12074 = vst [vmem:[#allocation48_spill] sm:$0xff] %v8996_v44  ;;  %12075 = vst [vmem:[#allocation49_spill] sm:$0xff] %v8999_v14  ;;  %6018 = vrsqrt.f32 %v1827_v61  ;;  %v2428_v34 = vadd.f32 %v8999_v14, %v8996_v44  ;;  %v2127_v19 = vmul.f32 %v8318_v59, %v1988_v28 }
 0x34a   : > { %v9007_v8 = vsub.f32 %v8352_v56, %v2512_v30  ;;  %v9010_v3 = vsub.f32 %v12078_v24, %v2512_v30  ;;  %v2128_v23 = vmul.f32 %v8321_v31, %v1989_v16  ;;  %v12082_v24 = vld [vmem:[#allocation114_spill] sm:$0xff] }
 0x34b   : > { %v1658_v13 = vpop.xlane.xlu0 %1657  ;;  %2429 = vadd.xlane.f32.xlu0 %v2428_v34  ;;  %v9014_v45 = vadd.f32 %v8332_v0, %v2127_v19 }
 0x34c   : > { %12077 = vst [vmem:[#allocation50_spill] sm:$0xff] %v9007_v8  ;;  %12079 = vst [vmem:[#allocation51_spill] sm:$0xff] %v9010_v3  ;;  %v6013_v58 = vpop.eup %6012  ;;  %v2325_v40 = vpop.xlane.xlu1 %2324  ;;  %v2704_v27 = vmul.f32 %v9007_v8, %v9007_v8  ;;  %v2705_v61 = vmul.f32 %v9010_v3, %v9010_v3  ;;  %v1764_v28 = vmul.f32 0.00390625, %v1658_v13  ;;  %v9021_v30 = vadd.f32 %v8335_v48, %v2128_v23 }
 0x34d   : > { %v2513_v56 = vmul.f32 0.00390625, %v2325_v40  ;;  %v1990_v16 = vmul.f32 %v6013_v58, %v12081_v57  ;;  %v1991_v14 = vmul.f32 %v6013_v58, %v12082_v24  ;;  %v12085_v57 = vld [vmem:[#allocation115_spill] sm:$0xff] }
 0x34e   : > { %12080 = vst [vmem:[#allocation52_spill] sm:$0xff] %v9021_v30  ;;  %v6015_v44 = vpop.eup %6014  ;;  %v1828_v8 = vadd.f32 1e-05, %v1764_v28  ;;  %v2832_v60 = vadd.f32 %v2705_v61, %v2704_v27  ;;  %v2431_v40 = vadd.f32 %v9021_v30, %v9014_v45 }
 0x34f   : > { %v9026_v34 = vsub.f32 %v8372_v35, %v2513_v56  ;;  %v9029_v19 = vsub.f32 %v8375_v10, %v2513_v56  ;;  %v2129_v23 = vmul.f32 %v8318_v59, %v1990_v16  ;;  %v2130_v13 = vmul.f32 %v8321_v31, %v1991_v14  ;;  %v12086_v14 = vld [vmem:[#allocation116_spill] sm:$0xff] }
 0x350   : > { %v1661_v49 = vpop.xlane.xlu1 %1660  ;;  %v1992_v3 = vmul.f32 %v6015_v44, %v12085_v57  ;;  %6020 = vrsqrt.f32 %v1828_v8  ;;  %v2328_v56 = vpop.xlane.xlu0 %2327  ;;  %2833 = vadd.xlane.f32.xlu0 %v2832_v60  ;;  %2432 = vadd.xlane.f32.xlu1 %v2431_v40  ;;  %v1993_v16 = vmul.f32 %v6015_v44, %v12086_v14 }
 0x351   : > { %12083 = vst [vmem:[#allocation53_spill] sm:$0xff] %v9026_v34  ;;  %12084 = vst [vmem:[#allocation54_spill] sm:$0xff] %v9029_v19  ;;  %v2706_v58 = vmul.f32 %v9026_v34, %v9026_v34  ;;  %v2707_v35 = vmul.f32 %v9029_v19, %v9029_v19  ;;  %v1765_v10 = vmul.f32 0.00390625, %v1661_v49  ;;  %v2514_v27 = vmul.f32 0.00390625, %v2328_v56  ;;  %v12088_v49 = vld [vmem:[#allocation64_spill] sm:$0xff] }
 0x352   : > { %v9041_v61 = vadd.f32 %v8332_v0, %v2129_v23  ;;  %v9044_v28 = vadd.f32 %v8335_v48, %v2130_v13  ;;  %v2131_v34 = vmul.f32 %v8318_v59, %v1992_v3  ;;  %v2132_v13 = vmul.f32 %v8321_v31, %v1993_v16  ;;  %v12090_v3 = vld [vmem:[#allocation117_spill] sm:$0xff] }
 0x353   : > { %v1829_v24 = vadd.f32 1e-05, %v1765_v10  ;;  %v2835_v57 = vadd.f32 %v2707_v35, %v2706_v58  ;;  %v6017_v30 = vpop.eup %6016  ;;  %v9049_v8 = vsub.f32 %v8396_v11, %v2514_v27  ;;  %v9052_v60 = vsub.f32 %v12088_v49, %v2514_v27  ;;  %v12094_v49 = vld [vmem:[#allocation118_spill] sm:$0xff] }
 0x354   : > { %v2331_v40 = vpop.xlane.xlu1 %2330  ;;  %v2434_v23 = vadd.f32 %v9044_v28, %v9041_v61  ;;  %v1664_v44 = vpop.xlane.xlu0 %1663  ;;  %v9058_v58 = vadd.f32 %v8332_v0, %v2131_v34  ;;  %v1994_v35 = vmul.f32 %v6017_v30, %v12090_v3  ;;  %v9066_v14 = vadd.f32 %v8335_v48, %v2132_v13 }
 0x355   : > { %12087 = vst [vmem:[#allocation55_spill] sm:$0xff] %v9049_v8  ;;  %12089 = vst [vmem:[#allocation56_spill] sm:$0xff] %v9052_v60  ;;  %6022 = vrsqrt.f32 %v1829_v24  ;;  %v2515_v56 = vmul.f32 0.00390625, %v2331_v40  ;;  %v2708_v11 = vmul.f32 %v9049_v8, %v9049_v8  ;;  %v2709_v10 = vmul.f32 %v9052_v60, %v9052_v60  ;;  %2836 = vadd.xlane.f32.xlu1 %v2835_v57 }
 0x356   : > { %v1766_v27 = vmul.f32 0.00390625, %v1664_v44  ;;  %2435 = vadd.xlane.f32.xlu0 %v2434_v23  ;;  %12091 = vst [vmem:[#allocation59_spill] sm:$0xff] %v9066_v14  ;;  %v6019_v16 = vpop.eup %6018  ;;  %v1995_v40 = vmul.f32 %v6017_v30, %v12094_v49  ;;  %v2133_v3 = vmul.f32 %v8318_v59, %v1994_v35  ;;  %v2437_v57 = vadd.f32 %v9066_v14, %v9058_v58  ;;  %v12095_v44 = vld [vmem:[#allocation119_spill] sm:$0xff] }
 0x357   : > { %v9069_v24 = vsub.f32 %v8416_v55, %v2515_v56  ;;  %v9072_v34 = vsub.f32 %v8419_v36, %v2515_v56  ;;  %v2838_v23 = vadd.f32 %v2709_v10, %v2708_v11  ;;  %v1996_v13 = vmul.f32 %v6019_v16, %v12095_v44 }
 0x358   : > { %v1830_v19 = vadd.f32 1e-05, %v1766_v27  ;;  %v1667_v8 = vpop.xlane.xlu1 %1666  ;;  %v2134_v56 = vmul.f32 %v8321_v31, %v1995_v40  ;;  %v9085_v35 = vadd.f32 %v8332_v0, %v2133_v3  ;;  %v12096_v27 = vld [vmem:[#allocation120_spill] sm:$0xff] }
 0x359   : > { %12092 = vst [vmem:[#allocation60_spill] sm:$0xff] %v9069_v24  ;;  %12093 = vst [vmem:[#allocation113_spill] sm:$0xff] %v9072_v34  ;;  %v2710_v60 = vmul.f32 %v9069_v24, %v9069_v24  ;;  %v2711_v55 = vmul.f32 %v9072_v34, %v9072_v34  ;;  %v1767_v36 = vmul.f32 0.00390625, %v1667_v8  ;;  %v2334_v30 = vpop.xlane.xlu0 %2333  ;;  %2438 = vadd.xlane.f32.xlu1 %v2437_v57 }
 0x35a   : > { %6024 = vrsqrt.f32 %v1830_v19  ;;  %2839 = vadd.xlane.f32.xlu0 %v2838_v23  ;;  %v1997_v11 = vmul.f32 %v6019_v16, %v12096_v27  ;;  %v2135_v10 = vmul.f32 %v8318_v59, %v1996_v13  ;;  %v2516_v44 = vmul.f32 0.00390625, %v2334_v30 }
 0x35b   : > { %v1831_v49 = vadd.f32 1e-05, %v1767_v36  ;;  %v2841_v24 = vadd.f32 %v2711_v55, %v2710_v60  ;;  %v9090_v14 = vadd.f32 %v8335_v48, %v2134_v56 }
 0x35c   : > { %v2337_v8 = vpop.xlane.xlu1 %2336  ;;  %v2136_v40 = vmul.f32 %v8321_v31, %v1997_v11  ;;  %v9094_v19 = vadd.f32 %v8332_v0, %v2135_v10  ;;  %v9097_v3 = vsub.f32 %v8440_v1, %v2516_v44  ;;  %v9100_v16 = vsub.f32 %v8448_v37, %v2516_v44  ;;  %v12102_v11 = vld [vmem:[#allocation57_spill] sm:$0xff] }
 0x35d   : > { %6026 = vrsqrt.f32 %v1831_v49  ;;  %v2517_v57 = vmul.f32 0.00390625, %v2337_v8  ;;  %v6021_v23 = vpop.eup %6020  ;;  %v1670_v13 = vpop.xlane.xlu0 %1669  ;;  %2842 = vadd.xlane.f32.xlu1 %v2841_v24  ;;  %v2440_v60 = vadd.f32 %v9090_v14, %v9085_v35  ;;  %v12103_v49 = vld [vmem:[#allocation58_spill] sm:$0xff] }
 0x35e   : > { %12097 = vst [vmem:[#allocation114_spill] sm:$0xff] %v9097_v3  ;;  %12098 = vst [vmem:[#allocation115_spill] sm:$0xff] %v9100_v16  ;;  %v9105_v55 = vadd.f32 %v8335_v48, %v2136_v40  ;;  %v2712_v36 = vmul.f32 %v9097_v3, %v9097_v3  ;;  %v2713_v1 = vmul.f32 %v9100_v16, %v9100_v16  ;;  %v1768_v30 = vmul.f32 0.00390625, %v1670_v13 }
 0x35f   : > { %v9112_v56 = vsub.f32 %v8458_v47, %v2517_v57  ;;  %v9115_v37 = vsub.f32 %v8463_v22, %v2517_v57  ;;  %2441 = vadd.xlane.f32.xlu0 %v2440_v60  ;;  %v1998_v10 = vmul.f32 %v6021_v23, %v12102_v11  ;;  %v1999_v44 = vmul.f32 %v6021_v23, %v12103_v49  ;;  %v12104_v23 = vld [vmem:[#allocation61_spill] sm:$0xff] }
 0x360   : > { %12099 = vst [vmem:[#allocation116_spill] sm:$0xff] %v9105_v55  ;;  %v1673_v24 = vpop.xlane.xlu1 %1672  ;;  %v2443_v27 = vadd.f32 %v9105_v55, %v9094_v19  ;;  %v2844_v16 = vadd.f32 %v2713_v1, %v2712_v36  ;;  %v1832_v57 = vadd.f32 1e-05, %v1768_v30  ;;  %v12105_v1 = vld [vmem:[#allocation121_spill] sm:$0xff] }
 0x361   : > { %12100 = vst [vmem:[#allocation64_spill] sm:$0xff] %v9112_v56  ;;  %12101 = vst [vmem:[#allocation117_spill] sm:$0xff] %v9115_v37  ;;  %v2714_v8 = vmul.f32 %v9112_v56, %v9112_v56  ;;  %v2715_v47 = vmul.f32 %v9115_v37, %v9115_v37  ;;  %v1769_v40 = vmul.f32 0.00390625, %v1673_v24  ;;  %v2137_v60 = vmul.f32 %v8318_v59, %v1998_v10 }
 0x362   : > { %v6023_v22 = vpop.eup %6022  ;;  %v2340_v13 = vpop.xlane.xlu0 %2339  ;;  %2444 = vadd.xlane.f32.xlu1 %v2443_v27  ;;  %v2138_v34 = vmul.f32 %v8321_v31, %v1999_v44  ;;  %6028 = vrsqrt.f32 %v1832_v57 }
 0x363   : > { %v1833_v3 = vadd.f32 1e-05, %v1769_v40  ;;  %v2518_v11 = vmul.f32 0.00390625, %v2340_v13  ;;  %v2847_v55 = vadd.f32 %v2715_v47, %v2714_v8  ;;  %v2000_v49 = vmul.f32 %v6023_v22, %v12104_v23  ;;  %2845 = vadd.xlane.f32.xlu0 %v2844_v16  ;;  %v12110_v13 = vld [vmem:[#allocation62_spill] sm:$0xff] }
 0x364   : > { %v2343_v56 = vpop.xlane.xlu1 %2342  ;;  %v9129_v37 = vadd.f32 %v8332_v0, %v2137_v60  ;;  %v9132_v36 = vadd.f32 %v8335_v48, %v2138_v34  ;;  %v2001_v30 = vmul.f32 %v6023_v22, %v12105_v1 }
 0x365   : > { %6030 = vrsqrt.f32 %v1833_v3  ;;  %v9136_v24 = vsub.f32 %v8484_v29, %v2518_v11  ;;  %v9139_v27 = vsub.f32 %v8492_v9, %v2518_v11  ;;  %v2519_v10 = vmul.f32 0.00390625, %v2343_v56 }
 0x366   : > { %v1676_v44 = vpop.xlane.xlu0 %1675  ;;  %2848 = vadd.xlane.f32.xlu1 %v2847_v55  ;;  %v2446_v16 = vadd.f32 %v9132_v36, %v9129_v37  ;;  %v2139_v8 = vmul.f32 %v8318_v59, %v2000_v49  ;;  %v2140_v34 = vmul.f32 %v8321_v31, %v2001_v30 }
 0x367   : > { %12106 = vst [vmem:[#allocation118_spill] sm:$0xff] %v9136_v24  ;;  %12107 = vst [vmem:[#allocation119_spill] sm:$0xff] %v9139_v27  ;;  %v6025_v47 = vpop.eup %6024  ;;  %v2716_v3 = vmul.f32 %v9136_v24, %v9136_v24  ;;  %v2717_v29 = vmul.f32 %v9139_v27, %v9139_v27  ;;  %v9150_v9 = vsub.f32 %v8502_v53, %v2519_v10  ;;  %v1770_v55 = vmul.f32 0.00390625, %v1676_v44  ;;  %v12111_v44 = vld [vmem:[#allocation63_spill] sm:$0xff]  ;;  %v12112_v27 = vld [vmem:[#allocation65_spill] sm:$0xff] }
 0x368   : > { %v9153_v56 = vsub.f32 %v8507_v32, %v2519_v10  ;;  %2447 = vadd.xlane.f32.xlu0 %v2446_v16  ;;  %v1679_v40 = vpop.xlane.xlu1 %1678  ;;  %v9156_v22 = vadd.f32 %v8332_v0, %v2139_v8  ;;  %v9159_v57 = vadd.f32 %v8335_v48, %v2140_v34  ;;  %v2002_v60 = vmul.f32 %v6025_v47, %v12110_v13 }
 0x369   : > { %12108 = vst [vmem:[#allocation120_spill] sm:$0xff] %v9150_v9  ;;  %v2718_v11 = vmul.f32 %v9150_v9, %v9150_v9  ;;  %v1771_v23 = vmul.f32 0.00390625, %v1679_v40  ;;  %v2850_v32 = vadd.f32 %v2717_v29, %v2716_v3  ;;  %v1834_v1 = vadd.f32 1e-05, %v1770_v55  ;;  %v12113_v55 = vld [vmem:[#allocation122_spill] sm:$0xff] }
 0x36a   : > { %12109 = vst [vmem:[#allocation57_spill] sm:$0xff] %v9153_v56  ;;  %v2719_v53 = vmul.f32 %v9153_v56, %v9153_v56  ;;  %v6027_v49 = vpop.eup %6026  ;;  %v2346_v30 = vpop.xlane.xlu0 %2345  ;;  %v2449_v10 = vadd.f32 %v9159_v57, %v9156_v22  ;;  %v2003_v16 = vmul.f32 %v6025_v47, %v12111_v44  ;;  %v2141_v8 = vmul.f32 %v8318_v59, %v2002_v60 }
 0x36b   : > { %v1835_v34 = vadd.f32 1e-05, %v1771_v23  ;;  %v2520_v13 = vmul.f32 0.00390625, %v2346_v30  ;;  %v2004_v24 = vmul.f32 %v6027_v49, %v12112_v27  ;;  %6032 = vrsqrt.f32 %v1834_v1 }
 0x36c   : > { %2450 = vadd.xlane.f32.xlu1 %v2449_v10  ;;  %2851 = vadd.xlane.f32.xlu0 %v2850_v32  ;;  %v2349_v56 = vpop.xlane.xlu1 %2348  ;;  %v2142_v3 = vmul.f32 %v8321_v31, %v2003_v16  ;;  %v9173_v29 = vadd.f32 %v8332_v0, %v2141_v8  ;;  %v2005_v40 = vmul.f32 %v6027_v49, %v12113_v55 }
 0x36d   : > { %6034 = vrsqrt.f32 %v1835_v34  ;;  %v9177_v47 = vsub.f32 %v8528_v41, %v2520_v13  ;;  %v9180_v60 = vsub.f32 %v8536_v46, %v2520_v13  ;;  %v2521_v23 = vmul.f32 0.00390625, %v2349_v56 }
 0x36e   : > { %v1682_v27 = vpop.xlane.xlu0 %1681  ;;  %v2853_v1 = vadd.f32 %v2719_v53, %v2718_v11  ;;  %v9183_v32 = vadd.f32 %v8335_v48, %v2142_v3  ;;  %v2143_v30 = vmul.f32 %v8318_v59, %v2004_v24  ;;  %v2144_v10 = vmul.f32 %v8321_v31, %v2005_v40 }
 0x36f   : > { %12114 = vst [vmem:[#allocation58_spill] sm:$0xff] %v9177_v47  ;;  %12115 = vst [vmem:[#allocation61_spill] sm:$0xff] %v9180_v60  ;;  %v2720_v49 = vmul.f32 %v9177_v47, %v9177_v47  ;;  %v2721_v41 = vmul.f32 %v9180_v60, %v9180_v60  ;;  %v9192_v44 = vsub.f32 %v8546_v12, %v2521_v23  ;;  %v1772_v56 = vmul.f32 0.00390625, %v1682_v27  ;;  %v6029_v8 = vpop.eup %6028  ;;  %v12119_v27 = vld [vmem:[#allocation66_spill] sm:$0xff] }
 0x370   : > { %12116 = vst [vmem:[#allocation121_spill] sm:$0xff] %v9183_v32  ;;  %v9195_v46 = vsub.f32 %v8551_v51, %v2521_v23  ;;  %2854 = vadd.xlane.f32.xlu1 %v2853_v1  ;;  %v2452_v11 = vadd.f32 %v9183_v32, %v9173_v29  ;;  %v1685_v24 = vpop.xlane.xlu1 %1684  ;;  %v9200_v53 = vadd.f32 %v8332_v0, %v2143_v30  ;;  %v12120_v30 = vld [vmem:[#allocation67_spill] sm:$0xff] }
 0x371   : > { %12117 = vst [vmem:[#allocation62_spill] sm:$0xff] %v9192_v44  ;;  %v9203_v16 = vadd.f32 %v8335_v48, %v2144_v10  ;;  %v2722_v12 = vmul.f32 %v9192_v44, %v9192_v44  ;;  %v1773_v34 = vmul.f32 0.00390625, %v1685_v24  ;;  %v2856_v13 = vadd.f32 %v2721_v41, %v2720_v49  ;;  %v12121_v44 = vld [vmem:[#allocation68_spill] sm:$0xff] }
 0x372   : > { %12118 = vst [vmem:[#allocation63_spill] sm:$0xff] %v9195_v46  ;;  %v2723_v51 = vmul.f32 %v9195_v46, %v9195_v46  ;;  %v6031_v3 = vpop.eup %6030  ;;  %v1836_v55 = vadd.f32 1e-05, %v1772_v56  ;;  %2453 = vadd.xlane.f32.xlu0 %v2452_v11  ;;  %v2352_v40 = vpop.xlane.xlu0 %2351  ;;  %v2006_v1 = vmul.f32 %v6029_v8, %v12119_v27  ;;  %v2007_v10 = vmul.f32 %v6029_v8, %v12120_v30  ;;  %v12122_v56 = vld [vmem:[#allocation69_spill] sm:$0xff] }
 0x373   : > { %v2455_v23 = vadd.f32 %v9203_v16, %v9200_v53  ;;  %v1837_v60 = vadd.f32 1e-05, %v1773_v34  ;;  %v2522_v47 = vmul.f32 0.00390625, %v2352_v40  ;;  %v2008_v32 = vmul.f32 %v6031_v3, %v12121_v44 }
 0x374   : > { %v2859_v9 = vadd.f32 %v2723_v51, %v2722_v12  ;;  %6036 = vrsqrt.f32 %v1836_v55  ;;  %v2145_v49 = vmul.f32 %v8318_v59, %v2006_v1  ;;  %v2146_v41 = vmul.f32 %v8321_v31, %v2007_v10 }
 0x375   : > { %2456 = vadd.xlane.f32.xlu1 %v2455_v23  ;;  %v2355_v24 = vpop.xlane.xlu1 %2354  ;;  %v2009_v11 = vmul.f32 %v6031_v3, %v12122_v56  ;;  %6038 = vrsqrt.f32 %v1837_v60  ;;  %v9218_v46 = vsub.f32 %v8572_v4, %v2522_v47  ;;  %v9221_v8 = vsub.f32 %v8580_v25, %v2522_v47  ;;  %v12127_v56 = vld [vmem:[#allocation70_spill] sm:$0xff] }
 0x376   : > { %v2523_v34 = vmul.f32 0.00390625, %v2355_v24  ;;  %2857 = vadd.xlane.f32.xlu0 %v2856_v13  ;;  %v1688_v12 = vpop.xlane.xlu0 %1687  ;;  %v9224_v44 = vadd.f32 %v8332_v0, %v2145_v49  ;;  %v9227_v51 = vadd.f32 %v8335_v48, %v2146_v41  ;;  %v2147_v55 = vmul.f32 %v8318_v59, %v2008_v32 }
 0x377   : > { %12123 = vst [vmem:[#allocation65_spill] sm:$0xff] %v9218_v46  ;;  %12124 = vst [vmem:[#allocation122_spill] sm:$0xff] %v9221_v8  ;;  %v2148_v3 = vmul.f32 %v8321_v31, %v2009_v11  ;;  %v2724_v4 = vmul.f32 %v9218_v46, %v9218_v46  ;;  %v2725_v25 = vmul.f32 %v9221_v8, %v9221_v8  ;;  %v1774_v13 = vmul.f32 0.00390625, %v1688_v12 }
 0x378   : > { %v9236_v47 = vsub.f32 %v8590_v54, %v2523_v34  ;;  %v9239_v60 = vsub.f32 %v8595_v7, %v2523_v34  ;;  %v2458_v40 = vadd.f32 %v9227_v51, %v9224_v44  ;;  %v9244_v23 = vadd.f32 %v8332_v0, %v2147_v55  ;;  %v6033_v1 = vpop.eup %6032  ;;  %v12128_v34 = vld [vmem:[#allocation71_spill] sm:$0xff] }
 0x379   : > { %2860 = vadd.xlane.f32.xlu1 %v2859_v9  ;;  %v1691_v32 = vpop.xlane.xlu1 %1690  ;;  %v9247_v27 = vadd.f32 %v8335_v48, %v2148_v3  ;;  %v2862_v10 = vadd.f32 %v2725_v25, %v2724_v4  ;;  %v1838_v24 = vadd.f32 1e-05, %v1774_v13  ;;  %v2010_v11 = vmul.f32 %v6033_v1, %v12127_v56  ;;  %v12130_v13 = vld [vmem:[#allocation73_spill] sm:$0xff] }
 0x37a   : > { %12125 = vst [vmem:[#allocation66_spill] sm:$0xff] %v9236_v47  ;;  %12126 = vst [vmem:[#allocation67_spill] sm:$0xff] %v9239_v60  ;;  %v2726_v54 = vmul.f32 %v9236_v47, %v9236_v47  ;;  %v2727_v7 = vmul.f32 %v9239_v60, %v9239_v60  ;;  %v1775_v30 = vmul.f32 0.00390625, %v1691_v32  ;;  %v6035_v9 = vpop.eup %6034  ;;  %2459 = vadd.xlane.f32.xlu0 %v2458_v40  ;;  %v12129_v47 = vld [vmem:[#allocation72_spill] sm:$0xff] }
 0x37b   : > { %v2358_v49 = vpop.xlane.xlu0 %2357  ;;  %v2461_v41 = vadd.f32 %v9247_v27, %v9244_v23  ;;  %v2011_v12 = vmul.f32 %v6033_v1, %v12128_v34  ;;  %v2012_v46 = vmul.f32 %v6035_v9, %v12129_v47  ;;  %6040 = vrsqrt.f32 %v1838_v24 }
 0x37c   : > { %v1839_v55 = vadd.f32 1e-05, %v1775_v30  ;;  %v2524_v3 = vmul.f32 0.00390625, %v2358_v49  ;;  %v2865_v8 = vadd.f32 %v2727_v7, %v2726_v54  ;;  %v2149_v4 = vmul.f32 %v8318_v59, %v2010_v11 }
 0x37d   : > { %2462 = vadd.xlane.f32.xlu1 %v2461_v41  ;;  %v2361_v32 = vpop.xlane.xlu1 %2360  ;;  %v2150_v25 = vmul.f32 %v8321_v31, %v2011_v12  ;;  %v2013_v40 = vmul.f32 %v6035_v9, %v12130_v13  ;;  %v2151_v24 = vmul.f32 %v8318_v59, %v2012_v46  ;;  %v12136_v13 = vld [vmem:[#allocation74_spill] sm:$0xff] }
 0x37e   : > { %6042 = vrsqrt.f32 %v1839_v55  ;;  %v9262_v60 = vsub.f32 %v8616_v33, %v2524_v3  ;;  %v9265_v1 = vsub.f32 %v8624_v5, %v2524_v3  ;;  %v2525_v30 = vmul.f32 0.00390625, %v2361_v32  ;;  %2863 = vadd.xlane.f32.xlu0 %v2862_v10 }
 0x37f   : > { %v1694_v54 = vpop.xlane.xlu0 %1693  ;;  %v9268_v47 = vadd.f32 %v8332_v0, %v2149_v4  ;;  %v9271_v7 = vadd.f32 %v8335_v48, %v2150_v25  ;;  %v2152_v9 = vmul.f32 %v8321_v31, %v2013_v40  ;;  %v9288_v11 = vadd.f32 %v8332_v0, %v2151_v24 }
 0x380   : > { %12131 = vst [vmem:[#allocation68_spill] sm:$0xff] %v9262_v60  ;;  %12132 = vst [vmem:[#allocation69_spill] sm:$0xff] %v9265_v1  ;;  %v2728_v33 = vmul.f32 %v9262_v60, %v9262_v60  ;;  %v2729_v5 = vmul.f32 %v9265_v1, %v9265_v1  ;;  %v9280_v49 = vsub.f32 %v8634_v26, %v2525_v30  ;;  %v1776_v41 = vmul.f32 0.00390625, %v1694_v54 }
 0x381   : > { %v9283_v10 = vsub.f32 %v8639_v21, %v2525_v30  ;;  %2866 = vadd.xlane.f32.xlu1 %v2865_v8  ;;  %v2464_v56 = vadd.f32 %v9271_v7, %v9268_v47  ;;  %v1697_v46 = vpop.xlane.xlu1 %1696  ;;  %v9291_v34 = vadd.f32 %v8335_v48, %v2152_v9  ;;  %v6037_v12 = vpop.eup %6036  ;;  %v12137_v30 = vld [vmem:[#allocation75_spill] sm:$0xff] }
 0x382   : > { %12133 = vst [vmem:[#allocation70_spill] sm:$0xff] %v9280_v49  ;;  %v2730_v26 = vmul.f32 %v9280_v49, %v9280_v49  ;;  %v1777_v55 = vmul.f32 0.00390625, %v1697_v46  ;;  %v2868_v3 = vadd.f32 %v2729_v5, %v2728_v33  ;;  %v6039_v8 = vpop.eup %6038  ;;  %v1840_v32 = vadd.f32 1e-05, %v1776_v41  ;;  %v12138_v49 = vld [vmem:[#allocation76_spill] sm:$0xff]  ;;  %v12139_v41 = vld [vmem:[#allocation77_spill] sm:$0xff] }
 0x383   : > { %12134 = vst [vmem:[#allocation71_spill] sm:$0xff] %v9283_v10  ;;  %12135 = vst [vmem:[#allocation72_spill] sm:$0xff] %v9291_v34  ;;  %v2731_v21 = vmul.f32 %v9283_v10, %v9283_v10  ;;  %2465 = vadd.xlane.f32.xlu0 %v2464_v56  ;;  %v2364_v4 = vpop.xlane.xlu0 %2363  ;;  %v2467_v25 = vadd.f32 %v9291_v34, %v9288_v11  ;;  %v2014_v40 = vmul.f32 %v6037_v12, %v12136_v13 }
 0x384   : > { %v2015_v54 = vmul.f32 %v6037_v12, %v12137_v30  ;;  %v1841_v24 = vadd.f32 1e-05, %v1777_v55  ;;  %v2526_v9 = vmul.f32 0.00390625, %v2364_v4  ;;  %v2016_v60 = vmul.f32 %v6039_v8, %v12138_v49  ;;  %v12144_v4 = vld [vmem:[#allocation123_spill] sm:$0xff] }
 0x385   : > { %v2871_v1 = vadd.f32 %v2731_v21, %v2730_v26  ;;  %6044 = vrsqrt.f32 %v1840_v32  ;;  %2468 = vadd.xlane.f32.xlu1 %v2467_v25  ;;  %v2367_v46 = vpop.xlane.xlu1 %2366  ;;  %v2153_v33 = vmul.f32 %v8318_v59, %v2014_v40  ;;  %v2017_v56 = vmul.f32 %v6039_v8, %v12139_v41 }
 0x386   : > { %v2154_v5 = vmul.f32 %v8321_v31, %v2015_v54  ;;  %6046 = vrsqrt.f32 %v1841_v24  ;;  %v9306_v10 = vsub.f32 %v8660_v39, %v2526_v9  ;;  %v9309_v12 = vsub.f32 %v8668_v52, %v2526_v9  ;;  %v5920_v9 = vld [vmem:[#allocation10 + $0x38] sm:$0xff]  }
 0x387   : > { %v2527_v55 = vmul.f32 0.00390625, %v2367_v46  ;;  %2869 = vadd.xlane.f32.xlu0 %v2868_v3  ;;  %v1700_v26 = vpop.xlane.xlu0 %1699  ;;  %v9312_v49 = vadd.f32 %v8332_v0, %v2153_v33  ;;  %v2155_v32 = vmul.f32 %v8318_v59, %v2016_v60  ;;  %v2156_v8 = vmul.f32 %v8321_v31, %v2017_v56  ;;  %v12146_v3 = vld [vmem:[#allocation124_spill] sm:$0xff]  ;;  %5576 = vmatprep.subr.bf16.mxu1 %v5920_v9 }
 0x388   : > { %12140 = vst [vmem:[#allocation73_spill] sm:$0xff] %v9306_v10  ;;  %12141 = vst [vmem:[#allocation74_spill] sm:$0xff] %v9309_v12  ;;  %v9315_v21 = vadd.f32 %v8335_v48, %v2154_v5  ;;  %v2732_v39 = vmul.f32 %v9306_v10, %v9306_v10  ;;  %v2733_v52 = vmul.f32 %v9309_v12, %v9309_v12  ;;  %v1778_v40 = vmul.f32 0.00390625, %v1700_v26  ;;  %v6041_v46 = vpop.eup %6040 }
 0x389   : > { %12142 = vst [vmem:[#allocation75_spill] sm:$0xff] %v9312_v49  ;;  %v9324_v25 = vsub.f32 %v12144_v4, %v2527_v55  ;;  %v9327_v13 = vsub.f32 %v12146_v3, %v2527_v55  ;;  %2872 = vadd.xlane.f32.xlu1 %v2871_v1  ;;  %v1703_v60 = vpop.xlane.xlu1 %1702  ;;  %v9332_v54 = vadd.f32 %v8332_v0, %v2155_v32  ;;  %v12150_v4 = vld [vmem:[#allocation78_spill] sm:$0xff]  ;;  %v12151_v3 = vld [vmem:[#allocation79_spill] sm:$0xff] }
 0x38a   : > { %12143 = vst [vmem:[#allocation76_spill] sm:$0xff] %v9315_v21  ;;  %v2470_v30 = vadd.f32 %v9315_v21, %v9312_v49  ;;  %v9335_v24 = vadd.f32 %v8335_v48, %v2156_v8  ;;  %v1779_v41 = vmul.f32 0.00390625, %v1703_v60  ;;  %v2874_v1 = vadd.f32 %v2733_v52, %v2732_v39  ;;  %v12152_v49 = vld [vmem:[#allocation80_spill] sm:$0xff]  ;;  %5577 = vmatpush3.bf16.msra.mxu1 %v5920_v9 }
 0x38b   : > { %12145 = vst [vmem:[#allocation77_spill] sm:$0xff] %v9324_v25  ;;  %12147 = vst [vmem:[#allocation123_spill] sm:$0xff] %v9327_v13  ;;  %v2734_v33 = vmul.f32 %v9324_v25, %v9324_v25  ;;  %v2735_v5 = vmul.f32 %v9327_v13, %v9327_v13  ;;  %v6043_v56 = vpop.eup %6042  ;;  %v1842_v55 = vadd.f32 1e-05, %v1778_v40  ;;  %v2018_v8 = vmul.f32 %v6041_v46, %v12150_v4  ;;  %v5921_v13 = vld [vmem:[#allocation10 + $0x30] sm:$0xff]  }
 0x38c   : > { %12148 = vst [vmem:[#allocation124_spill] sm:$0xff] %v9332_v54  ;;  %12149 = vst [vmem:[#allocation126_spill] sm:$0xff] %v9335_v24  ;;  %2471 = vadd.xlane.f32.xlu0 %v2470_v30  ;;  %v2370_v26 = vpop.xlane.xlu0 %2369  ;;  %v2473_v32 = vadd.f32 %v9335_v24, %v9332_v54  ;;  %v2019_v12 = vmul.f32 %v6041_v46, %v12151_v3  ;;  %v1843_v10 = vadd.f32 1e-05, %v1779_v41  ;;  %v12153_v30 = vld [vmem:[#allocation81_spill] sm:$0xff]  ;;  %v12154_v4 = vld [vmem:[#allocation92_spill] sm:$0xff]  ;;  %5578 = vmatprep.subr.bf16.mxu1 %v5921_v13 }
 0x38d   : > { %v2528_v21 = vmul.f32 0.00390625, %v2370_v26  ;;  %v2877_v25 = vadd.f32 %v2735_v5, %v2734_v33  ;;  %v2020_v34 = vmul.f32 %v6043_v56, %v12152_v49  ;;  %6048 = vrsqrt.f32 %v1842_v55  ;;  %v12156_v41 = vld [vmem:[#allocation93_spill] sm:$0xff]  ;;  %v12160_v55 = vld [vmem:[#allocation108_spill] sm:$0xff] }
 0x38e   : > { %2474 = vadd.xlane.f32.xlu1 %v2473_v32  ;;  %v2373_v39 = vpop.xlane.xlu1 %2372  ;;  %v2157_v52 = vmul.f32 %v8318_v59, %v2018_v8  ;;  %v2158_v40 = vmul.f32 %v8321_v31, %v2019_v12  ;;  %v2021_v60 = vmul.f32 %v6043_v56, %v12153_v30  ;;  %6050 = vrsqrt.f32 %v1843_v10  ;;  %5579 = vmatpush3.bf16.msra.mxu1 %v5921_v13  ;;  %v5922_v30 = vld [vmem:[#allocation10 + $0x28] sm:$0xff]   ;;  %v12166_v24 = vld [vmem:[#allocation84_spill] sm:$0xff] }
 0x38f   : > { %v9350_v46 = vsub.f32 %v12154_v4, %v2528_v21  ;;  %v9353_v26 = vsub.f32 %v12156_v41, %v2528_v21  ;;  %v2529_v33 = vmul.f32 0.00390625, %v2373_v39  ;;  %v2159_v12 = vmul.f32 %v8318_v59, %v2020_v34  ;;  %v12165_v13 = vld [vmem:[#allocation83_spill] sm:$0xff]  ;;  %5580 = vmatprep.subr.bf16.mxu1 %v5922_v30 }
 0x390   : > { %2875 = vadd.xlane.f32.xlu0 %v2874_v1  ;;  %v1706_v49 = vpop.xlane.xlu0 %1705  ;;  %v9356_v9 = vadd.f32 %v8332_v0, %v2157_v52  ;;  %v9359_v5 = vadd.f32 %v8335_v48, %v2158_v40  ;;  %v2160_v56 = vmul.f32 %v8321_v31, %v2021_v60  ;;  %v12162_v1 = vld [vmem:[#allocation125_spill] sm:$0xff] }
 0x391   : > { %12155 = vst [vmem:[#allocation78_spill] sm:$0xff] %v9350_v46  ;;  %12157 = vst [vmem:[#allocation79_spill] sm:$0xff] %v9353_v26  ;;  %v2736_v10 = vmul.f32 %v9350_v46, %v9350_v46  ;;  %v2737_v21 = vmul.f32 %v9353_v26, %v9353_v26  ;;  %v9368_v32 = vsub.f32 %v12160_v55, %v2529_v33  ;;  %v1780_v3 = vmul.f32 0.00390625, %v1706_v49 }
 0x392   : > { %12158 = vst [vmem:[#allocation80_spill] sm:$0xff] %v9356_v9  ;;  %12159 = vst [vmem:[#allocation81_spill] sm:$0xff] %v9359_v5  ;;  %v9371_v8 = vsub.f32 %v12162_v1, %v2529_v33  ;;  %2878 = vadd.xlane.f32.xlu1 %v2877_v25  ;;  %v2476_v34 = vadd.f32 %v9359_v5, %v9356_v9  ;;  %v1709_v39 = vpop.xlane.xlu1 %1708  ;;  %v9376_v52 = vadd.f32 %v8332_v0, %v2159_v12  ;;  %v6045_v60 = vpop.eup %6044 }
 0x393   : > { %12161 = vst [vmem:[#allocation92_spill] sm:$0xff] %v9368_v32  ;;  %v9379_v40 = vadd.f32 %v8335_v48, %v2160_v56  ;;  %v2738_v4 = vmul.f32 %v9368_v32, %v9368_v32  ;;  %v1781_v25 = vmul.f32 0.00390625, %v1709_v39  ;;  %v2880_v33 = vadd.f32 %v2737_v21, %v2736_v10  ;;  %v6047_v49 = vpop.eup %6046  ;;  %v12164_v56 = vld [vmem:[#allocation82_spill] sm:$0xff]  ;;  %5581 = vmatpush3.bf16.msra.mxu1 %v5922_v30 }
 0x394   : > { %12163 = vst [vmem:[#allocation93_spill] sm:$0xff] %v9371_v8  ;;  %v2739_v41 = vmul.f32 %v9371_v8, %v9371_v8  ;;  %v1844_v55 = vadd.f32 1e-05, %v1780_v3  ;;  %2477 = vadd.xlane.f32.xlu0 %v2476_v34  ;;  %v2376_v1 = vpop.xlane.xlu0 %2375  ;;  %v2022_v26 = vmul.f32 %v6045_v60, %v12164_v56  ;;  %v2023_v46 = vmul.f32 %v6045_v60, %v12165_v13  ;;  %v12167_v34 = vld [vmem:[#allocation85_spill] sm:$0xff]  ;;  %v5923_v8 = vld [vmem:[#allocation10 + $0x20] sm:$0xff]   ;;  %v12168_v56 = vld [vmem:[#allocation96_spill] sm:$0xff] }
 0x395   : > { %v2479_v12 = vadd.f32 %v9379_v40, %v9376_v52  ;;  %v1845_v5 = vadd.f32 1e-05, %v1781_v25  ;;  %v2530_v9 = vmul.f32 0.00390625, %v2376_v1  ;;  %v2024_v54 = vmul.f32 %v6047_v49, %v12166_v24  ;;  %v12170_v25 = vld [vmem:[#allocation97_spill] sm:$0xff]  ;;  %5582 = vmatprep.subr.bf16.mxu1 %v5923_v8 }
 0x396   : > { %v2883_v32 = vadd.f32 %v2739_v41, %v2738_v4  ;;  %6052 = vrsqrt.f32 %v1844_v55  ;;  %v2379_v10 = vpop.xlane.xlu1 %2378  ;;  %v2161_v21 = vmul.f32 %v8318_v59, %v2022_v26  ;;  %v2162_v3 = vmul.f32 %v8321_v31, %v2023_v46 }
 0x397   : > { %2480 = vadd.xlane.f32.xlu1 %v2479_v12  ;;  %v2025_v39 = vmul.f32 %v6047_v49, %v12167_v34  ;;  %6054 = vrsqrt.f32 %v1845_v5  ;;  %v9394_v60 = vsub.f32 %v12168_v56, %v2530_v9  ;;  %v9397_v1 = vsub.f32 %v12170_v25, %v2530_v9  ;;  %5583 = vmatpush3.bf16.msra.mxu1 %v5923_v8  ;;  %v12177_v8 = vld [vmem:[#allocation87_spill] sm:$0xff] }
 0x398   : > { %v2531_v4 = vmul.f32 0.00390625, %v2379_v10  ;;  %2881 = vadd.xlane.f32.xlu0 %v2880_v33  ;;  %v1712_v24 = vpop.xlane.xlu0 %1711  ;;  %v9400_v41 = vadd.f32 %v8332_v0, %v2161_v21  ;;  %v9403_v26 = vadd.f32 %v8335_v48, %v2162_v3  ;;  %v2163_v46 = vmul.f32 %v8318_v59, %v2024_v54  ;;  %v5924_v21 = vld [vmem:[#allocation10 + $0x18] sm:$0xff]  }
 0x399   : > { %12169 = vst [vmem:[#allocation108_spill] sm:$0xff] %v9394_v60  ;;  %12171 = vst [vmem:[#allocation125_spill] sm:$0xff] %v9397_v1  ;;  %v2164_v30 = vmul.f32 %v8321_v31, %v2025_v39  ;;  %v2740_v5 = vmul.f32 %v9394_v60, %v9394_v60  ;;  %v2741_v9 = vmul.f32 %v9397_v1, %v9397_v1  ;;  %v1782_v55 = vmul.f32 0.00390625, %v1712_v24  ;;  %v12176_v24 = vld [vmem:[#allocation86_spill] sm:$0xff] }
 0x39a   : > { %12172 = vst [vmem:[#allocation82_spill] sm:$0xff] %v9400_v41  ;;  %12173 = vst [vmem:[#allocation83_spill] sm:$0xff] %v9403_v26  ;;  %v9412_v49 = vsub.f32 %v8766_v42, %v2531_v4  ;;  %v9415_v33 = vsub.f32 %v8771_v43, %v2531_v4  ;;  %v2482_v54 = vadd.f32 %v9403_v26, %v9400_v41  ;;  %v1715_v12 = vpop.xlane.xlu1 %1714  ;;  %v6049_v42 = vpop.eup %6048  ;;  %5584 = vmatprep.subr.bf16.mxu1 %v5924_v21  ;;  %v12178_v26 = vld [vmem:[#allocation88_spill] sm:$0xff] }
 0x39b   : > { %2884 = vadd.xlane.f32.xlu1 %v2883_v32  ;;  %v9420_v13 = vadd.f32 %v8332_v0, %v2163_v46  ;;  %v9423_v10 = vadd.f32 %v8335_v48, %v2164_v30  ;;  %v1783_v32 = vmul.f32 0.00390625, %v1715_v12  ;;  %v2886_v34 = vadd.f32 %v2741_v9, %v2740_v5  ;;  %v6051_v39 = vpop.eup %6050  ;;  %5585 = vmatpush3.bf16.msra.mxu1 %v5924_v21 }
 0x39c   : > { %12174 = vst [vmem:[#allocation84_spill] sm:$0xff] %v9412_v49  ;;  %12175 = vst [vmem:[#allocation85_spill] sm:$0xff] %v9415_v33  ;;  %v2742_v43 = vmul.f32 %v9412_v49, %v9412_v49  ;;  %v2743_v3 = vmul.f32 %v9415_v33, %v9415_v33  ;;  %v1846_v56 = vadd.f32 1e-05, %v1782_v55  ;;  %2483 = vadd.xlane.f32.xlu0 %v2482_v54  ;;  %v2382_v25 = vpop.xlane.xlu0 %2381  ;;  %v12179_v54 = vld [vmem:[#allocation89_spill] sm:$0xff]  ;;  %v5925_v33 = vld [vmem:[#allocation10 + $0x10] sm:$0xff]  }
 0x39d   : > { %v2485_v4 = vadd.f32 %v9423_v10, %v9420_v13  ;;  %v2026_v46 = vmul.f32 %v6049_v42, %v12176_v24  ;;  %v2027_v30 = vmul.f32 %v6049_v42, %v12177_v8  ;;  %v1847_v1 = vadd.f32 1e-05, %v1783_v32  ;;  %5586 = vmatprep.subr.bf16.mxu1 %v5925_v33 }
 0x39e   : > { %v2532_v60 = vmul.f32 0.00390625, %v2382_v25  ;;  %v2889_v49 = vadd.f32 %v2743_v3, %v2742_v43  ;;  %v2028_v41 = vmul.f32 %v6051_v39, %v12178_v26  ;;  %6056 = vrsqrt.f32 %v1846_v56  ;;  %v2385_v5 = vpop.xlane.xlu1 %2384 }
 0x39f   : > { %2486 = vadd.xlane.f32.xlu1 %v2485_v4  ;;  %v2165_v9 = vmul.f32 %v8318_v59, %v2026_v46  ;;  %v2166_v55 = vmul.f32 %v8321_v31, %v2027_v30  ;;  %v2029_v12 = vmul.f32 %v6051_v39, %v12179_v54  ;;  %6058 = vrsqrt.f32 %v1847_v1  ;;  %5587 = vmatpush3.bf16.msra.mxu1 %v5925_v33  ;;  %v5926_v46 = vld [vmem:[#allocation10 + $0x8] sm:$0xff]  }
 0x3a0   : > { %v9438_v42 = vsub.f32 %v8792_v15, %v2532_v60  ;;  %v9441_v32 = vsub.f32 %v8798_v17, %v2532_v60  ;;  %v2533_v43 = vmul.f32 0.00390625, %v2385_v5  ;;  %2887 = vadd.xlane.f32.xlu0 %v2886_v34  ;;  %v1718_v26 = vpop.xlane.xlu0 %1717  ;;  %v2167_v39 = vmul.f32 %v8318_v59, %v2028_v41  ;;  %v12185_v33 = vld [vmem:[#allocation91_spill] sm:$0xff]  ;;  %5588 = vmatprep.subr.bf16.mxu1 %v5926_v46 }
 0x3a1   : > { %v9444_v3 = vadd.f32 %v8332_v0, %v2165_v9  ;;  %v9447_v56 = vadd.f32 %v8335_v48, %v2166_v55  ;;  %v2168_v21 = vmul.f32 %v8321_v31, %v2029_v12  ;;  %v1784_v34 = vmul.f32 0.00390625, %v1718_v26  ;;  %v12184_v12 = vld [vmem:[#allocation90_spill] sm:$0xff] }
 0x3a2   : > { %12180 = vst [vmem:[#allocation96_spill] sm:$0xff] %v9438_v42  ;;  %12181 = vst [vmem:[#allocation97_spill] sm:$0xff] %v9441_v32  ;;  %v2744_v15 = vmul.f32 %v9438_v42, %v9438_v42  ;;  %v2745_v17 = vmul.f32 %v9441_v32, %v9441_v32  ;;  %v9456_v60 = vsub.f32 %v8808_v50, %v2533_v43  ;;  %v1721_v25 = vpop.xlane.xlu1 %1720 }
 0x3a3   : > { %v9459_v1 = vsub.f32 %v8815_v63, %v2533_v43  ;;  %2890 = vadd.xlane.f32.xlu1 %v2889_v49  ;;  %v2488_v41 = vadd.f32 %v9447_v56, %v9444_v3  ;;  %v9464_v4 = vadd.f32 %v8332_v0, %v2167_v39  ;;  %v9467_v24 = vadd.f32 %v8335_v48, %v2168_v21  ;;  %v6053_v50 = vpop.eup %6052 }
 0x3a4   : > { %12182 = vst [vmem:[#allocation86_spill] sm:$0xff] %v9456_v60  ;;  %v2746_v63 = vmul.f32 %v9456_v60, %v9456_v60  ;;  %v1785_v49 = vmul.f32 0.00390625, %v1721_v25  ;;  %v2892_v30 = vadd.f32 %v2745_v17, %v2744_v15  ;;  %v6055_v5 = vpop.eup %6054  ;;  %v1848_v9 = vadd.f32 1e-05, %v1784_v34  ;;  %v2388_v55 = vpop.xlane.xlu0 %2387  ;;  %v12186_v60 = vld [vmem:[#allocation104_spill] sm:$0xff]  ;;  %5589 = vmatpush3.bf16.msra.mxu1 %v5926_v46 }
 0x3a5   : > { %12183 = vst [vmem:[#allocation87_spill] sm:$0xff] %v9459_v1  ;;  %v2747_v8 = vmul.f32 %v9459_v1, %v9459_v1  ;;  %2489 = vadd.xlane.f32.xlu0 %v2488_v41  ;;  %v2491_v54 = vadd.f32 %v9467_v24, %v9464_v4  ;;  %v2030_v43 = vmul.f32 %v6053_v50, %v12184_v12  ;;  %v2534_v21 = vmul.f32 0.00390625, %v2388_v55  ;;  %v12187_v41 = vld [vmem:[#allocation105_spill] sm:$0xff] }
 0x3a6   : > { %v2031_v26 = vmul.f32 %v6053_v50, %v12185_v33  ;;  %v1849_v39 = vadd.f32 1e-05, %v1785_v49  ;;  %v2032_v42 = vmul.f32 %v6055_v5, %v12186_v60  ;;  %6060 = vrsqrt.f32 %v1848_v9  ;;  %v2391_v15 = vpop.xlane.xlu1 %2390 }
 0x3a7   : > { %v2895_v32 = vadd.f32 %v2747_v8, %v2746_v63  ;;  %2492 = vadd.xlane.f32.xlu1 %v2491_v54  ;;  %v2169_v17 = vmul.f32 %v8318_v59, %v2030_v43  ;;  %v2033_v25 = vmul.f32 %v6055_v5, %v12187_v41  ;;  %v9482_v12 = vsub.f32 %v8829_v6, %v2534_v21 }
 0x3a8   : > { %v2170_v34 = vmul.f32 %v8321_v31, %v2031_v26  ;;  %6062 = vrsqrt.f32 %v1849_v39  ;;  %v9485_v50 = vsub.f32 %v8834_v2, %v2534_v21  ;;  %v2535_v63 = vmul.f32 0.00390625, %v2391_v15  ;;  %v12192_v26 = vld [vmem:[#allocation94_spill] sm:$0xff]  ;;  %v12193_v21 = vld [vmem:[#allocation95_spill] sm:$0xff] }
 0x3a9   : > { %12188 = vst [vmem:[#allocation88_spill] sm:$0xff] %v9482_v12  ;;  %2893 = vadd.xlane.f32.xlu0 %v2892_v30  ;;  %v9488_v60 = vadd.f32 %v8332_v0, %v2169_v17  ;;  %v2171_v49 = vmul.f32 %v8318_v59, %v2032_v42  ;;  %v2172_v5 = vmul.f32 %v8321_v31, %v2033_v25  ;;  %v2394_v33 = vpop.xlane.xlu0 %2393  ;;  %v12194_v17 = vld [vmem:[#allocation109_spill] sm:$0xff] }
 0x3aa   : > { %12189 = vst [vmem:[#allocation89_spill] sm:$0xff] %v9485_v50  ;;  %v9491_v8 = vadd.f32 %v8335_v48, %v2170_v34  ;;  %v2748_v46 = vmul.f32 %v9482_v12, %v9482_v12  ;;  %v9498_v6 = vsub.f32 %v8838_v20, %v2535_v63  ;;  %v9501_v2 = vsub.f32 %v8844_v18, %v2535_v63  ;;  %v12205_v12 = vld [vmem:[#allocation101_spill] sm:$0xff] }
 0x3ab   : > { %v2749_v30 = vmul.f32 %v9485_v50, %v9485_v50  ;;  %2896 = vadd.xlane.f32.xlu1 %v2895_v32  ;;  %v9508_v42 = vadd.f32 %v8332_v0, %v2171_v49  ;;  %v9511_v55 = vadd.f32 %v8335_v48, %v2172_v5  ;;  %v6057_v54 = vpop.eup %6056  ;;  %v12195_v49 = vld [vmem:[#allocation110_spill] sm:$0xff] }
 0x3ac   : > { %12190 = vst [vmem:[#allocation90_spill] sm:$0xff] %v9498_v6  ;;  %12191 = vst [vmem:[#allocation91_spill] sm:$0xff] %v9501_v2  ;;  %v2494_v9 = vadd.f32 %v9491_v8, %v9488_v60  ;;  %v2750_v20 = vmul.f32 %v9498_v6, %v9498_v6  ;;  %v6059_v43 = vpop.eup %6058  ;;  %v2751_v18 = vmul.f32 %v9501_v2, %v9501_v2  ;;  %v2536_v2 = vmul.f32 0.00390625, %v2394_v33 }
 0x3ad   : > { %v2497_v32 = vadd.f32 %v9511_v55, %v9508_v42  ;;  %v2034_v39 = vmul.f32 %v6057_v54, %v12192_v26  ;;  %v2035_v15 = vmul.f32 %v6057_v54, %v12193_v21  ;;  %v2036_v34 = vmul.f32 %v6059_v43, %v12194_v17  ;;  %v2397_v50 = vpop.xlane.xlu1 %2396  ;;  %v12199_v17 = vld [vmem:[#allocation111_spill] sm:$0xff] }
 0x3ae   : > { %2495 = vadd.xlane.f32.xlu0 %v2494_v9  ;;  %v2898_v41 = vadd.f32 %v2749_v30, %v2748_v46  ;;  %v2037_v5 = vmul.f32 %v6059_v43, %v12195_v49  ;;  %v2901_v1 = vadd.f32 %v2751_v18, %v2750_v20  ;;  %v2537_v18 = vmul.f32 0.00390625, %v2397_v50 }
 0x3af   : > { %2498 = vadd.xlane.f32.xlu1 %v2497_v32  ;;  %v2173_v25 = vmul.f32 %v8318_v59, %v2034_v39  ;;  %v2174_v63 = vmul.f32 %v8321_v31, %v2035_v15  ;;  %v2175_v9 = vmul.f32 %v8318_v59, %v2036_v34  ;;  %v9542_v21 = vsub.f32 %v8852_v38, %v2536_v2 }
 0x3b0   : > { %v2176_v46 = vmul.f32 %v8321_v31, %v2037_v5  ;;  %v12203_v5 = vld [vmem:[#allocation98_spill] sm:$0xff] }
 0x3b1   : > { %v9527_v26 = vadd.f32 %v8332_v0, %v2173_v25  ;;  %v9530_v54 = vadd.f32 %v8335_v48, %v2174_v63  ;;  %v9534_v30 = vadd.f32 %v8332_v0, %v2175_v9  ;;  %v2400_v33 = vpop.xlane.xlu0 %2399  ;;  %12198 = vst [vmem:[#allocation94_spill] sm:$0xff] %v9542_v21  ;;  %v12201_v25 = vld [vmem:[#allocation100_spill] sm:$0xff] }
 0x3b2   : > { %2899 = vadd.xlane.f32.xlu0 %v2898_v41  ;;  %v9539_v32 = vadd.f32 %v8335_v48, %v2176_v46  ;;  %v9549_v63 = vsub.f32 %v12201_v25, %v2536_v2  ;;  %v2538_v49 = vmul.f32 0.00390625, %v2400_v33  ;;  %v12204_v46 = vld [vmem:[#allocation99_spill] sm:$0xff] }
 0x3b3   : > { %12196 = vst [vmem:[#allocation104_spill] sm:$0xff] %v9534_v30  ;;  %2902 = vadd.xlane.f32.xlu1 %v2901_v1  ;;  %v2500_v43 = vadd.f32 %v9530_v54, %v9527_v26  ;;  %v6061_v20 = vpop.eup %6060  ;;  %v12200_v1 = vld [vmem:[#allocation112_spill] sm:$0xff] }
 0x3b4   : > { %12197 = vst [vmem:[#allocation105_spill] sm:$0xff] %v9539_v32  ;;  %v2503_v15 = vadd.f32 %v9539_v32, %v9534_v30  ;;  %v2038_v34 = vmul.f32 %v6061_v20, %v12199_v17  ;;  %v2039_v41 = vmul.f32 %v6061_v20, %v12200_v1  ;;  %12202 = vst [vmem:[#allocation95_spill] sm:$0xff] %v9549_v63  ;;  %v12207_v17 = vld [vmem:[#allocation102_spill] sm:$0xff] }
 0x3b5   : > { %v6063_v39 = vpop.eup %6062  ;;  %v2403_v6 = vpop.xlane.xlu1 %2402  ;;  %v9556_v32 = vsub.f32 %v12205_v12, %v2537_v18  ;;  %v9559_v30 = vsub.f32 %v12207_v17, %v2537_v18  ;;  %v2753_v12 = vmul.f32 %v9549_v63, %v9549_v63  ;;  %v12209_v18 = vld [vmem:[#allocation103_spill] sm:$0xff]  ;;  %v12215_v17 = vld [vmem:[#allocation32_spill] sm:$0xff] }
 0x3b6   : > { %2501 = vadd.xlane.f32.xlu0 %v2500_v43  ;;  %v2040_v9 = vmul.f32 %v6063_v39, %v12203_v5  ;;  %v2041_v50 = vmul.f32 %v6063_v39, %v12204_v46  ;;  %v2177_v38 = vmul.f32 %v8318_v59, %v2038_v34  ;;  %v2178_v43 = vmul.f32 %v8321_v31, %v2039_v41  ;;  %v2406_v33 = vpop.xlane.xlu0 %2405 }
 0x3b7   : > { %2504 = vadd.xlane.f32.xlu1 %v2503_v15  ;;  %12206 = vst [vmem:[#allocation109_spill] sm:$0xff] %v9556_v32  ;;  %12208 = vst [vmem:[#allocation110_spill] sm:$0xff] %v9559_v30  ;;  %v2539_v20 = vmul.f32 0.00390625, %v2403_v6  ;;  %v2752_v34 = vmul.f32 %v9542_v21, %v9542_v21  ;;  %v9574_v41 = vsub.f32 %v12209_v18, %v2538_v49  ;;  %v12211_v6 = vld [vmem:[#allocation106_spill] sm:$0xff]  ;;  %v2540_v5 = vmul.f32 0.00390625, %v2406_v33 }
 0x3b8   : > { %v2179_v2 = vmul.f32 %v8318_v59, %v2040_v9  ;;  %v9563_v1 = vadd.f32 %v8332_v0, %v2177_v38  ;;  %v9566_v39 = vadd.f32 %v8335_v48, %v2178_v43  ;;  %v2180_v15 = vmul.f32 %v8321_v31, %v2041_v50  ;;  %v12213_v43 = vld [vmem:[#allocation107_spill] sm:$0xff] }
 0x3b9   : > { %12210 = vst [vmem:[#allocation111_spill] sm:$0xff] %v9574_v41  ;;  %v9580_v25 = vsub.f32 %v12211_v6, %v2538_v49  ;;  %v2754_v46 = vmul.f32 %v9556_v32, %v9556_v32  ;;  %v2755_v50 = vmul.f32 %v9559_v30, %v9559_v30  ;;  %v9595_v49 = vsub.f32 %v12215_v17, %v2539_v20  ;;  %v12217_v30 = vld [vmem:[#allocation33_spill] sm:$0xff]  ;;  %v12223_v17 = vld [vmem:[#allocation36_spill] sm:$0xff] }
 0x3ba   : > { %v9577_v59 = vadd.f32 %v8332_v0, %v2179_v2  ;;  %v2506_v9 = vadd.f32 %v9566_v39, %v9563_v1  ;;  %v9585_v31 = vadd.f32 %v8335_v48, %v2180_v15  ;;  %v2409_v38 = vpop.xlane.xlu1 %2408  ;;  %v9592_v0 = vsub.f32 %v12213_v43, %v2539_v20  ;;  %v5927_v48 = vld [vmem:[#allocation10] sm:$0xff]  }
 0x3bb   : > { %12212 = vst [vmem:[#allocation112_spill] sm:$0xff] %v9580_v25  ;;  %12216 = vst [vmem:[#allocation98_spill] sm:$0xff] %v9595_v49  ;;  %v2541_v2 = vmul.f32 0.00390625, %v2409_v38  ;;  %v2756_v15 = vmul.f32 %v9574_v41, %v9574_v41  ;;  %v2904_v18 = vadd.f32 %v2753_v12, %v2752_v34  ;;  %v2757_v6 = vmul.f32 %v9580_v25, %v9580_v25  ;;  %v12219_v43 = vld [vmem:[#allocation34_spill] sm:$0xff]  ;;  %v12221_v34 = vld [vmem:[#allocation35_spill] sm:$0xff] }
 0x3bc   : > { %12214 = vst [vmem:[#allocation100_spill] sm:$0xff] %v9592_v0  ;;  %2507 = vadd.xlane.f32.xlu0 %v2506_v9  ;;  %v2509_v33 = vadd.f32 %v9585_v31, %v9577_v59  ;;  %v9604_v63 = vsub.f32 %v12217_v30, %v2540_v5  ;;  %v9607_v32 = vsub.f32 %v12219_v43, %v2540_v5 }
 0x3bd   : > { %5590 = vmatprep.subr.bf16.mxu1 %v5927_v48  ;;  %v2907_v20 = vadd.f32 %v2755_v50, %v2754_v46  ;;  %v2758_v9 = vmul.f32 %v9592_v0, %v9592_v0  ;;  %v2759_v38 = vmul.f32 %v9595_v49, %v9595_v49  ;;  %v9614_v12 = vsub.f32 %v12221_v34, %v2541_v2  ;;  %v2412_v30 = vpop.xlane.xlu0 %2411  ;;  %v12227_v49 = vld [vmem:[#allocation38_spill] sm:$0xff] }
 0x3be   : > { %12218 = vst [vmem:[#allocation99_spill] sm:$0xff] %v9604_v63  ;;  %12220 = vst [vmem:[#allocation101_spill] sm:$0xff] %v9607_v32  ;;  %2510 = vadd.xlane.f32.xlu1 %v2509_v33  ;;  %5591 = vmatpush3.bf16.msra.mxu1 %v5927_v48  ;;  %v9617_v25 = vsub.f32 %v12223_v17, %v2541_v2  ;;  %v2542_v5 = vmul.f32 0.00390625, %v2412_v30  ;;  %v2760_v33 = vmul.f32 %v9604_v63, %v9604_v63  ;;  %v12225_v48 = vld [vmem:[#allocation37_spill] sm:$0xff] }
 0x3bf   : > { %12222 = vst [vmem:[#allocation102_spill] sm:$0xff] %v9614_v12  ;;  %v2761_v46 = vmul.f32 %v9607_v32, %v9607_v32  ;;  %v2910_v50 = vadd.f32 %v2757_v6, %v2756_v15  ;;  %v2762_v2 = vmul.f32 %v9614_v12, %v9614_v12  ;;  %v2913_v30 = vadd.f32 %v2759_v38, %v2758_v9 }
 0x3c0   : > { %12224 = vst [vmem:[#allocation103_spill] sm:$0xff] %v9617_v25  ;;  %2905 = vadd.xlane.f32.xlu0 %v2904_v18  ;;  %v9624_v43 = vsub.f32 %v12225_v48, %v2542_v5  ;;  %v9627_v34 = vsub.f32 %v12227_v49, %v2542_v5  ;;  %v2415_v0 = vpop.xlane.xlu1 %2414  ;;  %v2763_v18 = vmul.f32 %v9617_v25, %v9617_v25  ;;  %v12230_v49 = vld [vmem:[#allocation39_spill] sm:$0xff] }
 0x3c1   : > { %v2543_v17 = vmul.f32 0.00390625, %v2415_v0  ;;  %v2916_v48 = vadd.f32 %v2761_v46, %v2760_v33 }
 0x3c2   : > { %2908 = vadd.xlane.f32.xlu1 %v2907_v20  ;;  %12226 = vst [vmem:[#allocation106_spill] sm:$0xff] %v9624_v43  ;;  %12228 = vst [vmem:[#allocation107_spill] sm:$0xff] %v9627_v34  ;;  %v2764_v20 = vmul.f32 %v9624_v43, %v9624_v43  ;;  %v2765_v15 = vmul.f32 %v9627_v34, %v9627_v34  ;;  %v2919_v38 = vadd.f32 %v2763_v18, %v2762_v2  ;;  %v12236_v2 = vld [vmem:[#allocation42_spill] sm:$0xff] }
 0x3c3   : > { %v9638_v6 = vsub.f32 %v8936_v62, %v2543_v17  ;;  %v9641_v5 = vsub.f32 %v12230_v49, %v2543_v17  ;;  %v12232_v62 = vld [vmem:[#allocation40_spill] sm:$0xff]  ;;  %v12234_v17 = vld [vmem:[#allocation41_spill] sm:$0xff] }
 0x3c4   : > { %2911 = vadd.xlane.f32.xlu0 %v2910_v50  ;;  %v2922_v50 = vadd.f32 %v2765_v15, %v2764_v20  ;;  %v12238_v20 = vld [vmem:[#allocation43_spill] sm:$0xff] }
 0x3c5   : > { %12229 = vst [vmem:[#allocation32_spill] sm:$0xff] %v9638_v6  ;;  %12231 = vst [vmem:[#allocation33_spill] sm:$0xff] %v9641_v5  ;;  %v2766_v25 = vmul.f32 %v9638_v6, %v9638_v6  ;;  %v2767_v0 = vmul.f32 %v9641_v5, %v9641_v5  ;;  %v2418_v9 = vpop.xlane.xlu0 %2417 }
 0x3c6   : > { %2914 = vadd.xlane.f32.xlu1 %v2913_v30  ;;  %v2544_v32 = vmul.f32 0.00390625, %v2418_v9 }
 0x3c7   : > { %v2925_v34 = vadd.f32 %v2767_v0, %v2766_v25 }
 0x3c8   : > { %2917 = vadd.xlane.f32.xlu0 %v2916_v48  ;;  %v9648_v43 = vsub.f32 %v12232_v62, %v2544_v32  ;;  %v9651_v49 = vsub.f32 %v12234_v17, %v2544_v32  ;;  %v12242_v17 = vld [vmem:[#allocation45_spill] sm:$0xff] }
 0x3c9   : > { %v2421_v33 = vpop.xlane.xlu1 %2420 }
 0x3ca   : > { %2920 = vadd.xlane.f32.xlu1 %v2919_v38  ;;  %12233 = vst [vmem:[#allocation34_spill] sm:$0xff] %v9648_v43  ;;  %12235 = vst [vmem:[#allocation35_spill] sm:$0xff] %v9651_v49  ;;  %v2545_v46 = vmul.f32 0.00390625, %v2421_v33  ;;  %v2768_v30 = vmul.f32 %v9648_v43, %v9648_v43  ;;  %v2769_v48 = vmul.f32 %v9651_v49, %v9651_v49 }
 0x3cc   : > { %2923 = vadd.xlane.f32.xlu0 %v2922_v50  ;;  %v9658_v18 = vsub.f32 %v12236_v2, %v2545_v46  ;;  %v9661_v25 = vsub.f32 %v12238_v20, %v2545_v46  ;;  %v2928_v0 = vadd.f32 %v2769_v48, %v2768_v30  ;;  %v12240_v50 = vld [vmem:[#allocation44_spill] sm:$0xff] }
 0x3cd   : > { %v2424_v15 = vpop.xlane.xlu0 %2423 }
 0x3ce   : > { %12237 = vst [vmem:[#allocation36_spill] sm:$0xff] %v9658_v18  ;;  %12239 = vst [vmem:[#allocation37_spill] sm:$0xff] %v9661_v25  ;;  %2926 = vadd.xlane.f32.xlu1 %v2925_v34  ;;  %v2770_v32 = vmul.f32 %v9658_v18, %v9658_v18  ;;  %v2771_v9 = vmul.f32 %v9661_v25, %v9661_v25  ;;  %v2546_v38 = vmul.f32 0.00390625, %v2424_v15  ;;  %v12244_v25 = vld [vmem:[#allocation46_spill] sm:$0xff] }
 0x3cf   : > { %v12311_v18 = vld [vmem:[#allocation58_spill] sm:$0xff] }
 0x3d0   : > { %2929 = vadd.xlane.f32.xlu0 %v2928_v0  ;;  %v9668_v62 = vsub.f32 %v12240_v50, %v2546_v38  ;;  %v9671_v33 = vsub.f32 %v12242_v17, %v2546_v38  ;;  %v2931_v2 = vadd.f32 %v2771_v9, %v2770_v32  ;;  %v2427_v30 = vpop.xlane.xlu1 %2426  ;;  %v12246_v0 = vld [vmem:[#allocation47_spill] sm:$0xff]  ;;  %v12248_v17 = vld [vmem:[#allocation48_spill] sm:$0xff] }
 0x3d1   : > { %v2547_v48 = vmul.f32 0.00390625, %v2427_v30 }
 0x3d2   : > { %12241 = vst [vmem:[#allocation38_spill] sm:$0xff] %v9668_v62  ;;  %12243 = vst [vmem:[#allocation39_spill] sm:$0xff] %v9671_v33  ;;  %v2772_v34 = vmul.f32 %v9668_v62, %v9668_v62  ;;  %v2773_v46 = vmul.f32 %v9671_v33, %v9671_v33  ;;  %2932 = vadd.xlane.f32.xlu1 %v2931_v2  ;;  %v12250_v2 = vld [vmem:[#allocation49_spill] sm:$0xff] }
 0x3d3   : > { %v9678_v15 = vsub.f32 %v12244_v25, %v2547_v48  ;;  %v9681_v50 = vsub.f32 %v12246_v0, %v2547_v48 }
 0x3d4   : > { %v2934_v20 = vadd.f32 %v2773_v46, %v2772_v34  ;;  %v2430_v49 = vpop.xlane.xlu0 %2429 }
 0x3d5   : > { %12245 = vst [vmem:[#allocation40_spill] sm:$0xff] %v9678_v15  ;;  %12247 = vst [vmem:[#allocation41_spill] sm:$0xff] %v9681_v50  ;;  %v2548_v38 = vmul.f32 0.00390625, %v2430_v49  ;;  %v2774_v32 = vmul.f32 %v9678_v15, %v9678_v15  ;;  %v2775_v9 = vmul.f32 %v9681_v50, %v9681_v50 }
 0x3d6   : > { %2935 = vadd.xlane.f32.xlu0 %v2934_v20 }
 0x3d7   : > { %v9688_v33 = vsub.f32 %v12248_v17, %v2548_v38  ;;  %v9691_v34 = vsub.f32 %v12250_v2, %v2548_v38  ;;  %v2937_v25 = vadd.f32 %v2775_v9, %v2774_v32  ;;  %v12253_v17 = vld [vmem:[#allocation52_spill] sm:$0xff] }
 0x3d9   : > { %12249 = vst [vmem:[#allocation42_spill] sm:$0xff] %v9688_v33  ;;  %12251 = vst [vmem:[#allocation43_spill] sm:$0xff] %v9691_v34  ;;  %v2776_v46 = vmul.f32 %v9688_v33, %v9688_v33  ;;  %v2777_v49 = vmul.f32 %v9691_v34, %v9691_v34  ;;  %v2834_v30 = vpop.xlane.xlu0 %2833  ;;  %v2433_v48 = vpop.xlane.xlu1 %2432  ;;  %2938 = vadd.xlane.f32.xlu1 %v2937_v25 }
 0x3da   : > { %v2549_v20 = vmul.f32 0.00390625, %v2433_v48 }
 0x3db   : > { %v2940_v0 = vadd.f32 %v2777_v49, %v2776_v46 }
 0x3dc   : > { %v9698_v50 = vsub.f32 %v9014_v45, %v2549_v20  ;;  %v9701_v5 = vsub.f32 %v12253_v17, %v2549_v20  ;;  %v3024_v20 = vmul.f32 0.00390625, %v2834_v30 }
 0x3dd   : > { %2941 = vadd.xlane.f32.xlu0 %v2940_v0 }
 0x3de   : > { %12252 = vst [vmem:[#allocation44_spill] sm:$0xff] %v9698_v50  ;;  %12254 = vst [vmem:[#allocation45_spill] sm:$0xff] %v9701_v5  ;;  %v2837_v38 = vpop.xlane.xlu1 %2836  ;;  %v2778_v9 = vmul.f32 %v9698_v50, %v9698_v50  ;;  %v2779_v2 = vmul.f32 %v9701_v5, %v9701_v5 }
 0x3df   : > { %v2436_v32 = vpop.xlane.xlu0 %2435 }
 0x3e0   : > { %v2550_v34 = vmul.f32 0.00390625, %v2436_v32  ;;  %v2943_v45 = vadd.f32 %v2779_v2, %v2778_v9  ;;  %v3088_v9 = vadd.f32 1e-05, %v3024_v20 }
 0x3e2   : > { %v9708_v25 = vsub.f32 %v9041_v61, %v2550_v34  ;;  %v9711_v46 = vsub.f32 %v9044_v28, %v2550_v34  ;;  %v2439_v49 = vpop.xlane.xlu1 %2438  ;;  %2944 = vadd.xlane.f32.xlu1 %v2943_v45  ;;  %v12258_v61 = vld [vmem:[#allocation59_spill] sm:$0xff]  ;;  %6064 = vrsqrt.f32 %v3088_v9 }
 0x3e3   : > { %v2840_v48 = vpop.xlane.xlu0 %2839  ;;  %v2551_v50 = vmul.f32 0.00390625, %v2439_v49 }
 0x3e4   : > { %12255 = vst [vmem:[#allocation46_spill] sm:$0xff] %v9708_v25  ;;  %12256 = vst [vmem:[#allocation47_spill] sm:$0xff] %v9711_v46  ;;  %v2780_v0 = vmul.f32 %v9708_v25, %v9708_v25  ;;  %v2781_v17 = vmul.f32 %v9711_v46, %v9711_v46  ;;  %v3025_v25 = vmul.f32 0.00390625, %v2837_v38 }
 0x3e5   : > { %v9718_v32 = vsub.f32 %v9058_v58, %v2551_v50  ;;  %v9721_v5 = vsub.f32 %v12258_v61, %v2551_v50 }
 0x3e6   : > { %v2946_v28 = vadd.f32 %v2781_v17, %v2780_v0  ;;  %v2843_v34 = vpop.xlane.xlu1 %2842  ;;  %v3089_v0 = vadd.f32 1e-05, %v3025_v25  ;;  %v3026_v25 = vmul.f32 0.00390625, %v2840_v48 }
 0x3e7   : > { %12257 = vst [vmem:[#allocation48_spill] sm:$0xff] %v9718_v32  ;;  %12259 = vst [vmem:[#allocation49_spill] sm:$0xff] %v9721_v5  ;;  %v2782_v30 = vmul.f32 %v9718_v32, %v9718_v32  ;;  %v2783_v2 = vmul.f32 %v9721_v5, %v9721_v5 }
 0x3e8   : > { %2947 = vadd.xlane.f32.xlu0 %v2946_v28  ;;  %v2442_v46 = vpop.xlane.xlu0 %2441  ;;  %v12263_v28 = vld [vmem:[#allocation116_spill] sm:$0xff]  ;;  %6066 = vrsqrt.f32 %v3089_v0 }
 0x3e9   : > { %v2552_v49 = vmul.f32 0.00390625, %v2442_v46  ;;  %v2949_v45 = vadd.f32 %v2783_v2, %v2782_v30 }
 0x3eb   : > { %v2445_v33 = vpop.xlane.xlu1 %2444  ;;  %v9728_v58 = vsub.f32 %v9085_v35, %v2552_v49  ;;  %v9731_v50 = vsub.f32 %v9090_v14, %v2552_v49  ;;  %2950 = vadd.xlane.f32.xlu1 %v2949_v45  ;;  %v3027_v49 = vmul.f32 0.00390625, %v2843_v34 }
 0x3ec   : > { %v2553_v20 = vmul.f32 0.00390625, %v2445_v33  ;;  %v2846_v17 = vpop.xlane.xlu0 %2845 }
 0x3ed   : > { %12260 = vst [vmem:[#allocation52_spill] sm:$0xff] %v9728_v58  ;;  %12261 = vst [vmem:[#allocation59_spill] sm:$0xff] %v9731_v50  ;;  %v2784_v61 = vmul.f32 %v9728_v58, %v9728_v58  ;;  %v2785_v38 = vmul.f32 %v9731_v50, %v9731_v50 }
 0x3ee   : > { %v9738_v46 = vsub.f32 %v9094_v19, %v2553_v20  ;;  %v9741_v9 = vsub.f32 %v12263_v28, %v2553_v20  ;;  %v3090_v20 = vadd.f32 1e-05, %v3026_v25  ;;  %v12269_v25 = vld [vmem:[#allocation30_spill] sm:$0xff] }
 0x3ef   : > { %v2952_v33 = vadd.f32 %v2785_v38, %v2784_v61  ;;  %v2849_v30 = vpop.xlane.xlu1 %2848  ;;  %v9763_v38 = vpop.eup %6064 }
 0x3f0   : > { %12262 = vst [vmem:[#allocation127_spill] sm:$0xff] %v9738_v46  ;;  %12264 = vst [vmem:[#allocation116_spill] sm:$0xff] %v9741_v9  ;;  %v2786_v14 = vmul.f32 %v9738_v46, %v9738_v46  ;;  %v2787_v35 = vmul.f32 %v9741_v9, %v9741_v9  ;;  %v3091_v9 = vadd.f32 1e-05, %v3027_v49  ;;  %6068 = vrsqrt.f32 %v3090_v20 }
 0x3f1   : > { %v2448_v2 = vpop.xlane.xlu0 %2447  ;;  %2953 = vadd.xlane.f32.xlu0 %v2952_v33  ;;  %v9777_v20 = vld [vmem:[#allocation8 + $0x3] ss:$4 sm:$0x3] }
 0x3f2   : > { %v2554_v45 = vmul.f32 0.00390625, %v2448_v2  ;;  %v2955_v50 = vadd.f32 %v2787_v35, %v2786_v14  ;;  %6070 = vrsqrt.f32 %v3091_v9  ;;  %v3028_v35 = vmul.f32 0.00390625, %v2846_v17  ;;  %v12270_v2 = vld [vmem:[#allocation50_spill] sm:$0xff] }
 0x3f3   : > { %v3216_v49 = vmul.f32 %v9763_v38, %v12270_v2  ;;  %v3029_v17 = vmul.f32 0.00390625, %v2849_v30 }
 0x3f4   : > { %v9748_v19 = vsub.f32 %v9129_v37, %v2554_v45  ;;  %v9751_v28 = vsub.f32 %v9132_v36, %v2554_v45  ;;  %2956 = vadd.xlane.f32.xlu1 %v2955_v50  ;;  %v9765_v36 = vld [vmem:[#allocation8 + $0x2] ss:$4 sm:$0x3] }
 0x3f5   : > { %v2451_v5 = vpop.xlane.xlu1 %2450  ;;  %v2852_v46 = vpop.xlane.xlu0 %2851 }
 0x3f6   : > { %12265 = vst [vmem:[#allocation128_spill] sm:$0xff] %v9748_v19  ;;  %12266 = vst [vmem:[#allocation129_spill] sm:$0xff] %v9751_v28  ;;  %v2788_v48 = vmul.f32 %v9748_v19, %v9748_v19  ;;  %v2555_v0 = vmul.f32 0.00390625, %v2451_v5  ;;  %v2789_v34 = vmul.f32 %v9751_v28, %v9751_v28 }
 0x3f8   : > { %v9758_v61 = vsub.f32 %v9156_v22, %v2555_v0  ;;  %v9761_v37 = vsub.f32 %v9159_v57, %v2555_v0  ;;  %v2958_v14 = vadd.f32 %v2789_v34, %v2788_v48  ;;  %v9773_v57 = vrot.slane %v9765_v36, %v12269_v25  ;;  %v9779_v0 = vpop.eup %6066 }
 0x3f9   : > { %v2855_v50 = vpop.xlane.xlu1 %2854 }
 0x3fa   : > { %12267 = vst [vmem:[#allocation130_spill] sm:$0xff] %v9758_v61  ;;  %12268 = vst [vmem:[#allocation131_spill] sm:$0xff] %v9761_v37  ;;  %v2790_v5 = vmul.f32 %v9758_v61, %v9758_v61  ;;  %v2791_v33 = vmul.f32 %v9761_v37, %v9761_v37  ;;  %2959 = vadd.xlane.f32.xlu0 %v2958_v14  ;;  %v3092_v37 = vadd.f32 1e-05, %v3028_v35  ;;  %v12272_v14 = vld [vmem:[#allocation121_spill] sm:$0xff] }
 0x3fb   : > { %v2454_v22 = vpop.xlane.xlu0 %2453  ;;  %v3355_v2 = vmul.f32 %v9773_v57, %v3216_v49  ;;  %v3093_v35 = vadd.f32 1e-05, %v3029_v17 }
 0x3fc   : > { %v2556_v45 = vmul.f32 0.00390625, %v2454_v22  ;;  %v2961_v48 = vadd.f32 %v2791_v33, %v2790_v5  ;;  %v9789_v22 = vrot.slane %v9777_v20, %v12269_v25  ;;  %v12274_v5 = vld [vmem:[#allocation53_spill] sm:$0xff]  ;;  %6072 = vrsqrt.f32 %v3092_v37 }
 0x3fd   : > { %v3218_v33 = vmul.f32 %v9779_v0, %v12274_v5  ;;  %v3030_v5 = vmul.f32 0.00390625, %v2852_v46  ;;  %v9810_v32 = vpop.eup %6068  ;;  %6074 = vrsqrt.f32 %v3093_v35  ;;  %v3031_v37 = vmul.f32 0.00390625, %v2855_v50 }
 0x3fe   : > { %v2457_v9 = vpop.xlane.xlu1 %2456  ;;  %v9782_v34 = vsub.f32 %v9173_v29, %v2556_v45  ;;  %v9785_v28 = vsub.f32 %v12272_v14, %v2556_v45  ;;  %2962 = vadd.xlane.f32.xlu1 %v2961_v48  ;;  %v3494_v49 = vadd.f32 %v9789_v22, %v3355_v2 }
 0x3ff   : > { %v2557_v61 = vmul.f32 0.00390625, %v2457_v9  ;;  %v2858_v19 = vpop.xlane.xlu0 %2857  ;;  %v3357_v17 = vmul.f32 %v9773_v57, %v3218_v33 }
 0x400   : > { %12271 = vst [vmem:[#allocation30_spill] sm:$0xff] %v9782_v34  ;;  %12273 = vst [vmem:[#allocation50_spill] sm:$0xff] %v9785_v28  ;;  %v2792_v45 = vmul.f32 %v9782_v34, %v9782_v34  ;;  %v2793_v9 = vmul.f32 %v9785_v28, %v9785_v28  ;;  %v5403_v15 = vmul.f32 -1.442695, %v3494_v49  ;;  %v12283_v49 = vld [vmem:[#allocation31_spill] sm:$0xff] }
 0x401   : > { %v9795_v30 = vsub.f32 %v9200_v53, %v2557_v61  ;;  %v9802_v48 = vsub.f32 %v9203_v16, %v2557_v61  ;;  %v9812_v61 = vpop.eup %6070  ;;  %v3496_v33 = vadd.f32 %v9789_v22, %v3357_v17  ;;  %v3032_v17 = vmul.f32 0.00390625, %v2858_v19 }
 0x402   : > { %v2861_v29 = vpop.xlane.xlu1 %2860  ;;  %v2964_v16 = vadd.f32 %v2793_v9, %v2792_v45  ;;  %v3094_v45 = vadd.f32 1e-05, %v3030_v5  ;;  %6076 = vpow2.f32 %v5403_v15 }
 0x403   : > { %12275 = vst [vmem:[#allocation121_spill] sm:$0xff] %v9795_v30  ;;  %12276 = vst [vmem:[#allocation53_spill] sm:$0xff] %v9802_v48  ;;  %v2460_v25 = vpop.xlane.xlu0 %2459  ;;  %v2794_v14 = vmul.f32 %v9795_v30, %v9795_v30  ;;  %v2795_v53 = vmul.f32 %v9802_v48, %v9802_v48 }
 0x404   : > { %v2558_v34 = vmul.f32 0.00390625, %v2460_v25  ;;  %2965 = vadd.xlane.f32.xlu0 %v2964_v16  ;;  %v12279_v25 = vld [vmem:[#allocation55_spill] sm:$0xff]  ;;  %6078 = vrsqrt.f32 %v3094_v45 }
 0x405   : > { %v2967_v46 = vadd.f32 %v2795_v53, %v2794_v14  ;;  %v3220_v35 = vmul.f32 %v9810_v32, %v12279_v25  ;;  %v9837_v14 = vrot.slane %v9765_v36, %v12283_v49  ;;  %v3095_v53 = vadd.f32 1e-05, %v3031_v37  ;;  %v12286_v45 = vld [vmem:[#allocation51_spill] sm:$0xff] }
 0x406   : > { %v2463_v58 = vpop.xlane.xlu1 %2462  ;;  %v9815_v2 = vsub.f32 %v9224_v44, %v2558_v34  ;;  %v9818_v28 = vsub.f32 %v9227_v51, %v2558_v34  ;;  %v12280_v44 = vld [vmem:[#allocation60_spill] sm:$0xff] }
 0x407   : > { %v2559_v30 = vmul.f32 0.00390625, %v2463_v58  ;;  %v2864_v48 = vpop.xlane.xlu0 %2863  ;;  %v3222_v62 = vmul.f32 %v9812_v61, %v12280_v44  ;;  %2968 = vadd.xlane.f32.xlu1 %v2967_v46  ;;  %6080 = vrsqrt.f32 %v3095_v53 }
 0x408   : > { %12277 = vst [vmem:[#allocation132_spill] sm:$0xff] %v9815_v2  ;;  %12278 = vst [vmem:[#allocation133_spill] sm:$0xff] %v9818_v28  ;;  %v2796_v50 = vmul.f32 %v9815_v2, %v9815_v2  ;;  %v2797_v51 = vmul.f32 %v9818_v28, %v9818_v28  ;;  %v5404_v28 = vmul.f32 -1.442695, %v3496_v33 }
 0x409   : > { %v9830_v58 = vsub.f32 %v9244_v23, %v2559_v30  ;;  %v9833_v34 = vsub.f32 %v9247_v27, %v2559_v30  ;;  %v3359_v27 = vmul.f32 %v9773_v57, %v3220_v35  ;;  %v3033_v30 = vmul.f32 0.00390625, %v2861_v29  ;;  %v6073_v33 = vpop.eup %6072 }
 0x40a   : > { %v2867_v9 = vpop.xlane.xlu1 %2866  ;;  %v2970_v23 = vadd.f32 %v2797_v51, %v2796_v50  ;;  %v3361_v36 = vmul.f32 %v9773_v57, %v3222_v62  ;;  %v3096_v35 = vadd.f32 1e-05, %v3032_v17  ;;  %6082 = vpow2.f32 %v5404_v28 }
 0x40b   : > { %12281 = vst [vmem:[#allocation55_spill] sm:$0xff] %v9830_v58  ;;  %12282 = vst [vmem:[#allocation60_spill] sm:$0xff] %v9833_v34  ;;  %v2798_v16 = vmul.f32 %v9830_v58, %v9830_v58  ;;  %v2799_v25 = vmul.f32 %v9833_v34, %v9833_v34  ;;  %v3034_v34 = vmul.f32 0.00390625, %v2864_v48  ;;  %v3035_v29 = vmul.f32 0.00390625, %v2867_v9  ;;  %v12288_v48 = vld [vmem:[#allocation72_spill] sm:$0xff]  ;;  %v12290_v9 = vld [vmem:[#allocation54_spill] sm:$0xff] }
 0x40c   : > { %v2466_v5 = vpop.xlane.xlu0 %2465  ;;  %2971 = vadd.xlane.f32.xlu0 %v2970_v23  ;;  %v3097_v51 = vadd.f32 1e-05, %v3033_v30  ;;  %v3219_v17 = vmul.f32 %v9779_v0, %v12290_v9  ;;  %v3500_v28 = vadd.f32 %v9789_v22, %v3361_v36  ;;  %6084 = vrsqrt.f32 %v3096_v35  ;;  %v12294_v35 = vld [vmem:[#allocation75_spill] sm:$0xff]  ;;  %v12304_v58 = vld [vmem:[#allocation118_spill] sm:$0xff] }
 0x40d   : > { %v2560_v44 = vmul.f32 0.00390625, %v2466_v5  ;;  %v2973_v15 = vadd.f32 %v2799_v25, %v2798_v16  ;;  %v3498_v25 = vadd.f32 %v9789_v22, %v3359_v27  ;;  %v3099_v0 = vadd.f32 1e-05, %v3035_v29 }
 0x40e   : > { %v2469_v46 = vpop.xlane.xlu1 %2468  ;;  %6086 = vrsqrt.f32 %v3097_v51  ;;  %v3358_v9 = vmul.f32 %v9837_v14, %v3219_v17  ;;  %v5406_v51 = vmul.f32 -1.442695, %v3500_v28 }
 0x40f   : > { %v9846_v19 = vsub.f32 %v9268_v47, %v2560_v44  ;;  %v9849_v37 = vsub.f32 %v9271_v7, %v2560_v44  ;;  %v2561_v5 = vmul.f32 0.00390625, %v2469_v46  ;;  %v3217_v7 = vmul.f32 %v9763_v38, %v12286_v45  ;;  %2974 = vadd.xlane.f32.xlu1 %v2973_v15  ;;  %v9870_v46 = vpop.eup %6074  ;;  %v12291_v38 = vld [vmem:[#allocation114_spill] sm:$0xff] }
 0x410   : > { %v9851_v50 = vpop.xlane.xlu0 %2869  ;;  %v3224_v30 = vmul.f32 %v6073_v33, %v12291_v38  ;;  %v3098_v45 = vadd.f32 1e-05, %v3034_v34  ;;  %v12292_v38 = vld [vmem:[#allocation56_spill] sm:$0xff] }
 0x411   : > { %12284 = vst [vmem:[#allocation31_spill] sm:$0xff] %v9846_v19  ;;  %12285 = vst [vmem:[#allocation134_spill] sm:$0xff] %v9849_v37  ;;  %v2800_v62 = vmul.f32 %v9846_v19, %v9846_v19  ;;  %v2801_v47 = vmul.f32 %v9849_v37, %v9849_v37  ;;  %v9860_v53 = vsub.f32 %v9288_v11, %v2561_v5  ;;  %v5405_v37 = vmul.f32 -1.442695, %v3498_v25 }
 0x412   : > { %v9863_v44 = vsub.f32 %v12288_v48, %v2561_v5  ;;  %v9865_v16 = vpop.xlane.xlu1 %2872  ;;  %v9879_v48 = vrot.slane %v9777_v20, %v12283_v49  ;;  %v3356_v27 = vmul.f32 %v9837_v14, %v3217_v7  ;;  %v3363_v20 = vmul.f32 %v9773_v57, %v3224_v30  ;;  %v12293_v49 = vld [vmem:[#allocation64_spill] sm:$0xff]  ;;  %v6077_v30 = vpop.eup %6076 }
 0x413   : > { %12287 = vst [vmem:[#allocation51_spill] sm:$0xff] %v9860_v53  ;;  %v2976_v23 = vadd.f32 %v2801_v47, %v2800_v62  ;;  %v2802_v11 = vmul.f32 %v9860_v53, %v9860_v53  ;;  %v3226_v36 = vmul.f32 %v9870_v46, %v12293_v49  ;;  %6088 = vrsqrt.f32 %v3098_v45  ;;  %v12298_v45 = vld [vmem:[#allocation113_spill] sm:$0xff] }
 0x414   : > { %12289 = vst [vmem:[#allocation72_spill] sm:$0xff] %v9863_v44  ;;  %v2803_v5 = vmul.f32 %v9863_v44, %v9863_v44  ;;  %v3221_v44 = vmul.f32 %v9810_v32, %v12292_v38  ;;  %6090 = vrsqrt.f32 %v3099_v0  ;;  %v3495_v25 = vadd.f32 %v9879_v48, %v3356_v27  ;;  %v9907_v0 = vpop.eup %6078 }
 0x415   : > { %v2472_v15 = vpop.xlane.xlu0 %2471  ;;  %2977 = vadd.xlane.f32.xlu0 %v2976_v23  ;;  %v12296_v23 = vld [vmem:[#allocation76_spill] sm:$0xff]  ;;  %6092 = vpow2.f32 %v5405_v37  ;;  %v3036_v37 = vmul.f32 0.00390625, %v9851_v50 }
 0x416   : > { %v2562_v34 = vmul.f32 0.00390625, %v2472_v15  ;;  %v2979_v47 = vadd.f32 %v2803_v5, %v2802_v11  ;;  %v3360_v5 = vmul.f32 %v9837_v14, %v3221_v44  ;;  %v3223_v15 = vmul.f32 %v9812_v61, %v12298_v45  ;;  %v9912_v44 = vpop.eup %6080  ;;  %v12299_v61 = vld [vmem:[#allocation124_spill] sm:$0xff]  ;;  %v12303_v45 = vld [vmem:[#allocation115_spill] sm:$0xff] }
 0x417   : > { %v2475_v62 = vpop.xlane.xlu1 %2474  ;;  %6094 = vpow2.f32 %v5406_v51  ;;  %v6083_v51 = vpop.eup %6082  ;;  %v12305_v50 = vld [vmem:[#allocation120_spill] sm:$0xff] }
 0x418   : > { %v9890_v29 = vsub.f32 %v12294_v35, %v2562_v34  ;;  %2980 = vadd.xlane.f32.xlu1 %v2979_v47  ;;  %v9895_v17 = vsub.f32 %v12296_v23, %v2562_v34  ;;  %v2563_v11 = vmul.f32 0.00390625, %v2475_v62  ;;  %v3502_v34 = vadd.f32 %v9789_v22, %v3363_v20  ;;  %v12301_v35 = vld [vmem:[#allocation126_spill] sm:$0xff] }
 0x419   : > { %v9892_v7 = vpop.xlane.xlu0 %2875  ;;  %v3365_v62 = vmul.f32 %v9773_v57, %v3226_v36  ;;  %v3497_v47 = vadd.f32 %v9879_v48, %v3358_v9  ;;  %6096 = vtanh.f32 %v3495_v25  ;;  %v9923_v36 = vadd.f32 %v9879_v48, %v3360_v5 }
 0x41a   : > { %12295 = vst [vmem:[#allocation54_spill] sm:$0xff] %v9890_v29  ;;  %12297 = vst [vmem:[#allocation114_spill] sm:$0xff] %v9895_v17  ;;  %v2804_v38 = vmul.f32 %v9890_v29, %v9890_v29  ;;  %v2805_v28 = vmul.f32 %v9895_v17, %v9895_v17  ;;  %v9915_v49 = vsub.f32 %v12299_v61, %v2563_v11  ;;  %v5407_v19 = vmul.f32 -1.442695, %v3502_v34 }
 0x41b   : > { %v9897_v32 = vpop.xlane.xlu1 %2878  ;;  %v9918_v23 = vsub.f32 %v12301_v35, %v2563_v11  ;;  %v3225_v17 = vmul.f32 %v6073_v33, %v12303_v45  ;;  %v3362_v9 = vmul.f32 %v9837_v14, %v3223_v15  ;;  %v3504_v61 = vadd.f32 %v9789_v22, %v3365_v62  ;;  %v12306_v62 = vld [vmem:[#allocation117_spill] sm:$0xff] }
 0x41c   : > { %12300 = vst [vmem:[#allocation56_spill] sm:$0xff] %v9915_v49  ;;  %v2982_v53 = vadd.f32 %v2805_v28, %v2804_v38  ;;  %v3228_v11 = vmul.f32 %v9907_v0, %v12304_v58  ;;  %6098 = vtanh.f32 %v3497_v47  ;;  %v3230_v25 = vmul.f32 %v9912_v44, %v12305_v50  ;;  %v9937_v28 = vpop.eup %6084  ;;  %v12307_v50 = vld [vmem:[#allocation80_spill] sm:$0xff] }
 0x41d   : > { %v2478_v27 = vpop.xlane.xlu0 %2477  ;;  %12302 = vst [vmem:[#allocation64_spill] sm:$0xff] %v9918_v23  ;;  %v2806_v5 = vmul.f32 %v9915_v49, %v9915_v49  ;;  %v2807_v15 = vmul.f32 %v9918_v23, %v9918_v23  ;;  %v3814_v38 = vadd.f32 1.0, %v6077_v30  ;;  %v3364_v34 = vmul.f32 %v9837_v14, %v3225_v17  ;;  %v9945_v45 = vpop.eup %6086  ;;  %v12309_v23 = vld [vmem:[#allocation81_spill] sm:$0xff] }
 0x41e   : > { %v2564_v29 = vmul.f32 0.00390625, %v2478_v27  ;;  %2983 = vadd.xlane.f32.xlu0 %v2982_v53  ;;  %v3227_v58 = vmul.f32 %v9870_v46, %v12306_v62  ;;  %v3100_v27 = vadd.f32 1e-05, %v3036_v37  ;;  %v3037_v47 = vmul.f32 0.00390625, %v9865_v16 }
 0x41f   : > { %v3815_v30 = vadd.f32 1.0, %v6083_v51  ;;  %6100 = vrcp.f32 %v3814_v38  ;;  %v5408_v17 = vmul.f32 -1.442695, %v3504_v61  ;;  %v3367_v2 = vmul.f32 %v9773_v57, %v3228_v11 }
 0x420   : > { %v2481_v20 = vpop.xlane.xlu1 %2480  ;;  %v9948_v49 = vsub.f32 %v12307_v50, %v2564_v29  ;;  %v9951_v53 = vsub.f32 %v12309_v23, %v2564_v29  ;;  %6102 = vpow2.f32 %v5407_v19  ;;  %v9954_v62 = vpop.eup %6088  ;;  %v3369_v16 = vmul.f32 %v9773_v57, %v3230_v25  ;;  %v12312_v29 = vld [vmem:[#allocation62_spill] sm:$0xff] }
 0x421   : > { %v9929_v33 = vpop.xlane.xlu0 %2881  ;;  %v2565_v46 = vmul.f32 0.00390625, %v2481_v20  ;;  %v3232_v43 = vmul.f32 %v9937_v28, %v12311_v18  ;;  %6104 = vrcp.f32 %v3815_v30  ;;  %v2985_v50 = vadd.f32 %v2807_v15, %v2806_v5  ;;  %v9959_v6 = vpop.eup %6090 }
 0x422   : > { %12308 = vst [vmem:[#allocation75_spill] sm:$0xff] %v9948_v49  ;;  %12310 = vst [vmem:[#allocation76_spill] sm:$0xff] %v9951_v53  ;;  %v3234_v23 = vmul.f32 %v9945_v45, %v12312_v29  ;;  %v3101_v19 = vadd.f32 1e-05, %v3037_v47  ;;  %v3038_v51 = vmul.f32 0.00390625, %v9892_v7  ;;  %6106 = vrsqrt.f32 %v3100_v27  ;;  %v12315_v7 = vld [vmem:[#allocation65_spill] sm:$0xff]  ;;  %v6093_v47 = vpop.eup %6092 }
 0x423   : > { %v9965_v20 = vsub.f32 %v9376_v52, %v2565_v46  ;;  %v2808_v11 = vmul.f32 %v9948_v49, %v9948_v49  ;;  %v2809_v18 = vmul.f32 %v9951_v53, %v9951_v53  ;;  %v9972_v25 = vsub.f32 %v9379_v40, %v2565_v46  ;;  %2986 = vadd.xlane.f32.xlu1 %v2985_v50  ;;  %v12316_v29 = vld [vmem:[#allocation66_spill] sm:$0xff] }
 0x424   : > { %v9943_v35 = vpop.xlane.xlu1 %2884  ;;  %v3501_v5 = vadd.f32 %v9879_v48, %v3362_v9  ;;  %v9976_v15 = vadd.f32 %v9879_v48, %v3364_v34  ;;  %v3366_v52 = vmul.f32 %v9837_v14, %v3227_v58  ;;  %v3236_v38 = vmul.f32 %v9954_v62, %v12315_v7  ;;  %v6095_v50 = vpop.eup %6094 }
 0x425   : > { %v2484_v37 = vpop.xlane.xlu0 %2483  ;;  %12313 = vst [vmem:[#allocation113_spill] sm:$0xff] %v9965_v20  ;;  %12314 = vst [vmem:[#allocation124_spill] sm:$0xff] %v9972_v25  ;;  %6108 = vpow2.f32 %v5408_v17  ;;  %v3506_v30 = vadd.f32 %v9789_v22, %v3367_v2  ;;  %v3238_v40 = vmul.f32 %v9959_v6, %v12316_v29  ;;  %v3371_v9 = vmul.f32 %v9773_v57, %v3232_v43 }
 0x426   : > { %v2566_v46 = vmul.f32 0.00390625, %v2484_v37  ;;  %v3102_v34 = vadd.f32 1e-05, %v3038_v51  ;;  %v2810_v58 = vmul.f32 %v9965_v20, %v9965_v20  ;;  %v2811_v7 = vmul.f32 %v9972_v25, %v9972_v25  ;;  %v6097_v53 = vpop.eup %6096  ;;  %v12317_v25 = vld [vmem:[#allocation82_spill] sm:$0xff] }
 0x427   : > { %v3508_v49 = vadd.f32 %v9789_v22, %v3369_v16  ;;  %v3373_v17 = vmul.f32 %v9773_v57, %v3234_v23  ;;  %6110 = vrsqrt.f32 %v3101_v19  ;;  %v2988_v2 = vadd.f32 %v2809_v18, %v2808_v11  ;;  %v12319_v16 = vld [vmem:[#allocation83_spill] sm:$0xff] }
 0x428   : > { %v2487_v61 = vpop.xlane.xlu1 %2486  ;;  %v3375_v37 = vmul.f32 %v9773_v57, %v3236_v38  ;;  %v3039_v43 = vmul.f32 0.00390625, %v9897_v32  ;;  %v3816_v51 = vadd.f32 1.0, %v6093_v47  ;;  %6112 = vtanh.f32 %v9923_v36  ;;  %v12321_v19 = vld [vmem:[#allocation119_spill] sm:$0xff] }
 0x429   : > { %v9981_v27 = vpop.xlane.xlu0 %2887  ;;  %v6099_v29 = vpop.eup %6098  ;;  %v3377_v20 = vmul.f32 %v9773_v57, %v3238_v40  ;;  %v10000_v63 = vsub.f32 %v12317_v25, %v2566_v46  ;;  %v10003_v41 = vsub.f32 %v12319_v16, %v2566_v46  ;;  %2989 = vadd.xlane.f32.xlu0 %v2988_v2  ;;  %v3817_v23 = vadd.f32 1.0, %v6095_v50 }
 0x42a   : > { %v3229_v11 = vmul.f32 %v9907_v0, %v12321_v19  ;;  %v3510_v18 = vadd.f32 %v9789_v22, %v3371_v9  ;;  %6114 = vrsqrt.f32 %v3102_v34  ;;  %v2991_v32 = vadd.f32 %v2811_v7, %v2810_v58  ;;  %v12323_v19 = vld [vmem:[#allocation61_spill] sm:$0xff] }
 0x42b   : > { %12318 = vst [vmem:[#allocation126_spill] sm:$0xff] %v10000_v63  ;;  %12320 = vst [vmem:[#allocation115_spill] sm:$0xff] %v10003_v41  ;;  %v10009_v36 = vadd.f32 %v9879_v48, %v3366_v52  ;;  %v5409_v47 = vmul.f32 -1.442695, %v3506_v30  ;;  %v3512_v25 = vadd.f32 %v9789_v22, %v3373_v17  ;;  %6116 = vtanh.f32 %v3501_v5 }
 0x42c   : > { %v9993_v12 = vpop.xlane.xlu1 %2890  ;;  %v6101_v40 = vpop.eup %6100  ;;  %v5410_v46 = vmul.f32 -1.442695, %v3508_v49  ;;  %v3514_v2 = vadd.f32 %v9789_v22, %v3375_v37  ;;  %v3103_v50 = vadd.f32 1e-05, %v3039_v43  ;;  %6118 = vrcp.f32 %v3816_v51  ;;  %2992 = vadd.xlane.f32.xlu1 %v2991_v32  ;;  %v12322_v49 = vld [vmem:[#allocation57_spill] sm:$0xff] }
 0x42d   : > { %v6103_v0 = vpop.eup %6102  ;;  %v3516_v9 = vadd.f32 %v9789_v22, %v3377_v20  ;;  %v2812_v34 = vmul.f32 %v10000_v63, %v10000_v63  ;;  %v2813_v52 = vmul.f32 %v10003_v41, %v10003_v41  ;;  %6120 = vrcp.f32 %v3817_v23 }
 0x42e   : > { %v2490_v38 = vpop.xlane.xlu0 %2489  ;;  %v6105_v58 = vpop.eup %6104  ;;  %v3368_v5 = vmul.f32 %v9837_v14, %v3229_v11  ;;  %v3231_v7 = vmul.f32 %v9912_v44, %v12322_v49  ;;  %v5411_v17 = vmul.f32 -1.442695, %v3510_v18  ;;  %v2567_v37 = vmul.f32 0.00390625, %v2487_v61 }
 0x42f   : > { %6122 = vpow2.f32 %v5409_v47  ;;  %v5412_v43 = vmul.f32 -1.442695, %v3512_v25  ;;  %v4070_v51 = vmul.f32 %v6101_v40, %v6097_v53  ;;  %v4071_v20 = vmul.f32 %v6105_v58, %v6099_v29  ;;  %v10021_v16 = vpop.eup %6106 }
 0x430   : > { %v2493_v30 = vpop.xlane.xlu1 %2492  ;;  %v3233_v32 = vmul.f32 %v9937_v28, %v12323_v19  ;;  %v5413_v41 = vmul.f32 -1.442695, %v3514_v2  ;;  %6124 = vrsqrt.f32 %v3103_v50  ;;  %v2568_v23 = vmul.f32 0.00390625, %v2490_v38  ;;  %v12325_v38 = vld [vmem:[#allocation68_spill] sm:$0xff]  ;;  %v12328_v19 = vld [vmem:[#allocation122_spill] sm:$0xff] }
 0x431   : > { %6126 = vpow2.f32 %v5410_v46  ;;  %v5414_v11 = vmul.f32 -1.442695, %v3516_v9  ;;  %v10027_v21 = vpack.c.bf16 %v4071_v20, %v4070_v51  ;;  %v2994_v44 = vadd.f32 %v2813_v52, %v2812_v34  ;;  %v12326_v9 = vld [vmem:[#allocation63_spill] sm:$0xff] }
 0x432   : > { %v10025_v63 = vpop.xlane.xlu0 %2893  ;;  %v6109_v61 = vpop.eup %6108  ;;  %v10030_v18 = vadd.f32 %v9879_v48, %v3368_v5  ;;  %6128 = vpow2.f32 %v5411_v17  ;;  %v10033_v53 = vsub.f32 %v9420_v13, %v2567_v37  ;;  %v10036_v28 = vsub.f32 %v9423_v10, %v2567_v37 }
 0x433   : > { %12324 = vst [vmem:[#allocation118_spill] sm:$0xff] %v10027_v21  ;;  %v3370_v29 = vmul.f32 %v9837_v14, %v3231_v7  ;;  %6130 = vpow2.f32 %v5412_v43  ;;  %v3240_v47 = vmul.f32 %v10021_v16, %v12325_v38  ;;  %5592 = vmatprep.mubr.bf16.mxu1 %v10027_v21  ;;  %2995 = vadd.xlane.f32.xlu0 %v2994_v44  ;;  %v3818_v25 = vadd.f32 1.0, %v6103_v0  ;;  %v12327_v7 = vld [vmem:[#allocation70_spill] sm:$0xff] }
 0x434   : > { %v10042_v40 = vpop.xlane.xlu1 %2896  ;;  %v10044_v46 = vpop.eup %6110  ;;  %v3372_v13 = vmul.f32 %v9837_v14, %v3233_v32  ;;  %6132 = vpow2.f32 %v5413_v41  ;;  %v10048_v10 = vsub.f32 %v9444_v3, %v2568_v23  ;;  %v10051_v2 = vsub.f32 %v9447_v56, %v2568_v23 }
 0x435   : > { %v6113_v50 = vpop.eup %6112  ;;  %v3235_v34 = vmul.f32 %v9945_v45, %v12326_v9  ;;  %6134 = vpow2.f32 %v5414_v11  ;;  %v3040_v0 = vmul.f32 0.00390625, %v9929_v33  ;;  %v3819_v52 = vadd.f32 1.0, %v6109_v61 }
 0x436   : > { %v2814_v58 = vmul.f32 %v10033_v53, %v10033_v53  ;;  %v2815_v41 = vmul.f32 %v10036_v28, %v10036_v28  ;;  %6136 = vrcp.f32 %v3818_v25  ;;  %v2569_v3 = vmul.f32 0.00390625, %v2493_v30 }
 0x437   : > { %v2496_v5 = vpop.xlane.xlu0 %2495  ;;  %v10060_v49 = vpop.eup %6114  ;;  %v10063_v56 = vadd.f32 %v9879_v48, %v3370_v29  ;;  %v3379_v45 = vmul.f32 %v9773_v57, %v3240_v47  ;;  %v3242_v33 = vmul.f32 %v10044_v46, %v12327_v7  ;;  %6138 = vrcp.f32 %v3819_v52 }
 0x438   : > { %v6117_v17 = vpop.eup %6116  ;;  %v10069_v37 = vadd.f32 %v9879_v48, %v3372_v13  ;;  %v2816_v43 = vmul.f32 %v10048_v10, %v10048_v10  ;;  %v2817_v30 = vmul.f32 %v10051_v2, %v10051_v2  ;;  %6140 = vtanh.f32 %v9976_v15  ;;  %v2499_v11 = vpop.xlane.xlu1 %2498 }
 0x439   : > { %v6119_v51 = vpop.eup %6118  ;;  %v10077_v20 = vmul.f32 %v9837_v14, %v3235_v34  ;;  %v10081_v32 = vmul.f32 %v9954_v62, %v12328_v19  ;;  %v3041_v23 = vmul.f32 0.00390625, %v9943_v35  ;;  %6142 = vtanh.f32 %v10009_v36 }
 0x43a   : > { %v6121_v44 = vpop.eup %6120  ;;  %v3104_v61 = vadd.f32 1e-05, %v3040_v0  ;;  %v10086_v29 = vsub.f32 %v9464_v4, %v2569_v3  ;;  %v10089_v15 = vsub.f32 %v9467_v24, %v2569_v3  ;;  %v2997_v38 = vadd.f32 %v2815_v41, %v2814_v58  ;;  %v12329_v24 = vld [vmem:[#allocation73_spill] sm:$0xff] }
 0x43b   : > { %v3518_v47 = vadd.f32 %v9789_v22, %v3379_v45  ;;  %v3381_v25 = vmul.f32 %v9773_v57, %v3242_v33  ;;  %v4072_v62 = vmul.f32 %v6119_v51, %v6113_v50  ;;  %v4073_v13 = vmul.f32 %v6121_v44, %v6117_v17  ;;  %v10094_v52 = vpop.xlane.xlu0 %2899 }
 0x43c   : > { %v6123_v9 = vpop.eup %6122  ;;  %v3042_v35 = vmul.f32 0.00390625, %v9981_v27  ;;  %2998 = vadd.xlane.f32.xlu1 %v2997_v38  ;;  %v2570_v36 = vmul.f32 0.00390625, %v2496_v5  ;;  %v3000_v34 = vadd.f32 %v2817_v30, %v2816_v43  ;;  %v2571_v0 = vmul.f32 0.00390625, %v2499_v11  ;;  %v12331_v43 = vld [vmem:[#allocation67_spill] sm:$0xff]  ;;  %v10119_v19 = vpop.xlane.xlu1 %2902 }
 0x43d   : > { %v10096_v4 = vpop.eup %6124  ;;  %v3244_v58 = vmul.f32 %v10060_v49, %v12329_v24  ;;  %v3105_v41 = vadd.f32 1e-05, %v3041_v23  ;;  %v10100_v3 = vpack.c.bf16 %v4073_v13, %v4072_v62  ;;  %v3043_v50 = vmul.f32 0.00390625, %v9993_v12 }
 0x43e   : > { %v6127_v45 = vpop.eup %6126  ;;  %v2818_v27 = vmul.f32 %v10086_v29, %v10086_v29  ;;  %v2819_v5 = vmul.f32 %v10089_v15, %v10089_v15  ;;  %v10108_v7 = vsub.f32 %v9488_v60, %v2570_v36  ;;  %v10111_v33 = vsub.f32 %v9491_v8, %v2570_v36  ;;  %3001 = vadd.xlane.f32.xlu0 %v3000_v34  ;;  %v12332_v60 = vld [vmem:[#allocation77_spill] sm:$0xff] }
 0x43f   : > { %12330 = vst [vmem:[#allocation120_spill] sm:$0xff] %v10100_v3  ;;  %v6129_v17 = vpop.eup %6128  ;;  %v10115_v30 = vmul.f32 %v9959_v6, %v12331_v43  ;;  %v5415_v12 = vmul.f32 -1.442695, %v3518_v47  ;;  %v3520_v51 = vadd.f32 %v9789_v22, %v3381_v25  ;;  %6144 = vrsqrt.f32 %v3104_v61  ;;  %5593 = vmatmul.mubr.bf16.vlgmr.msra.gmra.mxu1 %v10100_v3  ;;  %v2502_v36 = vpop.xlane.xlu0 %2501 }
 0x440   : > { %v6131_v23 = vpop.eup %6130  ;;  %v3246_v11 = vmul.f32 %v10096_v4, %v12332_v60  ;;  %v3106_v8 = vadd.f32 1e-05, %v3042_v35  ;;  %v10124_v44 = vsub.f32 %v9508_v42, %v2571_v0  ;;  %v10127_v38 = vsub.f32 %v9511_v55, %v2571_v0 }
 0x441   : > { %v10129_v6 = vpop.eup %6132  ;;  %v3383_v47 = vmul.f32 %v9773_v57, %v3244_v58  ;;  %v3107_v61 = vadd.f32 1e-05, %v3043_v50  ;;  %v2820_v25 = vmul.f32 %v10108_v7, %v10108_v7  ;;  %v2821_v62 = vmul.f32 %v10111_v33, %v10111_v33 }
 0x442   : > { %v10136_v13 = vpop.eup %6134  ;;  %6146 = vrsqrt.f32 %v3105_v41  ;;  %v3044_v42 = vmul.f32 0.00390625, %v10025_v63  ;;  %v3045_v35 = vmul.f32 0.00390625, %v10042_v40  ;;  %v3003_v55 = vadd.f32 %v2819_v5, %v2818_v27 }
 0x443   : > { %v6137_v34 = vpop.eup %6136  ;;  %6148 = vpow2.f32 %v5415_v12  ;;  %v5416_v0 = vmul.f32 -1.442695, %v3520_v51  ;;  %v3820_v24 = vadd.f32 1.0, %v6123_v9  ;;  %v3821_v58 = vadd.f32 1.0, %v6127_v45  ;;  %v2505_v12 = vpop.xlane.xlu1 %2504 }
 0x444   : > { %v6139_v50 = vpop.eup %6138  ;;  %v3385_v43 = vmul.f32 %v9773_v57, %v3246_v11  ;;  %6150 = vrsqrt.f32 %v3106_v8  ;;  %v2822_v60 = vmul.f32 %v10124_v44, %v10124_v44  ;;  %v2823_v41 = vmul.f32 %v10127_v38, %v10127_v38  ;;  %3004 = vadd.xlane.f32.xlu1 %v3003_v55 }
 0x445   : > { %v6141_v63 = vpop.eup %6140  ;;  %v3522_v40 = vadd.f32 %v9789_v22, %v3383_v47  ;;  %6152 = vrsqrt.f32 %v3107_v61  ;;  %v2572_v27 = vmul.f32 0.00390625, %v2502_v36  ;;  %v3006_v5 = vadd.f32 %v2821_v62, %v2820_v25  ;;  %v2508_v62 = vpop.xlane.xlu0 %2507 }
 0x446   : > { %v6143_v9 = vpop.eup %6142  ;;  %v4074_v45 = vmul.f32 %v6141_v63, %v6137_v34  ;;  %v3108_v51 = vadd.f32 1e-05, %v3044_v42  ;;  %v3109_v3 = vadd.f32 1e-05, %v3045_v35  ;;  %6154 = vrcp.f32 %v3820_v24 }
 0x447   : > { %v4075_v11 = vmul.f32 %v6143_v9, %v6139_v50  ;;  %6156 = vrcp.f32 %v3821_v58  ;;  %v10147_v8 = vsub.f32 %v9527_v26, %v2572_v27  ;;  %v10150_v21 = vsub.f32 %v9530_v54, %v2572_v27  ;;  %3007 = vadd.xlane.f32.xlu0 %v3006_v5  ;;  %v2511_v34 = vpop.xlane.xlu1 %2510  ;;  %v12334_v50 = vld [vmem:[#allocation104_spill] sm:$0xff] }
 0x448   : > { %6158 = vtanh.f32 %v10030_v18  ;;  %v2573_v47 = vmul.f32 0.00390625, %v2505_v12  ;;  %v3009_v61 = vadd.f32 %v2823_v41, %v2822_v60  ;;  %v3822_v25 = vadd.f32 1.0, %v6129_v17 }
 0x449   : > { %v10153_v55 = vpack.c.bf16 %v4075_v11, %v4074_v45  ;;  %6160 = vtanh.f32 %v10063_v56  ;;  %v2824_v42 = vmul.f32 %v10147_v8, %v10147_v8  ;;  %v2825_v26 = vmul.f32 %v10150_v21, %v10150_v21  ;;  %v12336_v11 = vld [vmem:[#allocation69_spill] sm:$0xff] }
 0x44a   : > { %v3513_v54 = vadd.f32 %v9879_v48, %v10077_v20  ;;  %6162 = vpow2.f32 %v5416_v0  ;;  %v3524_v18 = vadd.f32 %v9789_v22, %v3385_v43  ;;  %3010 = vadd.xlane.f32.xlu1 %v3009_v61  ;;  %v3823_v35 = vadd.f32 1.0, %v6131_v23  ;;  %v12337_v61 = vld [vmem:[#allocation71_spill] sm:$0xff] }
 0x44b   : > { %12333 = vst [vmem:[#allocation117_spill] sm:$0xff] %v10153_v55  ;;  %v3376_v17 = vmul.f32 %v9837_v14, %v10081_v32  ;;  %v3378_v56 = vmul.f32 %v9837_v14, %v10115_v30  ;;  %5596 = vmatprep.mubr.bf16.mxu1 %v10153_v55  ;;  %6164 = vrsqrt.f32 %v3108_v51  ;;  %v2574_v36 = vmul.f32 0.00390625, %v2508_v62  ;;  %v12335_v32 = vld [vmem:[#allocation105_spill] sm:$0xff] }
 0x44c   : > { %v10168_v24 = vpop.eup %6144  ;;  %v5417_v58 = vmul.f32 -1.442695, %v3522_v40  ;;  %6166 = vrsqrt.f32 %v3109_v3  ;;  %v3046_v20 = vmul.f32 0.00390625, %v10094_v52  ;;  %v3012_v0 = vadd.f32 %v2825_v26, %v2824_v42  ;;  %v5928_v30 = vld [vmem:[#allocation11 + $0x38] sm:$0xff]  }
 0x44d   : > { %v3047_v23 = vmul.f32 0.00390625, %v10119_v19  ;;  %v10173_v43 = vsub.f32 %v12334_v50, %v2573_v47  ;;  %v10176_v60 = vsub.f32 %v12335_v32, %v2573_v47  ;;  %6168 = vrcp.f32 %v3822_v25  ;;  %v2906_v19 = vpop.xlane.xlu0 %2905  ;;  %5656 = vmatprep.subr.bf16.mxu1 %v5928_v30 }
 0x44e   : > { %v5418_v41 = vmul.f32 -1.442695, %v3524_v18  ;;  %6170 = vrcp.f32 %v3823_v35  ;;  %3013 = vadd.xlane.f32.xlu0 %v3012_v0  ;;  %v2575_v63 = vmul.f32 0.00390625, %v2511_v34  ;;  %v10182_v52 = vsub.f32 %v9563_v1, %v2574_v36  ;;  %5657 = vmatpush3.bf16.msra.mxu1 %v5928_v30  ;;  %v12341_v34 = vld [vmem:[#allocation108_spill] sm:$0xff] }
 0x44f   : > { %v10178_v27 = vpop.eup %6146  ;;  %6172 = vtanh.f32 %v10069_v37  ;;  %v10185_v3 = vsub.f32 %v9566_v39, %v2574_v36  ;;  %v3515_v5 = vadd.f32 %v9879_v48, %v3376_v17  ;;  %v3517_v12 = vadd.f32 %v9879_v48, %v3378_v56  ;;  %v2909_v17 = vpop.xlane.xlu1 %2908  ;;  %v12339_v56 = vld [vmem:[#allocation78_spill] sm:$0xff]  ;;  %v12340_v36 = vld [vmem:[#allocation92_spill] sm:$0xff] }
 0x450   : > { %v10187_v40 = vpop.eup %6148  ;;  %v3110_v9 = vadd.f32 1e-05, %v3046_v20  ;;  %6174 = vtanh.f32 %v3513_v54  ;;  %v3111_v37 = vadd.f32 1e-05, %v3047_v23  ;;  %v2826_v1 = vmul.f32 %v10173_v43, %v10173_v43 }
 0x451   : > { %v10191_v45 = vpop.eup %6150  ;;  %6176 = vpow2.f32 %v5417_v58  ;;  %v2827_v39 = vmul.f32 %v10176_v60, %v10176_v60  ;;  %v3241_v47 = vmul.f32 %v10021_v16, %v12336_v11  ;;  %v3243_v25 = vmul.f32 %v10044_v46, %v12337_v61  ;;  %v2912_v50 = vpop.xlane.xlu0 %2911 }
 0x452   : > { %v10197_v51 = vpop.eup %6152  ;;  %6178 = vpow2.f32 %v5418_v41  ;;  %v10204_v62 = vsub.f32 %v9577_v59, %v2575_v63  ;;  %v2828_v26 = vmul.f32 %v10182_v52, %v10182_v52  ;;  %v2829_v54 = vmul.f32 %v10185_v3, %v10185_v3 }
 0x453   : > { %v6155_v42 = vpop.eup %6154  ;;  %v10211_v18 = vsub.f32 %v9585_v31, %v2575_v63  ;;  %v3048_v35 = vmul.f32 0.00390625, %v2906_v19  ;;  %v3248_v46 = vmul.f32 %v10168_v24, %v12339_v56  ;;  %v3250_v59 = vmul.f32 %v10178_v27, %v12340_v36 }
 0x454   : > { %v6157_v16 = vpop.eup %6156  ;;  %v3252_v58 = vmul.f32 %v10191_v45, %v12341_v34  ;;  %6180 = vrsqrt.f32 %v3110_v9  ;;  %v3015_v23 = vadd.f32 %v2827_v39, %v2826_v1  ;;  %v3824_v31 = vadd.f32 1.0, %v10129_v6 }
 0x455   : > { %12338 = vst [vmem:[#allocation80_spill] sm:$0xff] %v10211_v18  ;;  %v6159_v20 = vpop.eup %6158  ;;  %6182 = vrsqrt.f32 %v3111_v37  ;;  %v3112_v0 = vadd.f32 1e-05, %v3048_v35  ;;  %v2830_v41 = vmul.f32 %v10204_v62, %v10204_v62  ;;  %v3825_v63 = vadd.f32 1.0, %v10136_v13 }
 0x456   : > { %v6161_v32 = vpop.eup %6160  ;;  %v4076_v30 = vmul.f32 %v6159_v20, %v6155_v42  ;;  %v3049_v19 = vmul.f32 0.00390625, %v2909_v17  ;;  %v2831_v9 = vmul.f32 %v10211_v18, %v10211_v18  ;;  %3016 = vadd.xlane.f32.xlu1 %v3015_v23  ;;  %6184 = vtanh.f32 %v3515_v5  ;;  %v12342_v17 = vld [vmem:[#allocation84_spill] sm:$0xff] }
 0x457   : > { %v6163_v11 = vpop.eup %6162  ;;  %v4077_v61 = vmul.f32 %v6161_v32, %v6157_v16  ;;  %v3018_v37 = vadd.f32 %v2829_v54, %v2828_v26  ;;  %v3380_v6 = vmul.f32 %v9837_v14, %v3241_v47  ;;  %6186 = vrsqrt.f32 %v3112_v0  ;;  %v12344_v0 = vld [vmem:[#allocation96_spill] sm:$0xff] }
 0x458   : > { %v10225_v1 = vpop.eup %6164  ;;  %v3113_v39 = vadd.f32 1e-05, %v3049_v19  ;;  %v3050_v42 = vmul.f32 0.00390625, %v2912_v50  ;;  %v3387_v13 = vmul.f32 %v9773_v57, %v3248_v46  ;;  %v3254_v16 = vmul.f32 %v10197_v51, %v12342_v17  ;;  %v2915_v46 = vpop.xlane.xlu1 %2914  ;;  %v12346_v17 = vld [vmem:[#allocation86_spill] sm:$0xff] }
 0x459   : > { %v10228_v35 = vpop.eup %6166  ;;  %v10233_v56 = vpack.c.bf16 %v4077_v61, %v4076_v30  ;;  %6188 = vrcp.f32 %v3824_v31  ;;  %3019 = vadd.xlane.f32.xlu0 %v3018_v37  ;;  %v3382_v26 = vmul.f32 %v9837_v14, %v3243_v25  ;;  %v3389_v47 = vmul.f32 %v9773_v57, %v3250_v59  ;;  %v12345_v37 = vld [vmem:[#allocation74_spill] sm:$0xff] }
 0x45a   : > { %v6169_v5 = vpop.eup %6168  ;;  %6190 = vrcp.f32 %v3825_v63  ;;  %v3391_v36 = vmul.f32 %v9773_v57, %v3252_v58  ;;  %v3021_v34 = vadd.f32 %v2831_v9, %v2830_v41  ;;  %v3256_v23 = vmul.f32 %v10225_v1, %v12344_v0 }
 0x45b   : > { %12343 = vst [vmem:[#allocation81_spill] sm:$0xff] %v10233_v56  ;;  %v6171_v54 = vpop.eup %6170  ;;  %5597 = vmatmul.mubr.bf16.gmra.mxu1 %v10233_v56  ;;  %6192 = vtanh.f32 %v3517_v12  ;;  %v3114_v31 = vadd.f32 1e-05, %v3050_v42  ;;  %v3519_v25 = vadd.f32 %v9879_v48, %v3380_v6  ;;  %v3526_v32 = vadd.f32 %v9789_v22, %v3387_v13 }
 0x45c   : > { %v6173_v20 = vpop.eup %6172  ;;  %6194 = vrsqrt.f32 %v3113_v39  ;;  %v3393_v59 = vmul.f32 %v9773_v57, %v3254_v16  ;;  %3022 = vadd.xlane.f32.xlu1 %v3021_v34  ;;  %v3826_v58 = vadd.f32 1.0, %v10187_v40  ;;  %v3051_v41 = vmul.f32 0.00390625, %v2915_v46 }
 0x45d   : > { %v6175_v50 = vpop.eup %6174  ;;  %v4078_v12 = vmul.f32 %v6173_v20, %v6169_v5  ;;  %v3827_v19 = vadd.f32 1.0, %v6163_v11  ;;  %v3521_v9 = vadd.f32 %v9879_v48, %v3382_v26  ;;  %v3245_v39 = vmul.f32 %v10060_v49, %v12345_v37  ;;  %v2918_v5 = vpop.xlane.xlu0 %2917  ;;  %v5929_v11 = vld [vmem:[#allocation11 + $0x30] sm:$0xff]   ;;  %v12348_v49 = vld [vmem:[#allocation123_spill] sm:$0xff]  ;;  %v12350_v37 = vld [vmem:[#allocation90_spill] sm:$0xff] }
 0x45e   : > { %v6177_v30 = vpop.eup %6176  ;;  %v4079_v63 = vmul.f32 %v6175_v50, %v6171_v54  ;;  %v3528_v6 = vadd.f32 %v9789_v22, %v3389_v47  ;;  %v3530_v42 = vadd.f32 %v9789_v22, %v3391_v36  ;;  %v3395_v13 = vmul.f32 %v9773_v57, %v3256_v23  ;;  %5658 = vmatprep.subr.bf16.mxu1 %v5929_v11 }
 0x45f   : > { %v6179_v61 = vpop.eup %6178  ;;  %v3258_v40 = vmul.f32 %v10228_v35, %v12346_v17  ;;  %6196 = vrsqrt.f32 %v3114_v31  ;;  %v5419_v26 = vmul.f32 -1.442695, %v3526_v32  ;;  %v3247_v47 = vmul.f32 %v10096_v4, %v12348_v49  ;;  %5659 = vmatpush3.bf16.msra.mxu1 %v5929_v11  ;;  %v2921_v4 = vpop.xlane.xlu1 %2920 }
 0x460   : > { %v10253_v16 = vpack.c.bf16 %v4079_v63, %v4078_v12  ;;  %6198 = vrcp.f32 %v3826_v58  ;;  %v3532_v36 = vadd.f32 %v9789_v22, %v3393_v59  ;;  %v3115_v34 = vadd.f32 1e-05, %v3051_v41  ;;  %v12349_v12 = vld [vmem:[#allocation88_spill] sm:$0xff] }
 0x461   : > { %v10255_v54 = vpop.eup %6180  ;;  %6200 = vrcp.f32 %v3827_v19  ;;  %v3384_v20 = vmul.f32 %v9837_v14, %v3245_v39  ;;  %v5420_v0 = vmul.f32 -1.442695, %v3528_v6  ;;  %v3052_v23 = vmul.f32 0.00390625, %v2918_v5 }
 0x462   : > { %12347 = vst [vmem:[#allocation58_spill] sm:$0xff] %v10253_v16  ;;  %v10257_v46 = vpop.eup %6182  ;;  %5600 = vmatprep.mubr.bf16.mxu1 %v10253_v16  ;;  %6202 = vtanh.f32 %v3519_v25  ;;  %v5421_v50 = vmul.f32 -1.442695, %v3530_v42  ;;  %v3534_v32 = vadd.f32 %v9789_v22, %v3395_v13  ;;  %v3397_v58 = vmul.f32 %v9773_v57, %v3258_v40 }
 0x463   : > { %v6185_v31 = vpop.eup %6184  ;;  %6204 = vtanh.f32 %v3521_v9  ;;  %v3260_v63 = vmul.f32 %v10255_v54, %v12349_v12  ;;  %v5422_v19 = vmul.f32 -1.442695, %v3532_v36  ;;  %v3262_v25 = vmul.f32 %v10257_v46, %v12350_v37  ;;  %v2924_v36 = vpop.xlane.xlu0 %2923 }
 0x464   : > { %v10266_v59 = vpop.eup %6186  ;;  %6206 = vpow2.f32 %v5419_v26  ;;  %v3386_v6 = vmul.f32 %v9837_v14, %v3247_v47  ;;  %v3116_v42 = vadd.f32 1e-05, %v3052_v23  ;;  %v3523_v9 = vadd.f32 %v9879_v48, %v3384_v20  ;;  %v2927_v12 = vpop.xlane.xlu1 %2926 }
 0x465   : > { %6208 = vrsqrt.f32 %v3115_v34  ;;  %v5423_v17 = vmul.f32 -1.442695, %v3534_v32  ;;  %v3536_v40 = vadd.f32 %v9789_v22, %v3397_v58  ;;  %v3399_v11 = vmul.f32 %v9773_v57, %v3260_v63  ;;  %v12353_v32 = vld [vmem:[#allocation109_spill] sm:$0xff] }
 0x466   : > { %v6189_v41 = vpop.eup %6188  ;;  %6210 = vpow2.f32 %v5420_v0  ;;  %v3828_v34 = vadd.f32 1.0, %v6177_v30  ;;  %v3401_v47 = vmul.f32 %v9773_v57, %v3262_v25  ;;  %v12351_v0 = vld [vmem:[#allocation94_spill] sm:$0xff]  ;;  %v3829_v20 = vadd.f32 1.0, %v6179_v61 }
 0x467   : > { %v6191_v39 = vpop.eup %6190  ;;  %6212 = vpow2.f32 %v5421_v50  ;;  %v4080_v26 = vmul.f32 %v6189_v41, %v6185_v31  ;;  %v3264_v23 = vmul.f32 %v10266_v59, %v12351_v0  ;;  %v3053_v37 = vmul.f32 0.00390625, %v2921_v4  ;;  %v2930_v61 = vpop.xlane.xlu0 %2929  ;;  %v5930_v0 = vld [vmem:[#allocation11 + $0x28] sm:$0xff]  }
 0x468   : > { %v6193_v13 = vpop.eup %6192  ;;  %6214 = vpow2.f32 %v5422_v19  ;;  %v3525_v31 = vadd.f32 %v9879_v48, %v3386_v6  ;;  %v3054_v63 = vmul.f32 0.00390625, %v2924_v36  ;;  %v5424_v41 = vmul.f32 -1.442695, %v3536_v40  ;;  %5660 = vmatprep.subr.bf16.mxu1 %v5930_v0 }
 0x469   : > { %v10275_v5 = vpop.eup %6194  ;;  %v4081_v49 = vmul.f32 %v6193_v13, %v6191_v39  ;;  %6216 = vrsqrt.f32 %v3116_v42  ;;  %v3538_v19 = vadd.f32 %v9789_v22, %v3399_v11  ;;  %v3403_v39 = vmul.f32 %v9773_v57, %v3264_v23  ;;  %v2933_v42 = vpop.xlane.xlu1 %2932  ;;  %5661 = vmatpush3.bf16.msra.mxu1 %v5930_v0 }
 0x46a   : > { %v3266_v58 = vmul.f32 %v10275_v5, %v12353_v32  ;;  %6218 = vpow2.f32 %v5423_v17  ;;  %v3055_v13 = vmul.f32 0.00390625, %v2927_v12  ;;  %v3540_v6 = vadd.f32 %v9789_v22, %v3401_v47  ;;  %v12355_v12 = vld [vmem:[#allocation111_spill] sm:$0xff] }
 0x46b   : > { %v10281_v50 = vpack.c.bf16 %v4081_v49, %v4080_v26  ;;  %6220 = vrcp.f32 %v3828_v34  ;;  %v3117_v26 = vadd.f32 1e-05, %v3053_v37  ;;  %v12354_v49 = vld [vmem:[#allocation79_spill] sm:$0xff]  ;;  %v3118_v36 = vadd.f32 1e-05, %v3054_v63 }
 0x46c   : > { %v10286_v30 = vpop.eup %6196  ;;  %6222 = vrcp.f32 %v3829_v20  ;;  %v3405_v17 = vmul.f32 %v9773_v57, %v3266_v58  ;;  %v3249_v11 = vmul.f32 %v10168_v24, %v12354_v49  ;;  %v3056_v34 = vmul.f32 0.00390625, %v2930_v61  ;;  %v12356_v24 = vld [vmem:[#allocation93_spill] sm:$0xff] }
 0x46d   : > { %12352 = vst [vmem:[#allocation62_spill] sm:$0xff] %v10281_v50  ;;  %5601 = vmatmul.mubr.bf16.gmra.mxu1 %v10281_v50  ;;  %v6199_v25 = vpop.eup %6198  ;;  %6224 = vtanh.f32 %v3523_v9  ;;  %v5425_v23 = vmul.f32 -1.442695, %v3538_v19  ;;  %v3268_v20 = vmul.f32 %v10286_v30, %v12355_v12  ;;  %v3057_v50 = vmul.f32 0.00390625, %v2933_v42 }
 0x46e   : > { %v6201_v4 = vpop.eup %6200  ;;  %6226 = vtanh.f32 %v3525_v31  ;;  %v3542_v58 = vadd.f32 %v9789_v22, %v3403_v39  ;;  %v3119_v16 = vadd.f32 1e-05, %v3055_v13  ;;  %v3251_v31 = vmul.f32 %v10178_v27, %v12356_v24  ;;  %v12358_v27 = vld [vmem:[#allocation100_spill] sm:$0xff] }
 0x46f   : > { %v6203_v40 = vpop.eup %6202  ;;  %6228 = vpow2.f32 %v5424_v41  ;;  %v5426_v63 = vmul.f32 -1.442695, %v3540_v6  ;;  %v3544_v41 = vadd.f32 %v9789_v22, %v3405_v17  ;;  %v3120_v42 = vadd.f32 1e-05, %v3056_v34 }
 0x470   : > { %v6205_v32 = vpop.eup %6204  ;;  %v4082_v37 = vmul.f32 %v6203_v40, %v6199_v25  ;;  %6230 = vrsqrt.f32 %v3117_v26  ;;  %v3407_v25 = vmul.f32 %v9773_v57, %v3268_v20  ;;  %v3121_v13 = vadd.f32 1e-05, %v3057_v50  ;;  %v12360_v50 = vld [vmem:[#allocation85_spill] sm:$0xff] }
 0x471   : > { %v6207_v47 = vpop.eup %6206  ;;  %v4083_v9 = vmul.f32 %v6205_v32, %v6201_v4  ;;  %6232 = vrsqrt.f32 %v3118_v36  ;;  %v2936_v4 = vpop.xlane.xlu0 %2935  ;;  %v3388_v40 = vmul.f32 %v9837_v14, %v3249_v11  ;;  %v5427_v49 = vmul.f32 -1.442695, %v3542_v58  ;;  %v12359_v36 = vld [vmem:[#allocation125_spill] sm:$0xff] }
 0x472   : > { %v10298_v56 = vpop.eup %6208  ;;  %6234 = vpow2.f32 %v5425_v23  ;;  %v3390_v26 = vmul.f32 %v9837_v14, %v3251_v31  ;;  %v3253_v34 = vmul.f32 %v10191_v45, %v12359_v36  ;;  %v5428_v0 = vmul.f32 -1.442695, %v3544_v41 }
 0x473   : > { %v6211_v19 = vpop.eup %6210  ;;  %v10303_v61 = vpack.c.bf16 %v4083_v9, %v4082_v37  ;;  %v3270_v6 = vmul.f32 %v10298_v56, %v12358_v27  ;;  %6236 = vrsqrt.f32 %v3119_v16  ;;  %v3255_v11 = vmul.f32 %v10197_v51, %v12360_v50  ;;  %v12361_v51 = vld [vmem:[#allocation99_spill] sm:$0xff] }
 0x474   : > { %v6213_v39 = vpop.eup %6212  ;;  %6238 = vpow2.f32 %v5426_v63  ;;  %v3830_v23 = vadd.f32 1.0, %v6207_v47  ;;  %v3058_v12 = vmul.f32 0.00390625, %v2936_v4  ;;  %v3546_v58 = vadd.f32 %v9789_v22, %v3407_v25  ;;  %v12362_v25 = vld [vmem:[#allocation97_spill] sm:$0xff]  ;;  %v2939_v4 = vpop.xlane.xlu1 %2938 }
 0x475   : > { %12357 = vst [vmem:[#allocation65_spill] sm:$0xff] %v10303_v61  ;;  %5604 = vmatprep.mubr.bf16.mxu1 %v10303_v61  ;;  %v6215_v17 = vpop.eup %6214  ;;  %6240 = vrsqrt.f32 %v3120_v42  ;;  %v3831_v16 = vadd.f32 1.0, %v6211_v19  ;;  %v3527_v9 = vadd.f32 %v9879_v48, %v3388_v40  ;;  %v3409_v45 = vmul.f32 %v9773_v57, %v3270_v6 }
 0x476   : > { %v10313_v32 = vpop.eup %6216  ;;  %6242 = vrsqrt.f32 %v3121_v13  ;;  %v3529_v31 = vadd.f32 %v9879_v48, %v3390_v26  ;;  %v3392_v63 = vmul.f32 %v9837_v14, %v3253_v34  ;;  %v3394_v42 = vmul.f32 %v9837_v14, %v3255_v11  ;;  %v5931_v11 = vld [vmem:[#allocation11 + $0x20] sm:$0xff]  }
 0x477   : > { %v6219_v20 = vpop.eup %6218  ;;  %6244 = vpow2.f32 %v5427_v49  ;;  %v3272_v47 = vmul.f32 %v10313_v32, %v12361_v51  ;;  %v3257_v19 = vmul.f32 %v10225_v1, %v12362_v25  ;;  %v3122_v13 = vadd.f32 1e-05, %v3058_v12  ;;  %v12363_v49 = vld [vmem:[#allocation87_spill] sm:$0xff]  ;;  %5662 = vmatprep.subr.bf16.mxu1 %v5931_v11 }
 0x478   : > { %v6221_v37 = vpop.eup %6220  ;;  %6246 = vpow2.f32 %v5428_v0  ;;  %v3259_v27 = vmul.f32 %v10228_v35, %v12363_v49  ;;  %v5429_v6 = vmul.f32 -1.442695, %v3546_v58  ;;  %v3832_v26 = vadd.f32 1.0, %v6213_v39  ;;  %5663 = vmatpush3.bf16.msra.mxu1 %v5931_v11  ;;  %v12368_v11 = vld [vmem:[#allocation32_spill] sm:$0xff] }
 0x479   : > { %v6223_v24 = vpop.eup %6222  ;;  %6248 = vrcp.f32 %v3830_v23  ;;  %v3548_v34 = vadd.f32 %v9789_v22, %v3409_v45  ;;  %v3411_v51 = vmul.f32 %v9773_v57, %v3272_v47  ;;  %v3059_v1 = vmul.f32 0.00390625, %v2939_v4  ;;  %v2945_v4 = vpop.xlane.xlu1 %2944 }
 0x47a   : > { %v6225_v41 = vpop.eup %6224  ;;  %6250 = vrcp.f32 %v3831_v16  ;;  %v3833_v23 = vadd.f32 1.0, %v6215_v17  ;;  %v3531_v25 = vadd.f32 %v9879_v48, %v3392_v63  ;;  %v3533_v58 = vadd.f32 %v9879_v48, %v3394_v42  ;;  %v2942_v63 = vpop.xlane.xlu0 %2941 }
 0x47b   : > { %v6227_v40 = vpop.eup %6226  ;;  %v4084_v0 = vmul.f32 %v6225_v41, %v6221_v37  ;;  %6252 = vtanh.f32 %v3527_v9  ;;  %v3396_v16 = vmul.f32 %v9837_v14, %v3257_v19  ;;  %v3398_v9 = vmul.f32 %v9837_v14, %v3259_v27  ;;  %v12365_v41 = vld [vmem:[#allocation102_spill] sm:$0xff] }
 0x47c   : > { %v6229_v36 = vpop.eup %6228  ;;  %v4085_v50 = vmul.f32 %v6227_v40, %v6223_v24  ;;  %6254 = vtanh.f32 %v3529_v31  ;;  %v5430_v17 = vmul.f32 -1.442695, %v3548_v34  ;;  %v3550_v24 = vadd.f32 %v9789_v22, %v3411_v51  ;;  %v12366_v19 = vld [vmem:[#allocation106_spill] sm:$0xff] }
 0x47d   : > { %v10331_v12 = vpop.eup %6230  ;;  %6256 = vrsqrt.f32 %v3122_v13  ;;  %v3123_v31 = vadd.f32 1e-05, %v3059_v1  ;;  %v3834_v40 = vadd.f32 1.0, %v6219_v20  ;;  %v3535_v27 = vadd.f32 %v9879_v48, %v3396_v16  ;;  %v12369_v20 = vld [vmem:[#allocation91_spill] sm:$0xff] }
 0x47e   : > { %v10334_v35 = vpack.c.bf16 %v4085_v50, %v4084_v0  ;;  %v10336_v39 = vpop.eup %6232  ;;  %6258 = vpow2.f32 %v5429_v6  ;;  %v3274_v42 = vmul.f32 %v10331_v12, %v12365_v41  ;;  %v12367_v6 = vld [vmem:[#allocation89_spill] sm:$0xff]  ;;  %v3835_v34 = vadd.f32 1.0, %v6229_v36 }
 0x47f   : > { %v6235_v37 = vpop.eup %6234  ;;  %6260 = vrcp.f32 %v3832_v26  ;;  %v3276_v13 = vmul.f32 %v10336_v39, %v12366_v19  ;;  %v3261_v26 = vmul.f32 %v10255_v54, %v12367_v6  ;;  %v3537_v50 = vadd.f32 %v9879_v48, %v3398_v9  ;;  %v12370_v9 = vld [vmem:[#allocation34_spill] sm:$0xff] }
 0x480   : > { %12364 = vst [vmem:[#allocation66_spill] sm:$0xff] %v10334_v35  ;;  %5605 = vmatmul.mubr.bf16.gmra.mxu1 %v10334_v35  ;;  %v10342_v45 = vpop.eup %6236  ;;  %6262 = vrcp.f32 %v3833_v23  ;;  %v3060_v1 = vmul.f32 0.00390625, %v2942_v63  ;;  %v5431_v16 = vmul.f32 -1.442695, %v3550_v24  ;;  %v3061_v41 = vmul.f32 0.00390625, %v2945_v4  ;;  %v12371_v63 = vld [vmem:[#allocation36_spill] sm:$0xff] }
 0x481   : > { %v6239_v47 = vpop.eup %6238  ;;  %6264 = vtanh.f32 %v3531_v25  ;;  %v3278_v51 = vmul.f32 %v10342_v45, %v12368_v11  ;;  %v3263_v25 = vmul.f32 %v10257_v46, %v12369_v20  ;;  %v3413_v36 = vmul.f32 %v9773_v57, %v3274_v42  ;;  %v2948_v20 = vpop.xlane.xlu0 %2947 }
 0x482   : > { %v10349_v49 = vpop.eup %6240  ;;  %6266 = vtanh.f32 %v3533_v58  ;;  %v3415_v58 = vmul.f32 %v9773_v57, %v3276_v13  ;;  %v3400_v46 = vmul.f32 %v9837_v14, %v3261_v26  ;;  %v3125_v13 = vadd.f32 1e-05, %v3061_v41 }
 0x483   : > { %v10354_v0 = vpop.eup %6242  ;;  %6268 = vpow2.f32 %v5430_v17  ;;  %v3280_v17 = vmul.f32 %v10349_v49, %v12370_v9  ;;  %v3417_v24 = vmul.f32 %v9773_v57, %v3278_v51  ;;  %v3402_v42 = vmul.f32 %v9837_v14, %v3263_v25 }
 0x484   : > { %v10359_v23 = vpop.eup %6244  ;;  %6270 = vrsqrt.f32 %v3123_v31  ;;  %v3282_v6 = vmul.f32 %v10354_v0, %v12371_v63  ;;  %v3124_v31 = vadd.f32 1e-05, %v3060_v1  ;;  %v3836_v9 = vadd.f32 1.0, %v6235_v37 }
 0x485   : > { %v10363_v54 = vpop.eup %6246  ;;  %6272 = vrcp.f32 %v3834_v40  ;;  %v3552_v35 = vadd.f32 %v9789_v22, %v3413_v36  ;;  %v3419_v63 = vmul.f32 %v9773_v57, %v3280_v17  ;;  %v3837_v61 = vadd.f32 1.0, %v6239_v47 }
 0x486   : > { %v6249_v19 = vpop.eup %6248  ;;  %6274 = vrcp.f32 %v3835_v34  ;;  %v3554_v34 = vadd.f32 %v9789_v22, %v3415_v58  ;;  %v3421_v51 = vmul.f32 %v9773_v57, %v3282_v6  ;;  %v3556_v37 = vadd.f32 %v9789_v22, %v3417_v24  ;;  %v12372_v58 = vld [vmem:[#allocation95_spill] sm:$0xff]  ;;  %v2954_v24 = vpop.xlane.xlu0 %2953 }
 0x487   : > { %v6251_v11 = vpop.eup %6250  ;;  %6276 = vtanh.f32 %v3535_v27  ;;  %v3541_v36 = vadd.f32 %v9879_v48, %v3402_v42  ;;  %v3265_v17 = vmul.f32 %v10266_v59, %v12372_v58  ;;  %v5432_v47 = vmul.f32 -1.442695, %v3552_v35 }
 0x488   : > { %v6253_v4 = vpop.eup %6252  ;;  %6278 = vtanh.f32 %v3537_v50  ;;  %v3539_v50 = vadd.f32 %v9879_v48, %v3400_v46  ;;  %v3560_v59 = vadd.f32 %v9789_v22, %v3421_v51  ;;  %v5434_v35 = vmul.f32 -1.442695, %v3556_v37 }
 0x489   : > { %v6255_v40 = vpop.eup %6254  ;;  %6280 = vpow2.f32 %v5431_v16  ;;  %v4086_v27 = vmul.f32 %v6253_v4, %v6249_v19  ;;  %v3062_v16 = vmul.f32 0.00390625, %v2948_v20  ;;  %v2951_v19 = vpop.xlane.xlu1 %2950  ;;  %v12373_v4 = vld [vmem:[#allocation38_spill] sm:$0xff]  ;;  %v3064_v18 = vmul.f32 0.00390625, %v2954_v24 }
 0x48a   : > { %v10377_v26 = vpop.eup %6256  ;;  %v4087_v1 = vmul.f32 %v6255_v40, %v6251_v11  ;;  %6282 = vrsqrt.f32 %v3124_v31  ;;  %v3558_v11 = vadd.f32 %v9789_v22, %v3419_v63  ;;  %v12374_v20 = vld [vmem:[#allocation110_spill] sm:$0xff]  ;;  %v5433_v40 = vmul.f32 -1.442695, %v3554_v34 }
 0x48b   : > { %v10380_v25 = vpop.eup %6258  ;;  %6284 = vrsqrt.f32 %v3125_v13  ;;  %v3284_v46 = vmul.f32 %v10377_v26, %v12373_v4  ;;  %v3267_v42 = vmul.f32 %v10275_v5, %v12374_v20  ;;  %v5932_v13 = vld [vmem:[#allocation11 + $0x18] sm:$0xff]   ;;  %v3063_v63 = vmul.f32 0.00390625, %v2951_v19  ;;  %v12376_v19 = vld [vmem:[#allocation112_spill] sm:$0xff]  ;;  %v12377_v24 = vld [vmem:[#allocation98_spill] sm:$0xff] }
 0x48c   : > { %v6261_v41 = vpop.eup %6260  ;;  %v10387_v55 = vpack.c.bf16 %v4087_v1, %v4086_v27  ;;  %6286 = vrcp.f32 %v3836_v9  ;;  %v3126_v1 = vadd.f32 1e-05, %v3062_v16  ;;  %5664 = vmatprep.subr.bf16.mxu1 %v5932_v13  ;;  %v5435_v34 = vmul.f32 -1.442695, %v3558_v11 }
 0x48d   : > { %v6263_v6 = vpop.eup %6262  ;;  %6288 = vrcp.f32 %v3837_v61  ;;  %v3423_v51 = vmul.f32 %v9773_v57, %v3284_v46  ;;  %v2957_v61 = vpop.xlane.xlu1 %2956  ;;  %5665 = vmatpush3.bf16.msra.mxu1 %v5932_v13  ;;  %v3404_v37 = vmul.f32 %v9837_v14, %v3265_v17  ;;  %v3271_v46 = vmul.f32 %v10298_v56, %v12377_v24  ;;  %v12378_v56 = vld [vmem:[#allocation40_spill] sm:$0xff] }
 0x48e   : > { %v6265_v31 = vpop.eup %6264  ;;  %5608 = vmatprep.mubr.bf16.mxu1 %v10387_v55  ;;  %6290 = vtanh.f32 %v3539_v50  ;;  %v5436_v50 = vmul.f32 -1.442695, %v3560_v59  ;;  %v3128_v17 = vadd.f32 1e-05, %v3064_v18  ;;  %v5933_v59 = vld [vmem:[#allocation11 + $0x10] sm:$0xff]  }
 0x48f   : > { %v6267_v27 = vpop.eup %6266  ;;  %v4088_v9 = vmul.f32 %v6265_v31, %v6261_v41  ;;  %6292 = vtanh.f32 %v3541_v36  ;;  %v3406_v36 = vmul.f32 %v9837_v14, %v3267_v42  ;;  %v3065_v31 = vmul.f32 0.00390625, %v2957_v61  ;;  %5666 = vmatprep.subr.bf16.mxu1 %v5933_v59 }
 0x490   : > { %v10396_v58 = vpop.eup %6268  ;;  %v4089_v4 = vmul.f32 %v6267_v27, %v6263_v6  ;;  %6294 = vpow2.f32 %v5432_v47  ;;  %v3269_v6 = vmul.f32 %v10286_v30, %v12376_v19  ;;  %v3127_v47 = vadd.f32 1e-05, %v3063_v63 }
 0x491   : > { %v10398_v5 = vpop.eup %6270  ;;  %6296 = vpow2.f32 %v5433_v40  ;;  %v2960_v40 = vpop.xlane.xlu0 %2959  ;;  %v3562_v42 = vadd.f32 %v9789_v22, %v3423_v51  ;;  %v3838_v27 = vadd.f32 1.0, %v10359_v23  ;;  %v3839_v30 = vadd.f32 1.0, %v10363_v54  ;;  %5667 = vmatpush3.bf16.msra.mxu1 %v5933_v59  ;;  %v12381_v59 = vld [vmem:[#allocation42_spill] sm:$0xff] }
 0x492   : > { %v6273_v20 = vpop.eup %6272  ;;  %v10402_v16 = vpack.c.bf16 %v4089_v4, %v4088_v9  ;;  %6298 = vrsqrt.f32 %v3126_v1  ;;  %v2963_v1 = vpop.xlane.xlu1 %2962  ;;  %v3543_v4 = vadd.f32 %v9879_v48, %v3404_v37  ;;  %v3545_v23 = vadd.f32 %v9879_v48, %v3406_v36 }
 0x493   : > { %v6275_v41 = vpop.eup %6274  ;;  %6300 = vpow2.f32 %v5434_v35  ;;  %v3286_v35 = vmul.f32 %v10398_v5, %v12378_v56  ;;  %v3067_v61 = vmul.f32 0.00390625, %v2963_v1  ;;  %v3408_v19 = vmul.f32 %v9837_v14, %v3269_v6  ;;  %v12383_v1 = vld [vmem:[#allocation44_spill] sm:$0xff] }
 0x494   : > { %12375 = vst [vmem:[#allocation82_spill] sm:$0xff] %v10402_v16  ;;  %v6277_v11 = vpop.eup %6276  ;;  %5609 = vmatmul.mubr.bf16.gmra.mxu1 %v10402_v16  ;;  %6302 = vpow2.f32 %v5435_v34  ;;  %v3066_v34 = vmul.f32 0.00390625, %v2960_v40  ;;  %v3410_v37 = vmul.f32 %v9837_v14, %v3271_v46  ;;  %v12380_v40 = vld [vmem:[#allocation101_spill] sm:$0xff] }
 0x495   : > { %v6279_v13 = vpop.eup %6278  ;;  %6304 = vpow2.f32 %v5436_v50  ;;  %v4090_v9 = vmul.f32 %v6277_v11, %v6273_v20  ;;  %v5437_v20 = vmul.f32 -1.442695, %v3562_v42  ;;  %v3129_v11 = vadd.f32 1e-05, %v3065_v31  ;;  %v2966_v36 = vpop.xlane.xlu0 %2965 }
 0x496   : > { %v10413_v63 = vpop.eup %6280  ;;  %v4091_v18 = vmul.f32 %v6279_v13, %v6275_v41  ;;  %6306 = vrsqrt.f32 %v3127_v47  ;;  %v3425_v47 = vmul.f32 %v9773_v57, %v3286_v35  ;;  %v3130_v6 = vadd.f32 1e-05, %v3066_v34 }
 0x497   : > { %v10418_v51 = vpop.eup %6282  ;;  %6308 = vrsqrt.f32 %v3128_v17  ;;  %v3273_v17 = vmul.f32 %v10313_v32, %v12380_v40  ;;  %v3131_v31 = vadd.f32 1e-05, %v3067_v61  ;;  %v3840_v35 = vadd.f32 1.0, %v10380_v25 }
 0x498   : > { %v10421_v54 = vpack.c.bf16 %v4091_v18, %v4090_v9  ;;  %v10423_v50 = vpop.eup %6284  ;;  %6310 = vrcp.f32 %v3838_v27  ;;  %v3288_v13 = vmul.f32 %v10418_v51, %v12381_v59  ;;  %v12382_v27 = vld [vmem:[#allocation103_spill] sm:$0xff]  ;;  %v3841_v32 = vadd.f32 1.0, %v10396_v58 }
 0x499   : > { %v6287_v41 = vpop.eup %6286  ;;  %6312 = vrcp.f32 %v3839_v30  ;;  %v3275_v46 = vmul.f32 %v10331_v12, %v12382_v27  ;;  %v3290_v56 = vmul.f32 %v10423_v50, %v12383_v1  ;;  %v3068_v9 = vmul.f32 0.00390625, %v2966_v36 }
 0x49a   : > { %12379 = vst [vmem:[#allocation83_spill] sm:$0xff] %v10421_v54  ;;  %5612 = vmatprep.mubr.bf16.mxu1 %v10421_v54  ;;  %v6289_v24 = vpop.eup %6288  ;;  %6314 = vtanh.f32 %v3543_v4  ;;  %v3564_v34 = vadd.f32 %v9789_v22, %v3425_v47  ;;  %v3547_v12 = vadd.f32 %v9879_v48, %v3408_v19  ;;  %v3549_v27 = vadd.f32 %v9879_v48, %v3410_v37 }
 0x49b   : > { %v6291_v42 = vpop.eup %6290  ;;  %6316 = vtanh.f32 %v3545_v23  ;;  %v3427_v23 = vmul.f32 %v9773_v57, %v3288_v13  ;;  %v3412_v25 = vmul.f32 %v9837_v14, %v3273_v17  ;;  %v3429_v58 = vmul.f32 %v9773_v57, %v3290_v56 }
 0x49c   : > { %v6293_v30 = vpop.eup %6292  ;;  %6318 = vpow2.f32 %v5437_v20  ;;  %v4092_v4 = vmul.f32 %v6291_v42, %v6287_v41  ;;  %v3414_v47 = vmul.f32 %v9837_v14, %v3275_v46  ;;  %v3132_v37 = vadd.f32 1e-05, %v3068_v9  ;;  %v2969_v42 = vpop.xlane.xlu1 %2968  ;;  %v12387_v46 = vld [vmem:[#allocation35_spill] sm:$0xff]  ;;  %v12389_v9 = vld [vmem:[#allocation37_spill] sm:$0xff] }
 0x49d   : > { %v6295_v18 = vpop.eup %6294  ;;  %v4093_v40 = vmul.f32 %v6293_v30, %v6289_v24  ;;  %6320 = vrsqrt.f32 %v3129_v11  ;;  %v12385_v11 = vld [vmem:[#allocation107_spill] sm:$0xff]  ;;  %v12386_v24 = vld [vmem:[#allocation33_spill] sm:$0xff]  ;;  %v3842_v17 = vadd.f32 1.0, %v10413_v63  ;;  %v3281_v56 = vmul.f32 %v10349_v49, %v12387_v46 }
 0x49e   : > { %v6297_v59 = vpop.eup %6296  ;;  %6322 = vrsqrt.f32 %v3130_v6  ;;  %v3277_v19 = vmul.f32 %v10336_v39, %v12385_v11  ;;  %v3279_v13 = vmul.f32 %v10342_v45, %v12386_v24  ;;  %v5438_v6 = vmul.f32 -1.442695, %v3564_v34 }
 0x49f   : > { %v10443_v61 = vpop.eup %6298  ;;  %v10447_v20 = vpack.c.bf16 %v4093_v40, %v4092_v4  ;;  %6324 = vrsqrt.f32 %v3131_v31  ;;  %v3566_v39 = vadd.f32 %v9789_v22, %v3427_v23  ;;  %v12388_v31 = vld [vmem:[#allocation46_spill] sm:$0xff]  ;;  %v3568_v63 = vadd.f32 %v9789_v22, %v3429_v58 }
 0x4a0   : > { %v6301_v41 = vpop.eup %6300  ;;  %6326 = vrcp.f32 %v3840_v35  ;;  %v3292_v30 = vmul.f32 %v10443_v61, %v12388_v31  ;;  %v5934_v35 = vld [vmem:[#allocation11 + $0x8] sm:$0xff]   ;;  %v3843_v34 = vadd.f32 1.0, %v6295_v18  ;;  %v3551_v49 = vadd.f32 %v9879_v48, %v3412_v25  ;;  %v12390_v31 = vld [vmem:[#allocation48_spill] sm:$0xff] }
 0x4a1   : > { %12384 = vst [vmem:[#allocation119_spill] sm:$0xff] %v10447_v20  ;;  %v10452_v36 = vpop.eup %6302  ;;  %5613 = vmatmul.mubr.bf16.gmra.mxu1 %v10447_v20  ;;  %6328 = vrcp.f32 %v3841_v32  ;;  %v3283_v32 = vmul.f32 %v10354_v0, %v12389_v9  ;;  %v3069_v40 = vmul.f32 0.00390625, %v2969_v42  ;;  %5668 = vmatprep.subr.bf16.mxu1 %v5934_v35  ;;  %v3416_v11 = vmul.f32 %v9837_v14, %v3277_v19 }
 0x4a2   : > { %v10458_v1 = vpop.eup %6304  ;;  %6330 = vtanh.f32 %v3547_v12  ;;  %v3553_v12 = vadd.f32 %v9879_v48, %v3414_v47  ;;  %5669 = vmatpush3.bf16.msra.mxu1 %v5934_v35  ;;  %v3418_v0 = vmul.f32 %v9837_v14, %v3279_v13  ;;  %v5439_v58 = vmul.f32 -1.442695, %v3566_v39  ;;  %v2975_v13 = vpop.xlane.xlu1 %2974 }
 0x4a3   : > { %v10465_v45 = vpop.eup %6306  ;;  %6332 = vtanh.f32 %v3549_v27  ;;  %v3431_v18 = vmul.f32 %v9773_v57, %v3292_v30  ;;  %v2972_v27 = vpop.xlane.xlu0 %2971  ;;  %v3420_v25 = vmul.f32 %v9837_v14, %v3281_v56  ;;  %v5440_v42 = vmul.f32 -1.442695, %v3568_v63  ;;  %v12391_v56 = vld [vmem:[#allocation39_spill] sm:$0xff] }
 0x4a4   : > { %v10470_v4 = vpop.eup %6308  ;;  %6334 = vrsqrt.f32 %v3132_v37  ;;  %v3422_v37 = vmul.f32 %v9837_v14, %v3283_v32  ;;  %v3294_v19 = vmul.f32 %v10465_v45, %v12390_v31  ;;  %v3844_v35 = vadd.f32 1.0, %v6297_v59 }
 0x4a5   : > { %v6311_v23 = vpop.eup %6310  ;;  %6336 = vpow2.f32 %v5438_v6  ;;  %v3133_v6 = vadd.f32 1e-05, %v3069_v40  ;;  %v3070_v9 = vmul.f32 0.00390625, %v2972_v27  ;;  %v3285_v32 = vmul.f32 %v10377_v26, %v12391_v56  ;;  %v12393_v27 = vld [vmem:[#allocation41_spill] sm:$0xff]  ;;  %v12394_v56 = vld [vmem:[#allocation52_spill] sm:$0xff] }
 0x4a6   : > { %v6313_v24 = vpop.eup %6312  ;;  %6338 = vrcp.f32 %v3842_v17  ;;  %v3570_v63 = vadd.f32 %v9789_v22, %v3431_v18  ;;  %v3555_v59 = vadd.f32 %v9879_v48, %v3416_v11  ;;  %v3071_v40 = vmul.f32 0.00390625, %v2975_v13 }
 0x4a7   : > { %v6315_v46 = vpop.eup %6314  ;;  %6340 = vrcp.f32 %v3843_v34  ;;  %v3845_v34 = vadd.f32 1.0, %v6301_v41  ;;  %v3433_v26 = vmul.f32 %v9773_v57, %v3294_v19  ;;  %v3561_v41 = vadd.f32 %v9879_v48, %v3422_v37 }
 0x4a8   : > { %v6317_v47 = vpop.eup %6316  ;;  %6342 = vtanh.f32 %v3551_v49  ;;  %v4094_v30 = vmul.f32 %v6315_v46, %v6311_v23  ;;  %v3287_v11 = vmul.f32 %v10398_v5, %v12393_v27  ;;  %v3134_v46 = vadd.f32 1e-05, %v3070_v9  ;;  %v12395_v9 = vld [vmem:[#allocation127_spill] sm:$0xff] }
 0x4a9   : > { %v10481_v39 = vpop.eup %6318  ;;  %v4095_v17 = vmul.f32 %v6317_v47, %v6313_v24  ;;  %6344 = vtanh.f32 %v3553_v12  ;;  %v3557_v12 = vadd.f32 %v9879_v48, %v3418_v0  ;;  %v3559_v24 = vadd.f32 %v9879_v48, %v3420_v25 }
 0x4aa   : > { %v10483_v20 = vpop.eup %6320  ;;  %6346 = vpow2.f32 %v5439_v58  ;;  %v2978_v58 = vpop.xlane.xlu0 %2977  ;;  %v3424_v47 = vmul.f32 %v9837_v14, %v3285_v32  ;;  %v5441_v0 = vmul.f32 -1.442695, %v3570_v63  ;;  %v3846_v25 = vadd.f32 1.0, %v10452_v36  ;;  %v12396_v36 = vld [vmem:[#allocation128_spill] sm:$0xff] }
 0x4ab   : > { %v10488_v31 = vpop.eup %6322  ;;  %6348 = vpow2.f32 %v5440_v42  ;;  %v10491_v49 = vpack.c.bf16 %v4095_v17, %v4094_v30  ;;  %v3847_v13 = vadd.f32 1.0, %v10458_v1  ;;  %v3072_v37 = vmul.f32 0.00390625, %v2978_v58  ;;  %v2981_v30 = vpop.xlane.xlu1 %2980 }
 0x4ac   : > { %v10493_v23 = vpop.eup %6324  ;;  %6350 = vrsqrt.f32 %v3133_v6  ;;  %v3135_v6 = vadd.f32 1e-05, %v3071_v40  ;;  %v3572_v5 = vadd.f32 %v9789_v22, %v3433_v26  ;;  %v3298_v32 = vmul.f32 %v10483_v20, %v12395_v9  ;;  %v12398_v9 = vld [vmem:[#allocation130_spill] sm:$0xff] }
 0x4ad   : > { %12392 = vst [vmem:[#allocation57_spill] sm:$0xff] %v10491_v49  ;;  %v6327_v18 = vpop.eup %6326  ;;  %5616 = vmatprep.mubr.bf16.mxu1 %v10491_v49  ;;  %6352 = vrcp.f32 %v3844_v35  ;;  %v3296_v35 = vmul.f32 %v10470_v4, %v12394_v56  ;;  %v10515_v58 = vadd.f32 %v9879_v48, %v3424_v47  ;;  %v3426_v26 = vmul.f32 %v9837_v14, %v3287_v11  ;;  %v12397_v49 = vld [vmem:[#allocation43_spill] sm:$0xff]  ;;  %v12399_v47 = vld [vmem:[#allocation30_spill] sm:$0xff] }
 0x4ae   : > { %v6329_v42 = vpop.eup %6328  ;;  %6354 = vrcp.f32 %v3845_v34  ;;  %v3300_v34 = vmul.f32 %v10488_v31, %v12396_v36  ;;  %v3073_v27 = vmul.f32 0.00390625, %v2981_v30  ;;  %v3302_v54 = vmul.f32 %v10493_v23, %v12398_v9 }
 0x4af   : > { %v6331_v19 = vpop.eup %6330  ;;  %6356 = vtanh.f32 %v3555_v59  ;;  %v3136_v11 = vadd.f32 1e-05, %v3072_v37 }
 0x4b0   : > { %v6333_v17 = vpop.eup %6332  ;;  %6358 = vtanh.f32 %v3557_v12  ;;  %v4096_v59 = vmul.f32 %v6331_v19, %v6327_v18  ;;  %v3289_v12 = vmul.f32 %v10418_v51, %v12397_v49  ;;  %v2984_v18 = vpop.xlane.xlu0 %2983  ;;  %v3437_v51 = vmul.f32 %v9773_v57, %v3298_v32 }
 0x4b1   : > { %v10510_v63 = vpop.eup %6334  ;;  %v4097_v40 = vmul.f32 %v6333_v17, %v6329_v42  ;;  %6360 = vrsqrt.f32 %v3134_v46  ;;  %v3435_v42 = vmul.f32 %v9773_v57, %v3296_v35  ;;  %v5442_v17 = vmul.f32 -1.442695, %v3572_v5 }
 0x4b2   : > { %v6337_v1 = vpop.eup %6336  ;;  %6362 = vpow2.f32 %v5441_v0  ;;  %v3304_v19 = vmul.f32 %v10510_v63, %v12399_v47  ;;  %v5935_v0 = vld [vmem:[#allocation11] sm:$0xff]   ;;  %v3439_v49 = vmul.f32 %v9773_v57, %v3300_v34  ;;  %v3137_v36 = vadd.f32 1e-05, %v3073_v27 }
 0x4b3   : > { %v6339_v56 = vpop.eup %6338  ;;  %v10522_v16 = vpack.c.bf16 %v4097_v40, %v4096_v59  ;;  %6364 = vrsqrt.f32 %v3135_v6  ;;  %v3848_v35 = vadd.f32 1.0, %v10481_v39  ;;  %v3074_v59 = vmul.f32 0.00390625, %v2984_v18  ;;  %5670 = vmatprep.subr.bf16.mxu1 %v5935_v0 }
 0x4b4   : > { %v6341_v46 = vpop.eup %6340  ;;  %6366 = vrcp.f32 %v3846_v25  ;;  %v3441_v25 = vmul.f32 %v9773_v57, %v3302_v54  ;;  %5671 = vmatpush3.bf16.msra.mxu1 %v5935_v0  ;;  %v3574_v34 = vadd.f32 %v9789_v22, %v3435_v42  ;;  %v3576_v39 = vadd.f32 %v9789_v22, %v3437_v51 }
 0x4b5   : > { %v6343_v30 = vpop.eup %6342  ;;  %5617 = vmatmul.mubr.bf16.gmra.mxu1 %v10522_v16  ;;  %6368 = vrcp.f32 %v3847_v13  ;;  %v3443_v13 = vmul.f32 %v9773_v57, %v3304_v19  ;;  %v3578_v9 = vadd.f32 %v9789_v22, %v3439_v49  ;;  %v2987_v19 = vpop.xlane.xlu1 %2986  ;;  %v3428_v0 = vmul.f32 %v9837_v14, %v3289_v12  ;;  %v12403_v12 = vld [vmem:[#allocation47_spill] sm:$0xff] }
 0x4b6   : > { %v6345_v6 = vpop.eup %6344  ;;  %6370 = vtanh.f32 %v3559_v24  ;;  %v4098_v37 = vmul.f32 %v6343_v30, %v6339_v56  ;;  %v3849_v24 = vadd.f32 1.0, %v6337_v1  ;;  %v3580_v47 = vadd.f32 %v9789_v22, %v3441_v25 }
 0x4b7   : > { %v10531_v40 = vpop.eup %6346  ;;  %v4099_v5 = vmul.f32 %v6345_v6, %v6341_v46  ;;  %6372 = vtanh.f32 %v3561_v41  ;;  %v3565_v41 = vadd.f32 %v9879_v48, %v3426_v26  ;;  %v12401_v46 = vld [vmem:[#allocation45_spill] sm:$0xff]  ;;  %v3138_v1 = vadd.f32 1e-05, %v3074_v59 }
 0x4b8   : > { %v10534_v32 = vpop.eup %6348  ;;  %6374 = vrsqrt.f32 %v3136_v11  ;;  %v3291_v42 = vmul.f32 %v10423_v50, %v12401_v46  ;;  %v5443_v30 = vmul.f32 -1.442695, %v3574_v34  ;;  %v5444_v51 = vmul.f32 -1.442695, %v3576_v39  ;;  %v12402_v6 = vld [vmem:[#allocation121_spill] sm:$0xff] }
 0x4b9   : > { %v10538_v27 = vpop.eup %6350  ;;  %6376 = vpow2.f32 %v5442_v17  ;;  %v10542_v54 = vpack.c.bf16 %v4099_v5, %v4098_v37  ;;  %v3582_v17 = vadd.f32 %v9789_v22, %v3443_v13  ;;  %v5445_v49 = vmul.f32 -1.442695, %v3578_v9  ;;  %v12404_v13 = vld [vmem:[#allocation132_spill] sm:$0xff]  ;;  %v12405_v9 = vld [vmem:[#allocation49_spill] sm:$0xff] }
 0x4ba   : > { %v6353_v56 = vpop.eup %6352  ;;  %6378 = vrsqrt.f32 %v3137_v36  ;;  %v3306_v50 = vmul.f32 %v10538_v27, %v12402_v6  ;;  %v3075_v25 = vmul.f32 0.00390625, %v2987_v19  ;;  %v3293_v5 = vmul.f32 %v10443_v61, %v12403_v12  ;;  %v12407_v12 = vld [vmem:[#allocation55_spill] sm:$0xff] }
 0x4bb   : > { %12400 = vst [vmem:[#allocation61_spill] sm:$0xff] %v10542_v54  ;;  %v6355_v18 = vpop.eup %6354  ;;  %5620 = vmatprep.mubr.bf16.mxu1 %v10542_v54  ;;  %6380 = vrcp.f32 %v3848_v35  ;;  %v5446_v34 = vmul.f32 -1.442695, %v3580_v47  ;;  %v3430_v19 = vmul.f32 %v9837_v14, %v3291_v42  ;;  %v2993_v47 = vpop.xlane.xlu1 %2992  ;;  %v3850_v6 = vadd.f32 1.0, %v10531_v40 }
 0x4bc   : > { %v6357_v11 = vpop.eup %6356  ;;  %6382 = vrcp.f32 %v3849_v24  ;;  %v3445_v61 = vmul.f32 %v9773_v57, %v3306_v50 }
 0x4bd   : > { %v6359_v26 = vpop.eup %6358  ;;  %6384 = vtanh.f32 %v10515_v58  ;;  %v4100_v35 = vmul.f32 %v6357_v11, %v6353_v56  ;;  %v3295_v58 = vmul.f32 %v10465_v45, %v12405_v9  ;;  %v5447_v56 = vmul.f32 -1.442695, %v3582_v17  ;;  %v12408_v9 = vld [vmem:[#allocation31_spill] sm:$0xff] }
 0x4be   : > { %v10554_v36 = vpop.eup %6360  ;;  %v4101_v59 = vmul.f32 %v6359_v26, %v6355_v18  ;;  %6386 = vtanh.f32 %v3565_v41  ;;  %v2990_v41 = vpop.xlane.xlu0 %2989  ;;  %v3432_v26 = vmul.f32 %v9837_v14, %v3293_v5  ;;  %v3569_v40 = vadd.f32 %v9879_v48, %v3430_v19 }
 0x4bf   : > { %v10556_v37 = vpop.eup %6362  ;;  %v3308_v24 = vmul.f32 %v10554_v36, %v12404_v13  ;;  %6388 = vrsqrt.f32 %v3138_v1  ;;  %v3567_v1 = vadd.f32 %v9879_v48, %v3428_v0  ;;  %v3076_v42 = vmul.f32 0.00390625, %v2990_v41 }
 0x4c0   : > { %v10562_v39 = vpop.eup %6364  ;;  %6390 = vpow2.f32 %v5443_v30  ;;  %v10566_v18 = vpack.c.bf16 %v4101_v59, %v4100_v35  ;;  %v3139_v30 = vadd.f32 1e-05, %v3075_v25  ;;  %v3434_v50 = vmul.f32 %v9837_v14, %v3295_v58 }
 0x4c1   : > { %v6367_v46 = vpop.eup %6366  ;;  %6392 = vpow2.f32 %v5444_v51  ;;  %v3447_v45 = vmul.f32 %v9773_v57, %v3308_v24  ;;  %v3851_v35 = vadd.f32 1.0, %v10534_v32  ;;  %v3077_v0 = vmul.f32 0.00390625, %v2993_v47 }
 0x4c2   : > { %12406 = vst [vmem:[#allocation68_spill] sm:$0xff] %v10566_v18  ;;  %v6369_v11 = vpop.eup %6368  ;;  %6394 = vpow2.f32 %v5445_v49  ;;  %5621 = vmatmul.mubr.bf16.gmra.mxu1 %v10566_v18  ;;  %v3584_v59 = vadd.f32 %v9789_v22, %v3445_v61  ;;  %v3310_v25 = vmul.f32 %v10562_v39, %v12407_v12  ;;  %v3140_v41 = vadd.f32 1e-05, %v3076_v42  ;;  %v2996_v19 = vpop.xlane.xlu0 %2995  ;;  %v12412_v18 = vld [vmem:[#allocation129_spill] sm:$0xff] }
 0x4c3   : > { %v6371_v17 = vpop.eup %6370  ;;  %6396 = vpow2.f32 %v5446_v34  ;;  %v3586_v24 = vadd.f32 %v9789_v22, %v3447_v45  ;;  %v3571_v47 = vadd.f32 %v9879_v48, %v3432_v26  ;;  %v12410_v45 = vld [vmem:[#allocation59_spill] sm:$0xff] }
 0x4c4   : > { %v6373_v51 = vpop.eup %6372  ;;  %6398 = vpow2.f32 %v5447_v56  ;;  %v4102_v13 = vmul.f32 %v6371_v17, %v6367_v46  ;;  %v3573_v46 = vadd.f32 %v9879_v48, %v3434_v50  ;;  %v5448_v12 = vmul.f32 -1.442695, %v3584_v59 }
 0x4c5   : > { %v10577_v49 = vpop.eup %6374  ;;  %v4103_v5 = vmul.f32 %v6373_v51, %v6369_v11  ;;  %6400 = vrsqrt.f32 %v3139_v30  ;;  %v3141_v11 = vadd.f32 1e-05, %v3077_v0  ;;  %v3297_v51 = vmul.f32 %v10470_v4, %v12410_v45 }
 0x4c6   : > { %v6377_v34 = vpop.eup %6376  ;;  %v3312_v58 = vmul.f32 %v10577_v49, %v12408_v9  ;;  %6402 = vrcp.f32 %v3850_v6  ;;  %v3449_v30 = vmul.f32 %v9773_v57, %v3310_v25  ;;  %v2999_v6 = vpop.xlane.xlu1 %2998  ;;  %v3852_v0 = vadd.f32 1.0, %v10556_v37 }
 0x4c7   : > { %v10586_v32 = vpop.eup %6378  ;;  %v10588_v56 = vpack.c.bf16 %v4103_v5, %v4102_v13  ;;  %6404 = vrcp.f32 %v3851_v35  ;;  %v12411_v13 = vld [vmem:[#allocation116_spill] sm:$0xff]  ;;  %v5449_v5 = vmul.f32 -1.442695, %v3586_v24  ;;  %v3853_v4 = vadd.f32 1.0, %v6377_v34 }
 0x4c8   : > { %v6381_v61 = vpop.eup %6380  ;;  %6406 = vtanh.f32 %v3567_v1  ;;  %v3299_v26 = vmul.f32 %v10483_v20, %v12411_v13  ;;  %v3451_v50 = vmul.f32 %v9773_v57, %v3312_v58  ;;  %v3078_v59 = vmul.f32 0.00390625, %v2996_v19 }
 0x4c9   : > { %12409 = vst [vmem:[#allocation63_spill] sm:$0xff] %v10588_v56  ;;  %v6383_v17 = vpop.eup %6382  ;;  %5624 = vmatprep.mubr.bf16.mxu1 %v10588_v56  ;;  %6408 = vtanh.f32 %v3569_v40  ;;  %v3079_v1 = vmul.f32 0.00390625, %v2999_v6  ;;  %v3301_v20 = vmul.f32 %v10488_v31, %v12412_v18  ;;  %v3588_v24 = vadd.f32 %v9789_v22, %v3449_v30  ;;  %v12413_v40 = vld [vmem:[#allocation51_spill] sm:$0xff] }
 0x4ca   : > { %v6385_v42 = vpop.eup %6384  ;;  %6410 = vrsqrt.f32 %v3140_v41  ;;  %v3314_v58 = vmul.f32 %v10586_v32, %v12413_v40  ;;  %v3436_v37 = vmul.f32 %v9837_v14, %v3297_v51  ;;  %v3590_v34 = vadd.f32 %v9789_v22, %v3451_v50 }
 0x4cb   : > { %v6387_v35 = vpop.eup %6386  ;;  %v4104_v25 = vmul.f32 %v6385_v42, %v6381_v61  ;;  %6412 = vrsqrt.f32 %v3141_v11  ;;  %v3002_v11 = vpop.xlane.xlu0 %3001  ;;  %v3142_v18 = vadd.f32 1e-05, %v3078_v59  ;;  %v3438_v30 = vmul.f32 %v9837_v14, %v3299_v26 }
 0x4cc   : > { %v10600_v9 = vpop.eup %6388  ;;  %v4105_v45 = vmul.f32 %v6387_v35, %v6383_v17  ;;  %6414 = vpow2.f32 %v5448_v12  ;;  %v12415_v17 = vld [vmem:[#allocation54_spill] sm:$0xff]  ;;  %v3143_v51 = vadd.f32 1e-05, %v3079_v1  ;;  %v3440_v42 = vmul.f32 %v9837_v14, %v3301_v20 }
 0x4cd   : > { %v6391_v56 = vpop.eup %6390  ;;  %6416 = vpow2.f32 %v5449_v5  ;;  %v3316_v31 = vmul.f32 %v10600_v9, %v12415_v17  ;;  %v5450_v13 = vmul.f32 -1.442695, %v3588_v24  ;;  %v3453_v5 = vmul.f32 %v9773_v57, %v3314_v58  ;;  %v3005_v50 = vpop.xlane.xlu1 %3004 }
 0x4ce   : > { %v6393_v41 = vpop.eup %6392  ;;  %v10609_v61 = vpack.c.bf16 %v4105_v45, %v4104_v25  ;;  %6418 = vrcp.f32 %v3852_v0  ;;  %v3575_v35 = vadd.f32 %v9879_v48, %v3436_v37  ;;  %v12416_v0 = vld [vmem:[#allocation131_spill] sm:$0xff]  ;;  %v5451_v25 = vmul.f32 -1.442695, %v3590_v34 }
 0x4cf   : > { %v10611_v19 = vpop.eup %6394  ;;  %6420 = vrcp.f32 %v3853_v4  ;;  %v3303_v59 = vmul.f32 %v10493_v23, %v12416_v0  ;;  %v3455_v4 = vmul.f32 %v9773_v57, %v3316_v31  ;;  %v3854_v1 = vadd.f32 1.0, %v6391_v56 }
 0x4d0   : > { %12414 = vst [vmem:[#allocation70_spill] sm:$0xff] %v10609_v61  ;;  %v10615_v12 = vpop.eup %6396  ;;  %5625 = vmatmul.mubr.bf16.gmra.mxu1 %v10609_v61  ;;  %6422 = vtanh.f32 %v3571_v47  ;;  %v3008_v26 = vpop.xlane.xlu0 %3007  ;;  %v3080_v20 = vmul.f32 0.00390625, %v3002_v11  ;;  %v3577_v40 = vadd.f32 %v9879_v48, %v3438_v30  ;;  %v3855_v47 = vadd.f32 1.0, %v6393_v41  ;;  %v12418_v11 = vld [vmem:[#allocation56_spill] sm:$0xff] }
 0x4d1   : > { %v10619_v6 = vpop.eup %6398  ;;  %6424 = vtanh.f32 %v3573_v46  ;;  %v3081_v58 = vmul.f32 0.00390625, %v3005_v50  ;;  %v10631_v17 = vadd.f32 %v9879_v48, %v3440_v42  ;;  %v3592_v23 = vadd.f32 %v9789_v22, %v3453_v5 }
 0x4d2   : > { %v10626_v45 = vpop.eup %6400  ;;  %6426 = vrsqrt.f32 %v3142_v18  ;;  %v3082_v46 = vmul.f32 0.00390625, %v3008_v26  ;;  %v3442_v31 = vmul.f32 %v9837_v14, %v3303_v59  ;;  %v12417_v18 = vld [vmem:[#allocation50_spill] sm:$0xff]  ;;  %v3594_v42 = vadd.f32 %v9789_v22, %v3455_v4 }
 0x4d3   : > { %v6403_v24 = vpop.eup %6402  ;;  %6428 = vrsqrt.f32 %v3143_v51  ;;  %v3305_v56 = vmul.f32 %v10510_v63, %v12417_v18  ;;  %v3318_v30 = vmul.f32 %v10626_v45, %v12418_v11  ;;  %v12419_v51 = vld [vmem:[#allocation53_spill] sm:$0xff]  ;;  %v3145_v59 = vadd.f32 1e-05, %v3081_v58  ;;  %v3011_v61 = vpop.xlane.xlu1 %3010  ;;  %v12420_v18 = vld [vmem:[#allocation75_spill] sm:$0xff] }
 0x4d4   : > { %v6405_v37 = vpop.eup %6404  ;;  %6430 = vpow2.f32 %v5450_v13  ;;  %v3307_v50 = vmul.f32 %v10538_v27, %v12419_v51  ;;  %v3144_v13 = vadd.f32 1e-05, %v3080_v20  ;;  %v3146_v54 = vadd.f32 1e-05, %v3082_v46  ;;  %v12421_v20 = vld [vmem:[#allocation113_spill] sm:$0xff] }
 0x4d5   : > { %v6407_v34 = vpop.eup %6406  ;;  %6432 = vpow2.f32 %v5451_v25  ;;  %v5452_v25 = vmul.f32 -1.442695, %v3592_v23  ;;  %v3457_v4 = vmul.f32 %v9773_v57, %v3318_v30  ;;  %v3581_v46 = vadd.f32 %v9879_v48, %v3442_v31 }
 0x4d6   : > { %v6409_v41 = vpop.eup %6408  ;;  %6434 = vrcp.f32 %v3854_v1  ;;  %v4106_v0 = vmul.f32 %v6407_v34, %v6403_v24  ;;  %v3083_v34 = vmul.f32 0.00390625, %v3011_v61  ;;  %v3444_v61 = vmul.f32 %v9837_v14, %v3305_v56 }
 0x4d7   : > { %v10642_v5 = vpop.eup %6410  ;;  %v4107_v26 = vmul.f32 %v6409_v41, %v6405_v37  ;;  %6436 = vrcp.f32 %v3855_v47  ;;  %v3014_v47 = vpop.xlane.xlu0 %3013  ;;  %v5453_v37 = vmul.f32 -1.442695, %v3594_v42  ;;  %v3856_v41 = vadd.f32 1.0, %v10611_v19 }
 0x4d8   : > { %v10644_v63 = vpop.eup %6412  ;;  %v3320_v11 = vmul.f32 %v10642_v5, %v12420_v18  ;;  %6438 = vtanh.f32 %v3575_v35  ;;  %v3857_v42 = vadd.f32 1.0, %v10615_v12  ;;  %v3446_v31 = vmul.f32 %v9837_v14, %v3307_v50 }
 0x4d9   : > { %v10648_v27 = vpop.eup %6414  ;;  %v10651_v1 = vpack.c.bf16 %v4107_v26, %v4106_v0  ;;  %v3322_v24 = vmul.f32 %v10644_v63, %v12421_v20  ;;  %6440 = vtanh.f32 %v3577_v40  ;;  %v12422_v40 = vld [vmem:[#allocation133_spill] sm:$0xff]  ;;  %v3084_v26 = vmul.f32 0.00390625, %v3014_v47 }
 0x4da   : > { %v10655_v58 = vpop.eup %6416  ;;  %v3459_v23 = vmul.f32 %v9773_v57, %v3320_v11  ;;  %6442 = vrsqrt.f32 %v3144_v13  ;;  %v3309_v0 = vmul.f32 %v10554_v36, %v12422_v40  ;;  %v3596_v18 = vadd.f32 %v9789_v22, %v3457_v4 }
 0x4db   : > { %v6419_v35 = vpop.eup %6418  ;;  %5628 = vmatprep.mubr.bf16.mxu1 %v10651_v1  ;;  %v3461_v30 = vmul.f32 %v9773_v57, %v3322_v24  ;;  %6444 = vrsqrt.f32 %v3145_v59  ;;  %v12423_v59 = vld [vmem:[#allocation60_spill] sm:$0xff]  ;;  %v3147_v36 = vadd.f32 1e-05, %v3083_v34 }
 0x4dc   : > { %v6421_v51 = vpop.eup %6420  ;;  %6446 = vrsqrt.f32 %v3146_v54  ;;  %v3311_v19 = vmul.f32 %v10562_v39, %v12423_v59  ;;  %v3598_v20 = vadd.f32 %v9789_v22, %v3459_v23  ;;  %v3448_v50 = vmul.f32 %v9837_v14, %v3309_v0 }
 0x4dd   : > { %v6423_v13 = vpop.eup %6422  ;;  %6448 = vpow2.f32 %v5452_v25  ;;  %v3600_v12 = vadd.f32 %v9789_v22, %v3461_v30  ;;  %v12424_v25 = vld [vmem:[#allocation126_spill] sm:$0xff]  ;;  %v3148_v39 = vadd.f32 1e-05, %v3084_v26  ;;  %v5454_v23 = vmul.f32 -1.442695, %v3596_v18 }
 0x4de   : > { %v6425_v11 = vpop.eup %6424  ;;  %6450 = vpow2.f32 %v5453_v37  ;;  %v4108_v24 = vmul.f32 %v6423_v13, %v6419_v35  ;;  %v3583_v26 = vadd.f32 %v9879_v48, %v3444_v61  ;;  %v3859_v61 = vadd.f32 1.0, %v10648_v27 }
 0x4df   : > { %v10671_v54 = vpop.eup %6426  ;;  %v4109_v47 = vmul.f32 %v6425_v11, %v6421_v51  ;;  %6452 = vrcp.f32 %v3856_v41  ;;  %v3450_v41 = vmul.f32 %v9837_v14, %v3311_v19  ;;  %v5455_v51 = vmul.f32 -1.442695, %v3598_v20  ;;  %v3017_v0 = vpop.xlane.xlu1 %3016  ;;  %v12425_v11 = vld [vmem:[#allocation134_spill] sm:$0xff] }
 0x4e0   : > { %v10674_v56 = vpop.eup %6428  ;;  %v3324_v4 = vmul.f32 %v10671_v54, %v12424_v25  ;;  %6454 = vrcp.f32 %v3857_v42  ;;  %v5456_v13 = vmul.f32 -1.442695, %v3600_v12  ;;  %v3313_v59 = vmul.f32 %v10577_v49, %v12425_v11 }
 0x4e1   : > { %v10679_v37 = vpop.eup %6430  ;;  %v10681_v34 = vpack.c.bf16 %v4109_v47, %v4108_v24  ;;  %v3326_v30 = vmul.f32 %v10674_v56, %v10033_v53  ;;  %6456 = vtanh.f32 %v10631_v17  ;;  %v3585_v24 = vadd.f32 %v9879_v48, %v3446_v31 }
 0x4e2   : > { %v10686_v35 = vpop.eup %6432  ;;  %v3463_v40 = vmul.f32 %v9773_v57, %v3324_v4  ;;  %6458 = vtanh.f32 %v3581_v46  ;;  %v3020_v53 = vpop.xlane.xlu0 %3019  ;;  %v3858_v46 = vadd.f32 1.0, %v10619_v6  ;;  %v3085_v12 = vmul.f32 0.00390625, %v3017_v0 }
 0x4e3   : > { %v6435_v42 = vpop.eup %6434  ;;  %5629 = vmatmul.mubr.bf16.gmra.mxu1 %v10681_v34  ;;  %v3465_v18 = vmul.f32 %v9773_v57, %v3326_v30  ;;  %6460 = vrsqrt.f32 %v3147_v36  ;;  %v10700_v36 = vadd.f32 %v9879_v48, %v3448_v50  ;;  %v10703_v25 = vadd.f32 %v9879_v48, %v3450_v41 }
 0x4e4   : > { %v6437_v17 = vpop.eup %6436  ;;  %v3602_v19 = vadd.f32 %v9789_v22, %v3463_v40  ;;  %6462 = vrsqrt.f32 %v3148_v39  ;;  %v3086_v49 = vmul.f32 0.00390625, %v3020_v53  ;;  %v10711_v27 = vmul.f32 %v9837_v14, %v3313_v59 }
 0x4e5   : > { %v6439_v20 = vpop.eup %6438  ;;  %6464 = vpow2.f32 %v5454_v23  ;;  %v3604_v6 = vadd.f32 %v9789_v22, %v3465_v18  ;;  %v3149_v0 = vadd.f32 1e-05, %v3085_v12  ;;  %v12427_v12 = vld [vmem:[#allocation114_spill] sm:$0xff] }
 0x4e6   : > { %v6441_v47 = vpop.eup %6440  ;;  %6466 = vpow2.f32 %v5455_v51  ;;  %v4110_v39 = vmul.f32 %v6439_v20, %v6435_v42  ;;  %v5457_v30 = vmul.f32 -1.442695, %v3602_v19  ;;  %v3150_v53 = vadd.f32 1e-05, %v3086_v49  ;;  %v3023_v19 = vpop.xlane.xlu1 %3022 }
 0x4e7   : > { %v10705_v4 = vpop.eup %6442  ;;  %6468 = vpow2.f32 %v5456_v13  ;;  %v4111_v31 = vmul.f32 %v6441_v47, %v6437_v17  ;;  %v5458_v59 = vmul.f32 -1.442695, %v3604_v6  ;;  %v3317_v47 = vmul.f32 %v10600_v9, %v12427_v12 }
 0x4e8   : > { %v10708_v23 = vpop.eup %6444  ;;  %v3328_v50 = vmul.f32 %v10705_v4, %v10048_v10  ;;  %6470 = vrcp.f32 %v3858_v46  ;;  %v12426_v10 = vld [vmem:[#allocation72_spill] sm:$0xff] }
 0x4e9   : > { %v10715_v41 = vpop.eup %6446  ;;  %v10717_v51 = vpack.c.bf16 %v4111_v31, %v4110_v39  ;;  %v3330_v40 = vmul.f32 %v10708_v23, %v10086_v29  ;;  %6472 = vrcp.f32 %v3859_v61  ;;  %v3315_v11 = vmul.f32 %v10586_v32, %v12426_v10  ;;  %v12428_v32 = vld [vmem:[#allocation64_spill] sm:$0xff] }
 0x4ea   : > { %v6449_v42 = vpop.eup %6448  ;;  %v3467_v13 = vmul.f32 %v9773_v57, %v3328_v50  ;;  %v3332_v18 = vmul.f32 %v10715_v41, %v10108_v7  ;;  %6474 = vtanh.f32 %v3583_v26  ;;  %v3860_v26 = vadd.f32 1.0, %v10655_v58 }
 0x4eb   : > { %v10724_v17 = vpop.eup %6450  ;;  %5632 = vmatprep.mubr.bf16.mxu1 %v10717_v51  ;;  %v3469_v29 = vmul.f32 %v9773_v57, %v3330_v40  ;;  %6476 = vtanh.f32 %v3585_v24  ;;  %v3319_v49 = vmul.f32 %v10626_v45, %v12428_v32  ;;  %v3861_v31 = vadd.f32 1.0, %v10679_v37  ;;  %v12429_v40 = vld [vmem:[#allocation76_spill] sm:$0xff] }
 0x4ec   : > { %v6453_v46 = vpop.eup %6452  ;;  %6478 = vpow2.f32 %v5457_v30  ;;  %v3606_v20 = vadd.f32 %v9789_v22, %v3467_v13  ;;  %v3471_v7 = vmul.f32 %v9773_v57, %v3332_v18  ;;  %v3087_v30 = vmul.f32 0.00390625, %v3023_v19  ;;  %v12430_v45 = vld [vmem:[#allocation124_spill] sm:$0xff] }
 0x4ed   : > { %v6455_v61 = vpop.eup %6454  ;;  %v3608_v6 = vadd.f32 %v9789_v22, %v3469_v29  ;;  %6480 = vrsqrt.f32 %v3149_v0  ;;  %v3321_v58 = vmul.f32 %v10642_v5, %v12429_v40  ;;  %v3323_v10 = vmul.f32 %v10644_v63, %v12430_v45 }
 0x4ee   : > { %v6457_v24 = vpop.eup %6456  ;;  %v5459_v39 = vmul.f32 -1.442695, %v3606_v20  ;;  %6482 = vrsqrt.f32 %v3150_v53  ;;  %v3610_v9 = vadd.f32 %v9789_v22, %v3471_v7  ;;  %v3454_v37 = vmul.f32 %v9837_v14, %v3315_v11 }
 0x4ef   : > { %v6459_v50 = vpop.eup %6458  ;;  %6484 = vpow2.f32 %v5458_v59  ;;  %v5460_v13 = vmul.f32 -1.442695, %v3608_v6  ;;  %v4112_v0 = vmul.f32 %v6457_v24, %v6453_v46  ;;  %v3456_v19 = vmul.f32 %v9837_v14, %v3317_v47 }
 0x4f0   : > { %v10742_v18 = vpop.eup %6460  ;;  %v4113_v29 = vmul.f32 %v6459_v50, %v6455_v61  ;;  %6486 = vrcp.f32 %v3860_v26  ;;  %v3151_v46 = vadd.f32 1e-05, %v3087_v30  ;;  %v3458_v26 = vmul.f32 %v9837_v14, %v3319_v49  ;;  %v12431_v30 = vld [vmem:[#allocation115_spill] sm:$0xff] }
 0x4f1   : > { %v10746_v53 = vpop.eup %6462  ;;  %6488 = vpow2.f32 %v5459_v39  ;;  %v3334_v5 = vmul.f32 %v10742_v18, %v10124_v44  ;;  %v5461_v61 = vmul.f32 -1.442695, %v3610_v9  ;;  %v3460_v44 = vmul.f32 %v9837_v14, %v3321_v58 }
 0x4f2   : > { %v6465_v59 = vpop.eup %6464  ;;  %6490 = vpow2.f32 %v5460_v13  ;;  %v10752_v20 = vpack.c.bf16 %v4113_v29, %v4112_v0  ;;  %v3336_v63 = vmul.f32 %v10746_v53, %v10147_v8  ;;  %v3462_v47 = vmul.f32 %v9837_v14, %v3323_v10 }
 0x4f3   : > { %v10756_v7 = vpop.eup %6466  ;;  %v3473_v11 = vmul.f32 %v9773_v57, %v3334_v5  ;;  %6492 = vrcp.f32 %v3861_v31  ;;  %v3862_v8 = vadd.f32 1.0, %v10686_v35  ;;  %v3591_v49 = vadd.f32 %v9879_v48, %v10711_v27 }
 0x4f4   : > { %v10760_v12 = vpop.eup %6468  ;;  %5633 = vmatmul.mubr.bf16.gmra.mxu1 %v10752_v20  ;;  %6494 = vtanh.f32 %v10700_v36  ;;  %v3863_v24 = vadd.f32 1.0, %v6449_v42  ;;  %v3593_v31 = vadd.f32 %v9879_v48, %v3454_v37  ;;  %v3325_v50 = vmul.f32 %v10671_v54, %v12431_v30 }
 0x4f5   : > { %v6471_v32 = vpop.eup %6470  ;;  %v3612_v6 = vadd.f32 %v9789_v22, %v3473_v11  ;;  %6496 = vtanh.f32 %v10703_v25  ;;  %v3475_v40 = vmul.f32 %v9773_v57, %v3336_v63  ;;  %v3595_v35 = vadd.f32 %v9879_v48, %v3456_v19 }
 0x4f6   : > { %v6473_v39 = vpop.eup %6472  ;;  %6498 = vrsqrt.f32 %v3151_v46  ;;  %v3327_v27 = vmul.f32 %v10674_v56, %v10036_v28  ;;  %v3597_v25 = vadd.f32 %v9879_v48, %v3458_v26  ;;  %v10780_v42 = vadd.f32 %v9879_v48, %v3460_v44  ;;  %v10790_v28 = vld [vmem:[%s11378_s6] ss:$0 sm:$0xff] }
 0x4f7   : > { %v6475_v36 = vpop.eup %6474  ;;  %6500 = vpow2.f32 %v5461_v61  ;;  %v5462_v58 = vmul.f32 -1.442695, %v3612_v6  ;;  %v10783_v9 = vadd.f32 %v9879_v48, %v3462_v47  ;;  %v3864_v56 = vadd.f32 1.0, %v10724_v17 }
 0x4f8   : > { %v6477_v13 = vpop.eup %6476  ;;  %6502 = vrcp.f32 %v3862_v8  ;;  %v4114_v45 = vmul.f32 %v6475_v36, %v6471_v32  ;;  %v10796_v29 = vmul.f32 %v9837_v14, %v3325_v50  ;;  %v3614_v37 = vadd.f32 %v9789_v22, %v3475_v40 }
 0x4f9   : > { %v10785_v54 = vpop.eup %6478  ;;  %v4115_v10 = vmul.f32 %v6477_v13, %v6473_v39  ;;  %6504 = vrcp.f32 %v3863_v24  ;;  %v3865_v5 = vadd.f32 1.0, %v6465_v59  ;;  %v10800_v46 = vmul.f32 %v9837_v14, %v3327_v27  ;;  %v6576_v24 = vld [vmem:[%s7260_s21 + $0x10] sm:$0xff] }
 0x4fa   : > { %v10793_v0 = vpop.eup %6480  ;;  %6506 = vpow2.f32 %v5462_v58  ;;  %v3329_v32 = vmul.f32 %v10705_v4, %v10051_v2  ;;  %v6577_v4 = vld [vmem:[%s7260_s21] sm:$0xff]  ;;  %v3866_v40 = vadd.f32 1.0, %v10756_v7 }
 0x4fb   : > { %v6483_v63 = vpop.eup %6482  ;;  %v10802_v26 = vpack.c.bf16 %v4115_v10, %v4114_v45  ;;  %v3338_v61 = vmul.f32 %v10793_v0, %v10173_v43  ;;  %6508 = vtanh.f32 %v3591_v49 }
 0x4fc   : > { %v10806_v17 = vpop.eup %6484  ;;  %v3340_v11 = vmul.f32 %v6483_v63, %v10182_v52  ;;  %v3341_v44 = vmul.f32 %v6483_v63, %v10185_v3  ;;  %6510 = vtanh.f32 %v3593_v31  ;;  %v5463_v52 = vmul.f32 -1.442695, %v3614_v37 }
 0x4fd   : > { %v6487_v8 = vpop.eup %6486  ;;  %5636 = vmatprep.mubr.bf16.mxu1 %v10802_v26  ;;  %v3477_v43 = vmul.f32 %v9773_v57, %v3338_v61  ;;  %6512 = vrcp.f32 %v3864_v56 }
 0x4fe   : > { %v10816_v6 = vpop.eup %6488  ;;  %v3479_v3 = vmul.f32 %v9773_v57, %v3340_v11  ;;  %6514 = vrcp.f32 %v3865_v5  ;;  %v3480_v27 = vmul.f32 %v9837_v14, %v3341_v44  ;;  %v6578_v44 = vld [vmem:[%s7260_s21 + $0x18] sm:$0xff] }
 0x4ff   : > { %v5594_v19 = vpop.f32.mrf.mxu1  ;;  %v10820_v30 = vpop.eup %6490  ;;  %v3616_v2 = vadd.f32 %v9789_v22, %v3477_v43  ;;  %6516 = vtanh.f32 %v3595_v35 }
 0x500   : > { %v4278_v59 = vadd.f32 %v5594_v19, %v10790_v28  ;;  %v6493_v36 = vpop.eup %6492  ;;  %v3618_v58 = vadd.f32 %v9789_v22, %v3479_v3  ;;  %6518 = vtanh.f32 %v3597_v25  ;;  %v3867_v25 = vadd.f32 1.0, %v10760_v12 }
 0x501   : > { %v4269_v47 = vpop.f32.mrf.mxu1  ;;  %v6495_v10 = vpop.eup %6494  ;;  %v5464_v56 = vmul.f32 -1.442695, %v3616_v2  ;;  %6520 = vpow2.f32 %v5463_v52  ;;  %v3619_v52 = vadd.f32 %v9879_v48, %v3480_v27  ;;  %v3605_v27 = vadd.f32 %v9879_v48, %v10800_v46 }
 0x502   : > { %v4270_v49 = vadd.f32 %v10790_v28, %v4269_v47  ;;  %v4884_v39 = vadd.f32 %v6576_v24, %v4278_v59  ;;  %v6497_v5 = vpop.eup %6496  ;;  %v5465_v7 = vmul.f32 -1.442695, %v3618_v58  ;;  %v4116_v63 = vmul.f32 %v6495_v10, %v6487_v8  ;;  %v6579_v47 = vld [vmem:[%s7260_s21 + $0x8] sm:$0xff] }
 0x503   : > { %v5595_v31 = vpop.f32.mrf.mxu1  ;;  %v10834_v61 = vpop.eup %6498  ;;  %6522 = vpow2.f32 %v5464_v56  ;;  %v4117_v11 = vmul.f32 %v6497_v5, %v6493_v36  ;;  %v3331_v8 = vmul.f32 %v10708_v23, %v10089_v15  ;;  %v3868_v15 = vadd.f32 1.0, %v10785_v54 }
 0x504   : > { %v4882_v50 = vadd.f32 %v6577_v4, %v4270_v49  ;;  %v4948_v13 = vmul.f32 0.70710677, %v4884_v39  ;;  %v4281_v35 = vadd.f32 %v5595_v31, %v10790_v28  ;;  %v6501_v49 = vpop.eup %6500  ;;  %6524 = vpow2.f32 %v5465_v7 }
 0x505   : > { %v4272_v45 = vpop.f32.mrf.mxu1  ;;  %v3342_v12 = vmul.f32 %v10834_v61, %v10204_v62  ;;  %v6503_v3 = vpop.eup %6502  ;;  %v10844_v24 = vpack.c.bf16 %v4117_v11, %v4116_v63  ;;  %6526 = vrcp.f32 %v3866_v40  ;;  %v3869_v62 = vadd.f32 1.0, %v10806_v17  ;;  %v12432_v63 = vld [vmem:[#allocation80_spill] sm:$0xff] }
 0x506   : > { %v4946_v37 = vmul.f32 0.70710677, %v4882_v50  ;;  %v4273_v19 = vadd.f32 %v10790_v28, %v4272_v45  ;;  %5012 = vst [vmem:[%s10830_s23 + $0x10] sm:$0xff] %v4948_v13  ;;  %v4885_v59 = vadd.f32 %v6578_v44, %v4281_v35  ;;  %v6505_v2 = vpop.eup %6504  ;;  %6528 = vrcp.f32 %v3867_v25 }
 0x507   : > { %v3481_v4 = vmul.f32 %v9773_v57, %v3342_v12  ;;  %v6507_v23 = vpop.eup %6506  ;;  %v3468_v50 = vmul.f32 %v9837_v14, %v3329_v32  ;;  %5637 = vmatmul.mubr.bf16.gmra.mxu1 %v10844_v24  ;;  %6530 = vtanh.f32 %v10780_v42  ;;  %v3603_v40 = vadd.f32 %v9879_v48, %v10796_v29 }
 0x508   : > { %5010 = vst [vmem:[%s10830_s23] sm:$0xff] %v4946_v37  ;;  %v4883_v43 = vadd.f32 %v6579_v47, %v4273_v19  ;;  %v4949_v39 = vmul.f32 0.70710677, %v4885_v59  ;;  %v6509_v36 = vpop.eup %6508  ;;  %v3333_v57 = vmul.f32 %v10715_v41, %v10111_v33  ;;  %6532 = vtanh.f32 %v10783_v9 }
 0x509   : > { %v3620_v54 = vadd.f32 %v9789_v22, %v3481_v4  ;;  %v6511_v32 = vpop.eup %6510  ;;  %v3470_v58 = vmul.f32 %v9837_v14, %v3331_v8  ;;  %v3335_v42 = vmul.f32 %v10742_v18, %v10127_v38  ;;  %6534 = vtanh.f32 %v3619_v52 }
 0x50a   : > { %v4947_v31 = vmul.f32 0.70710677, %v4883_v43  ;;  %5013 = vst [vmem:[%s10830_s23 + $0x18] sm:$0xff] %v4949_v39  ;;  %v6513_v17 = vpop.eup %6512  ;;  %v4118_v29 = vmul.f32 %v6509_v36, %v6503_v3  ;;  %v4119_v45 = vmul.f32 %v6511_v32, %v6505_v2  ;;  %6536 = vrcp.f32 %v3868_v15 }
 0x50b   : > { %v5466_v13 = vmul.f32 -1.442695, %v3620_v54  ;;  %v6515_v33 = vpop.eup %6514  ;;  %v3607_v22 = vadd.f32 %v9879_v48, %v3468_v50  ;;  %6538 = vrcp.f32 %v3869_v62  ;;  %v3870_v41 = vadd.f32 1.0, %v10816_v6 }
 0x50c   : > { %5011 = vst [vmem:[%s10830_s23 + $0x8] sm:$0xff] %v4947_v31  ;;  %v6517_v9 = vpop.eup %6516  ;;  %v3472_v46 = vmul.f32 %v9837_v14, %v3333_v57  ;;  %v10868_v10 = vpack.c.bf16 %v4119_v45, %v4118_v29  ;;  %v3871_v38 = vadd.f32 1.0, %v10820_v30  ;;  %v3609_v56 = vadd.f32 %v9879_v48, %v3470_v58 }
 0x50d   : > { %6540 = vpow2.f32 %v5466_v13  ;;  %v6519_v18 = vpop.eup %6518  ;;  %v3474_v37 = vmul.f32 %v9837_v14, %v3335_v42  ;;  %v3337_v35 = vmul.f32 %v10746_v53, %v10150_v21  ;;  %v3339_v6 = vmul.f32 %v10793_v0, %v10176_v60 }
 0x50e   : > { %6542 = vtanh.f32 %v3603_v40  ;;  %5640 = vmatprep.mubr.bf16.mxu1 %v10868_v10  ;;  %v4120_v19 = vmul.f32 %v6517_v9, %v6513_v17  ;;  %v4121_v5 = vmul.f32 %v6519_v18, %v6515_v33  ;;  %v6521_v7 = vpop.eup %6520  ;;  %v3343_v30 = vmul.f32 %v10834_v61, %v12432_v63  ;;  %v6581_v33 = vld [vmem:[%s7260_s21 + $0x20] sm:$0xff] }
 0x50f   : > { %6544 = vtanh.f32 %v3605_v27  ;;  %v3872_v25 = vadd.f32 1.0, %v6501_v49  ;;  %v3873_v21 = vadd.f32 1.0, %v6507_v23  ;;  %v3611_v59 = vadd.f32 %v9879_v48, %v3472_v46  ;;  %v6580_v27 = vld [vmem:[%s7260_s21 + $0x30] sm:$0xff] }
 0x510   : > { %6546 = vrcp.f32 %v3870_v41  ;;  %v6523_v11 = vpop.eup %6522  ;;  %v10880_v44 = vpack.c.bf16 %v4121_v5, %v4120_v19  ;;  %v3476_v60 = vmul.f32 %v9837_v14, %v3337_v35  ;;  %v3613_v47 = vadd.f32 %v9879_v48, %v3474_v37  ;;  %v6582_v35 = vld [vmem:[%s7260_s21 + $0x38] sm:$0xff] }
 0x511   : > { %6548 = vrcp.f32 %v3871_v38  ;;  %v6525_v53 = vpop.eup %6524  ;;  %v3478_v43 = vmul.f32 %v9837_v14, %v3339_v6  ;;  %v3482_v49 = vmul.f32 %v9837_v14, %v3343_v30  ;;  %v3874_v8 = vadd.f32 1.0, %v6521_v7 }
 0x512   : > { %6550 = vtanh.f32 %v3607_v22  ;;  %v6527_v0 = vpop.eup %6526  ;;  %5641 = vmatmul.mubr.bf16.gmra.mxu1 %v10880_v44  ;;  %v3875_v12 = vadd.f32 1.0, %v6523_v11  ;;  %v3615_v39 = vadd.f32 %v9879_v48, %v3476_v60  ;;  %v3876_v54 = vadd.f32 1.0, %v6525_v53 }
 0x513   : > { %6552 = vtanh.f32 %v3609_v56  ;;  %v6529_v61 = vpop.eup %6528  ;;  %v3617_v2 = vadd.f32 %v9879_v48, %v3478_v43  ;;  %v3621_v14 = vadd.f32 %v9879_v48, %v3482_v49 }
 0x514   : > { %6554 = vrcp.f32 %v3872_v25  ;;  %v6531_v52 = vpop.eup %6530  ;;  %v6583_v25 = vld [vmem:[%s7260_s21 + $0x28] sm:$0xff] }
 0x515   : > { %6556 = vrcp.f32 %v3873_v21  ;;  %v6533_v3 = vpop.eup %6532  ;;  %v4122_v4 = vmul.f32 %v6531_v52, %v6527_v0 }
 0x516   : > { %6558 = vtanh.f32 %v3611_v59  ;;  %v10889_v31 = vpop.eup %6534  ;;  %v4123_v15 = vmul.f32 %v6533_v3, %v6529_v61 }
 0x517   : > { %6560 = vtanh.f32 %v3613_v47  ;;  %v6537_v50 = vpop.eup %6536 }
 0x518   : > { %6562 = vrcp.f32 %v3874_v8  ;;  %v6539_v36 = vpop.eup %6538  ;;  %v10894_v40 = vpack.c.bf16 %v4123_v15, %v4122_v4 }
 0x519   : > { %6564 = vrcp.f32 %v3875_v12 }
 0x51a   : > { %v6541_v32 = vpop.eup %6540  ;;  %6566 = vtanh.f32 %v3615_v39  ;;  %5644 = vmatprep.mubr.bf16.mxu1 %v10894_v40 }
 0x51b   : > { %v5598_v23 = vpop.f32.mrf.mxu1  ;;  %v6543_v17 = vpop.eup %6542  ;;  %6568 = vtanh.f32 %v3617_v2  ;;  %v3877_v13 = vadd.f32 1.0, %v6541_v32  ;;  %v6584_v32 = vld [vmem:[%s7260_s21 + $0x50] sm:$0xff] }
 0x51c   : > { %v4294_v62 = vadd.f32 %v5598_v23, %v10790_v28  ;;  %v6545_v29 = vpop.eup %6544  ;;  %6570 = vtanh.f32 %v3621_v14  ;;  %v4124_v46 = vmul.f32 %v6543_v17, %v6537_v50 }
 0x51d   : > { %v4285_v57 = vpop.f32.mrf.mxu1  ;;  %v6547_v9 = vpop.eup %6546  ;;  %v4125_v38 = vmul.f32 %v6545_v29, %v6539_v36  ;;  %6572 = vrcp.f32 %v3876_v54  ;;  %v6585_v29 = vld [vmem:[%s7260_s21 + $0x40] sm:$0xff] }
 0x51e   : > { %v4888_v58 = vadd.f32 %v6580_v27, %v4294_v62  ;;  %v4286_v42 = vadd.f32 %v10790_v28, %v4285_v57  ;;  %v6549_v56 = vpop.eup %6548  ;;  %6574 = vrcp.f32 %v3877_v13 }
 0x51f   : > { %v5599_v48 = vpop.f32.mrf.mxu1  ;;  %v6551_v5 = vpop.eup %6550  ;;  %v10904_v7 = vpack.c.bf16 %v4125_v38, %v4124_v46  ;;  %v6586_v46 = vld [vmem:[%s7260_s21 + $0x58] sm:$0xff] }
 0x520   : > { %v4952_v45 = vmul.f32 0.70710677, %v4888_v58  ;;  %v4886_v22 = vadd.f32 %v6581_v33, %v4286_v42  ;;  %v4297_v41 = vadd.f32 %v5599_v48, %v10790_v28  ;;  %v6553_v63 = vpop.eup %6552  ;;  %v4126_v53 = vmul.f32 %v6551_v5, %v6547_v9  ;;  %v12435_v5 = vld [vmem:[#allocation117_spill] sm:$0xff] }
 0x521   : > { %v4288_v18 = vpop.f32.mrf.mxu1  ;;  %v6555_v21 = vpop.eup %6554  ;;  %5645 = vmatmul.mubr.bf16.gmra.mxu1 %v10904_v7  ;;  %v4127_v59 = vmul.f32 %v6553_v63, %v6549_v56  ;;  %v6587_v56 = vld [vmem:[%s7260_s21 + $0x48] sm:$0xff] }
 0x522   : > { %5016 = vst [vmem:[%s10830_s23 + $0x30] sm:$0xff] %v4952_v45  ;;  %v4950_v37 = vmul.f32 0.70710677, %v4886_v22  ;;  %v4889_v6 = vadd.f32 %v6582_v35, %v4297_v41  ;;  %v4289_v19 = vadd.f32 %v10790_v28, %v4288_v18  ;;  %v6557_v60 = vpop.eup %6556  ;;  %v12433_v35 = vld [vmem:[#allocation118_spill] sm:$0xff] }
 0x523   : > { %v6559_v47 = vpop.eup %6558  ;;  %v10910_v43 = vpack.c.bf16 %v4127_v59, %v4126_v53  ;;  %v12436_v59 = vld [vmem:[#allocation81_spill] sm:$0xff] }
 0x524   : > { %5014 = vst [vmem:[%s10830_s23 + $0x20] sm:$0xff] %v4950_v37  ;;  %v4953_v30 = vmul.f32 0.70710677, %v4889_v6  ;;  %v4887_v11 = vadd.f32 %v6583_v25, %v4289_v19  ;;  %v6561_v61 = vpop.eup %6560  ;;  %v4128_v8 = vmul.f32 %v6559_v47, %v6555_v21  ;;  %v12434_v19 = vld [vmem:[#allocation120_spill] sm:$0xff] }
 0x525   : > { %v6563_v49 = vpop.eup %6562  ;;  %5648 = vmatprep.mubr.bf16.mxu1 %v10910_v43  ;;  %v4129_v52 = vmul.f32 %v6561_v61, %v6557_v60  ;;  %v6589_v61 = vld [vmem:[%s7260_s21 + $0x60] sm:$0xff] }
 0x526   : > { %5017 = vst [vmem:[%s10830_s23 + $0x38] sm:$0xff] %v4953_v30  ;;  %v4951_v0 = vmul.f32 0.70710677, %v4887_v11  ;;  %v6565_v12 = vpop.eup %6564  ;;  %v6588_v11 = vld [vmem:[%s7260_s21 + $0x70] sm:$0xff] }
 0x527   : > { %v6567_v3 = vpop.eup %6566  ;;  %v10914_v39 = vpack.c.bf16 %v4129_v52, %v4128_v8 }
 0x528   : > { %5015 = vst [vmem:[%s10830_s23 + $0x28] sm:$0xff] %v4951_v0  ;;  %v6569_v2 = vpop.eup %6568  ;;  %v4130_v23 = vmul.f32 %v6567_v3, %v6563_v49  ;;  %v12437_v0 = vld [vmem:[#allocation58_spill] sm:$0xff]  ;;  %v6590_v3 = vld [vmem:[%s7260_s21 + $0x78] sm:$0xff] }
 0x529   : > { %v6571_v4 = vpop.eup %6570  ;;  %5649 = vmatmul.mubr.bf16.gmra.mxu1 %v10914_v39  ;;  %v4131_v50 = vmul.f32 %v6569_v2, %v6565_v12 }
 0x52a   : > { %v6573_v14 = vpop.eup %6572 }
 0x52b   : > { %v6575_v36 = vpop.eup %6574  ;;  %v10918_v54 = vpack.c.bf16 %v4131_v50, %v4130_v23  ;;  %v4132_v42 = vmul.f32 %v6573_v14, %v10889_v31  ;;  %v6591_v23 = vld [vmem:[%s7260_s21 + $0x68] sm:$0xff] }
 0x52c   : > { %v4133_v17 = vmul.f32 %v6575_v36, %v6571_v4  ;;  %v12439_v36 = vld [vmem:[#allocation65_spill] sm:$0xff] }
 0x52d   : > { %v5602_v15 = vpop.f32.mrf.mxu1  ;;  %5652 = vmatprep.mubr.bf16.mxu1 %v10918_v54 }
 0x52e   : > { %v4310_v62 = vadd.f32 %v5602_v15, %v10790_v28  ;;  %v10926_v22 = vpack.c.bf16 %v4133_v17, %v4132_v42  ;;  %v6592_v42 = vld [vmem:[%s7260_s21 + $0x90] sm:$0xff] }
 0x52f   : > { %v4301_v57 = vpop.f32.mrf.mxu1 }
 0x530   : > { %v4892_v27 = vadd.f32 %v6584_v32, %v4310_v62  ;;  %v4302_v58 = vadd.f32 %v10790_v28, %v4301_v57  ;;  %v12438_v62 = vld [vmem:[#allocation62_spill] sm:$0xff] }
 0x531   : > { %v5603_v48 = vpop.f32.mrf.mxu1  ;;  %5653 = vmatmul.mubr.bf16.gmra.mxu1 %v10926_v22  ;;  %v12440_v57 = vld [vmem:[#allocation66_spill] sm:$0xff] }
 0x532   : > { %v4956_v13 = vmul.f32 0.70710677, %v4892_v27  ;;  %v4890_v45 = vadd.f32 %v6585_v29, %v4302_v58  ;;  %v4313_v33 = vadd.f32 %v5603_v48, %v10790_v28  ;;  %5672 = vmatprep.mubr.bf16.mxu1 %v12433_v35  ;;  %v6595_v35 = vld [vmem:[%s7260_s21 + $0x88] sm:$0xff] }
 0x533   : > { %v4304_v41 = vpop.f32.mrf.mxu1 }
 0x534   : > { %5020 = vst [vmem:[%s10830_s23 + $0x50] sm:$0xff] %v4956_v13  ;;  %v4954_v9 = vmul.f32 0.70710677, %v4890_v45  ;;  %v4893_v31 = vadd.f32 %v6586_v46, %v4313_v33  ;;  %v4305_v38 = vadd.f32 %v10790_v28, %v4304_v41  ;;  %v6593_v45 = vld [vmem:[%s7260_s21 + $0x80] sm:$0xff] }
 0x536   : > { %5018 = vst [vmem:[%s10830_s23 + $0x40] sm:$0xff] %v4954_v9  ;;  %v4957_v18 = vmul.f32 0.70710677, %v4893_v31  ;;  %v4891_v37 = vadd.f32 %v6587_v56, %v4305_v38  ;;  %v12441_v9 = vld [vmem:[#allocation82_spill] sm:$0xff]  ;;  %v6594_v31 = vld [vmem:[%s7260_s21 + $0x98] sm:$0xff] }
 0x537   : > { %v12442_v56 = vld [vmem:[#allocation83_spill] sm:$0xff] }
 0x538   : > { %5021 = vst [vmem:[%s10830_s23 + $0x58] sm:$0xff] %v4957_v18  ;;  %v4955_v6 = vmul.f32 0.70710677, %v4891_v37 }
 0x539   : > { %5673 = vmatmul.mubr.bf16.vlgmr.msra.gmra.mxu1 %v12434_v19 }
 0x53a   : > { %5019 = vst [vmem:[%s10830_s23 + $0x48] sm:$0xff] %v4955_v6  ;;  %5676 = vmatprep.mubr.bf16.mxu1 %v12435_v5 }
 0x540   : > { %v5606_v63 = vpop.f32.mrf.mxu1 }
 0x541   : > { %v4326_v30 = vadd.f32 %v5606_v63, %v10790_v28  ;;  %5677 = vmatmul.mubr.bf16.gmra.mxu1 %v12436_v59  ;;  %v12443_v63 = vld [vmem:[#allocation119_spill] sm:$0xff] }
 0x542   : > { %v4317_v25 = vpop.f32.mrf.mxu1  ;;  %5680 = vmatprep.mubr.bf16.mxu1 %v12437_v0 }
 0x543   : > { %v4896_v21 = vadd.f32 %v6588_v11, %v4326_v30  ;;  %v4318_v53 = vadd.f32 %v10790_v28, %v4317_v25  ;;  %v12444_v25 = vld [vmem:[#allocation57_spill] sm:$0xff] }
 0x544   : > { %v5607_v60 = vpop.f32.mrf.mxu1 }
 0x545   : > { %v4960_v47 = vmul.f32 0.70710677, %v4896_v21  ;;  %v4894_v49 = vadd.f32 %v6589_v61, %v4318_v53  ;;  %v4329_v8 = vadd.f32 %v5607_v60, %v10790_v28  ;;  %v6596_v21 = vld [vmem:[%s7260_s21 + $0xb0] sm:$0xff] }
 0x546   : > { %v4320_v52 = vpop.f32.mrf.mxu1 }
 0x547   : > { %5024 = vst [vmem:[%s10830_s23 + $0x70] sm:$0xff] %v4960_v47  ;;  %v4958_v12 = vmul.f32 0.70710677, %v4894_v49  ;;  %v4897_v2 = vadd.f32 %v6590_v3, %v4329_v8  ;;  %v4321_v4 = vadd.f32 %v10790_v28, %v4320_v52  ;;  %v6597_v47 = vld [vmem:[%s7260_s21 + $0xa0] sm:$0xff] }
 0x549   : > { %5022 = vst [vmem:[%s10830_s23 + $0x60] sm:$0xff] %v4958_v12  ;;  %v4961_v15 = vmul.f32 0.70710677, %v4897_v2  ;;  %v4895_v50 = vadd.f32 %v6591_v23, %v4321_v4  ;;  %5681 = vmatmul.mubr.bf16.gmra.mxu1 %v12438_v62  ;;  %v6598_v12 = vld [vmem:[%s7260_s21 + $0xb8] sm:$0xff] }
 0x54a   : > { %5684 = vmatprep.mubr.bf16.mxu1 %v12439_v36  ;;  %v12446_v62 = vld [vmem:[#allocation68_spill] sm:$0xff]  ;;  %v12447_v36 = vld [vmem:[#allocation63_spill] sm:$0xff] }
 0x54b   : > { %5025 = vst [vmem:[%s10830_s23 + $0x78] sm:$0xff] %v4961_v15  ;;  %v4959_v14 = vmul.f32 0.70710677, %v4895_v50  ;;  %v6599_v15 = vld [vmem:[%s7260_s21 + $0xa8] sm:$0xff] }
 0x54c   : > { %v12445_v50 = vld [vmem:[#allocation61_spill] sm:$0xff] }
 0x54d   : > { %5023 = vst [vmem:[%s10830_s23 + $0x68] sm:$0xff] %v4959_v14 }
 0x551   : > { %5685 = vmatmul.mubr.bf16.gmra.mxu1 %v12440_v57 }
 0x552   : > { %5688 = vmatprep.mubr.bf16.mxu1 %v10387_v55 }
 0x554   : > { %v5610_v32 = vpop.f32.mrf.mxu1 }
 0x555   : > { %v4342_v27 = vadd.f32 %v5610_v32, %v10790_v28 }
 0x556   : > { %v4333_v58 = vpop.f32.mrf.mxu1 }
 0x557   : > { %v4900_v17 = vadd.f32 %v6592_v42, %v4342_v27  ;;  %v4334_v48 = vadd.f32 %v10790_v28, %v4333_v58  ;;  %v6600_v27 = vld [vmem:[%s7260_s21 + $0xd0] sm:$0xff] }
 0x558   : > { %v5611_v13 = vpop.f32.mrf.mxu1 }
 0x559   : > { %v4964_v29 = vmul.f32 0.70710677, %v4900_v17  ;;  %v4898_v33 = vadd.f32 %v6593_v45, %v4334_v48  ;;  %v4345_v41 = vadd.f32 %v5611_v13, %v10790_v28  ;;  %5689 = vmatmul.mubr.bf16.gmra.mxu1 %v12441_v9  ;;  %v12448_v48 = vld [vmem:[#allocation70_spill] sm:$0xff]  ;;  %v6602_v9 = vld [vmem:[%s7260_s21 + $0xd8] sm:$0xff] }
 0x55a   : > { %v4336_v55 = vpop.f32.mrf.mxu1  ;;  %5692 = vmatprep.mubr.bf16.mxu1 %v12442_v56 }
 0x55b   : > { %5028 = vst [vmem:[%s10830_s23 + $0x90] sm:$0xff] %v4964_v29  ;;  %v4962_v46 = vmul.f32 0.70710677, %v4898_v33  ;;  %v4901_v38 = vadd.f32 %v6594_v31, %v4345_v41  ;;  %v4337_v18 = vadd.f32 %v10790_v28, %v4336_v55  ;;  %v6601_v29 = vld [vmem:[%s7260_s21 + $0xc0] sm:$0xff] }
 0x55d   : > { %5026 = vst [vmem:[%s10830_s23 + $0x80] sm:$0xff] %v4962_v46  ;;  %v4965_v37 = vmul.f32 0.70710677, %v4901_v38  ;;  %v4899_v6 = vadd.f32 %v6595_v35, %v4337_v18  ;;  %v6603_v18 = vld [vmem:[%s7260_s21 + $0xc8] sm:$0xff] }
 0x55f   : > { %5029 = vst [vmem:[%s10830_s23 + $0x98] sm:$0xff] %v4965_v37  ;;  %v4963_v19 = vmul.f32 0.70710677, %v4899_v6 }
 0x561   : > { %5027 = vst [vmem:[%s10830_s23 + $0x88] sm:$0xff] %v4963_v19  ;;  %v5614_v5 = vpop.f32.mrf.mxu1  ;;  %5693 = vmatmul.mubr.bf16.gmra.mxu1 %v12443_v63  ;;  %v6604_v19 = vld [vmem:[%s7260_s21 + $0xf0] sm:$0xff] }
 0x562   : > { %v4358_v30 = vadd.f32 %v5614_v5, %v10790_v28  ;;  %5696 = vmatprep.mubr.bf16.mxu1 %v12444_v25 }
 0x563   : > { %v4349_v11 = vpop.f32.mrf.mxu1 }
 0x564   : > { %v4904_v53 = vadd.f32 %v6596_v21, %v4358_v30  ;;  %v4350_v59 = vadd.f32 %v10790_v28, %v4349_v11  ;;  %v6605_v11 = vld [vmem:[%s7260_s21 + $0xe0] sm:$0xff] }
 0x565   : > { %v5615_v60 = vpop.f32.mrf.mxu1 }
 0x566   : > { %v4968_v0 = vmul.f32 0.70710677, %v4904_v53  ;;  %v4902_v61 = vadd.f32 %v6597_v47, %v4350_v59  ;;  %v4361_v49 = vadd.f32 %v5615_v60, %v10790_v28  ;;  %v6606_v59 = vld [vmem:[%s7260_s21 + $0xf8] sm:$0xff] }
 0x567   : > { %v4352_v8 = vpop.f32.mrf.mxu1 }
 0x568   : > { %5032 = vst [vmem:[%s10830_s23 + $0xb0] sm:$0xff] %v4968_v0  ;;  %v4966_v52 = vmul.f32 0.70710677, %v4902_v61  ;;  %v4905_v3 = vadd.f32 %v6598_v12, %v4361_v49  ;;  %v4353_v2 = vadd.f32 %v10790_v28, %v4352_v8  ;;  %v6607_v61 = vld [vmem:[%s7260_s21 + $0xe8] sm:$0xff] }
 0x569   : > { %5697 = vmatmul.mubr.bf16.gmra.mxu1 %v10522_v16 }
 0x56a   : > { %5030 = vst [vmem:[%s10830_s23 + $0xa0] sm:$0xff] %v4966_v52  ;;  %v4969_v4 = vmul.f32 0.70710677, %v4905_v3  ;;  %v4903_v23 = vadd.f32 %v6599_v15, %v4353_v2  ;;  %5700 = vmatprep.mubr.bf16.mxu1 %v12445_v50 }
 0x56c   : > { %5033 = vst [vmem:[%s10830_s23 + $0xb8] sm:$0xff] %v4969_v4  ;;  %v4967_v14 = vmul.f32 0.70710677, %v4903_v23  ;;  %v6609_v23 = vld [vmem:[%s7260_s21 + $0x100] sm:$0xff] }
 0x56e   : > { %5031 = vst [vmem:[%s10830_s23 + $0xa8] sm:$0xff] %v4967_v14 }
 0x571   : > { %5701 = vmatmul.mubr.bf16.gmra.mxu1 %v12446_v62 }
 0x572   : > { %5704 = vmatprep.mubr.bf16.mxu1 %v12447_v36  ;;  %v6610_v36 = vld [vmem:[%s7260_s21 + $0x118] sm:$0xff] }
 0x575   : > { %v5618_v57 = vpop.f32.mrf.mxu1 }
 0x576   : > { %v4374_v32 = vadd.f32 %v5618_v57, %v10790_v28 }
 0x577   : > { %v4365_v16 = vpop.f32.mrf.mxu1 }
 0x578   : > { %v4908_v58 = vadd.f32 %v6600_v27, %v4374_v32  ;;  %v4366_v42 = vadd.f32 %v10790_v28, %v4365_v16  ;;  %v6611_v16 = vld [vmem:[%s7260_s21 + $0x108] sm:$0xff] }
 0x579   : > { %v5619_v17 = vpop.f32.mrf.mxu1  ;;  %5705 = vmatmul.mubr.bf16.gmra.mxu1 %v12448_v48 }
 0x57a   : > { %v4972_v13 = vmul.f32 0.70710677, %v4908_v58  ;;  %v4906_v45 = vadd.f32 %v6601_v29, %v4366_v42  ;;  %v4377_v33 = vadd.f32 %v5619_v17, %v10790_v28  ;;  %5708 = vmatprep.mubr.bf16.mxu1 %v10651_v1 }
 0x57b   : > { %v4368_v41 = vpop.f32.mrf.mxu1 }
 0x57c   : > { %5036 = vst [vmem:[%s10830_s23 + $0xd0] sm:$0xff] %v4972_v13  ;;  %v4970_v55 = vmul.f32 0.70710677, %v4906_v45  ;;  %v4909_v46 = vadd.f32 %v6602_v9, %v4377_v33  ;;  %v4369_v31 = vadd.f32 %v10790_v28, %v4368_v41  ;;  %v6612_v13 = vld [vmem:[%s7260_s21 + $0x130] sm:$0xff]  ;;  %v6613_v33 = vld [vmem:[%s7260_s21 + $0x120] sm:$0xff]  ;;  %v6614_v9 = vld [vmem:[%s7260_s21 + $0x138] sm:$0xff] }
 0x57e   : > { %5034 = vst [vmem:[%s10830_s23 + $0xc0] sm:$0xff] %v4970_v55  ;;  %v4973_v38 = vmul.f32 0.70710677, %v4909_v46  ;;  %v4907_v56 = vadd.f32 %v6603_v18, %v4369_v31  ;;  %v6615_v18 = vld [vmem:[%s7260_s21 + $0x128] sm:$0xff] }
 0x580   : > { %5037 = vst [vmem:[%s10830_s23 + $0xd8] sm:$0xff] %v4973_v38  ;;  %v4971_v37 = vmul.f32 0.70710677, %v4907_v56 }
 0x581   : > { %5709 = vmatmul.mubr.bf16.gmra.mxu1 %v10681_v34 }
 0x582   : > { %5035 = vst [vmem:[%s10830_s23 + $0xc8] sm:$0xff] %v4971_v37  ;;  %v5622_v1 = vpop.f32.mrf.mxu1  ;;  %5712 = vmatprep.mubr.bf16.mxu1 %v10717_v51 }
 0x583   : > { %v4390_v35 = vadd.f32 %v5622_v1, %v10790_v28 }
 0x584   : > { %v4381_v6 = vpop.f32.mrf.mxu1 }
 0x585   : > { %v4912_v5 = vadd.f32 %v6604_v19, %v4390_v35  ;;  %v4382_v63 = vadd.f32 %v10790_v28, %v4381_v6  ;;  %v6616_v35 = vld [vmem:[%s7260_s21 + $0x150] sm:$0xff] }
 0x586   : > { %v5623_v30 = vpop.f32.mrf.mxu1 }
 0x587   : > { %v4976_v25 = vmul.f32 0.70710677, %v4912_v5  ;;  %v4910_v21 = vadd.f32 %v6605_v11, %v4382_v63  ;;  %v4393_v34 = vadd.f32 %v5623_v30, %v10790_v28  ;;  %v6617_v30 = vld [vmem:[%s7260_s21 + $0x140] sm:$0xff] }
 0x588   : > { %v4384_v53 = vpop.f32.mrf.mxu1 }
 0x589   : > { %5040 = vst [vmem:[%s10830_s23 + $0xf0] sm:$0xff] %v4976_v25  ;;  %v4974_v51 = vmul.f32 0.70710677, %v4910_v21  ;;  %v4913_v60 = vadd.f32 %v6606_v59, %v4393_v34  ;;  %v4385_v0 = vadd.f32 %v10790_v28, %v4384_v53  ;;  %5713 = vmatmul.mubr.bf16.gmra.mxu1 %v10752_v20  ;;  %v6608_v20 = vld [vmem:[%s7260_s21 + $0x110] sm:$0xff]  ;;  %v6618_v34 = vld [vmem:[%s7260_s21 + $0x158] sm:$0xff] }
 0x58a   : > { %5716 = vmatprep.mubr.bf16.mxu1 %v10802_v26 }
 0x58b   : > { %5038 = vst [vmem:[%s10830_s23 + $0xe0] sm:$0xff] %v4974_v51  ;;  %v4977_v47 = vmul.f32 0.70710677, %v4913_v60  ;;  %v4911_v49 = vadd.f32 %v6607_v61, %v4385_v0  ;;  %v6619_v60 = vld [vmem:[%s7260_s21 + $0x148] sm:$0xff] }
 0x58d   : > { %5041 = vst [vmem:[%s10830_s23 + $0xf8] sm:$0xff] %v4977_v47  ;;  %v4975_v8 = vmul.f32 0.70710677, %v4911_v49 }
 0x58f   : > { %5039 = vst [vmem:[%s10830_s23 + $0xe8] sm:$0xff] %v4975_v8 }
 0x590   : > { %v5626_v52 = vpop.f32.mrf.mxu1 }
 0x591   : > { %v4406_v12 = vadd.f32 %v5626_v52, %v10790_v28  ;;  %5717 = vmatmul.mubr.bf16.gmra.mxu1 %v10844_v24  ;;  %v6620_v52 = vld [vmem:[%s7260_s21 + $0x170] sm:$0xff] }
 0x592   : > { %v4397_v3 = vpop.f32.mrf.mxu1  ;;  %5720 = vmatprep.mubr.bf16.mxu1 %v10868_v10 }
 0x593   : > { %v4916_v26 = vadd.f32 %v6608_v20, %v4406_v12  ;;  %v4398_v2 = vadd.f32 %v10790_v28, %v4397_v3 }
 0x594   : > { %v5627_v4 = vpop.f32.mrf.mxu1 }
 0x595   : > { %v4980_v15 = vmul.f32 0.70710677, %v4916_v26  ;;  %v4914_v50 = vadd.f32 %v6609_v23, %v4398_v2  ;;  %v4409_v14 = vadd.f32 %v5627_v4, %v10790_v28  ;;  %v6621_v2 = vld [vmem:[%s7260_s21 + $0x160] sm:$0xff] }
 0x596   : > { %v4400_v62 = vpop.f32.mrf.mxu1 }
 0x597   : > { %5044 = vst [vmem:[%s10830_s23 + $0x110] sm:$0xff] %v4980_v15  ;;  %v4978_v24 = vmul.f32 0.70710677, %v4914_v50  ;;  %v4917_v57 = vadd.f32 %v6610_v36, %v4409_v14  ;;  %v4401_v10 = vadd.f32 %v10790_v28, %v4400_v62  ;;  %v6622_v14 = vld [vmem:[%s7260_s21 + $0x178] sm:$0xff] }
 0x599   : > { %5042 = vst [vmem:[%s10830_s23 + $0x100] sm:$0xff] %v4978_v24  ;;  %v4981_v32 = vmul.f32 0.70710677, %v4917_v57  ;;  %v4915_v27 = vadd.f32 %v6611_v16, %v4401_v10  ;;  %5721 = vmatmul.mubr.bf16.gmra.mxu1 %v10880_v44  ;;  %v6623_v57 = vld [vmem:[%s7260_s21 + $0x168] sm:$0xff] }
 0x59a   : > { %5724 = vmatprep.mubr.bf16.mxu1 %v10894_v40 }
 0x59b   : > { %5045 = vst [vmem:[%s10830_s23 + $0x118] sm:$0xff] %v4981_v32  ;;  %v4979_v58 = vmul.f32 0.70710677, %v4915_v27 }
 0x59d   : > { %5043 = vst [vmem:[%s10830_s23 + $0x108] sm:$0xff] %v4979_v58 }
 0x5a1   : > { %5725 = vmatmul.mubr.bf16.gmra.mxu1 %v10904_v7 }
 0x5a2   : > { %5728 = vmatprep.mubr.bf16.mxu1 %v10910_v43 }
 0x5a3   : > { %v5630_v42 = vpop.f32.mrf.mxu1 }
 0x5a4   : > { %v4422_v17 = vadd.f32 %v5630_v42, %v10790_v28  ;;  %v6624_v42 = vld [vmem:[%s7260_s21 + $0x190] sm:$0xff] }
 0x5a5   : > { %v4413_v48 = vpop.f32.mrf.mxu1 }
 0x5a6   : > { %v4920_v29 = vadd.f32 %v6612_v13, %v4422_v17  ;;  %v4414_v44 = vadd.f32 %v10790_v28, %v4413_v48 }
 0x5a7   : > { %v5631_v40 = vpop.f32.mrf.mxu1 }
 0x5a8   : > { %v4984_v45 = vmul.f32 0.70710677, %v4920_v29  ;;  %v4918_v41 = vadd.f32 %v6613_v33, %v4414_v44  ;;  %v4425_v7 = vadd.f32 %v5631_v40, %v10790_v28  ;;  %v6625_v44 = vld [vmem:[%s7260_s21 + $0x180] sm:$0xff] }
 0x5a9   : > { %5729 = vmatmul.mubr.bf16.gmra.mxu1 %v10914_v39  ;;  %v4416_v43 = vpop.f32.mrf.mxu1 }
 0x5aa   : > { %5732 = vmatprep.mubr.bf16.mxu1 %v10918_v54  ;;  %5048 = vst [vmem:[%s10830_s23 + $0x130] sm:$0xff] %v4984_v45  ;;  %v4982_v55 = vmul.f32 0.70710677, %v4918_v41  ;;  %v4921_v46 = vadd.f32 %v6614_v9, %v4425_v7  ;;  %v4417_v31 = vadd.f32 %v10790_v28, %v4416_v43  ;;  %v6626_v7 = vld [vmem:[%s7260_s21 + $0x198] sm:$0xff] }
 0x5ac   : > { %5046 = vst [vmem:[%s10830_s23 + $0x120] sm:$0xff] %v4982_v55  ;;  %v4985_v38 = vmul.f32 0.70710677, %v4921_v46  ;;  %v4919_v56 = vadd.f32 %v6615_v18, %v4417_v31  ;;  %v6627_v46 = vld [vmem:[%s7260_s21 + $0x188] sm:$0xff] }
 0x5ae   : > { %5049 = vst [vmem:[%s10830_s23 + $0x138] sm:$0xff] %v4985_v38  ;;  %v4983_v37 = vmul.f32 0.70710677, %v4919_v56 }
 0x5b0   : > { %5047 = vst [vmem:[%s10830_s23 + $0x128] sm:$0xff] %v4983_v37 }
 0x5b1   : > { %5733 = vmatmul.mubr.bf16.gmra.mxu1 %v10926_v22 }
 0x5b4   : > { %v5634_v39 = vpop.f32.mrf.mxu1 }
 0x5b5   : > { %v4438_v54 = vadd.f32 %v5634_v39, %v10790_v28  ;;  %v6628_v39 = vld [vmem:[%s7260_s21 + $0x1b0] sm:$0xff] }
 0x5b6   : > { %v4429_v1 = vpop.f32.mrf.mxu1 }
 0x5b7   : > { %v4924_v6 = vadd.f32 %v6616_v35, %v4438_v54  ;;  %v4430_v19 = vadd.f32 %v10790_v28, %v4429_v1 }
 0x5b8   : > { %v5635_v5 = vpop.f32.mrf.mxu1 }
 0x5b9   : > { %v4988_v63 = vmul.f32 0.70710677, %v4924_v6  ;;  %v4922_v25 = vadd.f32 %v6617_v30, %v4430_v19  ;;  %v4441_v11 = vadd.f32 %v5635_v5, %v10790_v28  ;;  %v6629_v19 = vld [vmem:[%s7260_s21 + $0x1a0] sm:$0xff] }
 0x5ba   : > { %v4432_v21 = vpop.f32.mrf.mxu1 }
 0x5bb   : > { %5052 = vst [vmem:[%s10830_s23 + $0x150] sm:$0xff] %v4988_v63  ;;  %v4986_v22 = vmul.f32 0.70710677, %v4922_v25  ;;  %v4925_v53 = vadd.f32 %v6618_v34, %v4441_v11  ;;  %v4433_v51 = vadd.f32 %v10790_v28, %v4432_v21  ;;  %v6630_v11 = vld [vmem:[%s7260_s21 + $0x1b8] sm:$0xff] }
 0x5bd   : > { %5050 = vst [vmem:[%s10830_s23 + $0x140] sm:$0xff] %v4986_v22  ;;  %v4989_v59 = vmul.f32 0.70710677, %v4925_v53  ;;  %v4923_v0 = vadd.f32 %v6619_v60, %v4433_v51  ;;  %v6631_v51 = vld [vmem:[%s7260_s21 + $0x1a8] sm:$0xff] }
 0x5bf   : > { %5053 = vst [vmem:[%s10830_s23 + $0x158] sm:$0xff] %v4989_v59  ;;  %v4987_v47 = vmul.f32 0.70710677, %v4923_v0 }
 0x5c1   : > { %5051 = vst [vmem:[%s10830_s23 + $0x148] sm:$0xff] %v4987_v47 }
 0x5c7   : > { %v5638_v61 = vpop.f32.mrf.mxu1 }
 0x5c8   : > { %v4454_v49 = vadd.f32 %v5638_v61, %v10790_v28  ;;  %v6632_v61 = vld [vmem:[%s7260_s21 + $0x1d0] sm:$0xff] }
 0x5c9   : > { %v4445_v8 = vpop.f32.mrf.mxu1 }
 0x5ca   : > { %v4928_v12 = vadd.f32 %v6620_v52, %v4454_v49  ;;  %v4446_v3 = vadd.f32 %v10790_v28, %v4445_v8 }
 0x5cb   : > { %v5639_v20 = vpop.f32.mrf.mxu1 }
 0x5cc   : > { %v4992_v26 = vmul.f32 0.70710677, %v4928_v12  ;;  %v4926_v4 = vadd.f32 %v6621_v2, %v4446_v3  ;;  %v4457_v15 = vadd.f32 %v5639_v20, %v10790_v28  ;;  %v6633_v3 = vld [vmem:[%s7260_s21 + $0x1c0] sm:$0xff] }
 0x5cd   : > { %v4448_v23 = vpop.f32.mrf.mxu1 }
 0x5ce   : > { %5056 = vst [vmem:[%s10830_s23 + $0x170] sm:$0xff] %v4992_v26  ;;  %v4990_v50 = vmul.f32 0.70710677, %v4926_v4  ;;  %v4929_v62 = vadd.f32 %v6622_v14, %v4457_v15  ;;  %v4449_v24 = vadd.f32 %v10790_v28, %v4448_v23  ;;  %v6634_v15 = vld [vmem:[%s7260_s21 + $0x1d8] sm:$0xff] }
 0x5d0   : > { %5054 = vst [vmem:[%s10830_s23 + $0x160] sm:$0xff] %v4990_v50  ;;  %v4993_v36 = vmul.f32 0.70710677, %v4929_v62  ;;  %v4927_v10 = vadd.f32 %v6623_v57, %v4449_v24  ;;  %v6635_v24 = vld [vmem:[%s7260_s21 + $0x1c8] sm:$0xff] }
 0x5d2   : > { %5057 = vst [vmem:[%s10830_s23 + $0x178] sm:$0xff] %v4993_v36  ;;  %v4991_v32 = vmul.f32 0.70710677, %v4927_v10  ;;  %v5642_v16 = vpop.f32.mrf.mxu1 }
 0x5d3   : > { %v4470_v27 = vadd.f32 %v5642_v16, %v10790_v28  ;;  %v6636_v16 = vld [vmem:[%s7260_s21 + $0x1f0] sm:$0xff] }
 0x5d4   : > { %5055 = vst [vmem:[%s10830_s23 + $0x168] sm:$0xff] %v4991_v32  ;;  %v4461_v58 = vpop.f32.mrf.mxu1 }
 0x5d5   : > { %v4932_v17 = vadd.f32 %v6624_v42, %v4470_v27  ;;  %v4462_v48 = vadd.f32 %v10790_v28, %v4461_v58  ;;  %v6637_v58 = vld [vmem:[%s11378_s6] ss:$0 sm:$0xff] }
 0x5d6   : > { %v5643_v13 = vpop.f32.mrf.mxu1 }
 0x5d7   : > { %v4996_v29 = vmul.f32 0.70710677, %v4932_v17  ;;  %v4930_v40 = vadd.f32 %v6625_v44, %v4462_v48  ;;  %v4473_v45 = vadd.f32 %v5643_v13, %v10790_v28  ;;  %v6638_v13 = vld [vmem:[%s7260_s21 + $0x1e0] sm:$0xff] }
 0x5d8   : > { %v4464_v33 = vpop.f32.mrf.mxu1 }
 0x5d9   : > { %5060 = vst [vmem:[%s10830_s23 + $0x190] sm:$0xff] %v4996_v29  ;;  %v4994_v41 = vmul.f32 0.70710677, %v4930_v40  ;;  %v4933_v43 = vadd.f32 %v6626_v7, %v4473_v45  ;;  %v4465_v55 = vadd.f32 %v10790_v28, %v4464_v33  ;;  %v11121_v40 = vld [vmem:[%s11378_s6 + $0x1] ss:$0 sm:$0xff]  ;;  %v6639_v33 = vld [vmem:[%s7260_s21 + $0x1f8] sm:$0xff] }
 0x5db   : > { %5058 = vst [vmem:[%s10830_s23 + $0x180] sm:$0xff] %v4994_v41  ;;  %v4997_v9 = vmul.f32 0.70710677, %v4933_v43  ;;  %v4931_v31 = vadd.f32 %v6627_v46, %v4465_v55 }
 0x5dd   : > { %5061 = vst [vmem:[%s10830_s23 + $0x198] sm:$0xff] %v4997_v9  ;;  %v4995_v38 = vmul.f32 0.70710677, %v4931_v31  ;;  %v6640_v9 = vld [vmem:[%s7260_s21 + $0x1e8] sm:$0xff]  ;;  %s11137_s21 = sadd.s32 %s5488_s13, %s5487_s20 }
 0x5de   : > { %s5489_s11 = sshll.u32 %s11137_s21, 7 }
 0x5df   : > { %5059 = vst [vmem:[%s10830_s23 + $0x188] sm:$0xff] %v4995_v38  ;;  %s11150_s16 = scalar_lea.hbm %s12451_s30, %s5489_s11 }
 0x5e1   : > { %v5646_v18 = vpop.f32.mrf.mxu1 }
 0x5e2   : > { %v4486_v56 = vadd.f32 %v5646_v18, %v10790_v28 }
 0x5e3   : > { %v4477_v37 = vpop.f32.mrf.mxu1 }
 0x5e4   : > { %v4936_v54 = vadd.f32 %v6628_v39, %v4486_v56  ;;  %v4478_v1 = vadd.f32 %v10790_v28, %v4477_v37 }
 0x5e5   : > { %v5647_v35 = vpop.f32.mrf.mxu1 }
 0x5e6   : > { %v5000_v6 = vmul.f32 0.70710677, %v4936_v54  ;;  %v4934_v5 = vadd.f32 %v6629_v19, %v4478_v1  ;;  %v4489_v63 = vadd.f32 %v5647_v35, %v10790_v28 }
 0x5e7   : > { %v4480_v30 = vpop.f32.mrf.mxu1 }
 0x5e8   : > { %5064 = vst [vmem:[%s10830_s23 + $0x1b0] sm:$0xff] %v5000_v6  ;;  %v4998_v25 = vmul.f32 0.70710677, %v4934_v5  ;;  %v4937_v21 = vadd.f32 %v6630_v11, %v4489_v63  ;;  %v4481_v22 = vadd.f32 %v10790_v28, %v4480_v30 }
 0x5e9   : > { %v5650_v34 = vpop.f32.mrf.mxu1 }
 0x5ea   : > { %5062 = vst [vmem:[%s10830_s23 + $0x1a0] sm:$0xff] %v4998_v25  ;;  %v5001_v53 = vmul.f32 0.70710677, %v4937_v21  ;;  %v4935_v59 = vadd.f32 %v6631_v51, %v4481_v22  ;;  %v4502_v60 = vadd.f32 %v5650_v34, %v10790_v28 }
 0x5eb   : > { %v4493_v0 = vpop.f32.mrf.mxu1 }
 0x5ec   : > { %5065 = vst [vmem:[%s10830_s23 + $0x1b8] sm:$0xff] %v5001_v53  ;;  %v4999_v47 = vmul.f32 0.70710677, %v4935_v59  ;;  %v4940_v49 = vadd.f32 %v6632_v61, %v4502_v60  ;;  %v4494_v8 = vadd.f32 %v10790_v28, %v4493_v0 }
 0x5ed   : > { %v5651_v52 = vpop.f32.mrf.mxu1 }
 0x5ee   : > { %5063 = vst [vmem:[%s10830_s23 + $0x1a8] sm:$0xff] %v4999_v47  ;;  %v5004_v12 = vmul.f32 0.70710677, %v4940_v49  ;;  %v4938_v20 = vadd.f32 %v6633_v3, %v4494_v8  ;;  %v4505_v26 = vadd.f32 %v5651_v52, %v10790_v28 }
 0x5ef   : > { %v4496_v2 = vpop.f32.mrf.mxu1 }
 0x5f0   : > { %5068 = vst [vmem:[%s10830_s23 + $0x1d0] sm:$0xff] %v5004_v12  ;;  %v5002_v4 = vmul.f32 0.70710677, %v4938_v20  ;;  %v4941_v23 = vadd.f32 %v6634_v15, %v4505_v26  ;;  %v4497_v50 = vadd.f32 %v10790_v28, %v4496_v2 }
 0x5f1   : > { %v5654_v14 = vpop.f32.mrf.mxu1 }
 0x5f2   : > { %5066 = vst [vmem:[%s10830_s23 + $0x1c0] sm:$0xff] %v5002_v4  ;;  %v5005_v62 = vmul.f32 0.70710677, %v4941_v23  ;;  %v4939_v36 = vadd.f32 %v6635_v24, %v4497_v50  ;;  %v4518_v57 = vadd.f32 %v5654_v14, %v10790_v28 }
 0x5f3   : > { %v4509_v10 = vpop.f32.mrf.mxu1 }
 0x5f4   : > { %5069 = vst [vmem:[%s10830_s23 + $0x1d8] sm:$0xff] %v5005_v62  ;;  %v5003_v32 = vmul.f32 0.70710677, %v4939_v36  ;;  %v4944_v27 = vadd.f32 %v6636_v16, %v4518_v57  ;;  %v4510_v42 = vadd.f32 %v6637_v58, %v4509_v10 }
 0x5f5   : > { %v5655_v17 = vpop.f32.mrf.mxu1 }
 0x5f6   : > { %5067 = vst [vmem:[%s10830_s23 + $0x1c8] sm:$0xff] %v5003_v32  ;;  %v5008_v48 = vmul.f32 0.70710677, %v4944_v27  ;;  %v4942_v28 = vadd.f32 %v6638_v13, %v4510_v42  ;;  %v4521_v29 = vadd.f32 %v6637_v58, %v5655_v17 }
 0x5f7   : > { %v4512_v44 = vpop.f32.mrf.mxu1 }
 0x5f8   : > { %5072 = vst [vmem:[%s10830_s23 + $0x1f0] sm:$0xff] %v5008_v48  ;;  %v5006_v45 = vmul.f32 0.70710677, %v4942_v28  ;;  %v4945_v41 = vadd.f32 %v6639_v33, %v4521_v29  ;;  %v4513_v7 = vadd.f32 %v6637_v58, %v4512_v44 }
 0x5f9   : > { %v5674_v43 = vpop.f32.mrf.mxu1 }
 0x5fa   : > { %5070 = vst [vmem:[%s10830_s23 + $0x1e0] sm:$0xff] %v5006_v45  ;;  %v5009_v55 = vmul.f32 0.70710677, %v4945_v41  ;;  %v4943_v46 = vadd.f32 %v6640_v9, %v4513_v7  ;;  %v4636_v31 = vadd.f32 %v5674_v43, %v11121_v40 }
 0x5fb   : > { %v4627_v38 = vpop.f32.mrf.mxu1 }
 0x5fc   : > { %5073 = vst [vmem:[%s10830_s23 + $0x1f8] sm:$0xff] %v5009_v55  ;;  %v5007_v18 = vmul.f32 0.70710677, %v4943_v46  ;;  %5076 = vst [vmem:[%s11133_s2 + $0x10] sm:$0xff] %v4636_v31  ;;  %v4628_v56 = vadd.f32 %v11121_v40, %v4627_v38 }
 0x5fd   : > { %v5675_v37 = vpop.f32.mrf.mxu1 }
 0x5fe   : > { %5071 = vst [vmem:[%s10830_s23 + $0x1e8] sm:$0xff] %v5007_v18  ;;  %5074 = vst [vmem:[%s11133_s2] sm:$0xff] %v4628_v56  ;;  %v4639_v39 = vadd.f32 %v5675_v37, %v11121_v40  ;;  %s6807_s23 = scalar_lea.vmem %s6806_s27, 16384 }
 0x5ff   : > { %v4630_v54 = vpop.f32.mrf.mxu1  ;;  %p6809_p6 = scmp.lt.s32.totalorder %s6807_s23, %s6801_s25 }
 0x601   : > { %p6810_p12 = por %p6809_p6, %p6808_p10 }
 0x603   : > { %p6811_p2 = pnand %p6810_p12, %p6804_p1 }
 0x605   : > { %6814 = shalt.err (!%p6811_p2)
}
 0x606   : > { %s6815_s5 = scalar_lea.hbm %s11150_s16, 8192  ;;  %s6819_s13 = scalar_lea.hbm %s12452_s19, 32768 }
 0x607   : > { %p6816_p4 = scmp.ne.s32.totalorder %s11150_s16, %s6815_s5  ;;  %p6820_p8 = scmp.lt.s32.totalorder %s11150_s16, %s12452_s19 }
 0x608   : > { %p6821_p9 = scmp.lt.s32.totalorder %s6819_s13, %s6815_s5 }
 0x609   : > { %p6817_p3 = pnand %p6816_p4, %p7169_p13 }
 0x60a   : > { %p6822_p7 = por %p6821_p9, %p6820_p8 }
 0x60b   : > { %p6818_p5 = pneg %p6817_p3 }
 0x60d   : > { %p6823_p0 = pnand %p6822_p7, %p6818_p5 }
 0x60f   : > { %6826 = shalt.err (!%p6823_p0)
}
 0x610   : > { %s6981_s30 = smov 128   ;;  %s6982_s25 = smov 8   ;;  %5077 = vst [vmem:[%s11133_s2 + $0x18] sm:$0xff] %v4639_v39  ;;  %v4631_v1 = vadd.f32 %v11121_v40, %v4630_v54  ;;  %v5678_v35 = vpop.f32.mrf.mxu1 }
 0x611   : > { %5756 = dma.vmem_to_hbm [thread:$0]  (%p7169_p13), %s11139_s24, 8192, %s11150_s16, %s5139_s22, %s6981_s30, %s6981_s30, %s6982_s25   ;;  %v4652_v6 = vadd.f32 %v5678_v35, %v11121_v40 }
 0x612   : > { %5075 = vst [vmem:[%s11133_s2 + $0x8] sm:$0xff] %v4631_v1  ;;  %v4643_v19 = vpop.f32.mrf.mxu1  ;;  %s5177_s24 = sshll.u32 %s11133_s2, 4  ;;  %s12453_s18 = sld [smem:[#allocation140_spill]]  ;;  %s11308_s24 = int_to_ptr.vmem [resolvable:$true] %s5177_s24 }
 0x613   : > { %5080 = vst [vmem:[%s11133_s2 + $0x30] sm:$0xff] %v4652_v6  ;;  %v4644_v5 = vadd.f32 %v11121_v40, %v4643_v19  ;;  %s5144_s23 = scalar_lea.sflag [#allocation15], %s7253_s8  ;;  %s6827_s5 = scalar_lea.vmem %s11308_s24, 8192 }
 0x614   : > { %v5679_v63 = vpop.f32.mrf.mxu1  ;;  %p6828_p11 = scmp.ne.s32.totalorder %s11308_s24, %s6827_s5  ;;  %s6983_s12 = smov [#allocation14]  }
 0x615   : > { %5078 = vst [vmem:[%s11133_s2 + $0x20] sm:$0xff] %v4644_v5  ;;  %v4655_v30 = vadd.f32 %v5679_v63, %v11121_v40  ;;  %s6831_s20 = sshll.u32 %s6983_s12, 4  ;;  %s6832_s20 = int_to_ptr.vmem [resolvable:$false] %s6831_s20 }
 0x616   : > { %v4646_v25 = vpop.f32.mrf.mxu1  ;;  %p6829_p1 = pnand %p6828_p11, %p7169_p13  ;;  %s6833_s21 = scalar_lea.vmem %s6832_s20, 16384 }
 0x617   : > { %5081 = vst [vmem:[%s11133_s2 + $0x38] sm:$0xff] %v4655_v30  ;;  %v4647_v11 = vadd.f32 %v11121_v40, %v4646_v25  ;;  %p6834_p6 = scmp.lt.s32.totalorder %s11308_s24, %s6832_s20  ;;  %p6835_p12 = scmp.lt.s32.totalorder %s6833_s21, %s6827_s5 }
 0x618   : > { %v5682_v21 = vpop.f32.mrf.mxu1  ;;  %s11306_s27 = scalar_lea.hbm %s12453_s18, %s5489_s11  ;;  %p6830_p10 = pneg %p6829_p1 }
 0x619   : > { %5079 = vst [vmem:[%s11133_s2 + $0x28] sm:$0xff] %v4647_v11  ;;  %v4668_v22 = vadd.f32 %v5682_v21, %v11121_v40  ;;  %p6836_p2 = por %p6835_p12, %p6834_p6 }
 0x61a   : > { %v4659_v34 = vpop.f32.mrf.mxu1 }
 0x61b   : > { %5084 = vst [vmem:[%s11133_s2 + $0x50] sm:$0xff] %v4668_v22  ;;  %v4660_v53 = vadd.f32 %v11121_v40, %v4659_v34  ;;  %p6837_p4 = pnand %p6836_p2, %p6830_p10 }
 0x61c   : > { %v5683_v51 = vpop.f32.mrf.mxu1 }
 0x61d   : > { %5082 = vst [vmem:[%s11133_s2 + $0x40] sm:$0xff] %v4660_v53  ;;  %v4671_v59 = vadd.f32 %v5683_v51, %v11121_v40 }
 0x61e   : > { %v4662_v60 = vpop.f32.mrf.mxu1 }
 0x61f   : > { %5085 = vst [vmem:[%s11133_s2 + $0x58] sm:$0xff] %v4671_v59  ;;  %v4663_v0 = vadd.f32 %v11121_v40, %v4662_v60 }
 0x620   : > { %v5686_v47 = vpop.f32.mrf.mxu1 }
 0x621   : > { %5083 = vst [vmem:[%s11133_s2 + $0x48] sm:$0xff] %v4663_v0  ;;  %v4684_v61 = vadd.f32 %v5686_v47, %v11121_v40 }
 0x622   : > { %v4675_v49 = vpop.f32.mrf.mxu1 }
 0x623   : > { %5088 = vst [vmem:[%s11133_s2 + $0x70] sm:$0xff] %v4684_v61  ;;  %v4676_v8 = vadd.f32 %v11121_v40, %v4675_v49 }
 0x624   : > { %v5687_v52 = vpop.f32.mrf.mxu1 }
 0x625   : > { %5086 = vst [vmem:[%s11133_s2 + $0x60] sm:$0xff] %v4676_v8  ;;  %v4687_v12 = vadd.f32 %v5687_v52, %v11121_v40 }
 0x626   : > { %v4678_v3 = vpop.f32.mrf.mxu1 }
 0x627   : > { %5089 = vst [vmem:[%s11133_s2 + $0x78] sm:$0xff] %v4687_v12  ;;  %v4679_v20 = vadd.f32 %v11121_v40, %v4678_v3 }
 0x628   : > { %v5690_v26 = vpop.f32.mrf.mxu1 }
 0x629   : > { %5087 = vst [vmem:[%s11133_s2 + $0x68] sm:$0xff] %v4679_v20  ;;  %v4700_v2 = vadd.f32 %v5690_v26, %v11121_v40 }
 0x62a   : > { %v4691_v4 = vpop.f32.mrf.mxu1 }
 0x62b   : > { %5092 = vst [vmem:[%s11133_s2 + $0x90] sm:$0xff] %v4700_v2  ;;  %v4692_v15 = vadd.f32 %v11121_v40, %v4691_v4 }
 0x62c   : > { %v5691_v23 = vpop.f32.mrf.mxu1 }
 0x62d   : > { %5090 = vst [vmem:[%s11133_s2 + $0x80] sm:$0xff] %v4692_v15  ;;  %v4703_v50 = vadd.f32 %v5691_v23, %v11121_v40 }
 0x62e   : > { %v4694_v14 = vpop.f32.mrf.mxu1 }
 0x62f   : > { %5093 = vst [vmem:[%s11133_s2 + $0x98] sm:$0xff] %v4703_v50  ;;  %v4695_v62 = vadd.f32 %v11121_v40, %v4694_v14 }
 0x630   : > { %v5694_v24 = vpop.f32.mrf.mxu1 }
 0x631   : > { %5091 = vst [vmem:[%s11133_s2 + $0x88] sm:$0xff] %v4695_v62  ;;  %v4716_v36 = vadd.f32 %v5694_v24, %v11121_v40 }
 0x632   : > { %v4707_v57 = vpop.f32.mrf.mxu1 }
 0x633   : > { %5096 = vst [vmem:[%s11133_s2 + $0xb0] sm:$0xff] %v4716_v36  ;;  %v4708_v10 = vadd.f32 %v11121_v40, %v4707_v57 }
 0x634   : > { %v5695_v32 = vpop.f32.mrf.mxu1 }
 0x635   : > { %5094 = vst [vmem:[%s11133_s2 + $0xa0] sm:$0xff] %v4708_v10  ;;  %v4719_v16 = vadd.f32 %v5695_v32, %v11121_v40 }
 0x636   : > { %v4710_v27 = vpop.f32.mrf.mxu1 }
 0x637   : > { %5097 = vst [vmem:[%s11133_s2 + $0xb8] sm:$0xff] %v4719_v16  ;;  %v4711_v58 = vadd.f32 %v11121_v40, %v4710_v27 }
 0x638   : > { %v5698_v42 = vpop.f32.mrf.mxu1 }
 0x639   : > { %5095 = vst [vmem:[%s11133_s2 + $0xa8] sm:$0xff] %v4711_v58  ;;  %v4732_v17 = vadd.f32 %v5698_v42, %v11121_v40 }
 0x63a   : > { %v4723_v48 = vpop.f32.mrf.mxu1 }
 0x63b   : > { %5100 = vst [vmem:[%s11133_s2 + $0xd0] sm:$0xff] %v4732_v17  ;;  %v4724_v13 = vadd.f32 %v11121_v40, %v4723_v48 }
 0x63c   : > { %v5699_v28 = vpop.f32.mrf.mxu1 }
 0x63d   : > { %5098 = vst [vmem:[%s11133_s2 + $0xc0] sm:$0xff] %v4724_v13  ;;  %v4735_v29 = vadd.f32 %v5699_v28, %v11121_v40 }
 0x63e   : > { %v4726_v44 = vpop.f32.mrf.mxu1 }
 0x63f   : > { %5101 = vst [vmem:[%s11133_s2 + $0xd8] sm:$0xff] %v4735_v29  ;;  %v4727_v45 = vadd.f32 %v11121_v40, %v4726_v44 }
 0x640   : > { %v5702_v33 = vpop.f32.mrf.mxu1 }
 0x641   : > { %5099 = vst [vmem:[%s11133_s2 + $0xc8] sm:$0xff] %v4727_v45  ;;  %v4748_v41 = vadd.f32 %v5702_v33, %v11121_v40 }
 0x642   : > { %v4739_v7 = vpop.f32.mrf.mxu1 }
 0x643   : > { %5104 = vst [vmem:[%s11133_s2 + $0xf0] sm:$0xff] %v4748_v41  ;;  %v4740_v43 = vadd.f32 %v11121_v40, %v4739_v7 }
 0x644   : > { %v5703_v55 = vpop.f32.mrf.mxu1 }
 0x645   : > { %5102 = vst [vmem:[%s11133_s2 + $0xe0] sm:$0xff] %v4740_v43  ;;  %v4751_v9 = vadd.f32 %v5703_v55, %v11121_v40 }
 0x646   : > { %v4742_v46 = vpop.f32.mrf.mxu1 }
 0x647   : > { %5105 = vst [vmem:[%s11133_s2 + $0xf8] sm:$0xff] %v4751_v9  ;;  %v4743_v31 = vadd.f32 %v11121_v40, %v4742_v46 }
 0x648   : > { %v5706_v38 = vpop.f32.mrf.mxu1 }
 0x649   : > { %5103 = vst [vmem:[%s11133_s2 + $0xe8] sm:$0xff] %v4743_v31  ;;  %v4764_v18 = vadd.f32 %v5706_v38, %v11121_v40 }
 0x64a   : > { %v4755_v56 = vpop.f32.mrf.mxu1 }
 0x64b   : > { %5108 = vst [vmem:[%s11133_s2 + $0x110] sm:$0xff] %v4764_v18  ;;  %v4756_v37 = vadd.f32 %v11121_v40, %v4755_v56 }
 0x64c   : > { %v5707_v39 = vpop.f32.mrf.mxu1 }
 0x64d   : > { %5106 = vst [vmem:[%s11133_s2 + $0x100] sm:$0xff] %v4756_v37  ;;  %v4767_v54 = vadd.f32 %v5707_v39, %v11121_v40 }
 0x64e   : > { %v4758_v1 = vpop.f32.mrf.mxu1 }
 0x64f   : > { %5109 = vst [vmem:[%s11133_s2 + $0x118] sm:$0xff] %v4767_v54  ;;  %v4759_v35 = vadd.f32 %v11121_v40, %v4758_v1 }
 0x650   : > { %v5710_v6 = vpop.f32.mrf.mxu1 }
 0x651   : > { %5107 = vst [vmem:[%s11133_s2 + $0x108] sm:$0xff] %v4759_v35  ;;  %v4780_v19 = vadd.f32 %v5710_v6, %v11121_v40 }
 0x652   : > { %v4771_v5 = vpop.f32.mrf.mxu1 }
 0x653   : > { %5112 = vst [vmem:[%s11133_s2 + $0x130] sm:$0xff] %v4780_v19  ;;  %v4772_v63 = vadd.f32 %v11121_v40, %v4771_v5 }
 0x654   : > { %v5711_v30 = vpop.f32.mrf.mxu1 }
 0x655   : > { %5110 = vst [vmem:[%s11133_s2 + $0x120] sm:$0xff] %v4772_v63  ;;  %v4783_v25 = vadd.f32 %v5711_v30, %v11121_v40 }
 0x656   : > { %v4774_v11 = vpop.f32.mrf.mxu1 }
 0x657   : > { %5113 = vst [vmem:[%s11133_s2 + $0x138] sm:$0xff] %v4783_v25  ;;  %v4775_v21 = vadd.f32 %v11121_v40, %v4774_v11 }
 0x658   : > { %v5714_v22 = vpop.f32.mrf.mxu1 }
 0x659   : > { %5111 = vst [vmem:[%s11133_s2 + $0x128] sm:$0xff] %v4775_v21  ;;  %v4796_v34 = vadd.f32 %v5714_v22, %v11121_v40 }
 0x65a   : > { %v4787_v53 = vpop.f32.mrf.mxu1 }
 0x65b   : > { %5116 = vst [vmem:[%s11133_s2 + $0x150] sm:$0xff] %v4796_v34  ;;  %v4788_v51 = vadd.f32 %v11121_v40, %v4787_v53 }
 0x65c   : > { %v5715_v59 = vpop.f32.mrf.mxu1 }
 0x65d   : > { %5114 = vst [vmem:[%s11133_s2 + $0x140] sm:$0xff] %v4788_v51  ;;  %v4799_v60 = vadd.f32 %v5715_v59, %v11121_v40 }
 0x65e   : > { %v4790_v0 = vpop.f32.mrf.mxu1 }
 0x65f   : > { %5117 = vst [vmem:[%s11133_s2 + $0x158] sm:$0xff] %v4799_v60  ;;  %v4791_v47 = vadd.f32 %v11121_v40, %v4790_v0 }
 0x660   : > { %v5718_v61 = vpop.f32.mrf.mxu1 }
 0x661   : > { %5115 = vst [vmem:[%s11133_s2 + $0x148] sm:$0xff] %v4791_v47  ;;  %v4812_v49 = vadd.f32 %v5718_v61, %v11121_v40 }
 0x662   : > { %v4803_v8 = vpop.f32.mrf.mxu1 }
 0x663   : > { %5120 = vst [vmem:[%s11133_s2 + $0x170] sm:$0xff] %v4812_v49  ;;  %v4804_v52 = vadd.f32 %v11121_v40, %v4803_v8 }
 0x664   : > { %v5719_v12 = vpop.f32.mrf.mxu1 }
 0x665   : > { %5118 = vst [vmem:[%s11133_s2 + $0x160] sm:$0xff] %v4804_v52  ;;  %v4815_v3 = vadd.f32 %v5719_v12, %v11121_v40 }
 0x666   : > { %v4806_v20 = vpop.f32.mrf.mxu1 }
 0x667   : > { %5121 = vst [vmem:[%s11133_s2 + $0x178] sm:$0xff] %v4815_v3  ;;  %v4807_v26 = vadd.f32 %v11121_v40, %v4806_v20 }
 0x668   : > { %v5722_v2 = vpop.f32.mrf.mxu1 }
 0x669   : > { %5119 = vst [vmem:[%s11133_s2 + $0x168] sm:$0xff] %v4807_v26  ;;  %v4828_v4 = vadd.f32 %v5722_v2, %v11121_v40 }
 0x66a   : > { %v4819_v15 = vpop.f32.mrf.mxu1 }
 0x66b   : > { %5124 = vst [vmem:[%s11133_s2 + $0x190] sm:$0xff] %v4828_v4  ;;  %v4820_v23 = vadd.f32 %v11121_v40, %v4819_v15 }
 0x66c   : > { %v5723_v50 = vpop.f32.mrf.mxu1 }
 0x66d   : > { %5122 = vst [vmem:[%s11133_s2 + $0x180] sm:$0xff] %v4820_v23  ;;  %v4831_v14 = vadd.f32 %v5723_v50, %v11121_v40 }
 0x66e   : > { %v4822_v62 = vpop.f32.mrf.mxu1 }
 0x66f   : > { %5125 = vst [vmem:[%s11133_s2 + $0x198] sm:$0xff] %v4831_v14  ;;  %v4823_v24 = vadd.f32 %v11121_v40, %v4822_v62 }
 0x670   : > { %v5726_v36 = vpop.f32.mrf.mxu1 }
 0x671   : > { %5123 = vst [vmem:[%s11133_s2 + $0x188] sm:$0xff] %v4823_v24  ;;  %v4844_v57 = vadd.f32 %v5726_v36, %v11121_v40 }
 0x672   : > { %v4835_v10 = vpop.f32.mrf.mxu1 }
 0x673   : > { %5128 = vst [vmem:[%s11133_s2 + $0x1b0] sm:$0xff] %v4844_v57  ;;  %v4836_v32 = vadd.f32 %v11121_v40, %v4835_v10 }
 0x674   : > { %v5727_v16 = vpop.f32.mrf.mxu1 }
 0x675   : > { %5126 = vst [vmem:[%s11133_s2 + $0x1a0] sm:$0xff] %v4836_v32  ;;  %v4847_v27 = vadd.f32 %v5727_v16, %v11121_v40 }
 0x676   : > { %v4838_v58 = vpop.f32.mrf.mxu1 }
 0x677   : > { %5129 = vst [vmem:[%s11133_s2 + $0x1b8] sm:$0xff] %v4847_v27  ;;  %v4839_v42 = vadd.f32 %v11121_v40, %v4838_v58 }
 0x678   : > { %v5730_v17 = vpop.f32.mrf.mxu1 }
 0x679   : > { %5127 = vst [vmem:[%s11133_s2 + $0x1a8] sm:$0xff] %v4839_v42  ;;  %v4860_v48 = vadd.f32 %v5730_v17, %v11121_v40 }
 0x67a   : > { %v4851_v13 = vpop.f32.mrf.mxu1 }
 0x67b   : > { %5132 = vst [vmem:[%s11133_s2 + $0x1d0] sm:$0xff] %v4860_v48  ;;  %v4852_v28 = vadd.f32 %v11121_v40, %v4851_v13 }
 0x67c   : > { %v5731_v29 = vpop.f32.mrf.mxu1 }
 0x67d   : > { %5130 = vst [vmem:[%s11133_s2 + $0x1c0] sm:$0xff] %v4852_v28  ;;  %v4863_v44 = vadd.f32 %v5731_v29, %v11121_v40 }
 0x67e   : > { %v4854_v45 = vpop.f32.mrf.mxu1 }
 0x67f   : > { %5133 = vst [vmem:[%s11133_s2 + $0x1d8] sm:$0xff] %v4863_v44  ;;  %v4855_v33 = vadd.f32 %v11121_v40, %v4854_v45 }
 0x680   : > { %v5734_v41 = vpop.f32.mrf.mxu1 }
 0x681   : > { %5131 = vst [vmem:[%s11133_s2 + $0x1c8] sm:$0xff] %v4855_v33  ;;  %v4876_v7 = vadd.f32 %v5734_v41, %v11121_v40 }
 0x682   : > { %v4867_v43 = vpop.f32.mrf.mxu1 }
 0x683   : > { %5136 = vst [vmem:[%s11133_s2 + $0x1f0] sm:$0xff] %v4876_v7  ;;  %v4868_v55 = vadd.f32 %v11121_v40, %v4867_v43 }
 0x684   : > { %v5735_v9 = vpop.f32.mrf.mxu1 }
 0x685   : > { %5134 = vst [vmem:[%s11133_s2 + $0x1e0] sm:$0xff] %v4868_v55  ;;  %v4879_v46 = vadd.f32 %v5735_v9, %v11121_v40 }
 0x686   : > { %v4870_v31 = vpop.f32.mrf.mxu1 }
 0x687   : > { %5137 = vst [vmem:[%s11133_s2 + $0x1f8] sm:$0xff] %v4879_v46  ;;  %v4871_v38 = vadd.f32 %v11121_v40, %v4870_v31 }
 0x689   : > { %5135 = vst [vmem:[%s11133_s2 + $0x1e8] sm:$0xff] %v4871_v38 }
 0x68a   : > { %6840 = shalt.err (!%p6837_p4)
}
 0x68b   : > { %s6841_s2 = scalar_lea.hbm %s11306_s27, 8192  ;;  %s6845_s13 = scalar_lea.hbm %s12453_s18, 32768 }
 0x68c   : > { %p6842_p3 = scmp.ne.s32.totalorder %s11306_s27, %s6841_s2  ;;  %p6846_p9 = scmp.lt.s32.totalorder %s11306_s27, %s12453_s18 }
 0x68d   : > { %p6847_p7 = scmp.lt.s32.totalorder %s6845_s13, %s6841_s2 }
 0x68e   : > { %p6843_p5 = pnand %p6842_p3, %p7169_p13 }
 0x68f   : > { %p6848_p0 = por %p6847_p7, %p6846_p9 }
 0x690   : > { %p6844_p8 = pneg %p6843_p5 }
 0x692   : > { %p6849_p11 = pnand %p6848_p0, %p6844_p8 }
 0x694   : > { %6852 = shalt.err (!%p6849_p11)
}
 0x695   : > { %5757 = dma.vmem_to_hbm [thread:$0]  (%p7169_p13), %s11308_s24, 8192, %s11306_s27, %s5144_s23, %s6981_s30, %s6981_s30, %s6982_s25  }
 0x696 PF: > { %s12454_s16 = sld [smem:[#allocation23_spill]]  ;;  %p5796_p1 = scmp.ge.s32.totalorder %s6967_s15, 2 }
 0x697   : > { %s12455_s22 = sld [smem:[#allocation29_spill]] }
 0x69c   : > { %s5192_s5 = sand.u32 1, %s12454_s16  }
 0x69d   : > { %p12456_p10 = scmp.ne.s32.totalorder %s12455_s22, 0  ;;  %s5193_s12 = scalar_lea.sflag [#allocation4], %s5192_s5 }
 0x69f   : > { %p5781_p6 = pnand %p5796_p1, %p12456_p10 }
 0x6a1   : > { %p5782_p12 = pneg %p5781_p6 }
 0x6a3   : > { %6918 = dma.done.wait (%p5782_p12), %s5193_s12, 8192  }
 0x6a4   : > { %6920 = vsyncadd (%p5782_p12), %s5193_s12, 4294959104  ;;  %s5202_s20 = scalar_lea.sflag [#allocation15], %s5192_s5 }
 0x6a5   : > { %6922 = dma.done.wait (%p5782_p12), %s5202_s20, 8192  }
 0x6a6   : > { %6924 = vsyncadd (%p5782_p12), %s5202_s20, 4294959104  ;;  %s33_s15 = sadd.s32 1, %s6967_s15   ;;  %s12457_s11 = sld [smem:[#allocation25_spill]] }
 0x6a7   : > { %p30_p2 = scmp.ge.s32.totalorder %s33_s15, 6   ;;  %s12458_s13 = sld [smem:[#allocation26_spill]] }
 0x6a8   : > { %s12459_s17 = sld [smem:[#allocation28_spill]]  ;;  %s12460_s27 = smov %s6931_s28 }
 0x6a9   : > { %s12461_s28 = smov %s6935_s29  ;;  %s12462_s29 = smov %s7222_s26 }
 0x6aa   : > { %s12463_s30 = smov %s6943_s9  ;;  %s12464_s9 = smov %s6947_s10 }
 0x6ab   : > { %s12465_s10 = smov %s7194_s3  ;;  %s12466_s12 = smov %s6963_s14 }
 0x6ac   :  { %32 = sbr.rel (!%p30_p2) target bundleno = 22 (0x16), region = 142 }
 0x6ae   : > { %s12467_s14 = smov %s12459_s17 }
 0x6b1   :  { %5207 = vsyncpa [#allocation3], 1 }
 0x6b2   :  { %5209 = vsyncpa [#allocation3 + $0x1], 1 }
 0x6b3   :  { %5210 = vsyncpa [#allocation6], 1 }
 0x6b4   :  { %5212 = vsyncpa [#allocation6 + $0x1], 1 }
 0x6b5   :  { %5213 = vsyncpa [#allocation9], 1 }
 0x6b6   :  { %5214 = vsyncpa [#allocation12], 1 }
 0x6b7   :  { %5215 = vsyncpa [#allocation4], 1 }
 0x6b8   :  { %5217 = vsyncpa [#allocation4 + $0x1], 1 }
 0x6b9   :  { %5218 = vsyncpa [#allocation15], 1 }
 0x6ba   :  { %5220 = vsyncpa [#allocation15 + $0x1], 1 }

</bundles_post_ra>
